<compile_context>
chip_gen: v7x
topology: tpu7x:2x2x1
jax: 0.10.0
libtpu: 0.0.40
codegen_flags: <defaults>
</compile_context>

<pallas_src>
import functools

import jax
import jax.numpy as jnp
from jax import lax
from jax.experimental import pallas as pl
from jax.experimental.pallas import tpu as pltpu


# ---------------------------------------------------------------------------
# Shared helpers
# ---------------------------------------------------------------------------

def _vmem_limit(est_bytes):
    """Explicit scoped-VMEM limit: 2x headroom over the estimate, clamped to
    [32 MiB, 64 MiB] (>= default scoped limit everywhere, <= v7x physical)."""
    return int(min(max(2 * est_bytes, 32 << 20), 64 << 20))


def _pick_batch_tile(batch, row_bytes, target_bytes=4 << 20, min_steps=4):
    """`batch` is a multiple of 8.  Grow the batch tile (multiples of 8 that
    divide `batch`) until it reaches ~target_bytes or the grid would drop
    below `min_steps` (pipelining + v7x 2-TC sharding want several steps;
    bump min_steps to 8 if tuning specifically for v7x)."""
    bt = 8
    while (batch % (bt * 2) == 0
           and (bt * 2) * row_bytes <= target_bytes
           and batch // (bt * 2) >= min_steps):
        bt *= 2
    return bt


# ---------------------------------------------------------------------------
# Path 1: HW < 128  ->  lane-dense (B, C*HW) view + MXU block-diag masks
# ---------------------------------------------------------------------------

def _block_diag_mask(hw, channels, dtype, pool):
    """0/1 block-diagonal mask built from iota compares (no int division,
    no HBM traffic).  pool=True -> (C*HW, C) with mask[r, c] = (r // HW == c);
    pool=False -> its (C, C*HW) transpose."""
    chw = channels * hw
    shape = (chw, channels) if pool else (channels, chw)
    pos_ax, ch_ax = (0, 1) if pool else (1, 0)
    pos = lax.broadcasted_iota(jnp.int32, shape, pos_ax)        # index into C*HW
    ch0 = lax.broadcasted_iota(jnp.int32, shape, ch_ax) * hw    # channel * HW
    hit = (pos >= ch0) & (pos < ch0 + hw)
    return jnp.where(hit, 1.0, 0.0).astype(dtype)


def _se_mxu_kernel(x_ref, wr_ref, br_ref, we_ref, be_ref, o_ref, *, hw, channels):
    # x_ref:  (bt, C*HW)  current batch tile, I/O dtype (f32 or bf16)
    # wr_ref: (C, C_rd)   reduce weight (transposed, 1/HW folded in), f32
    # br_ref: (1, C_rd)   reduce bias, f32
    # we_ref: (C_rd, C)   expand weight (transposed), f32
    # be_ref: (1, C)      expand bias, f32
    x = x_ref[...]                                                      # native dtype

    # Squeeze: per-channel sum as one MXU matmul against an in-kernel mask.
    # bf16 path: bf16 x bf16-ones with f32 accumulation == exact f32 sum.
    pool_mask = _block_diag_mask(hw, channels, x.dtype, pool=True)      # (C*HW, C)
    pooled = jnp.dot(x, pool_mask, preferred_element_type=jnp.float32)  # (bt, C)

    # Excite: tiny f32 matmuls (1/HW already folded into wr on the host).
    z = jnp.maximum(
        jnp.dot(pooled, wr_ref[...], preferred_element_type=jnp.float32)
        + br_ref[...], 0.0)                                             # (bt, C_rd)
    s = jax.nn.sigmoid(
        jnp.dot(z, we_ref[...], preferred_element_type=jnp.float32)
        + be_ref[...])                                                  # (bt, C)

    # Scale: broadcast s over HW via the transposed mask (MXU), in the I/O
    # dtype so the bf16 path never materialises an f32 copy of the tile.
    exp_mask = _block_diag_mask(hw, channels, x.dtype, pool=False)      # (C, C*HW)
    s_full = jnp.dot(s.astype(x.dtype), exp_mask,
                     preferred_element_type=x.dtype)                    # (bt, C*HW)
    o_ref[...] = (x * s_full).astype(o_ref.dtype)


def _se_block_mxu(x2, wr_t, br, we_t, be, hw, channels):
    B, CHW = x2.shape
    c_rd = wr_t.shape[1]
    itemsize = jnp.dtype(x2.dtype).itemsize
    bt = _pick_batch_tile(B, CHW * itemsize)

    tile_bytes = bt * CHW * itemsize
    mask_elems = CHW * channels
    # double-buffered in+out tiles, s_full temp, two masks + int32 iota temps.
    est = (5 * tile_bytes
           + 2 * mask_elems * itemsize
           + 2 * mask_elems * 4
           + (2 << 20))

    kernel = functools.partial(_se_mxu_kernel, hw=hw, channels=channels)
    return pl.pallas_call(
        kernel,
        out_shape=jax.ShapeDtypeStruct((B, CHW), x2.dtype),
        grid_spec=pltpu.PrefetchScalarGridSpec(
            num_scalar_prefetch=0,
            grid=(B // bt,),
            in_specs=[
                pl.BlockSpec((bt, CHW), lambda b: (b, 0)),        # x tile
                pl.BlockSpec((channels, c_rd), lambda b: (0, 0)), # reduce weight
                pl.BlockSpec((1, c_rd), lambda b: (0, 0)),        # reduce bias
                pl.BlockSpec((c_rd, channels), lambda b: (0, 0)), # expand weight
                pl.BlockSpec((1, channels), lambda b: (0, 0)),    # expand bias
            ],
            out_specs=pl.BlockSpec((bt, CHW), lambda b: (b, 0)),
        ),
        compiler_params=pltpu.CompilerParams(
            dimension_semantics=("parallel",),
            vmem_limit_bytes=_vmem_limit(est)),
    )(x2, wr_t, br, we_t, be)


# ---------------------------------------------------------------------------
# Path 2: HW >= 128  ->  per-image (C, HW) block, XLU lane reduce, no masks
# ---------------------------------------------------------------------------

def _se_img_kernel(x_ref, wr_ref, br_ref, we_ref, be_ref, o_ref):
    # x_ref:  (1, C, HW)  one image, I/O dtype
    # wr_ref: (C_rd, C)   reduce weight (torch layout, 1/HW folded in), f32
    # br_ref: (C_rd, 1)   reduce bias (column), f32
    # we_ref: (C, C_rd)   expand weight (torch layout), f32
    # be_ref: (C, 1)      expand bias (column), f32
    x = x_ref[0]                                                        # (C, HW)

    # Squeeze: per-channel sum over the lane dim (XLU), f32 accumulation.
    pooled = jnp.sum(x, axis=-1, keepdims=True, dtype=jnp.float32)      # (C, 1)

    # Excite on column vectors (keeps C on sublanes end-to-end, no relayouts).
    z = jnp.maximum(
        jnp.dot(wr_ref[...], pooled, preferred_element_type=jnp.float32)
        + br_ref[...], 0.0)                                             # (C_rd, 1)
    s = jax.nn.sigmoid(
        jnp.dot(we_ref[...], z, preferred_element_type=jnp.float32)
        + be_ref[...])                                                  # (C, 1)

    # Scale: sublane-broadcast multiply over HW lanes, in the I/O dtype.
    o_ref[0] = (x * s.astype(x.dtype)).astype(o_ref.dtype)


def _se_block_img(x3, wr, br_col, we, be_col):
    B, C, HW = x3.shape
    c_rd = wr.shape[0]
    est = 4 * C * HW * jnp.dtype(x3.dtype).itemsize + (2 << 20)
    return pl.pallas_call(
        _se_img_kernel,
        out_shape=jax.ShapeDtypeStruct((B, C, HW), x3.dtype),
        grid_spec=pltpu.PrefetchScalarGridSpec(
            num_scalar_prefetch=0,
            grid=(B,),
            in_specs=[
                pl.BlockSpec((1, C, HW), lambda b: (b, 0, 0)),    # one image
                pl.BlockSpec((c_rd, C), lambda b: (0, 0)),        # reduce weight
                pl.BlockSpec((c_rd, 1), lambda b: (0, 0)),        # reduce bias
                pl.BlockSpec((C, c_rd), lambda b: (0, 0)),        # expand weight
                pl.BlockSpec((C, 1), lambda b: (0, 0)),           # expand bias
            ],
            out_specs=pl.BlockSpec((1, C, HW), lambda b: (b, 0, 0)),
        ),
        compiler_params=pltpu.CompilerParams(
            dimension_semantics=("parallel",),
            vmem_limit_bytes=_vmem_limit(est)),
    )(x3, wr, br_col, we, be_col)


# ---------------------------------------------------------------------------
# Public wrapper
# ---------------------------------------------------------------------------

def se_block(x_nchw, w_reduce, b_reduce, w_expand, b_expand):
    """x_nchw: (B, C, H, W).  Conv weights in PyTorch 1x1 layout:
    w_reduce (C_rd, C), b_reduce (C_rd,), w_expand (C, C_rd), b_expand (C,)."""
    B, C, H, W = x_nchw.shape
    C_rd = w_reduce.shape[0]
    HW = H * W
    inv_hw = 1.0 / HW

    if HW >= 128:
        # Large spatial: per-image lane-reduce path (no C^2*HW masks).
        x3 = x_nchw.reshape(B, C, HW)                           # pure reshape of NCHW
        wr = (w_reduce * inv_hw).astype(jnp.float32)            # (C_rd, C), 1/HW folded
        brc = b_reduce.reshape(C_rd, 1).astype(jnp.float32)
        we = w_expand.astype(jnp.float32)                       # (C, C_rd)
        bec = b_expand.reshape(C, 1).astype(jnp.float32)
        out = _se_block_img(x3, wr, brc, we, bec)
        return out.reshape(B, C, H, W)

    # Small spatial: lane-dense (B, C*HW) view + MXU block-diag path.
    # Note: for very large C (C^2*HW mask too big for VMEM) one would switch
    # to channel-group tiling; not needed at MobileOne-style shapes.
    CHW = C * HW
    x2 = x_nchw.reshape(B, CHW)                                 # pure reshape of NCHW

    # Pad batch to a multiple of 8 so tiles stay (8,128)-legal and the grid
    # keeps multiple steps (instead of a single-step, un-pipelined call).
    B_pad = ((B + 7) // 8) * 8
    if B_pad != B:
        x2 = jnp.pad(x2, ((0, B_pad - B), (0, 0)))

    wr_t = (w_reduce.T * inv_hw).astype(jnp.float32)            # (C, C_rd), 1/HW folded
    br = b_reduce.reshape(1, C_rd).astype(jnp.float32)
    we_t = w_expand.T.astype(jnp.float32)                       # (C_rd, C)
    be = b_expand.reshape(1, C).astype(jnp.float32)

    out = _se_block_mxu(x2, wr_t, br, we_t, be, HW, C)
    if B_pad != B:
        out = out[:B]
    return out.reshape(B, C, H, W)


# ---------------------------------------------------------------------------
# Reference + tests
# ---------------------------------------------------------------------------

def se_block_ref(x, wr, br, we, be):
    """Pure-JAX reference matching the PyTorch forward (computed in f32)."""
    xf = x.astype(jnp.float32)
    pooled = jnp.mean(xf, axis=(2, 3))                          # (B, C)
    z = jnp.maximum(pooled @ wr.T + br, 0.0)                    # (B, C_rd)
    s = jax.nn.sigmoid(z @ we.T + be)                           # (B, C)
    return xf * s[:, :, None, None]


def _run_case(name, key, B, C, H, W, rd_ratio, dtype, atol, rtol):
    C_rd = max(1, int(C * rd_ratio))
    ks = jax.random.split(key, 5)
    x = jax.random.normal(ks[0], (B, C, H, W), dtype=jnp.float32).astype(dtype)
    wr = jax.random.normal(ks[1], (C_rd, C), dtype=jnp.float32) * 0.1
    br = jax.random.normal(ks[2], (C_rd,), dtype=jnp.float32) * 0.1
    we = jax.random.normal(ks[3], (C, C_rd), dtype=jnp.float32) * 0.1
    be = jax.random.normal(ks[4], (C,), dtype=jnp.float32) * 0.1

    out = jax.block_until_ready(se_block(x, wr, br, we, be))
    ref = se_block_ref(x, wr, br, we, be)
    assert out.shape == x.shape, name
    assert out.dtype == dtype, name
    assert jnp.allclose(out.astype(jnp.float32), ref, atol=atol, rtol=rtol), name


if __name__ == "__main__":
    root = jax.random.PRNGKey(0)
    keys = jax.random.split(root, 5)

    # SEBlock(in_channels=64, rd_ratio=0.0625) on an 8x8 feature map
    # (HW=64 < 128 -> lane-dense MXU path), f32 and bf16 I/O, plus a batch
    # that is not a multiple of 8 (exercises the padding fallback).
    _run_case("mxu_f32",  keys[0], 32, 64, 8, 8, 0.0625, jnp.float32,  1e-4, 1e-4)
    _run_case("mxu_bf16", keys[1], 32, 64, 8, 8, 0.0625, jnp.bfloat16, 2e-2, 2e-2)
    _run_case("mxu_pad",  keys[2],  5, 64, 8, 8, 0.0625, jnp.float32,  1e-4, 1e-4)

    # 16x16 feature map (HW=256 >= 128 -> per-image lane-reduce path).
    _run_case("img_f32",  keys[3],  4, 32, 16, 16, 0.125, jnp.float32,  1e-4, 1e-4)
    _run_case("img_bf16", keys[4],  4, 32, 16, 16, 0.125, jnp.bfloat16, 2e-2, 2e-2)

    print("KERNEL_OK")
</pallas_src>

<mosaic_0001>
module attributes {stable_mosaic.version = 11 : i64} {
  func.func @_se_mxu_kernel(%arg0: i32, %arg1: memref<8x4096xf32, #tpu.memory_space<vmem>>, %arg2: memref<64x4xf32, #tpu.memory_space<vmem>>, %arg3: memref<1x4xf32, #tpu.memory_space<vmem>>, %arg4: memref<4x64xf32, #tpu.memory_space<vmem>>, %arg5: memref<1x64xf32, #tpu.memory_space<vmem>>, %arg6: memref<8x4096xf32, #tpu.memory_space<vmem>>) attributes {dimension_semantics = [#tpu.dimension_semantics<parallel>], iteration_bounds = array<i64: 4>, scalar_prefetch = 0 : i64, scratch_operands = 0 : i64, tpu.core_type = #tpu.core_type<tc>, window_params = [{transform_indices = @transform_0, window_bounds = array<i64: 8, 4096>}, {pipeline_mode = #tpu.pipeline_mode<synchronous>, transform_indices = @transform_1, window_bounds = array<i64: 64, 4>}, {pipeline_mode = #tpu.pipeline_mode<synchronous>, transform_indices = @transform_2, window_bounds = array<i64: 1, 4>}, {pipeline_mode = #tpu.pipeline_mode<synchronous>, transform_indices = @transform_3, window_bounds = array<i64: 4, 64>}, {pipeline_mode = #tpu.pipeline_mode<synchronous>, transform_indices = @transform_4, window_bounds = array<i64: 1, 64>}, {transform_indices = @transform_5, window_bounds = array<i64: 8, 4096>}]} {
    %c0 = arith.constant 0 : index
    %c0_0 = arith.constant 0 : index
    %0 = vector.load %arg1[%c0, %c0_0] : memref<8x4096xf32, #tpu.memory_space<vmem>>, vector<8x4096xf32>
    %1 = tpu.iota {dimensions = array<i32: 0>} : vector<4096x64xi32>
    %2 = tpu.iota {dimensions = array<i32: 1>} : vector<4096x64xi32>
    %c64_i32 = arith.constant 64 : i32
    %3 = vector.broadcast %c64_i32 : i32 to vector<4096x64xi32>
    %4 = arith.muli %2, %3 : vector<4096x64xi32>
    %5 = arith.cmpi sge, %1, %4 : vector<4096x64xi32>
    %c64_i32_1 = arith.constant 64 : i32
    %6 = vector.broadcast %c64_i32_1 : i32 to vector<4096x64xi32>
    %7 = arith.addi %4, %6 : vector<4096x64xi32>
    %8 = arith.cmpi slt, %1, %7 : vector<4096x64xi32>
    %9 = arith.andi %5, %8 : vector<4096x64xi1>
    %cst = arith.constant 1.000000e+00 : f32
    %cst_2 = arith.constant 0.000000e+00 : f32
    %10 = vector.broadcast %cst : f32 to vector<4096x64xf32>
    %11 = vector.broadcast %cst_2 : f32 to vector<4096x64xf32>
    %12 = arith.select %9, %10, %11 : vector<4096x64xi1>, vector<4096x64xf32>
    %cst_3 = arith.constant dense<0.000000e+00> : vector<8x64xf32>
    %13 = tpu.matmul %0, %12, %cst_3 {dimension_numbers = #tpu.dot_dimension_numbers<[1], [0], [0], [1], [0, 0, 1, 1], [], []>} : vector<8x4096xf32>, vector<4096x64xf32>, vector<8x64xf32> -> vector<8x64xf32>
    %c0_4 = arith.constant 0 : index
    %c0_5 = arith.constant 0 : index
    %14 = vector.load %arg2[%c0_4, %c0_5] : memref<64x4xf32, #tpu.memory_space<vmem>>, vector<64x4xf32>
    %cst_6 = arith.constant dense<0.000000e+00> : vector<8x4xf32>
    %15 = tpu.matmul %13, %14, %cst_6 {dimension_numbers = #tpu.dot_dimension_numbers<[1], [0], [0], [1], [0, 0, 1, 1], [], []>} : vector<8x64xf32>, vector<64x4xf32>, vector<8x4xf32> -> vector<8x4xf32>
    %c0_7 = arith.constant 0 : index
    %c0_8 = arith.constant 0 : index
    %16 = vector.load %arg3[%c0_7, %c0_8] : memref<1x4xf32, #tpu.memory_space<vmem>>, vector<1x4xf32>
    %17 = vector.broadcast %16 : vector<1x4xf32> to vector<8x4xf32>
    %18 = arith.addf %15, %17 : vector<8x4xf32>
    %cst_9 = arith.constant 0.000000e+00 : f32
    %19 = vector.broadcast %cst_9 : f32 to vector<8x4xf32>
    %20 = arith.maximumf %18, %19 : vector<8x4xf32>
    %c0_10 = arith.constant 0 : index
    %c0_11 = arith.constant 0 : index
    %21 = vector.load %arg4[%c0_10, %c0_11] : memref<4x64xf32, #tpu.memory_space<vmem>>, vector<4x64xf32>
    %cst_12 = arith.constant dense<0.000000e+00> : vector<8x64xf32>
    %22 = tpu.matmul %20, %21, %cst_12 {dimension_numbers = #tpu.dot_dimension_numbers<[1], [0], [0], [1], [0, 0, 1, 1], [], []>} : vector<8x4xf32>, vector<4x64xf32>, vector<8x64xf32> -> vector<8x64xf32>
    %c0_13 = arith.constant 0 : index
    %c0_14 = arith.constant 0 : index
    %23 = vector.load %arg5[%c0_13, %c0_14] : memref<1x64xf32, #tpu.memory_space<vmem>>, vector<1x64xf32>
    %24 = vector.broadcast %23 : vector<1x64xf32> to vector<8x64xf32>
    %25 = arith.addf %22, %24 : vector<8x64xf32>
    %26 = arith.negf %25 : vector<8x64xf32>
    %27 = math.exp %26 : vector<8x64xf32>
    %cst_15 = arith.constant 1.000000e+00 : f32
    %28 = vector.broadcast %cst_15 : f32 to vector<8x64xf32>
    %29 = arith.addf %28, %27 : vector<8x64xf32>
    %30 = arith.divf %28, %29 : vector<8x64xf32>
    %31 = tpu.iota {dimensions = array<i32: 1>} : vector<64x4096xi32>
    %32 = tpu.iota {dimensions = array<i32: 0>} : vector<64x4096xi32>
    %c64_i32_16 = arith.constant 64 : i32
    %33 = vector.broadcast %c64_i32_16 : i32 to vector<64x4096xi32>
    %34 = arith.muli %32, %33 : vector<64x4096xi32>
    %35 = arith.cmpi sge, %31, %34 : vector<64x4096xi32>
    %c64_i32_17 = arith.constant 64 : i32
    %36 = vector.broadcast %c64_i32_17 : i32 to vector<64x4096xi32>
    %37 = arith.addi %34, %36 : vector<64x4096xi32>
    %38 = arith.cmpi slt, %31, %37 : vector<64x4096xi32>
    %39 = arith.andi %35, %38 : vector<64x4096xi1>
    %cst_18 = arith.constant 1.000000e+00 : f32
    %cst_19 = arith.constant 0.000000e+00 : f32
    %40 = vector.broadcast %cst_18 : f32 to vector<64x4096xf32>
    %41 = vector.broadcast %cst_19 : f32 to vector<64x4096xf32>
    %42 = arith.select %39, %40, %41 : vector<64x4096xi1>, vector<64x4096xf32>
    %cst_20 = arith.constant dense<0.000000e+00> : vector<8x4096xf32>
    %43 = tpu.matmul %30, %42, %cst_20 {dimension_numbers = #tpu.dot_dimension_numbers<[1], [0], [0], [1], [0, 0, 1, 1], [], []>} : vector<8x64xf32>, vector<64x4096xf32>, vector<8x4096xf32> -> vector<8x4096xf32>
    %44 = arith.mulf %0, %43 : vector<8x4096xf32>
    %c0_21 = arith.constant 0 : index
    %c0_22 = arith.constant 0 : index
    %45 = vector.load %arg6[%c0_21, %c0_22] : memref<8x4096xf32, #tpu.memory_space<vmem>>, vector<8x4096xf32>
    tpu.vector_store %arg6[%c0_21, %c0_22], %44 {strides = array<i32>} : memref<8x4096xf32, #tpu.memory_space<vmem>>, vector<8x4096xf32>,
    return
  }
  func.func @transform_0(%arg0: i32) -> (i32, i32) {
    %c0_i32 = arith.constant 0 : i32
    %c0_i32_0 = arith.constant 0 : i32
    return %arg0, %c0_i32 : i32, i32
  }
  func.func @transform_1(%arg0: i32) -> (i32, i32) {
    %c0_i32 = arith.constant 0 : i32
    %c0_i32_0 = arith.constant 0 : i32
    %c0_i32_1 = arith.constant 0 : i32
    return %c0_i32, %c0_i32_0 : i32, i32
  }
  func.func @transform_2(%arg0: i32) -> (i32, i32) {
    %c0_i32 = arith.constant 0 : i32
    %c0_i32_0 = arith.constant 0 : i32
    %c0_i32_1 = arith.constant 0 : i32
    return %c0_i32, %c0_i32_0 : i32, i32
  }
  func.func @transform_3(%arg0: i32) -> (i32, i32) {
    %c0_i32 = arith.constant 0 : i32
    %c0_i32_0 = arith.constant 0 : i32
    %c0_i32_1 = arith.constant 0 : i32
    return %c0_i32, %c0_i32_0 : i32, i32
  }
  func.func @transform_4(%arg0: i32) -> (i32, i32) {
    %c0_i32 = arith.constant 0 : i32
    %c0_i32_0 = arith.constant 0 : i32
    %c0_i32_1 = arith.constant 0 : i32
    return %c0_i32, %c0_i32_0 : i32, i32
  }
  func.func @transform_5(%arg0: i32) -> (i32, i32) {
    %c0_i32 = arith.constant 0 : i32
    %c0_i32_0 = arith.constant 0 : i32
    return %arg0, %c0_i32 : i32, i32
  }
}

</mosaic_0001>

<bundles_post_ra>
// kernel: tpu_custom_call.1
= control target key start
LH: loop header
LB: loop body
LE: loop exit
PB: predicated region body
PF: predicated region fallthrough
CT: control target
= control target key end

     0   :  { %10 = vsyncpa [#allocation3], 0  ;;  %s13616_s0 = inlined_call_operand.hbm [shape: f32[32,4096], index: 0, kind: input, shape index: {}]   ;;  %s13617_s1 = inlined_call_operand.vmem [shape: f32[64,4], index: 1, kind: input, shape index: {}]   ;;  %s13618_s2 = inlined_call_operand.vmem [shape: f32[1,4], index: 2, kind: input, shape index: {}]   ;;  %s13619_s3 = inlined_call_operand.vmem [shape: f32[4,64], index: 3, kind: input, shape index: {}]   ;;  %s13620_s4 = inlined_call_operand.vmem [shape: f32[1,64], index: 4, kind: input, shape index: {}]   ;;  %s13621_s5 = inlined_call_operand.hbm [shape: f32[32,4096], index: 5, kind: output, shape index: {}]  }
   0x1   :  { %12 = vsyncpa [#allocation3 + $0x1], 0 }
   0x2   :  { %13 = vsyncpa [#allocation4], 0 }
   0x3   :  { %15 = vsyncpa [#allocation4 + $0x1], 0  ;;  %s8900_s18 = smov 0   ;;  %s8902_s19 = smov 0  }
   0x4   :  { %s8904_s20 = smov 0   ;;  %s8906_s21 = smov 0  }
   0x5 LB: > { %s8921_s22 = sadd.s32 4294967295, %s8862_s21   ;;  %s6499_s23 = sadd.s32 4294967294, %s8862_s21   ;;  %s8862_s21 = sphi %s8906_s21, %s14275_s21   ;;  %s8858_s20 = sphi %s8904_s20, %s14274_s20   ;;  %s8854_s19 = sphi %s8902_s19, %s14273_s19   ;;  %s8850_s18 = sphi %s8900_s18, %s14272_s18  }
   0x6   : > { %s8925_s24 = sadd.s32 1, %s8862_s21   ;;  %s28_s25 = sadd.s32 1, %s8858_s20 }
   0x7   : > { %s25_s26 = ssub.s32 %s8862_s21, %s8925_s24  ;;  %p35_p0 = scmp.ne.s32.totalorder %s8858_s20, %s8854_s19 }
   0x8   : > { %p26_p1 = scmp.eq.s32.totalorder %s25_s26, 0  ;;  %p36_p2 = scmp.eq.s32.totalorder %s8862_s21, 0 }
   0x9   : > { %p41_p3 = scmp.ne.s32.totalorder %s8854_s19, %s8850_s18  ;;  %p42_p4 = scmp.eq.s32.totalorder %s8921_s22, 0 }
   0xa   : > { %s8937_s27 = scalar_select %p26_p1, %s8858_s20, %s28_s25  }
   0xb   : > { %p8939_p5 = por %p36_p2, %p35_p0  ;;  %p8943_p6 = por %p42_p4, %p41_p3 }
   0xc   : > { %p149_p7 = scmp.eq.s32.totalorder %s8921_s22, 3  ;;  %p155_p8 = scmp.eq.s32.totalorder %s6499_s23, 3 }
   0xd   : > { %p8692_p9 = scmp.lt.s32.totalorder %s8862_s21, 4  ;;  %s187_s7 = sand.u32 1, %s8858_s20  }
   0xe   : > { %p8949_p10 = por %p149_p7, %p35_p0  ;;  %p8953_p11 = por %p155_p8, %p41_p3 }
   0xf   : > { %s7303_s8 = sshll.u32 %s8862_s21, 12  ;;  %s6502_s9 = sshll.u32 %s187_s7, 8 }
  0x10   : > { %s13729_s30 = scalar_select %p8949_p10, 1, 0 }
  0x11   : > { %s13730_s6 = scalar_select %p8953_p11, 1, 0 }
  0x12   : > { %s8962_s12 = scalar_lea.hbm %s13616_s0, %s7303_s8  ;;  %s191_s13 = scalar_lea.vmem [#allocation2], %s6502_s9 }
  0x13   : > { %s199_s14 = sshll.u32 %s191_s13, 4  ;;  %p8966_p12 = pnand %p8692_p9, %p8939_p5  ;;  %s8970_s14 = int_to_ptr.vmem [resolvable:$true] %s199_s14 }
  0x14   : > { %s188_s16 = scalar_lea.sflag [#allocation3], %s187_s7  ;;  %s8766_s17 = scalar_lea.hbm %s8962_s12, 4096 }
  0x15   : > { %p8767_p1 = scmp.ne.s32.totalorder %s8962_s12, %s8766_s17  ;;  %p8768_p2 = pneg %p8966_p12 }
  0x16   : > { %s8771_s26 = scalar_lea.hbm %s13616_s0, 16384  ;;  %p8772_p5 = scmp.lt.u32.totalorder %s8962_s12, %s13616_s0 }
  0x17   : > { %p8769_p3 = pnand %p8768_p2, %p8767_p1  ;;  %p8773_p7 = scmp.lt.u32.totalorder %s8771_s26, %s8766_s17 }
  0x18   : > { %p8775_p9 = scmp.lt.u32.totalorder %s8766_s17, %s8962_s12 }
  0x19   : > { %p8770_p4 = pneg %p8769_p3  ;;  %p8774_p8 = por %p8773_p7, %p8772_p5 }
  0x1b   : > { %p8776_p13 = por %p8775_p9, %p8774_p8 }
  0x1d   : > { %p8777_p0 = pnand %p8776_p13, %p8770_p4 }
  0x1f   : > { %8780 = shalt.err (!%p8777_p0)
}
  0x20   : > { %s8781_s7 = scalar_lea.vmem %s8970_s14, 4096  ;;  %s8864_s9 = smov [#allocation2]  }
  0x21   : > { %p8782_p1 = scmp.ne.s32.totalorder %s8970_s14, %s8781_s7  ;;  %s8786_s10 = sshll.u32 %s8864_s9, 4  ;;  %s8787_s10 = int_to_ptr.vmem [resolvable:$false] %s8786_s10 }
  0x22   : > { %s8788_s11 = scalar_lea.vmem %s8787_s10, 8192  ;;  %p8789_p10 = scmp.lt.s32.totalorder %s8970_s14, %s8787_s10 }
  0x23   : > { %p8784_p3 = pnand %p8782_p1, %p8768_p2  ;;  %p8790_p5 = scmp.lt.s32.totalorder %s8788_s11, %s8781_s7 }
  0x25   : > { %p8785_p11 = pneg %p8784_p3  ;;  %p8791_p7 = por %p8790_p5, %p8789_p10 }
  0x27   : > { %p8792_p8 = pnand %p8791_p7, %p8785_p11 }
  0x29   : > { %8795 = shalt.err (!%p8792_p8)
}
  0x2a   : > { %8687 = dma.hbm_to_vmem [thread:$0]  (!%p8966_p12), %s8962_s12, 4096, %s8970_s14, %s188_s16  }
  0x2b   : > { %p13732_p13 = scmp.lt.s32.totalorder %s8862_s21, 5  ;;  %p13733_p0 = scmp.ge.s32.totalorder %s8862_s21, 1 }
  0x2d   : > { %p205_p2 = pnand %p13733_p0, %p13732_p13 }
  0x2f   : > { %208 = sbr.rel (%p205_p2) target bundleno = 2032 (0x7f0), region = 40 }
  0x36   : > { %s9004_s13 = sand.u32 1, %s8854_s19   ;;  %v273_v0 = vlaneseq }
  0x37   : > { %s6506_s17 = sshll.u32 %s9004_s13, 8  ;;  %s211_s23 = scalar_lea.sflag [#allocation3], %s9004_s13 }
  0x38   : > { %s9010_s15 = scalar_lea.vmem [#allocation2], %s6506_s17 }
  0x39   : > { %8841 = dma.done.wait (%p8943_p6), %s211_s23, 4096  }
  0x3a   : > { %8843 = vsyncadd (%p8943_p6), %s211_s23, 4294963200  ;;  %v9016_v1 = vshrl.u32 %v273_v0, 7  ;;  %v9018_v2 = vand.u32 127, %v273_v0  ;;  %v242_v9 = vld [vmem:[%s9010_s15 + $0x8] sm:$0xff]  ;;  %v244_v10 = vld [vmem:[%s9010_s15 + $0x18] sm:$0xff]  ;;  %s13412_s9 = scalar_lea.vmem [#allocation5], %s6506_s17 }
  0x3b   : > { %2902 = vmatprep.mubr.f32.mxu0 %v242_v9  ;;  %2972 = vmatprep.mubr.f32.mxu1 %v244_v10  ;;  %v13659_v13 = vmov 1.0|1.0   ;;  %s7304_s17 = sshll.u32 %s8921_s22, 12  ;;  %s6429_s10 = sshll.u32 %s13412_s9, 4  ;;  %s13573_s10 = int_to_ptr.vmem [resolvable:$true] %s6429_s10 }
  0x3c   : > { %v290_v3 = vadd.s32 128, %v9016_v1  ;;  %v291_v4 = vadd.s32 136, %v9016_v1  ;;  %v9023_v5 = vmul.u32 64, %v9018_v2  ;;  %v322_v6 = vadd.s32 384, %v9016_v1  ;;  %s13571_s29 = scalar_lea.hbm %s13621_s5, %s7304_s17  ;;  %s6415_s22 = scalar_lea.sflag [#allocation4], %s9004_s13 }
  0x3d   : > { %v323_v8 = vadd.s32 392, %v9016_v1  ;;  %v9039_v11 = vadd.s32 8, %v9016_v1  ;;  %v306_v12 = vadd.s32 256, %v9016_v1  ;;  %v307_v14 = vadd.s32 264, %v9016_v1  ;;  %s8796_s12 = scalar_lea.vmem %s13573_s10, 4096  ;;  %p14270_p10 = scmp.ne.s32.totalorder %s13729_s30, 0 }
  0x3e   : > { %vm805_vm0 = vcmp.ge.s32.totalorder %v290_v3, %v9023_v5  ;;  %v9028_v7 = vadd.s32 64, %v9023_v5  ;;  %vm806_vm1 = vcmp.ge.s32.totalorder %v291_v4, %v9023_v5  ;;  %vm837_vm5 = vcmp.ge.s32.totalorder %v322_v6, %v9023_v5  ;;  %p8797_p6 = scmp.ne.s32.totalorder %s13573_s10, %s8796_s12 }
  0x3f   : > { %vm838_vm8 = vcmp.ge.s32.totalorder %v323_v8, %v9023_v5  ;;  %vm789_vm12 = vcmp.ge.s32.totalorder %v9016_v1, %v9023_v5  ;;  %vm790_vm15 = vcmp.ge.s32.totalorder %v9039_v11, %v9023_v5  ;;  %v292_v15 = vadd.s32 144, %v9016_v1 }
  0x40   : > { %vm1318_vm2 = vcmp.lt.s32.totalorder %v290_v3, %v9028_v7  ;;  %vm1319_vm3 = vcmp.lt.s32.totalorder %v291_v4, %v9028_v7  ;;  %vm1350_vm6 = vcmp.lt.s32.totalorder %v322_v6, %v9028_v7  ;;  %vm1351_vm9 = vcmp.lt.s32.totalorder %v323_v8, %v9028_v7  ;;  %p8798_p11 = pnand %p8797_p6, %p14270_p10 }
  0x41   : > { %vm1830_vm4 = vmand %vm805_vm0, %vm1318_vm2  ;;  %vm1302_vm13 = vcmp.lt.s32.totalorder %v9016_v1, %v9028_v7  ;;  %vm1303_vm0 = vcmp.lt.s32.totalorder %v9039_v11, %v9028_v7  ;;  %v293_v16 = vadd.s32 152, %v9016_v1  ;;  %v324_v17 = vadd.s32 400, %v9016_v1 }
  0x42   : > { %vm1831_vm7 = vmand %vm806_vm1, %vm1319_vm3  ;;  %vm821_vm3 = vcmp.ge.s32.totalorder %v306_v12, %v9023_v5  ;;  %v325_v18 = vadd.s32 408, %v9016_v1  ;;  %v9069_v19 = vadd.s32 16, %v9016_v1  ;;  %v9075_v20 = vadd.s32 24, %v9016_v1  ;;  %p8799_p12 = pneg %p8798_p11 }
  0x43   : > { %vm7900_vm10 = vmpackc.low %vm1831_vm7, %vm1830_vm4  ;;  %vm1334_vm4 = vcmp.lt.s32.totalorder %v306_v12, %v9028_v7  ;;  %vm1335_vm7 = vcmp.lt.s32.totalorder %v307_v14, %v9028_v7  ;;  %v308_v21 = vadd.s32 272, %v9016_v1  ;;  %v309_v22 = vadd.s32 280, %v9016_v1 }
  0x44   : > { %7901 = vmatprep.subr.msk.bf16.mxu0 %vm7900_vm10, %v13659_v13  ;;  %vm1862_vm11 = vmand %vm837_vm5, %vm1350_vm6  ;;  %vm822_vm6 = vcmp.ge.s32.totalorder %v307_v14, %v9023_v5  ;;  %vm807_vm10 = vcmp.ge.s32.totalorder %v292_v15, %v9023_v5  ;;  %v294_v23 = vadd.s32 160, %v9016_v1  ;;  %v295_v24 = vadd.s32 168, %v9016_v1 }
  0x45   : > { %vm1863_vm14 = vmand %vm838_vm8, %vm1351_vm9  ;;  %v326_v25 = vadd.s32 416, %v9016_v1  ;;  %v327_v26 = vadd.s32 424, %v9016_v1  ;;  %v9105_v27 = vadd.s32 32, %v9016_v1  ;;  %v9111_v28 = vadd.s32 40, %v9016_v1 }
  0x46   : > { %vm7932_vm1 = vmpackc.low %vm1863_vm14, %vm1862_vm11  ;;  %vm1320_vm11 = vcmp.lt.s32.totalorder %v292_v15, %v9028_v7  ;;  %vm1321_vm14 = vcmp.lt.s32.totalorder %v293_v16, %v9028_v7  ;;  %v310_v29 = vadd.s32 288, %v9016_v1  ;;  %v311_v30 = vadd.s32 296, %v9016_v1 }
  0x47   : > { %7933 = vmatprep.subr.msk.bf16.mxu1 %vm7932_vm1, %v13659_v13  ;;  %vm1814_vm2 = vmand %vm789_vm12, %vm1302_vm13  ;;  %vm808_vm13 = vcmp.ge.s32.totalorder %v293_v16, %v9023_v5  ;;  %vm839_vm1 = vcmp.ge.s32.totalorder %v324_v17, %v9023_v5  ;;  %v296_v31 = vadd.s32 176, %v9016_v1  ;;  %v297_v32 = vadd.s32 184, %v9016_v1  ;;  %v241_v16 = vld [vmem:[%s9010_s15] sm:$0xff] }
  0x48   : > { %vm1815_vm5 = vmand %vm790_vm15, %vm1303_vm0  ;;  %v328_v33 = vadd.s32 432, %v9016_v1  ;;  %v329_v34 = vadd.s32 440, %v9016_v1  ;;  %v9141_v35 = vadd.s32 48, %v9016_v1  ;;  %v9147_v36 = vadd.s32 56, %v9016_v1 }
  0x49   : > { %vm7902_vm8 = vmpackc.low %vm1815_vm5, %vm1814_vm2  ;;  %vm1352_vm2 = vcmp.lt.s32.totalorder %v324_v17, %v9028_v7  ;;  %vm1353_vm5 = vcmp.lt.s32.totalorder %v325_v18, %v9028_v7  ;;  %v312_v37 = vadd.s32 304, %v9016_v1  ;;  %v313_v38 = vadd.s32 312, %v9016_v1 }
  0x4a   : > { %7903 = vmatpush3.bf16.msk.msra.mxu0 %vm7902_vm8, %v13659_v13  ;;  %vm1846_vm9 = vmand %vm821_vm3, %vm1334_vm4  ;;  %vm840_vm4 = vcmp.ge.s32.totalorder %v325_v18, %v9023_v5  ;;  %vm791_vm8 = vcmp.ge.s32.totalorder %v9069_v19, %v9023_v5  ;;  %v298_v39 = vadd.s32 192, %v9016_v1  ;;  %v299_v40 = vadd.s32 200, %v9016_v1  ;;  %v246_v18 = vld [vmem:[%s9010_s15 + $0x28] sm:$0xff] }
  0x4b   : > { %vm1847_vm12 = vmand %vm822_vm6, %vm1335_vm7  ;;  %v330_v41 = vadd.s32 448, %v9016_v1  ;;  %v331_v42 = vadd.s32 456, %v9016_v1  ;;  %v282_v43 = vadd.s32 64, %v9016_v1  ;;  %v283_v44 = vadd.s32 72, %v9016_v1 }
  0x4c   : > { %vm7934_vm15 = vmpackc.low %vm1847_vm12, %vm1846_vm9  ;;  %vm1304_vm9 = vcmp.lt.s32.totalorder %v9069_v19, %v9028_v7  ;;  %vm1305_vm12 = vcmp.lt.s32.totalorder %v9075_v20, %v9028_v7  ;;  %v314_v45 = vadd.s32 320, %v9016_v1  ;;  %v315_v46 = vadd.s32 328, %v9016_v1 }
  0x4d   : > { %7935 = vmatpush3.bf16.msk.msra.mxu1 %vm7934_vm15, %v13659_v13  ;;  %vm1832_vm0 = vmand %vm807_vm10, %vm1320_vm11  ;;  %vm792_vm11 = vcmp.ge.s32.totalorder %v9075_v20, %v9023_v5  ;;  %vm823_vm15 = vcmp.ge.s32.totalorder %v308_v21, %v9023_v5  ;;  %v300_v47 = vadd.s32 208, %v9016_v1  ;;  %v301_v48 = vadd.s32 216, %v9016_v1 }
  0x4e   : > { %vm1833_vm3 = vmand %vm808_vm13, %vm1321_vm14  ;;  %v332_v49 = vadd.s32 464, %v9016_v1  ;;  %v333_v50 = vadd.s32 472, %v9016_v1  ;;  %v284_v51 = vadd.s32 80, %v9016_v1  ;;  %v285_v52 = vadd.s32 88, %v9016_v1 }
  0x4f   : > { %vm7904_vm6 = vmpackc.low %vm1833_vm3, %vm1832_vm0  ;;  %vm1336_vm0 = vcmp.lt.s32.totalorder %v308_v21, %v9028_v7  ;;  %vm1337_vm3 = vcmp.lt.s32.totalorder %v309_v22, %v9028_v7  ;;  %v316_v53 = vadd.s32 336, %v9016_v1  ;;  %v317_v54 = vadd.s32 344, %v9016_v1 }
  0x50   : > { %7905 = vmatprep.subr.msk.bf16.mxu0 %vm7904_vm6, %v13659_v13  ;;  %vm1864_vm7 = vmand %vm839_vm1, %vm1352_vm2  ;;  %vm824_vm2 = vcmp.ge.s32.totalorder %v309_v22, %v9023_v5  ;;  %vm809_vm6 = vcmp.ge.s32.totalorder %v294_v23, %v9023_v5  ;;  %v302_v55 = vadd.s32 224, %v9016_v1  ;;  %v303_v56 = vadd.s32 232, %v9016_v1  ;;  %v243_v22 = vld [vmem:[%s9010_s15 + $0x10] sm:$0xff] }
  0x51   : > { %vm1865_vm10 = vmand %vm840_vm4, %vm1353_vm5  ;;  %v334_v57 = vadd.s32 480, %v9016_v1  ;;  %v335_v58 = vadd.s32 488, %v9016_v1  ;;  %v286_v59 = vadd.s32 96, %v9016_v1  ;;  %v287_v60 = vadd.s32 104, %v9016_v1 }
  0x52   : > { %vm7936_vm13 = vmpackc.low %vm1865_vm10, %vm1864_vm7  ;;  %vm1322_vm7 = vcmp.lt.s32.totalorder %v294_v23, %v9028_v7  ;;  %vm1323_vm10 = vcmp.lt.s32.totalorder %v295_v24, %v9028_v7  ;;  %v318_v61 = vadd.s32 352, %v9016_v1  ;;  %v319_v62 = vadd.s32 360, %v9016_v1 }
  0x53   : > { %7937 = vmatprep.subr.msk.bf16.mxu1 %vm7936_vm13, %v13659_v13  ;;  %vm1816_vm14 = vmand %vm791_vm8, %vm1304_vm9  ;;  %vm810_vm9 = vcmp.ge.s32.totalorder %v295_v24, %v9023_v5  ;;  %vm841_vm13 = vcmp.ge.s32.totalorder %v326_v25, %v9023_v5  ;;  %v304_v63 = vadd.s32 240, %v9016_v1  ;;  %v305_v0 = vadd.s32 248, %v9016_v1  ;;  %v248_v24 = vld [vmem:[%s9010_s15 + $0x38] sm:$0xff] }
  0x54   : > { %vm1817_vm1 = vmand %vm792_vm11, %vm1305_vm12  ;;  %v336_v3 = vadd.s32 496, %v9016_v1  ;;  %v337_v4 = vadd.s32 504, %v9016_v1  ;;  %v288_v6 = vadd.s32 112, %v9016_v1  ;;  %v289_v8 = vadd.s32 120, %v9016_v1 }
  0x55   : > { %vm7906_vm4 = vmpackc.low %vm1817_vm1, %vm1816_vm14  ;;  %vm1354_vm14 = vcmp.lt.s32.totalorder %v326_v25, %v9028_v7  ;;  %vm1355_vm1 = vcmp.lt.s32.totalorder %v327_v26, %v9028_v7  ;;  %v320_v9 = vadd.s32 368, %v9016_v1  ;;  %v321_v10 = vadd.s32 376, %v9016_v1 }
  0x56   : > { %7907 = vmatpush3.bf16.msk.msra.mxu0 %vm7906_vm4, %v13659_v13  ;;  %vm1848_vm5 = vmand %vm823_vm15, %vm1336_vm0  ;;  %vm842_vm0 = vcmp.ge.s32.totalorder %v327_v26, %v9023_v5  ;;  %vm793_vm4 = vcmp.ge.s32.totalorder %v9105_v27, %v9023_v5  ;;  %v354_v12 = vadd.s32 640, %v9016_v1  ;;  %v355_v14 = vadd.s32 648, %v9016_v1 }
  0x57   : > { %vm1849_vm8 = vmand %vm824_vm2, %vm1337_vm3  ;;  %v338_v15 = vadd.s32 512, %v9016_v1  ;;  %v339_v17 = vadd.s32 520, %v9016_v1  ;;  %v386_v21 = vadd.s32 896, %v9016_v1  ;;  %v387_v23 = vadd.s32 904, %v9016_v1 }
  0x58   : > { %vm7938_vm11 = vmpackc.low %vm1849_vm8, %vm1848_vm5  ;;  %vm1306_vm5 = vcmp.lt.s32.totalorder %v9105_v27, %v9028_v7  ;;  %vm1307_vm8 = vcmp.lt.s32.totalorder %v9111_v28, %v9028_v7  ;;  %v370_v25 = vadd.s32 768, %v9016_v1  ;;  %v371_v26 = vadd.s32 776, %v9016_v1 }
  0x59   : > { %7939 = vmatpush3.bf16.msk.msra.mxu1 %vm7938_vm11, %v13659_v13  ;;  %vm1834_vm12 = vmand %vm809_vm6, %vm1322_vm7  ;;  %vm794_vm7 = vcmp.ge.s32.totalorder %v9111_v28, %v9023_v5  ;;  %vm825_vm11 = vcmp.ge.s32.totalorder %v310_v29, %v9023_v5 }
  0x5a   : > { %vm1835_vm15 = vmand %vm810_vm9, %vm1323_vm10 }
  0x5b   : > { %vm7908_vm2 = vmpackc.low %vm1835_vm15, %vm1834_vm12  ;;  %vm1338_vm12 = vcmp.lt.s32.totalorder %v310_v29, %v9028_v7  ;;  %vm1339_vm15 = vcmp.lt.s32.totalorder %v311_v30, %v9028_v7  ;;  %v356_v29 = vadd.s32 656, %v9016_v1 }
  0x5c   : > { %7909 = vmatprep.subr.msk.bf16.mxu0 %vm7908_vm2, %v13659_v13  ;;  %vm1866_vm3 = vmand %vm841_vm13, %vm1354_vm14  ;;  %vm826_vm14 = vcmp.ge.s32.totalorder %v311_v30, %v9023_v5  ;;  %vm811_vm2 = vcmp.ge.s32.totalorder %v296_v31, %v9023_v5  ;;  %v357_v30 = vadd.s32 664, %v9016_v1 }
  0x5d   : > { %vm1867_vm6 = vmand %vm842_vm0, %vm1355_vm1 }
  0x5e   : > { %vm7940_vm9 = vmpackc.low %vm1867_vm6, %vm1866_vm3  ;;  %vm1324_vm3 = vcmp.lt.s32.totalorder %v296_v31, %v9028_v7  ;;  %vm1325_vm6 = vcmp.lt.s32.totalorder %v297_v32, %v9028_v7  ;;  %v340_v31 = vadd.s32 528, %v9016_v1 }
  0x5f   : > { %7941 = vmatprep.subr.msk.bf16.mxu1 %vm7940_vm9, %v13659_v13  ;;  %vm1818_vm10 = vmand %vm793_vm4, %vm1306_vm5  ;;  %vm812_vm5 = vcmp.ge.s32.totalorder %v297_v32, %v9023_v5  ;;  %vm843_vm9 = vcmp.ge.s32.totalorder %v328_v33, %v9023_v5  ;;  %v341_v32 = vadd.s32 536, %v9016_v1 }
  0x60   : > { %vm1819_vm13 = vmand %vm794_vm7, %vm1307_vm8 }
  0x61   : > { %vm7910_vm0 = vmpackc.low %vm1819_vm13, %vm1818_vm10  ;;  %vm1356_vm10 = vcmp.lt.s32.totalorder %v328_v33, %v9028_v7  ;;  %vm1357_vm13 = vcmp.lt.s32.totalorder %v329_v34, %v9028_v7  ;;  %v388_v33 = vadd.s32 912, %v9016_v1 }
  0x62   : > { %7911 = vmatpush3.bf16.msk.msra.mxu0 %vm7910_vm0, %v13659_v13  ;;  %vm1850_vm1 = vmand %vm825_vm11, %vm1338_vm12  ;;  %vm844_vm12 = vcmp.ge.s32.totalorder %v329_v34, %v9023_v5  ;;  %vm795_vm0 = vcmp.ge.s32.totalorder %v9141_v35, %v9023_v5  ;;  %v389_v34 = vadd.s32 920, %v9016_v1 }
  0x63   : > { %vm1851_vm4 = vmand %vm826_vm14, %vm1339_vm15 }
  0x64   : > { %vm7942_vm7 = vmpackc.low %vm1851_vm4, %vm1850_vm1  ;;  %vm1308_vm1 = vcmp.lt.s32.totalorder %v9141_v35, %v9028_v7  ;;  %vm1309_vm4 = vcmp.lt.s32.totalorder %v9147_v36, %v9028_v7 }
  0x65   : > { %7943 = vmatpush3.bf16.msk.msra.mxu1 %vm7942_vm7, %v13659_v13  ;;  %vm1836_vm8 = vmand %vm811_vm2, %vm1324_vm3  ;;  %vm796_vm3 = vcmp.ge.s32.totalorder %v9147_v36, %v9023_v5  ;;  %vm827_vm7 = vcmp.ge.s32.totalorder %v312_v37, %v9023_v5 }
  0x66   : > { %vm1837_vm11 = vmand %vm812_vm5, %vm1325_vm6 }
  0x67   : > { %vm7912_vm14 = vmpackc.low %vm1837_vm11, %vm1836_vm8  ;;  %vm1340_vm8 = vcmp.lt.s32.totalorder %v312_v37, %v9028_v7  ;;  %vm1341_vm11 = vcmp.lt.s32.totalorder %v313_v38, %v9028_v7  ;;  %v372_v37 = vadd.s32 784, %v9016_v1 }
  0x68   : > { %7913 = vmatprep.subr.msk.bf16.mxu0 %vm7912_vm14, %v13659_v13  ;;  %vm1868_vm15 = vmand %vm843_vm9, %vm1356_vm10  ;;  %vm828_vm10 = vcmp.ge.s32.totalorder %v313_v38, %v9023_v5  ;;  %vm813_vm14 = vcmp.ge.s32.totalorder %v298_v39, %v9023_v5  ;;  %v373_v38 = vadd.s32 792, %v9016_v1 }
  0x69   : > { %vm1869_vm2 = vmand %vm844_vm12, %vm1357_vm13 }
  0x6a   : > { %vm7944_vm5 = vmpackc.low %vm1869_vm2, %vm1868_vm15  ;;  %vm1326_vm15 = vcmp.lt.s32.totalorder %v298_v39, %v9028_v7  ;;  %vm1327_vm2 = vcmp.lt.s32.totalorder %v299_v40, %v9028_v7  ;;  %v358_v39 = vadd.s32 672, %v9016_v1 }
  0x6b   : > { %7945 = vmatprep.subr.msk.bf16.mxu1 %vm7944_vm5, %v13659_v13  ;;  %vm1820_vm6 = vmand %vm795_vm0, %vm1308_vm1  ;;  %vm814_vm1 = vcmp.ge.s32.totalorder %v299_v40, %v9023_v5  ;;  %vm845_vm5 = vcmp.ge.s32.totalorder %v330_v41, %v9023_v5  ;;  %v359_v40 = vadd.s32 680, %v9016_v1 }
  0x6c   : > { %vm1821_vm9 = vmand %vm796_vm3, %vm1309_vm4 }
  0x6d   : > { %vm7914_vm12 = vmpackc.low %vm1821_vm9, %vm1820_vm6  ;;  %vm1358_vm6 = vcmp.lt.s32.totalorder %v330_v41, %v9028_v7  ;;  %vm1359_vm9 = vcmp.lt.s32.totalorder %v331_v42, %v9028_v7  ;;  %v342_v41 = vadd.s32 544, %v9016_v1 }
  0x6e   : > { %7915 = vmatpush3.bf16.msk.msra.mxu0 %vm7914_vm12, %v13659_v13  ;;  %vm1852_vm13 = vmand %vm827_vm7, %vm1340_vm8  ;;  %vm846_vm8 = vcmp.ge.s32.totalorder %v331_v42, %v9023_v5  ;;  %vm797_vm12 = vcmp.ge.s32.totalorder %v282_v43, %v9023_v5  ;;  %v343_v42 = vadd.s32 552, %v9016_v1 }
  0x6f   : > { %vm1853_vm0 = vmand %vm828_vm10, %vm1341_vm11 }
  0x70   : > { %vm7946_vm3 = vmpackc.low %vm1853_vm0, %vm1852_vm13  ;;  %vm1310_vm13 = vcmp.lt.s32.totalorder %v282_v43, %v9028_v7  ;;  %vm1311_vm0 = vcmp.lt.s32.totalorder %v283_v44, %v9028_v7  ;;  %v390_v43 = vadd.s32 928, %v9016_v1 }
  0x71   : > { %7947 = vmatpush3.bf16.msk.msra.mxu1 %vm7946_vm3, %v13659_v13  ;;  %vm1838_vm4 = vmand %vm813_vm14, %vm1326_vm15  ;;  %vm798_vm15 = vcmp.ge.s32.totalorder %v283_v44, %v9023_v5  ;;  %vm829_vm3 = vcmp.ge.s32.totalorder %v314_v45, %v9023_v5  ;;  %v391_v44 = vadd.s32 936, %v9016_v1 }
  0x72   : > { %vm1839_vm7 = vmand %vm814_vm1, %vm1327_vm2 }
  0x73   : > { %vm7916_vm10 = vmpackc.low %vm1839_vm7, %vm1838_vm4  ;;  %vm1342_vm4 = vcmp.lt.s32.totalorder %v314_v45, %v9028_v7  ;;  %vm1343_vm7 = vcmp.lt.s32.totalorder %v315_v46, %v9028_v7  ;;  %v374_v45 = vadd.s32 800, %v9016_v1 }
  0x74   : > { %7917 = vmatprep.subr.msk.bf16.mxu0 %vm7916_vm10, %v13659_v13  ;;  %vm1870_vm11 = vmand %vm845_vm5, %vm1358_vm6  ;;  %vm830_vm6 = vcmp.ge.s32.totalorder %v315_v46, %v9023_v5  ;;  %vm815_vm10 = vcmp.ge.s32.totalorder %v300_v47, %v9023_v5  ;;  %v375_v46 = vadd.s32 808, %v9016_v1 }
  0x75   : > { %vm1871_vm14 = vmand %vm846_vm8, %vm1359_vm9 }
  0x76   : > { %vm7948_vm1 = vmpackc.low %vm1871_vm14, %vm1870_vm11  ;;  %vm1328_vm11 = vcmp.lt.s32.totalorder %v300_v47, %v9028_v7  ;;  %vm1329_vm14 = vcmp.lt.s32.totalorder %v301_v48, %v9028_v7  ;;  %v360_v47 = vadd.s32 688, %v9016_v1 }
  0x77   : > { %7949 = vmatprep.subr.msk.bf16.mxu1 %vm7948_vm1, %v13659_v13  ;;  %vm1822_vm2 = vmand %vm797_vm12, %vm1310_vm13  ;;  %vm816_vm13 = vcmp.ge.s32.totalorder %v301_v48, %v9023_v5  ;;  %vm847_vm1 = vcmp.ge.s32.totalorder %v332_v49, %v9023_v5  ;;  %v361_v48 = vadd.s32 696, %v9016_v1 }
  0x78   : > { %vm1823_vm5 = vmand %vm798_vm15, %vm1311_vm0 }
  0x79   : > { %vm7918_vm8 = vmpackc.low %vm1823_vm5, %vm1822_vm2  ;;  %vm1360_vm2 = vcmp.lt.s32.totalorder %v332_v49, %v9028_v7  ;;  %vm1361_vm5 = vcmp.lt.s32.totalorder %v333_v50, %v9028_v7  ;;  %v344_v49 = vadd.s32 560, %v9016_v1 }
  0x7a   : > { %7919 = vmatpush3.bf16.msk.msra.mxu0 %vm7918_vm8, %v13659_v13  ;;  %vm1854_vm9 = vmand %vm829_vm3, %vm1342_vm4  ;;  %vm848_vm4 = vcmp.ge.s32.totalorder %v333_v50, %v9023_v5  ;;  %vm799_vm8 = vcmp.ge.s32.totalorder %v284_v51, %v9023_v5  ;;  %v345_v50 = vadd.s32 568, %v9016_v1 }
  0x7b   : > { %vm1855_vm12 = vmand %vm830_vm6, %vm1343_vm7 }
  0x7c   : > { %vm7950_vm15 = vmpackc.low %vm1855_vm12, %vm1854_vm9  ;;  %vm1312_vm9 = vcmp.lt.s32.totalorder %v284_v51, %v9028_v7  ;;  %vm1313_vm12 = vcmp.lt.s32.totalorder %v285_v52, %v9028_v7  ;;  %v392_v51 = vadd.s32 944, %v9016_v1 }
  0x7d   : > { %7951 = vmatpush3.bf16.msk.msra.mxu1 %vm7950_vm15, %v13659_v13  ;;  %vm1840_vm0 = vmand %vm815_vm10, %vm1328_vm11  ;;  %vm800_vm11 = vcmp.ge.s32.totalorder %v285_v52, %v9023_v5  ;;  %vm831_vm15 = vcmp.ge.s32.totalorder %v316_v53, %v9023_v5  ;;  %v393_v52 = vadd.s32 952, %v9016_v1 }
  0x7e   : > { %vm1841_vm3 = vmand %vm816_vm13, %vm1329_vm14 }
  0x7f   : > { %vm7920_vm6 = vmpackc.low %vm1841_vm3, %vm1840_vm0  ;;  %vm1344_vm0 = vcmp.lt.s32.totalorder %v316_v53, %v9028_v7  ;;  %vm1345_vm3 = vcmp.lt.s32.totalorder %v317_v54, %v9028_v7  ;;  %v376_v53 = vadd.s32 816, %v9016_v1 }
  0x80   : > { %7921 = vmatprep.subr.msk.bf16.mxu0 %vm7920_vm6, %v13659_v13  ;;  %vm1872_vm7 = vmand %vm847_vm1, %vm1360_vm2  ;;  %vm832_vm2 = vcmp.ge.s32.totalorder %v317_v54, %v9023_v5  ;;  %vm817_vm6 = vcmp.ge.s32.totalorder %v302_v55, %v9023_v5  ;;  %v377_v54 = vadd.s32 824, %v9016_v1 }
  0x81   : > { %vm1873_vm10 = vmand %vm848_vm4, %vm1361_vm5 }
  0x82   : > { %vm7952_vm13 = vmpackc.low %vm1873_vm10, %vm1872_vm7  ;;  %vm1330_vm7 = vcmp.lt.s32.totalorder %v302_v55, %v9028_v7  ;;  %vm1331_vm10 = vcmp.lt.s32.totalorder %v303_v56, %v9028_v7  ;;  %v362_v55 = vadd.s32 704, %v9016_v1 }
  0x83   : > { %7953 = vmatprep.subr.msk.bf16.mxu1 %vm7952_vm13, %v13659_v13  ;;  %vm1824_vm14 = vmand %vm799_vm8, %vm1312_vm9  ;;  %vm818_vm9 = vcmp.ge.s32.totalorder %v303_v56, %v9023_v5  ;;  %vm849_vm13 = vcmp.ge.s32.totalorder %v334_v57, %v9023_v5  ;;  %v363_v56 = vadd.s32 712, %v9016_v1 }
  0x84   : > { %vm1825_vm1 = vmand %vm800_vm11, %vm1313_vm12 }
  0x85   : > { %vm7922_vm4 = vmpackc.low %vm1825_vm1, %vm1824_vm14  ;;  %vm1362_vm14 = vcmp.lt.s32.totalorder %v334_v57, %v9028_v7  ;;  %vm1363_vm1 = vcmp.lt.s32.totalorder %v335_v58, %v9028_v7  ;;  %v346_v57 = vadd.s32 576, %v9016_v1 }
  0x86   : > { %7923 = vmatpush3.bf16.msk.msra.mxu0 %vm7922_vm4, %v13659_v13  ;;  %vm1856_vm5 = vmand %vm831_vm15, %vm1344_vm0  ;;  %vm850_vm0 = vcmp.ge.s32.totalorder %v335_v58, %v9023_v5  ;;  %vm801_vm4 = vcmp.ge.s32.totalorder %v286_v59, %v9023_v5  ;;  %v347_v58 = vadd.s32 584, %v9016_v1 }
  0x87   : > { %vm1857_vm8 = vmand %vm832_vm2, %vm1345_vm3 }
  0x88   : > { %vm7954_vm11 = vmpackc.low %vm1857_vm8, %vm1856_vm5  ;;  %vm1314_vm5 = vcmp.lt.s32.totalorder %v286_v59, %v9028_v7  ;;  %vm1315_vm8 = vcmp.lt.s32.totalorder %v287_v60, %v9028_v7  ;;  %v394_v59 = vadd.s32 960, %v9016_v1 }
  0x89   : > { %7955 = vmatpush3.bf16.msk.msra.mxu1 %vm7954_vm11, %v13659_v13  ;;  %vm1842_vm12 = vmand %vm817_vm6, %vm1330_vm7  ;;  %vm802_vm7 = vcmp.ge.s32.totalorder %v287_v60, %v9023_v5  ;;  %vm833_vm11 = vcmp.ge.s32.totalorder %v318_v61, %v9023_v5  ;;  %v395_v60 = vadd.s32 968, %v9016_v1 }
  0x8a   : > { %vm1843_vm15 = vmand %vm818_vm9, %vm1331_vm10 }
  0x8b   : > { %vm7924_vm2 = vmpackc.low %vm1843_vm15, %vm1842_vm12  ;;  %vm1346_vm12 = vcmp.lt.s32.totalorder %v318_v61, %v9028_v7  ;;  %vm1347_vm15 = vcmp.lt.s32.totalorder %v319_v62, %v9028_v7  ;;  %v378_v61 = vadd.s32 832, %v9016_v1 }
  0x8c   : > { %7925 = vmatprep.subr.msk.bf16.mxu0 %vm7924_vm2, %v13659_v13  ;;  %vm1874_vm3 = vmand %vm849_vm13, %vm1362_vm14  ;;  %vm834_vm14 = vcmp.ge.s32.totalorder %v319_v62, %v9023_v5  ;;  %vm819_vm2 = vcmp.ge.s32.totalorder %v304_v63, %v9023_v5  ;;  %v379_v62 = vadd.s32 840, %v9016_v1 }
  0x8d   : > { %vm1875_vm6 = vmand %vm850_vm0, %vm1363_vm1 }
  0x8e   : > { %vm7956_vm9 = vmpackc.low %vm1875_vm6, %vm1874_vm3  ;;  %vm1332_vm3 = vcmp.lt.s32.totalorder %v304_v63, %v9028_v7  ;;  %vm1333_vm6 = vcmp.lt.s32.totalorder %v305_v0, %v9028_v7  ;;  %v364_v63 = vadd.s32 720, %v9016_v1 }
  0x8f   : > { %7957 = vmatprep.subr.msk.bf16.mxu1 %vm7956_vm9, %v13659_v13  ;;  %vm1826_vm10 = vmand %vm801_vm4, %vm1314_vm5  ;;  %vm820_vm5 = vcmp.ge.s32.totalorder %v305_v0, %v9023_v5  ;;  %vm851_vm9 = vcmp.ge.s32.totalorder %v336_v3, %v9023_v5  ;;  %v365_v0 = vadd.s32 728, %v9016_v1 }
  0x90   : > { %vm1827_vm13 = vmand %vm802_vm7, %vm1315_vm8 }
  0x91   : > { %vm7926_vm0 = vmpackc.low %vm1827_vm13, %vm1826_vm10  ;;  %vm1364_vm10 = vcmp.lt.s32.totalorder %v336_v3, %v9028_v7  ;;  %vm1365_vm13 = vcmp.lt.s32.totalorder %v337_v4, %v9028_v7  ;;  %v348_v3 = vadd.s32 592, %v9016_v1 }
  0x92   : > { %7927 = vmatpush3.bf16.msk.msra.mxu0 %vm7926_vm0, %v13659_v13  ;;  %vm1858_vm1 = vmand %vm833_vm11, %vm1346_vm12  ;;  %vm852_vm12 = vcmp.ge.s32.totalorder %v337_v4, %v9023_v5  ;;  %vm803_vm0 = vcmp.ge.s32.totalorder %v288_v6, %v9023_v5  ;;  %v349_v4 = vadd.s32 600, %v9016_v1 }
  0x93   : > { %vm1859_vm4 = vmand %vm834_vm14, %vm1347_vm15 }
  0x94   : > { %vm7958_vm7 = vmpackc.low %vm1859_vm4, %vm1858_vm1  ;;  %vm1316_vm1 = vcmp.lt.s32.totalorder %v288_v6, %v9028_v7  ;;  %vm1317_vm4 = vcmp.lt.s32.totalorder %v289_v8, %v9028_v7  ;;  %v396_v6 = vadd.s32 976, %v9016_v1 }
  0x95   : > { %7959 = vmatpush3.bf16.msk.msra.mxu1 %vm7958_vm7, %v13659_v13  ;;  %vm1844_vm8 = vmand %vm819_vm2, %vm1332_vm3  ;;  %vm804_vm3 = vcmp.ge.s32.totalorder %v289_v8, %v9023_v5  ;;  %vm835_vm7 = vcmp.ge.s32.totalorder %v320_v9, %v9023_v5  ;;  %v397_v8 = vadd.s32 984, %v9016_v1 }
  0x96   : > { %vm1845_vm11 = vmand %vm820_vm5, %vm1333_vm6 }
  0x97   : > { %vm7928_vm14 = vmpackc.low %vm1845_vm11, %vm1844_vm8  ;;  %vm1348_vm8 = vcmp.lt.s32.totalorder %v320_v9, %v9028_v7  ;;  %vm1349_vm11 = vcmp.lt.s32.totalorder %v321_v10, %v9028_v7  ;;  %v380_v9 = vadd.s32 848, %v9016_v1 }
  0x98   : > { %7929 = vmatprep.subr.msk.bf16.mxu0 %vm7928_vm14, %v13659_v13  ;;  %vm1876_vm15 = vmand %vm851_vm9, %vm1364_vm10  ;;  %vm836_vm10 = vcmp.ge.s32.totalorder %v321_v10, %v9023_v5  ;;  %vm869_vm14 = vcmp.ge.s32.totalorder %v354_v12, %v9023_v5  ;;  %v381_v10 = vadd.s32 856, %v9016_v1 }
  0x99   : > { %vm1877_vm2 = vmand %vm852_vm12, %vm1365_vm13 }
  0x9a   : > { %vm7960_vm5 = vmpackc.low %vm1877_vm2, %vm1876_vm15  ;;  %vm1382_vm15 = vcmp.lt.s32.totalorder %v354_v12, %v9028_v7  ;;  %vm1383_vm2 = vcmp.lt.s32.totalorder %v355_v14, %v9028_v7  ;;  %v366_v12 = vadd.s32 736, %v9016_v1 }
  0x9b   : > { %7961 = vmatprep.subr.msk.bf16.mxu1 %vm7960_vm5, %v13659_v13  ;;  %vm1828_vm6 = vmand %vm803_vm0, %vm1316_vm1  ;;  %vm870_vm1 = vcmp.ge.s32.totalorder %v355_v14, %v9023_v5  ;;  %vm853_vm5 = vcmp.ge.s32.totalorder %v338_v15, %v9023_v5  ;;  %v367_v14 = vadd.s32 744, %v9016_v1 }
  0x9c   : > { %vm1829_vm9 = vmand %vm804_vm3, %vm1317_vm4 }
  0x9d   : > { %vm7930_vm12 = vmpackc.low %vm1829_vm9, %vm1828_vm6  ;;  %vm1366_vm6 = vcmp.lt.s32.totalorder %v338_v15, %v9028_v7  ;;  %vm1367_vm9 = vcmp.lt.s32.totalorder %v339_v17, %v9028_v7  ;;  %v350_v15 = vadd.s32 608, %v9016_v1 }
  0x9e   : > { %7931 = vmatpush3.bf16.msk.msra.mxu0 %vm7930_vm12, %v13659_v13  ;;  %vm1860_vm13 = vmand %vm835_vm7, %vm1348_vm8  ;;  %vm854_vm8 = vcmp.ge.s32.totalorder %v339_v17, %v9023_v5  ;;  %vm901_vm12 = vcmp.ge.s32.totalorder %v386_v21, %v9023_v5  ;;  %v398_v17 = vadd.s32 992, %v9016_v1 }
  0x9f   : > { %vm1861_vm0 = vmand %vm836_vm10, %vm1349_vm11 }
  0xa0   : > { %vm7962_vm3 = vmpackc.low %vm1861_vm0, %vm1860_vm13  ;;  %vm1414_vm13 = vcmp.lt.s32.totalorder %v386_v21, %v9028_v7  ;;  %vm1415_vm0 = vcmp.lt.s32.totalorder %v387_v23, %v9028_v7  ;;  %v382_v21 = vadd.s32 864, %v9016_v1 }
  0xa1   : > { %7963 = vmatpush3.bf16.msk.msra.mxu1 %vm7962_vm3, %v13659_v13  ;;  %2903 = vmatmul.mubr.f32.vlgmr.msra.gmra.mrb[0].mxu0 %v241_v16  ;;  %vm1894_vm4 = vmand %vm869_vm14, %vm1382_vm15  ;;  %vm902_vm15 = vcmp.ge.s32.totalorder %v387_v23, %v9023_v5  ;;  %vm885_vm3 = vcmp.ge.s32.totalorder %v370_v25, %v9023_v5  ;;  %v351_v16 = vadd.s32 616, %v9016_v1  ;;  %v368_v23 = vadd.s32 752, %v9016_v1 }
  0xa2   : > { %vm1895_vm7 = vmand %vm870_vm1, %vm1383_vm2  ;;  %3042 = vmatprep.mubr.f32.mxu0 %v246_v18  ;;  %v399_v18 = vadd.s32 1000, %v9016_v1 }
  0xa3   : > { %vm7964_vm10 = vmpackc.low %vm1895_vm7, %vm1894_vm4  ;;  %vm1398_vm4 = vcmp.lt.s32.totalorder %v370_v25, %v9028_v7  ;;  %vm1399_vm7 = vcmp.lt.s32.totalorder %v371_v26, %v9028_v7  ;;  %v352_v25 = vadd.s32 624, %v9016_v1 }
  0xa4   : > { %2973 = vmatmul.mubr.f32.vlgmr.msra.gmra.mrb[0].mxu1 %v243_v22  ;;  %7965 = vmatprep.subr.msk.bf16.mxu0 %vm7964_vm10, %v13659_v13  ;;  %vm1878_vm11 = vmand %vm853_vm5, %vm1366_vm6  ;;  %vm886_vm6 = vcmp.ge.s32.totalorder %v371_v26, %v9023_v5  ;;  %vm871_vm10 = vcmp.ge.s32.totalorder %v356_v29, %v9023_v5  ;;  %v383_v22 = vadd.s32 872, %v9016_v1  ;;  %v353_v26 = vadd.s32 632, %v9016_v1 }
  0xa5   : > { %vm1879_vm14 = vmand %vm854_vm8, %vm1367_vm9  ;;  %3112 = vmatprep.mubr.f32.mxu1 %v248_v24  ;;  %v369_v24 = vadd.s32 760, %v9016_v1 }
  0xa6   : > { %vm7966_vm1 = vmpackc.low %vm1879_vm14, %vm1878_vm11  ;;  %vm1384_vm11 = vcmp.lt.s32.totalorder %v356_v29, %v9028_v7  ;;  %vm1385_vm14 = vcmp.lt.s32.totalorder %v357_v30, %v9028_v7  ;;  %v400_v29 = vadd.s32 1008, %v9016_v1 }
  0xa7   : > { %7967 = vmatpush3.bf16.msk.msra.mxu0 %vm7966_vm1, %v13659_v13  ;;  %vm1926_vm2 = vmand %vm901_vm12, %vm1414_vm13  ;;  %vm872_vm13 = vcmp.ge.s32.totalorder %v357_v30, %v9023_v5  ;;  %vm855_vm1 = vcmp.ge.s32.totalorder %v340_v31, %v9023_v5  ;;  %v401_v30 = vadd.s32 1016, %v9016_v1 }
  0xa8   : > { %vm1927_vm5 = vmand %vm902_vm15, %vm1415_vm0 }
  0xa9   : > { %vm7996_vm8 = vmpackc.low %vm1927_vm5, %vm1926_vm2  ;;  %vm1368_vm2 = vcmp.lt.s32.totalorder %v340_v31, %v9028_v7  ;;  %vm1369_vm5 = vcmp.lt.s32.totalorder %v341_v32, %v9028_v7  ;;  %v384_v31 = vadd.s32 880, %v9016_v1 }
  0xaa   : > { %7997 = vmatprep.subr.msk.bf16.mxu1 %vm7996_vm8, %v13659_v13  ;;  %vm1910_vm9 = vmand %vm885_vm3, %vm1398_vm4  ;;  %vm856_vm4 = vcmp.ge.s32.totalorder %v341_v32, %v9023_v5  ;;  %vm903_vm8 = vcmp.ge.s32.totalorder %v388_v33, %v9023_v5  ;;  %v385_v32 = vadd.s32 888, %v9016_v1 }
  0xab   : > { %vm1911_vm12 = vmand %vm886_vm6, %vm1399_vm7 }
  0xac   : > { %vm7998_vm15 = vmpackc.low %vm1911_vm12, %vm1910_vm9  ;;  %vm1416_vm9 = vcmp.lt.s32.totalorder %v388_v33, %v9028_v7  ;;  %vm1417_vm12 = vcmp.lt.s32.totalorder %v389_v34, %v9028_v7  ;;  %v418_v33 = vadd.s32 1152, %v9016_v1 }
  0xad   : > { %7999 = vmatpush3.bf16.msk.msra.mxu1 %vm7998_vm15, %v13659_v13  ;;  %vm1896_vm0 = vmand %vm871_vm10, %vm1384_vm11  ;;  %vm904_vm11 = vcmp.ge.s32.totalorder %v389_v34, %v9023_v5  ;;  %vm887_vm15 = vcmp.ge.s32.totalorder %v372_v37, %v9023_v5  ;;  %v245_v34 = vld [vmem:[%s9010_s15 + $0x20] sm:$0xff] }
  0xae   : > { %vm1897_vm3 = vmand %vm872_vm13, %vm1385_vm14 }
  0xaf   : > { %vm7968_vm6 = vmpackc.low %vm1897_vm3, %vm1896_vm0  ;;  %vm1400_vm0 = vcmp.lt.s32.totalorder %v372_v37, %v9028_v7  ;;  %vm1401_vm3 = vcmp.lt.s32.totalorder %v373_v38, %v9028_v7  ;;  %v419_v37 = vadd.s32 1160, %v9016_v1 }
  0xb0   : > { %7969 = vmatprep.subr.msk.bf16.mxu0 %vm7968_vm6, %v13659_v13  ;;  %vm1880_vm7 = vmand %vm855_vm1, %vm1368_vm2  ;;  %vm888_vm2 = vcmp.ge.s32.totalorder %v373_v38, %v9023_v5  ;;  %vm873_vm6 = vcmp.ge.s32.totalorder %v358_v39, %v9023_v5  ;;  %v250_v38 = vld [vmem:[%s9010_s15 + $0x48] sm:$0xff] }
  0xb1   : > { %vm1881_vm10 = vmand %vm856_vm4, %vm1369_vm5 }
  0xb2   : > { %vm7970_vm13 = vmpackc.low %vm1881_vm10, %vm1880_vm7  ;;  %vm1386_vm7 = vcmp.lt.s32.totalorder %v358_v39, %v9028_v7  ;;  %vm1387_vm10 = vcmp.lt.s32.totalorder %v359_v40, %v9028_v7  ;;  %v402_v39 = vadd.s32 1024, %v9016_v1 }
  0xb3   : > { %7971 = vmatpush3.bf16.msk.msra.mxu0 %vm7970_vm13, %v13659_v13  ;;  %vm1928_vm14 = vmand %vm903_vm8, %vm1416_vm9  ;;  %vm874_vm9 = vcmp.ge.s32.totalorder %v359_v40, %v9023_v5  ;;  %vm857_vm13 = vcmp.ge.s32.totalorder %v342_v41, %v9023_v5  ;;  %v403_v40 = vadd.s32 1032, %v9016_v1 }
  0xb4   : > { %vm1929_vm1 = vmand %vm904_vm11, %vm1417_vm12 }
  0xb5   : > { %vm8000_vm4 = vmpackc.low %vm1929_vm1, %vm1928_vm14  ;;  %vm1370_vm14 = vcmp.lt.s32.totalorder %v342_v41, %v9028_v7  ;;  %vm1371_vm1 = vcmp.lt.s32.totalorder %v343_v42, %v9028_v7  ;;  %v450_v41 = vadd.s32 1408, %v9016_v1 }
  0xb6   : > { %8001 = vmatprep.subr.msk.bf16.mxu1 %vm8000_vm4, %v13659_v13  ;;  %vm1912_vm5 = vmand %vm887_vm15, %vm1400_vm0  ;;  %vm858_vm0 = vcmp.ge.s32.totalorder %v343_v42, %v9023_v5  ;;  %vm905_vm4 = vcmp.ge.s32.totalorder %v390_v43, %v9023_v5  ;;  %v451_v42 = vadd.s32 1416, %v9016_v1 }
  0xb7   : > { %vm1913_vm8 = vmand %vm888_vm2, %vm1401_vm3 }
  0xb8   : > { %vm8002_vm11 = vmpackc.low %vm1913_vm8, %vm1912_vm5  ;;  %vm1418_vm5 = vcmp.lt.s32.totalorder %v390_v43, %v9028_v7  ;;  %vm1419_vm8 = vcmp.lt.s32.totalorder %v391_v44, %v9028_v7  ;;  %v247_v43 = vld [vmem:[%s9010_s15 + $0x30] sm:$0xff] }
  0xb9   : > { %8003 = vmatpush3.bf16.msk.msra.mxu1 %vm8002_vm11, %v13659_v13  ;;  %vm1898_vm12 = vmand %vm873_vm6, %vm1386_vm7  ;;  %vm906_vm7 = vcmp.ge.s32.totalorder %v391_v44, %v9023_v5  ;;  %vm889_vm11 = vcmp.ge.s32.totalorder %v374_v45, %v9023_v5  ;;  %v252_v44 = vld [vmem:[%s9010_s15 + $0x58] sm:$0xff] }
  0xba   : > { %vm1899_vm15 = vmand %vm874_vm9, %vm1387_vm10 }
  0xbb   : > { %vm7972_vm2 = vmpackc.low %vm1899_vm15, %vm1898_vm12  ;;  %vm1402_vm12 = vcmp.lt.s32.totalorder %v374_v45, %v9028_v7  ;;  %vm1403_vm15 = vcmp.lt.s32.totalorder %v375_v46, %v9028_v7  ;;  %v434_v45 = vadd.s32 1280, %v9016_v1 }
  0xbc   : > { %7973 = vmatprep.subr.msk.bf16.mxu0 %vm7972_vm2, %v13659_v13  ;;  %vm1882_vm3 = vmand %vm857_vm13, %vm1370_vm14  ;;  %vm890_vm14 = vcmp.ge.s32.totalorder %v375_v46, %v9023_v5  ;;  %vm875_vm2 = vcmp.ge.s32.totalorder %v360_v47, %v9023_v5  ;;  %v435_v46 = vadd.s32 1288, %v9016_v1 }
  0xbd   : > { %vm1883_vm6 = vmand %vm858_vm0, %vm1371_vm1 }
  0xbe   : > { %vm7974_vm9 = vmpackc.low %vm1883_vm6, %vm1882_vm3  ;;  %vm1388_vm3 = vcmp.lt.s32.totalorder %v360_v47, %v9028_v7  ;;  %vm1389_vm6 = vcmp.lt.s32.totalorder %v361_v48, %v9028_v7  ;;  %v420_v47 = vadd.s32 1168, %v9016_v1 }
  0xbf   : > { %7975 = vmatpush3.bf16.msk.msra.mxu0 %vm7974_vm9, %v13659_v13  ;;  %vm1930_vm10 = vmand %vm905_vm4, %vm1418_vm5  ;;  %vm876_vm5 = vcmp.ge.s32.totalorder %v361_v48, %v9023_v5  ;;  %vm859_vm9 = vcmp.ge.s32.totalorder %v344_v49, %v9023_v5  ;;  %v421_v48 = vadd.s32 1176, %v9016_v1 }
  0xc0   : > { %vm1931_vm13 = vmand %vm906_vm7, %vm1419_vm8 }
  0xc1   : > { %vm8004_vm0 = vmpackc.low %vm1931_vm13, %vm1930_vm10  ;;  %vm1372_vm10 = vcmp.lt.s32.totalorder %v344_v49, %v9028_v7  ;;  %vm1373_vm13 = vcmp.lt.s32.totalorder %v345_v50, %v9028_v7  ;;  %v404_v49 = vadd.s32 1040, %v9016_v1 }
  0xc2   : > { %8005 = vmatprep.subr.msk.bf16.mxu1 %vm8004_vm0, %v13659_v13  ;;  %vm1914_vm1 = vmand %vm889_vm11, %vm1402_vm12  ;;  %vm860_vm12 = vcmp.ge.s32.totalorder %v345_v50, %v9023_v5  ;;  %vm907_vm0 = vcmp.ge.s32.totalorder %v392_v51, %v9023_v5  ;;  %v405_v50 = vadd.s32 1048, %v9016_v1 }
  0xc3   : > { %vm1915_vm4 = vmand %vm890_vm14, %vm1403_vm15 }
  0xc4   : > { %vm8006_vm7 = vmpackc.low %vm1915_vm4, %vm1914_vm1  ;;  %vm1420_vm1 = vcmp.lt.s32.totalorder %v392_v51, %v9028_v7  ;;  %vm1421_vm4 = vcmp.lt.s32.totalorder %v393_v52, %v9028_v7  ;;  %v452_v51 = vadd.s32 1424, %v9016_v1 }
  0xc5   : > { %8007 = vmatpush3.bf16.msk.msra.mxu1 %vm8006_vm7, %v13659_v13  ;;  %vm1900_vm8 = vmand %vm875_vm2, %vm1388_vm3  ;;  %vm908_vm3 = vcmp.ge.s32.totalorder %v393_v52, %v9023_v5  ;;  %vm891_vm7 = vcmp.ge.s32.totalorder %v376_v53, %v9023_v5  ;;  %v453_v52 = vadd.s32 1432, %v9016_v1 }
  0xc6   : > { %vm1901_vm11 = vmand %vm876_vm5, %vm1389_vm6 }
  0xc7   : > { %vm7976_vm14 = vmpackc.low %vm1901_vm11, %vm1900_vm8  ;;  %vm1404_vm8 = vcmp.lt.s32.totalorder %v376_v53, %v9028_v7  ;;  %vm1405_vm11 = vcmp.lt.s32.totalorder %v377_v54, %v9028_v7  ;;  %v436_v53 = vadd.s32 1296, %v9016_v1 }
  0xc8   : > { %7977 = vmatprep.subr.msk.bf16.mxu0 %vm7976_vm14, %v13659_v13  ;;  %vm1884_vm15 = vmand %vm859_vm9, %vm1372_vm10  ;;  %vm892_vm10 = vcmp.ge.s32.totalorder %v377_v54, %v9023_v5  ;;  %vm877_vm14 = vcmp.ge.s32.totalorder %v362_v55, %v9023_v5  ;;  %v437_v54 = vadd.s32 1304, %v9016_v1 }
  0xc9   : > { %vm1885_vm2 = vmand %vm860_vm12, %vm1373_vm13 }
  0xca   : > { %vm7978_vm5 = vmpackc.low %vm1885_vm2, %vm1884_vm15  ;;  %vm1390_vm15 = vcmp.lt.s32.totalorder %v362_v55, %v9028_v7  ;;  %vm1391_vm2 = vcmp.lt.s32.totalorder %v363_v56, %v9028_v7  ;;  %v422_v55 = vadd.s32 1184, %v9016_v1 }
  0xcb   : > { %7979 = vmatpush3.bf16.msk.msra.mxu0 %vm7978_vm5, %v13659_v13  ;;  %vm1932_vm6 = vmand %vm907_vm0, %vm1420_vm1  ;;  %vm878_vm1 = vcmp.ge.s32.totalorder %v363_v56, %v9023_v5  ;;  %vm861_vm5 = vcmp.ge.s32.totalorder %v346_v57, %v9023_v5  ;;  %v423_v56 = vadd.s32 1192, %v9016_v1 }
  0xcc   : > { %vm1933_vm9 = vmand %vm908_vm3, %vm1421_vm4 }
  0xcd   : > { %vm8008_vm12 = vmpackc.low %vm1933_vm9, %vm1932_vm6  ;;  %vm1374_vm6 = vcmp.lt.s32.totalorder %v346_v57, %v9028_v7  ;;  %vm1375_vm9 = vcmp.lt.s32.totalorder %v347_v58, %v9028_v7  ;;  %v406_v57 = vadd.s32 1056, %v9016_v1 }
  0xce   : > { %8009 = vmatprep.subr.msk.bf16.mxu1 %vm8008_vm12, %v13659_v13  ;;  %vm1916_vm13 = vmand %vm891_vm7, %vm1404_vm8  ;;  %vm862_vm8 = vcmp.ge.s32.totalorder %v347_v58, %v9023_v5  ;;  %vm909_vm12 = vcmp.ge.s32.totalorder %v394_v59, %v9023_v5  ;;  %v407_v58 = vadd.s32 1064, %v9016_v1 }
  0xcf   : > { %vm1917_vm0 = vmand %vm892_vm10, %vm1405_vm11 }
  0xd0   : > { %vm8010_vm3 = vmpackc.low %vm1917_vm0, %vm1916_vm13  ;;  %vm1422_vm13 = vcmp.lt.s32.totalorder %v394_v59, %v9028_v7  ;;  %vm1423_vm0 = vcmp.lt.s32.totalorder %v395_v60, %v9028_v7  ;;  %v454_v59 = vadd.s32 1440, %v9016_v1 }
  0xd1   : > { %8011 = vmatpush3.bf16.msk.msra.mxu1 %vm8010_vm3, %v13659_v13  ;;  %vm1902_vm4 = vmand %vm877_vm14, %vm1390_vm15  ;;  %vm910_vm15 = vcmp.ge.s32.totalorder %v395_v60, %v9023_v5  ;;  %vm893_vm3 = vcmp.ge.s32.totalorder %v378_v61, %v9023_v5  ;;  %v455_v60 = vadd.s32 1448, %v9016_v1 }
  0xd2   : > { %vm1903_vm7 = vmand %vm878_vm1, %vm1391_vm2 }
  0xd3   : > { %vm7980_vm10 = vmpackc.low %vm1903_vm7, %vm1902_vm4  ;;  %vm1406_vm4 = vcmp.lt.s32.totalorder %v378_v61, %v9028_v7  ;;  %vm1407_vm7 = vcmp.lt.s32.totalorder %v379_v62, %v9028_v7  ;;  %v438_v61 = vadd.s32 1312, %v9016_v1 }
  0xd4   : > { %7981 = vmatprep.subr.msk.bf16.mxu0 %vm7980_vm10, %v13659_v13  ;;  %vm1886_vm11 = vmand %vm861_vm5, %vm1374_vm6  ;;  %vm894_vm6 = vcmp.ge.s32.totalorder %v379_v62, %v9023_v5  ;;  %vm879_vm10 = vcmp.ge.s32.totalorder %v364_v63, %v9023_v5  ;;  %v439_v62 = vadd.s32 1320, %v9016_v1 }
  0xd5   : > { %vm1887_vm14 = vmand %vm862_vm8, %vm1375_vm9 }
  0xd6   : > { %vm7982_vm1 = vmpackc.low %vm1887_vm14, %vm1886_vm11  ;;  %vm1392_vm11 = vcmp.lt.s32.totalorder %v364_v63, %v9028_v7  ;;  %vm1393_vm14 = vcmp.lt.s32.totalorder %v365_v0, %v9028_v7  ;;  %v424_v63 = vadd.s32 1200, %v9016_v1 }
  0xd7   : > { %7983 = vmatpush3.bf16.msk.msra.mxu0 %vm7982_vm1, %v13659_v13  ;;  %vm1934_vm2 = vmand %vm909_vm12, %vm1422_vm13  ;;  %vm880_vm13 = vcmp.ge.s32.totalorder %v365_v0, %v9023_v5  ;;  %vm863_vm1 = vcmp.ge.s32.totalorder %v348_v3, %v9023_v5  ;;  %v425_v0 = vadd.s32 1208, %v9016_v1 }
  0xd8   : > { %vm1935_vm5 = vmand %vm910_vm15, %vm1423_vm0 }
  0xd9   : > { %vm8012_vm8 = vmpackc.low %vm1935_vm5, %vm1934_vm2  ;;  %vm1376_vm2 = vcmp.lt.s32.totalorder %v348_v3, %v9028_v7  ;;  %vm1377_vm5 = vcmp.lt.s32.totalorder %v349_v4, %v9028_v7  ;;  %v408_v3 = vadd.s32 1072, %v9016_v1 }
  0xda   : > { %8013 = vmatprep.subr.msk.bf16.mxu1 %vm8012_vm8, %v13659_v13  ;;  %vm1918_vm9 = vmand %vm893_vm3, %vm1406_vm4  ;;  %vm864_vm4 = vcmp.ge.s32.totalorder %v349_v4, %v9023_v5  ;;  %vm911_vm8 = vcmp.ge.s32.totalorder %v396_v6, %v9023_v5  ;;  %v409_v4 = vadd.s32 1080, %v9016_v1 }
  0xdb   : > { %vm1919_vm12 = vmand %vm894_vm6, %vm1407_vm7 }
  0xdc   : > { %vm8014_vm15 = vmpackc.low %vm1919_vm12, %vm1918_vm9  ;;  %vm1424_vm9 = vcmp.lt.s32.totalorder %v396_v6, %v9028_v7  ;;  %vm1425_vm12 = vcmp.lt.s32.totalorder %v397_v8, %v9028_v7  ;;  %v456_v6 = vadd.s32 1456, %v9016_v1 }
  0xdd   : > { %8015 = vmatpush3.bf16.msk.msra.mxu1 %vm8014_vm15, %v13659_v13  ;;  %vm1904_vm0 = vmand %vm879_vm10, %vm1392_vm11  ;;  %vm912_vm11 = vcmp.ge.s32.totalorder %v397_v8, %v9023_v5  ;;  %vm895_vm15 = vcmp.ge.s32.totalorder %v380_v9, %v9023_v5  ;;  %v457_v8 = vadd.s32 1464, %v9016_v1 }
  0xde   : > { %vm1905_vm3 = vmand %vm880_vm13, %vm1393_vm14 }
  0xdf   : > { %vm7984_vm6 = vmpackc.low %vm1905_vm3, %vm1904_vm0  ;;  %vm1408_vm0 = vcmp.lt.s32.totalorder %v380_v9, %v9028_v7  ;;  %vm1409_vm3 = vcmp.lt.s32.totalorder %v381_v10, %v9028_v7  ;;  %v440_v9 = vadd.s32 1328, %v9016_v1 }
  0xe0   : > { %7985 = vmatprep.subr.msk.bf16.mxu0 %vm7984_vm6, %v13659_v13  ;;  %vm1888_vm7 = vmand %vm863_vm1, %vm1376_vm2  ;;  %vm896_vm2 = vcmp.ge.s32.totalorder %v381_v10, %v9023_v5  ;;  %vm881_vm6 = vcmp.ge.s32.totalorder %v366_v12, %v9023_v5  ;;  %v441_v10 = vadd.s32 1336, %v9016_v1 }
  0xe1   : > { %vm1889_vm10 = vmand %vm864_vm4, %vm1377_vm5 }
  0xe2   : > { %vm7986_vm13 = vmpackc.low %vm1889_vm10, %vm1888_vm7  ;;  %vm1394_vm7 = vcmp.lt.s32.totalorder %v366_v12, %v9028_v7  ;;  %vm1395_vm10 = vcmp.lt.s32.totalorder %v367_v14, %v9028_v7  ;;  %v426_v12 = vadd.s32 1216, %v9016_v1 }
  0xe3   : > { %7987 = vmatpush3.bf16.msk.msra.mxu0 %vm7986_vm13, %v13659_v13  ;;  %vm1936_vm14 = vmand %vm911_vm8, %vm1424_vm9  ;;  %vm882_vm9 = vcmp.ge.s32.totalorder %v367_v14, %v9023_v5  ;;  %vm865_vm13 = vcmp.ge.s32.totalorder %v350_v15, %v9023_v5  ;;  %v427_v14 = vadd.s32 1224, %v9016_v1 }
  0xe4   : > { %vm1937_vm1 = vmand %vm912_vm11, %vm1425_vm12 }
  0xe5   : > { %vm8016_vm4 = vmpackc.low %vm1937_vm1, %vm1936_vm14  ;;  %vm1378_vm14 = vcmp.lt.s32.totalorder %v350_v15, %v9028_v7  ;;  %vm1379_vm1 = vcmp.lt.s32.totalorder %v351_v16, %v9028_v7  ;;  %v410_v15 = vadd.s32 1088, %v9016_v1 }
  0xe6   : > { %8017 = vmatprep.subr.msk.bf16.mxu1 %vm8016_vm4, %v13659_v13  ;;  %vm1920_vm5 = vmand %vm895_vm15, %vm1408_vm0  ;;  %vm866_vm0 = vcmp.ge.s32.totalorder %v351_v16, %v9023_v5  ;;  %vm913_vm4 = vcmp.ge.s32.totalorder %v398_v17, %v9023_v5  ;;  %v411_v16 = vadd.s32 1096, %v9016_v1 }
  0xe7   : > { %vm1921_vm8 = vmand %vm896_vm2, %vm1409_vm3 }
  0xe8   : > { %vm8018_vm11 = vmpackc.low %vm1921_vm8, %vm1920_vm5  ;;  %vm1426_vm5 = vcmp.lt.s32.totalorder %v398_v17, %v9028_v7  ;;  %vm1427_vm8 = vcmp.lt.s32.totalorder %v399_v18, %v9028_v7  ;;  %v458_v17 = vadd.s32 1472, %v9016_v1 }
  0xe9   : > { %8019 = vmatpush3.bf16.msk.msra.mxu1 %vm8018_vm11, %v13659_v13  ;;  %vm1906_vm12 = vmand %vm881_vm6, %vm1394_vm7  ;;  %vm914_vm7 = vcmp.ge.s32.totalorder %v399_v18, %v9023_v5  ;;  %vm897_vm11 = vcmp.ge.s32.totalorder %v382_v21, %v9023_v5  ;;  %v459_v18 = vadd.s32 1480, %v9016_v1 }
  0xea   : > { %vm1907_vm15 = vmand %vm882_vm9, %vm1395_vm10 }
  0xeb   : > { %vm7988_vm2 = vmpackc.low %vm1907_vm15, %vm1906_vm12  ;;  %vm1410_vm12 = vcmp.lt.s32.totalorder %v382_v21, %v9028_v7  ;;  %vm1411_vm15 = vcmp.lt.s32.totalorder %v383_v22, %v9028_v7  ;;  %v442_v21 = vadd.s32 1344, %v9016_v1 }
  0xec   : > { %7989 = vmatprep.subr.msk.bf16.mxu0 %vm7988_vm2, %v13659_v13  ;;  %vm1890_vm3 = vmand %vm865_vm13, %vm1378_vm14  ;;  %vm898_vm14 = vcmp.ge.s32.totalorder %v383_v22, %v9023_v5  ;;  %vm883_vm2 = vcmp.ge.s32.totalorder %v368_v23, %v9023_v5  ;;  %v443_v22 = vadd.s32 1352, %v9016_v1 }
  0xed   : > { %vm1891_vm6 = vmand %vm866_vm0, %vm1379_vm1 }
  0xee   : > { %vm7990_vm9 = vmpackc.low %vm1891_vm6, %vm1890_vm3  ;;  %vm1396_vm3 = vcmp.lt.s32.totalorder %v368_v23, %v9028_v7  ;;  %vm1397_vm6 = vcmp.lt.s32.totalorder %v369_v24, %v9028_v7  ;;  %v428_v23 = vadd.s32 1232, %v9016_v1 }
  0xef   : > { %7991 = vmatpush3.bf16.msk.msra.mxu0 %vm7990_vm9, %v13659_v13  ;;  %vm1938_vm10 = vmand %vm913_vm4, %vm1426_vm5  ;;  %vm884_vm5 = vcmp.ge.s32.totalorder %v369_v24, %v9023_v5  ;;  %vm867_vm9 = vcmp.ge.s32.totalorder %v352_v25, %v9023_v5  ;;  %v429_v24 = vadd.s32 1240, %v9016_v1 }
  0xf0   : > { %vm1939_vm13 = vmand %vm914_vm7, %vm1427_vm8 }
  0xf1   : > { %vm8020_vm0 = vmpackc.low %vm1939_vm13, %vm1938_vm10  ;;  %vm1380_vm10 = vcmp.lt.s32.totalorder %v352_v25, %v9028_v7  ;;  %vm1381_vm13 = vcmp.lt.s32.totalorder %v353_v26, %v9028_v7  ;;  %v412_v25 = vadd.s32 1104, %v9016_v1 }
  0xf2   : > { %8021 = vmatprep.subr.msk.bf16.mxu1 %vm8020_vm0, %v13659_v13  ;;  %vm1922_vm1 = vmand %vm897_vm11, %vm1410_vm12  ;;  %vm868_vm12 = vcmp.ge.s32.totalorder %v353_v26, %v9023_v5  ;;  %vm915_vm0 = vcmp.ge.s32.totalorder %v400_v29, %v9023_v5  ;;  %v413_v26 = vadd.s32 1112, %v9016_v1 }
  0xf3   : > { %vm1923_vm4 = vmand %vm898_vm14, %vm1411_vm15 }
  0xf4   : > { %vm8022_vm7 = vmpackc.low %vm1923_vm4, %vm1922_vm1  ;;  %vm1428_vm1 = vcmp.lt.s32.totalorder %v400_v29, %v9028_v7  ;;  %vm1429_vm4 = vcmp.lt.s32.totalorder %v401_v30, %v9028_v7  ;;  %v460_v29 = vadd.s32 1488, %v9016_v1 }
  0xf5   : > { %8023 = vmatpush3.bf16.msk.msra.mxu1 %vm8022_vm7, %v13659_v13  ;;  %vm1908_vm8 = vmand %vm883_vm2, %vm1396_vm3  ;;  %vm916_vm3 = vcmp.ge.s32.totalorder %v401_v30, %v9023_v5  ;;  %vm899_vm7 = vcmp.ge.s32.totalorder %v384_v31, %v9023_v5  ;;  %v461_v30 = vadd.s32 1496, %v9016_v1 }
  0xf6   : > { %vm1909_vm11 = vmand %vm884_vm5, %vm1397_vm6 }
  0xf7   : > { %vm7992_vm14 = vmpackc.low %vm1909_vm11, %vm1908_vm8  ;;  %vm1412_vm8 = vcmp.lt.s32.totalorder %v384_v31, %v9028_v7  ;;  %vm1413_vm11 = vcmp.lt.s32.totalorder %v385_v32, %v9028_v7  ;;  %v444_v31 = vadd.s32 1360, %v9016_v1 }
  0xf8   : > { %7993 = vmatprep.subr.msk.bf16.mxu0 %vm7992_vm14, %v13659_v13  ;;  %vm1892_vm15 = vmand %vm867_vm9, %vm1380_vm10  ;;  %vm900_vm10 = vcmp.ge.s32.totalorder %v385_v32, %v9023_v5  ;;  %vm933_vm14 = vcmp.ge.s32.totalorder %v418_v33, %v9023_v5  ;;  %v445_v32 = vadd.s32 1368, %v9016_v1 }
  0xf9   : > { %vm1893_vm2 = vmand %vm868_vm12, %vm1381_vm13 }
  0xfa   : > { %vm7994_vm5 = vmpackc.low %vm1893_vm2, %vm1892_vm15  ;;  %vm1446_vm15 = vcmp.lt.s32.totalorder %v418_v33, %v9028_v7  ;;  %vm1447_vm2 = vcmp.lt.s32.totalorder %v419_v37, %v9028_v7  ;;  %v430_v33 = vadd.s32 1248, %v9016_v1 }
  0xfb   : > { %7995 = vmatpush3.bf16.msk.msra.mxu0 %vm7994_vm5, %v13659_v13  ;;  %vm1940_vm6 = vmand %vm915_vm0, %vm1428_vm1  ;;  %vm934_vm1 = vcmp.ge.s32.totalorder %v419_v37, %v9023_v5  ;;  %vm917_vm5 = vcmp.ge.s32.totalorder %v402_v39, %v9023_v5  ;;  %v414_v37 = vadd.s32 1120, %v9016_v1 }
  0xfc   : > { %vm1941_vm9 = vmand %vm916_vm3, %vm1429_vm4 }
  0xfd   : > { %vm8024_vm12 = vmpackc.low %vm1941_vm9, %vm1940_vm6  ;;  %vm1430_vm6 = vcmp.lt.s32.totalorder %v402_v39, %v9028_v7  ;;  %vm1431_vm9 = vcmp.lt.s32.totalorder %v403_v40, %v9028_v7  ;;  %v462_v39 = vadd.s32 1504, %v9016_v1 }
  0xfe   : > { %8025 = vmatprep.subr.msk.bf16.mxu1 %vm8024_vm12, %v13659_v13  ;;  %vm1924_vm13 = vmand %vm899_vm7, %vm1412_vm8  ;;  %3043 = vmatmul.mubr.f32.vlgmr.msra.gmra.mrb[2].mxu0 %v245_v34  ;;  %vm918_vm8 = vcmp.ge.s32.totalorder %v403_v40, %v9023_v5  ;;  %vm965_vm12 = vcmp.ge.s32.totalorder %v450_v41, %v9023_v5  ;;  %v431_v34 = vadd.s32 1256, %v9016_v1  ;;  %v463_v40 = vadd.s32 1512, %v9016_v1 }
  0xff   : > { %vm1925_vm0 = vmand %vm900_vm10, %vm1413_vm11  ;;  %3182 = vmatprep.mubr.f32.mxu0 %v250_v38  ;;  %v415_v38 = vadd.s32 1128, %v9016_v1 }
 0x100   : > { %vm8026_vm3 = vmpackc.low %vm1925_vm0, %vm1924_vm13  ;;  %vm1478_vm13 = vcmp.lt.s32.totalorder %v450_v41, %v9028_v7  ;;  %vm1479_vm0 = vcmp.lt.s32.totalorder %v451_v42, %v9028_v7  ;;  %v446_v41 = vadd.s32 1376, %v9016_v1 }
 0x101   : > { %8027 = vmatpush3.bf16.msk.msra.mxu1 %vm8026_vm3, %v13659_v13  ;;  %vm1958_vm4 = vmand %vm933_vm14, %vm1446_vm15  ;;  %vm966_vm15 = vcmp.ge.s32.totalorder %v451_v42, %v9023_v5  ;;  %vm949_vm3 = vcmp.ge.s32.totalorder %v434_v45, %v9023_v5  ;;  %v447_v42 = vadd.s32 1384, %v9016_v1 }
 0x102   : > { %vm1959_vm7 = vmand %vm934_vm1, %vm1447_vm2 }
 0x103   : > { %vm8028_vm10 = vmpackc.low %vm1959_vm7, %vm1958_vm4  ;;  %vm1462_vm4 = vcmp.lt.s32.totalorder %v434_v45, %v9028_v7  ;;  %vm1463_vm7 = vcmp.lt.s32.totalorder %v435_v46, %v9028_v7  ;;  %v416_v45 = vadd.s32 1136, %v9016_v1 }
 0x104   : > { %8029 = vmatprep.subr.msk.bf16.mxu0 %vm8028_vm10, %v13659_v13  ;;  %vm1942_vm11 = vmand %vm917_vm5, %vm1430_vm6  ;;  %3113 = vmatmul.mubr.f32.vlgmr.msra.gmra.mrb[2].mxu1 %v247_v43  ;;  %vm950_vm6 = vcmp.ge.s32.totalorder %v435_v46, %v9023_v5  ;;  %vm935_vm10 = vcmp.ge.s32.totalorder %v420_v47, %v9023_v5  ;;  %v432_v43 = vadd.s32 1264, %v9016_v1  ;;  %v417_v46 = vadd.s32 1144, %v9016_v1 }
 0x105   : > { %vm1943_vm14 = vmand %vm918_vm8, %vm1431_vm9  ;;  %3252 = vmatprep.mubr.f32.mxu1 %v252_v44  ;;  %v433_v44 = vadd.s32 1272, %v9016_v1 }
 0x106   : > { %vm8030_vm1 = vmpackc.low %vm1943_vm14, %vm1942_vm11  ;;  %vm1448_vm11 = vcmp.lt.s32.totalorder %v420_v47, %v9028_v7  ;;  %vm1449_vm14 = vcmp.lt.s32.totalorder %v421_v48, %v9028_v7  ;;  %v464_v47 = vadd.s32 1520, %v9016_v1 }
 0x107   : > { %8031 = vmatpush3.bf16.msk.msra.mxu0 %vm8030_vm1, %v13659_v13  ;;  %vm1990_vm2 = vmand %vm965_vm12, %vm1478_vm13  ;;  %vm936_vm13 = vcmp.ge.s32.totalorder %v421_v48, %v9023_v5  ;;  %vm919_vm1 = vcmp.ge.s32.totalorder %v404_v49, %v9023_v5  ;;  %v465_v48 = vadd.s32 1528, %v9016_v1 }
 0x108   : > { %vm1991_vm5 = vmand %vm966_vm15, %vm1479_vm0 }
 0x109   : > { %vm8060_vm8 = vmpackc.low %vm1991_vm5, %vm1990_vm2  ;;  %vm1432_vm2 = vcmp.lt.s32.totalorder %v404_v49, %v9028_v7  ;;  %vm1433_vm5 = vcmp.lt.s32.totalorder %v405_v50, %v9028_v7  ;;  %v448_v49 = vadd.s32 1392, %v9016_v1 }
 0x10a   : > { %8061 = vmatprep.subr.msk.bf16.mxu1 %vm8060_vm8, %v13659_v13  ;;  %vm1974_vm9 = vmand %vm949_vm3, %vm1462_vm4  ;;  %vm920_vm4 = vcmp.ge.s32.totalorder %v405_v50, %v9023_v5  ;;  %vm967_vm8 = vcmp.ge.s32.totalorder %v452_v51, %v9023_v5  ;;  %v449_v50 = vadd.s32 1400, %v9016_v1 }
 0x10b   : > { %vm1975_vm12 = vmand %vm950_vm6, %vm1463_vm7 }
 0x10c   : > { %vm8062_vm15 = vmpackc.low %vm1975_vm12, %vm1974_vm9  ;;  %vm1480_vm9 = vcmp.lt.s32.totalorder %v452_v51, %v9028_v7  ;;  %vm1481_vm12 = vcmp.lt.s32.totalorder %v453_v52, %v9028_v7  ;;  %v482_v51 = vadd.s32 1664, %v9016_v1 }
 0x10d   : > { %8063 = vmatpush3.bf16.msk.msra.mxu1 %vm8062_vm15, %v13659_v13  ;;  %vm1960_vm0 = vmand %vm935_vm10, %vm1448_vm11  ;;  %vm968_vm11 = vcmp.ge.s32.totalorder %v453_v52, %v9023_v5  ;;  %vm951_vm15 = vcmp.ge.s32.totalorder %v436_v53, %v9023_v5  ;;  %v249_v52 = vld [vmem:[%s9010_s15 + $0x40] sm:$0xff] }
 0x10e   : > { %vm1961_vm3 = vmand %vm936_vm13, %vm1449_vm14 }
 0x10f   : > { %vm8032_vm6 = vmpackc.low %vm1961_vm3, %vm1960_vm0  ;;  %vm1464_vm0 = vcmp.lt.s32.totalorder %v436_v53, %v9028_v7  ;;  %vm1465_vm3 = vcmp.lt.s32.totalorder %v437_v54, %v9028_v7  ;;  %v483_v53 = vadd.s32 1672, %v9016_v1 }
 0x110   : > { %8033 = vmatprep.subr.msk.bf16.mxu0 %vm8032_vm6, %v13659_v13  ;;  %vm1944_vm7 = vmand %vm919_vm1, %vm1432_vm2  ;;  %vm952_vm2 = vcmp.ge.s32.totalorder %v437_v54, %v9023_v5  ;;  %vm937_vm6 = vcmp.ge.s32.totalorder %v422_v55, %v9023_v5  ;;  %v254_v54 = vld [vmem:[%s9010_s15 + $0x68] sm:$0xff] }
 0x111   : > { %vm1945_vm10 = vmand %vm920_vm4, %vm1433_vm5 }
 0x112   : > { %vm8034_vm13 = vmpackc.low %vm1945_vm10, %vm1944_vm7  ;;  %vm1450_vm7 = vcmp.lt.s32.totalorder %v422_v55, %v9028_v7  ;;  %vm1451_vm10 = vcmp.lt.s32.totalorder %v423_v56, %v9028_v7  ;;  %v466_v55 = vadd.s32 1536, %v9016_v1 }
 0x113   : > { %8035 = vmatpush3.bf16.msk.msra.mxu0 %vm8034_vm13, %v13659_v13  ;;  %vm1992_vm14 = vmand %vm967_vm8, %vm1480_vm9  ;;  %vm938_vm9 = vcmp.ge.s32.totalorder %v423_v56, %v9023_v5  ;;  %vm921_vm13 = vcmp.ge.s32.totalorder %v406_v57, %v9023_v5  ;;  %v467_v56 = vadd.s32 1544, %v9016_v1 }
 0x114   : > { %vm1993_vm1 = vmand %vm968_vm11, %vm1481_vm12 }
 0x115   : > { %vm8064_vm4 = vmpackc.low %vm1993_vm1, %vm1992_vm14  ;;  %vm1434_vm14 = vcmp.lt.s32.totalorder %v406_v57, %v9028_v7  ;;  %vm1435_vm1 = vcmp.lt.s32.totalorder %v407_v58, %v9028_v7  ;;  %v514_v57 = vadd.s32 1920, %v9016_v1 }
 0x116   : > { %8065 = vmatprep.subr.msk.bf16.mxu1 %vm8064_vm4, %v13659_v13  ;;  %vm1976_vm5 = vmand %vm951_vm15, %vm1464_vm0  ;;  %vm922_vm0 = vcmp.ge.s32.totalorder %v407_v58, %v9023_v5  ;;  %vm969_vm4 = vcmp.ge.s32.totalorder %v454_v59, %v9023_v5  ;;  %v515_v58 = vadd.s32 1928, %v9016_v1 }
 0x117   : > { %vm1977_vm8 = vmand %vm952_vm2, %vm1465_vm3 }
 0x118   : > { %vm8066_vm11 = vmpackc.low %vm1977_vm8, %vm1976_vm5  ;;  %vm1482_vm5 = vcmp.lt.s32.totalorder %v454_v59, %v9028_v7  ;;  %vm1483_vm8 = vcmp.lt.s32.totalorder %v455_v60, %v9028_v7  ;;  %v251_v59 = vld [vmem:[%s9010_s15 + $0x50] sm:$0xff] }
 0x119   : > { %8067 = vmatpush3.bf16.msk.msra.mxu1 %vm8066_vm11, %v13659_v13  ;;  %vm1962_vm12 = vmand %vm937_vm6, %vm1450_vm7  ;;  %vm970_vm7 = vcmp.ge.s32.totalorder %v455_v60, %v9023_v5  ;;  %vm953_vm11 = vcmp.ge.s32.totalorder %v438_v61, %v9023_v5  ;;  %v256_v60 = vld [vmem:[%s9010_s15 + $0x78] sm:$0xff] }
 0x11a   : > { %vm1963_vm15 = vmand %vm938_vm9, %vm1451_vm10 }
 0x11b   : > { %vm8036_vm2 = vmpackc.low %vm1963_vm15, %vm1962_vm12  ;;  %vm1466_vm12 = vcmp.lt.s32.totalorder %v438_v61, %v9028_v7  ;;  %vm1467_vm15 = vcmp.lt.s32.totalorder %v439_v62, %v9028_v7  ;;  %v498_v61 = vadd.s32 1792, %v9016_v1 }
 0x11c   : > { %8037 = vmatprep.subr.msk.bf16.mxu0 %vm8036_vm2, %v13659_v13  ;;  %vm1946_vm3 = vmand %vm921_vm13, %vm1434_vm14  ;;  %vm954_vm14 = vcmp.ge.s32.totalorder %v439_v62, %v9023_v5  ;;  %vm939_vm2 = vcmp.ge.s32.totalorder %v424_v63, %v9023_v5  ;;  %v499_v62 = vadd.s32 1800, %v9016_v1 }
 0x11d   : > { %vm1947_vm6 = vmand %vm922_vm0, %vm1435_vm1 }
 0x11e   : > { %vm8038_vm9 = vmpackc.low %vm1947_vm6, %vm1946_vm3  ;;  %vm1452_vm3 = vcmp.lt.s32.totalorder %v424_v63, %v9028_v7  ;;  %vm1453_vm6 = vcmp.lt.s32.totalorder %v425_v0, %v9028_v7  ;;  %v484_v63 = vadd.s32 1680, %v9016_v1 }
 0x11f   : > { %8039 = vmatpush3.bf16.msk.msra.mxu0 %vm8038_vm9, %v13659_v13  ;;  %vm1994_vm10 = vmand %vm969_vm4, %vm1482_vm5  ;;  %vm940_vm5 = vcmp.ge.s32.totalorder %v425_v0, %v9023_v5  ;;  %vm923_vm9 = vcmp.ge.s32.totalorder %v408_v3, %v9023_v5  ;;  %v485_v0 = vadd.s32 1688, %v9016_v1 }
 0x120   : > { %vm1995_vm13 = vmand %vm970_vm7, %vm1483_vm8 }
 0x121   : > { %vm8068_vm0 = vmpackc.low %vm1995_vm13, %vm1994_vm10  ;;  %vm1436_vm10 = vcmp.lt.s32.totalorder %v408_v3, %v9028_v7  ;;  %vm1437_vm13 = vcmp.lt.s32.totalorder %v409_v4, %v9028_v7  ;;  %v468_v3 = vadd.s32 1552, %v9016_v1 }
 0x122   : > { %8069 = vmatprep.subr.msk.bf16.mxu1 %vm8068_vm0, %v13659_v13  ;;  %vm1978_vm1 = vmand %vm953_vm11, %vm1466_vm12  ;;  %vm924_vm12 = vcmp.ge.s32.totalorder %v409_v4, %v9023_v5  ;;  %vm971_vm0 = vcmp.ge.s32.totalorder %v456_v6, %v9023_v5  ;;  %v469_v4 = vadd.s32 1560, %v9016_v1 }
 0x123   : > { %vm1979_vm4 = vmand %vm954_vm14, %vm1467_vm15 }
 0x124   : > { %vm8070_vm7 = vmpackc.low %vm1979_vm4, %vm1978_vm1  ;;  %vm1484_vm1 = vcmp.lt.s32.totalorder %v456_v6, %v9028_v7  ;;  %vm1485_vm4 = vcmp.lt.s32.totalorder %v457_v8, %v9028_v7  ;;  %v516_v6 = vadd.s32 1936, %v9016_v1 }
 0x125   : > { %8071 = vmatpush3.bf16.msk.msra.mxu1 %vm8070_vm7, %v13659_v13  ;;  %vm1964_vm8 = vmand %vm939_vm2, %vm1452_vm3  ;;  %vm972_vm3 = vcmp.ge.s32.totalorder %v457_v8, %v9023_v5  ;;  %vm955_vm7 = vcmp.ge.s32.totalorder %v440_v9, %v9023_v5  ;;  %v517_v8 = vadd.s32 1944, %v9016_v1 }
 0x126   : > { %vm1965_vm11 = vmand %vm940_vm5, %vm1453_vm6 }
 0x127   : > { %vm8040_vm14 = vmpackc.low %vm1965_vm11, %vm1964_vm8  ;;  %vm1468_vm8 = vcmp.lt.s32.totalorder %v440_v9, %v9028_v7  ;;  %vm1469_vm11 = vcmp.lt.s32.totalorder %v441_v10, %v9028_v7  ;;  %v500_v9 = vadd.s32 1808, %v9016_v1 }
 0x128   : > { %8041 = vmatprep.subr.msk.bf16.mxu0 %vm8040_vm14, %v13659_v13  ;;  %vm1948_vm15 = vmand %vm923_vm9, %vm1436_vm10  ;;  %vm956_vm10 = vcmp.ge.s32.totalorder %v441_v10, %v9023_v5  ;;  %vm941_vm14 = vcmp.ge.s32.totalorder %v426_v12, %v9023_v5  ;;  %v501_v10 = vadd.s32 1816, %v9016_v1 }
 0x129   : > { %vm1949_vm2 = vmand %vm924_vm12, %vm1437_vm13 }
 0x12a   : > { %vm8042_vm5 = vmpackc.low %vm1949_vm2, %vm1948_vm15  ;;  %vm1454_vm15 = vcmp.lt.s32.totalorder %v426_v12, %v9028_v7  ;;  %vm1455_vm2 = vcmp.lt.s32.totalorder %v427_v14, %v9028_v7  ;;  %v486_v12 = vadd.s32 1696, %v9016_v1 }
 0x12b   : > { %8043 = vmatpush3.bf16.msk.msra.mxu0 %vm8042_vm5, %v13659_v13  ;;  %vm1996_vm6 = vmand %vm971_vm0, %vm1484_vm1  ;;  %vm942_vm1 = vcmp.ge.s32.totalorder %v427_v14, %v9023_v5  ;;  %vm925_vm5 = vcmp.ge.s32.totalorder %v410_v15, %v9023_v5  ;;  %v487_v14 = vadd.s32 1704, %v9016_v1 }
 0x12c   : > { %vm1997_vm9 = vmand %vm972_vm3, %vm1485_vm4 }
 0x12d   : > { %vm8072_vm12 = vmpackc.low %vm1997_vm9, %vm1996_vm6  ;;  %vm1438_vm6 = vcmp.lt.s32.totalorder %v410_v15, %v9028_v7  ;;  %vm1439_vm9 = vcmp.lt.s32.totalorder %v411_v16, %v9028_v7  ;;  %v470_v15 = vadd.s32 1568, %v9016_v1 }
 0x12e   : > { %8073 = vmatprep.subr.msk.bf16.mxu1 %vm8072_vm12, %v13659_v13  ;;  %vm1980_vm13 = vmand %vm955_vm7, %vm1468_vm8  ;;  %vm926_vm8 = vcmp.ge.s32.totalorder %v411_v16, %v9023_v5  ;;  %vm973_vm12 = vcmp.ge.s32.totalorder %v458_v17, %v9023_v5  ;;  %v471_v16 = vadd.s32 1576, %v9016_v1 }
 0x12f   : > { %vm1981_vm0 = vmand %vm956_vm10, %vm1469_vm11 }
 0x130   : > { %vm8074_vm3 = vmpackc.low %vm1981_vm0, %vm1980_vm13  ;;  %vm1486_vm13 = vcmp.lt.s32.totalorder %v458_v17, %v9028_v7  ;;  %vm1487_vm0 = vcmp.lt.s32.totalorder %v459_v18, %v9028_v7  ;;  %v518_v17 = vadd.s32 1952, %v9016_v1 }
 0x131   : > { %8075 = vmatpush3.bf16.msk.msra.mxu1 %vm8074_vm3, %v13659_v13  ;;  %vm1966_vm4 = vmand %vm941_vm14, %vm1454_vm15  ;;  %vm974_vm15 = vcmp.ge.s32.totalorder %v459_v18, %v9023_v5  ;;  %vm957_vm3 = vcmp.ge.s32.totalorder %v442_v21, %v9023_v5  ;;  %v519_v18 = vadd.s32 1960, %v9016_v1 }
 0x132   : > { %vm1967_vm7 = vmand %vm942_vm1, %vm1455_vm2 }
 0x133   : > { %vm8044_vm10 = vmpackc.low %vm1967_vm7, %vm1966_vm4  ;;  %vm1470_vm4 = vcmp.lt.s32.totalorder %v442_v21, %v9028_v7  ;;  %vm1471_vm7 = vcmp.lt.s32.totalorder %v443_v22, %v9028_v7  ;;  %v502_v21 = vadd.s32 1824, %v9016_v1 }
 0x134   : > { %8045 = vmatprep.subr.msk.bf16.mxu0 %vm8044_vm10, %v13659_v13  ;;  %vm1950_vm11 = vmand %vm925_vm5, %vm1438_vm6  ;;  %vm958_vm6 = vcmp.ge.s32.totalorder %v443_v22, %v9023_v5  ;;  %vm943_vm10 = vcmp.ge.s32.totalorder %v428_v23, %v9023_v5  ;;  %v503_v22 = vadd.s32 1832, %v9016_v1 }
 0x135   : > { %vm1951_vm14 = vmand %vm926_vm8, %vm1439_vm9 }
 0x136   : > { %vm8046_vm1 = vmpackc.low %vm1951_vm14, %vm1950_vm11  ;;  %vm1456_vm11 = vcmp.lt.s32.totalorder %v428_v23, %v9028_v7  ;;  %vm1457_vm14 = vcmp.lt.s32.totalorder %v429_v24, %v9028_v7  ;;  %v488_v23 = vadd.s32 1712, %v9016_v1 }
 0x137   : > { %8047 = vmatpush3.bf16.msk.msra.mxu0 %vm8046_vm1, %v13659_v13  ;;  %vm1998_vm2 = vmand %vm973_vm12, %vm1486_vm13  ;;  %vm944_vm13 = vcmp.ge.s32.totalorder %v429_v24, %v9023_v5  ;;  %vm927_vm1 = vcmp.ge.s32.totalorder %v412_v25, %v9023_v5  ;;  %v489_v24 = vadd.s32 1720, %v9016_v1 }
 0x138   : > { %vm1999_vm5 = vmand %vm974_vm15, %vm1487_vm0 }
 0x139   : > { %vm8076_vm8 = vmpackc.low %vm1999_vm5, %vm1998_vm2  ;;  %vm1440_vm2 = vcmp.lt.s32.totalorder %v412_v25, %v9028_v7  ;;  %vm1441_vm5 = vcmp.lt.s32.totalorder %v413_v26, %v9028_v7  ;;  %v472_v25 = vadd.s32 1584, %v9016_v1 }
 0x13a   : > { %8077 = vmatprep.subr.msk.bf16.mxu1 %vm8076_vm8, %v13659_v13  ;;  %vm1982_vm9 = vmand %vm957_vm3, %vm1470_vm4  ;;  %vm928_vm4 = vcmp.ge.s32.totalorder %v413_v26, %v9023_v5  ;;  %vm975_vm8 = vcmp.ge.s32.totalorder %v460_v29, %v9023_v5  ;;  %v473_v26 = vadd.s32 1592, %v9016_v1 }
 0x13b   : > { %vm1983_vm12 = vmand %vm958_vm6, %vm1471_vm7 }
 0x13c   : > { %vm8078_vm15 = vmpackc.low %vm1983_vm12, %vm1982_vm9  ;;  %vm1488_vm9 = vcmp.lt.s32.totalorder %v460_v29, %v9028_v7  ;;  %vm1489_vm12 = vcmp.lt.s32.totalorder %v461_v30, %v9028_v7  ;;  %v520_v29 = vadd.s32 1968, %v9016_v1 }
 0x13d   : > { %8079 = vmatpush3.bf16.msk.msra.mxu1 %vm8078_vm15, %v13659_v13  ;;  %vm1968_vm0 = vmand %vm943_vm10, %vm1456_vm11  ;;  %vm976_vm11 = vcmp.ge.s32.totalorder %v461_v30, %v9023_v5  ;;  %vm959_vm15 = vcmp.ge.s32.totalorder %v444_v31, %v9023_v5  ;;  %v521_v30 = vadd.s32 1976, %v9016_v1 }
 0x13e   : > { %vm1969_vm3 = vmand %vm944_vm13, %vm1457_vm14 }
 0x13f   : > { %vm8048_vm6 = vmpackc.low %vm1969_vm3, %vm1968_vm0  ;;  %vm1472_vm0 = vcmp.lt.s32.totalorder %v444_v31, %v9028_v7  ;;  %vm1473_vm3 = vcmp.lt.s32.totalorder %v445_v32, %v9028_v7  ;;  %v504_v31 = vadd.s32 1840, %v9016_v1 }
 0x140   : > { %8049 = vmatprep.subr.msk.bf16.mxu0 %vm8048_vm6, %v13659_v13  ;;  %vm1952_vm7 = vmand %vm927_vm1, %vm1440_vm2  ;;  %vm960_vm2 = vcmp.ge.s32.totalorder %v445_v32, %v9023_v5  ;;  %vm945_vm6 = vcmp.ge.s32.totalorder %v430_v33, %v9023_v5  ;;  %v505_v32 = vadd.s32 1848, %v9016_v1 }
 0x141   : > { %vm1953_vm10 = vmand %vm928_vm4, %vm1441_vm5 }
 0x142   : > { %vm8050_vm13 = vmpackc.low %vm1953_vm10, %vm1952_vm7  ;;  %vm1458_vm7 = vcmp.lt.s32.totalorder %v430_v33, %v9028_v7  ;;  %vm1459_vm10 = vcmp.lt.s32.totalorder %v431_v34, %v9028_v7  ;;  %v490_v33 = vadd.s32 1728, %v9016_v1 }
 0x143   : > { %8051 = vmatpush3.bf16.msk.msra.mxu0 %vm8050_vm13, %v13659_v13  ;;  %vm2000_vm14 = vmand %vm975_vm8, %vm1488_vm9  ;;  %vm946_vm9 = vcmp.ge.s32.totalorder %v431_v34, %v9023_v5  ;;  %vm929_vm13 = vcmp.ge.s32.totalorder %v414_v37, %v9023_v5  ;;  %v491_v34 = vadd.s32 1736, %v9016_v1 }
 0x144   : > { %vm2001_vm1 = vmand %vm976_vm11, %vm1489_vm12 }
 0x145   : > { %vm8080_vm4 = vmpackc.low %vm2001_vm1, %vm2000_vm14  ;;  %vm1442_vm14 = vcmp.lt.s32.totalorder %v414_v37, %v9028_v7  ;;  %vm1443_vm1 = vcmp.lt.s32.totalorder %v415_v38, %v9028_v7  ;;  %v474_v37 = vadd.s32 1600, %v9016_v1 }
 0x146   : > { %8081 = vmatprep.subr.msk.bf16.mxu1 %vm8080_vm4, %v13659_v13  ;;  %vm1984_vm5 = vmand %vm959_vm15, %vm1472_vm0  ;;  %vm930_vm0 = vcmp.ge.s32.totalorder %v415_v38, %v9023_v5  ;;  %vm977_vm4 = vcmp.ge.s32.totalorder %v462_v39, %v9023_v5  ;;  %v475_v38 = vadd.s32 1608, %v9016_v1 }
 0x147   : > { %vm1985_vm8 = vmand %vm960_vm2, %vm1473_vm3 }
 0x148   : > { %vm8082_vm11 = vmpackc.low %vm1985_vm8, %vm1984_vm5  ;;  %vm1490_vm5 = vcmp.lt.s32.totalorder %v462_v39, %v9028_v7  ;;  %vm1491_vm8 = vcmp.lt.s32.totalorder %v463_v40, %v9028_v7  ;;  %v522_v39 = vadd.s32 1984, %v9016_v1 }
 0x149   : > { %8083 = vmatpush3.bf16.msk.msra.mxu1 %vm8082_vm11, %v13659_v13  ;;  %vm1970_vm12 = vmand %vm945_vm6, %vm1458_vm7  ;;  %vm978_vm7 = vcmp.ge.s32.totalorder %v463_v40, %v9023_v5  ;;  %vm961_vm11 = vcmp.ge.s32.totalorder %v446_v41, %v9023_v5  ;;  %v523_v40 = vadd.s32 1992, %v9016_v1 }
 0x14a   : > { %vm1971_vm15 = vmand %vm946_vm9, %vm1459_vm10 }
 0x14b   : > { %vm8052_vm2 = vmpackc.low %vm1971_vm15, %vm1970_vm12  ;;  %vm1474_vm12 = vcmp.lt.s32.totalorder %v446_v41, %v9028_v7  ;;  %vm1475_vm15 = vcmp.lt.s32.totalorder %v447_v42, %v9028_v7  ;;  %v506_v41 = vadd.s32 1856, %v9016_v1 }
 0x14c   : > { %8053 = vmatprep.subr.msk.bf16.mxu0 %vm8052_vm2, %v13659_v13  ;;  %vm1954_vm3 = vmand %vm929_vm13, %vm1442_vm14  ;;  %vm962_vm14 = vcmp.ge.s32.totalorder %v447_v42, %v9023_v5  ;;  %vm947_vm2 = vcmp.ge.s32.totalorder %v432_v43, %v9023_v5  ;;  %v507_v42 = vadd.s32 1864, %v9016_v1 }
 0x14d   : > { %vm1955_vm6 = vmand %vm930_vm0, %vm1443_vm1 }
 0x14e   : > { %vm8054_vm9 = vmpackc.low %vm1955_vm6, %vm1954_vm3  ;;  %vm1460_vm3 = vcmp.lt.s32.totalorder %v432_v43, %v9028_v7  ;;  %vm1461_vm6 = vcmp.lt.s32.totalorder %v433_v44, %v9028_v7  ;;  %v492_v43 = vadd.s32 1744, %v9016_v1 }
 0x14f   : > { %8055 = vmatpush3.bf16.msk.msra.mxu0 %vm8054_vm9, %v13659_v13  ;;  %vm2002_vm10 = vmand %vm977_vm4, %vm1490_vm5  ;;  %vm948_vm5 = vcmp.ge.s32.totalorder %v433_v44, %v9023_v5  ;;  %vm931_vm9 = vcmp.ge.s32.totalorder %v416_v45, %v9023_v5  ;;  %v493_v44 = vadd.s32 1752, %v9016_v1 }
 0x150   : > { %vm2003_vm13 = vmand %vm978_vm7, %vm1491_vm8 }
 0x151   : > { %vm8084_vm0 = vmpackc.low %vm2003_vm13, %vm2002_vm10  ;;  %vm1444_vm10 = vcmp.lt.s32.totalorder %v416_v45, %v9028_v7  ;;  %vm1445_vm13 = vcmp.lt.s32.totalorder %v417_v46, %v9028_v7  ;;  %v476_v45 = vadd.s32 1616, %v9016_v1 }
 0x152   : > { %8085 = vmatprep.subr.msk.bf16.mxu1 %vm8084_vm0, %v13659_v13  ;;  %vm1986_vm1 = vmand %vm961_vm11, %vm1474_vm12  ;;  %vm932_vm12 = vcmp.ge.s32.totalorder %v417_v46, %v9023_v5  ;;  %vm979_vm0 = vcmp.ge.s32.totalorder %v464_v47, %v9023_v5  ;;  %v477_v46 = vadd.s32 1624, %v9016_v1 }
 0x153   : > { %vm1987_vm4 = vmand %vm962_vm14, %vm1475_vm15 }
 0x154   : > { %vm8086_vm7 = vmpackc.low %vm1987_vm4, %vm1986_vm1  ;;  %vm1492_vm1 = vcmp.lt.s32.totalorder %v464_v47, %v9028_v7  ;;  %vm1493_vm4 = vcmp.lt.s32.totalorder %v465_v48, %v9028_v7  ;;  %v524_v47 = vadd.s32 2000, %v9016_v1 }
 0x155   : > { %8087 = vmatpush3.bf16.msk.msra.mxu1 %vm8086_vm7, %v13659_v13  ;;  %vm1972_vm8 = vmand %vm947_vm2, %vm1460_vm3  ;;  %vm980_vm3 = vcmp.ge.s32.totalorder %v465_v48, %v9023_v5  ;;  %vm963_vm7 = vcmp.ge.s32.totalorder %v448_v49, %v9023_v5  ;;  %v525_v48 = vadd.s32 2008, %v9016_v1 }
 0x156   : > { %vm1973_vm11 = vmand %vm948_vm5, %vm1461_vm6 }
 0x157   : > { %vm8056_vm14 = vmpackc.low %vm1973_vm11, %vm1972_vm8  ;;  %vm1476_vm8 = vcmp.lt.s32.totalorder %v448_v49, %v9028_v7  ;;  %vm1477_vm11 = vcmp.lt.s32.totalorder %v449_v50, %v9028_v7  ;;  %v508_v49 = vadd.s32 1872, %v9016_v1 }
 0x158   : > { %8057 = vmatprep.subr.msk.bf16.mxu0 %vm8056_vm14, %v13659_v13  ;;  %vm1956_vm15 = vmand %vm931_vm9, %vm1444_vm10  ;;  %vm964_vm10 = vcmp.ge.s32.totalorder %v449_v50, %v9023_v5  ;;  %vm997_vm14 = vcmp.ge.s32.totalorder %v482_v51, %v9023_v5  ;;  %v509_v50 = vadd.s32 1880, %v9016_v1 }
 0x159   : > { %vm1957_vm2 = vmand %vm932_vm12, %vm1445_vm13 }
 0x15a   : > { %vm8058_vm5 = vmpackc.low %vm1957_vm2, %vm1956_vm15  ;;  %vm1510_vm15 = vcmp.lt.s32.totalorder %v482_v51, %v9028_v7  ;;  %vm1511_vm2 = vcmp.lt.s32.totalorder %v483_v53, %v9028_v7  ;;  %v494_v51 = vadd.s32 1760, %v9016_v1 }
 0x15b   : > { %8059 = vmatpush3.bf16.msk.msra.mxu0 %vm8058_vm5, %v13659_v13  ;;  %vm2004_vm6 = vmand %vm979_vm0, %vm1492_vm1  ;;  %vm998_vm1 = vcmp.ge.s32.totalorder %v483_v53, %v9023_v5  ;;  %vm981_vm5 = vcmp.ge.s32.totalorder %v466_v55, %v9023_v5  ;;  %v478_v53 = vadd.s32 1632, %v9016_v1 }
 0x15c   : > { %vm2005_vm9 = vmand %vm980_vm3, %vm1493_vm4 }
 0x15d   : > { %vm8088_vm12 = vmpackc.low %vm2005_vm9, %vm2004_vm6  ;;  %vm1494_vm6 = vcmp.lt.s32.totalorder %v466_v55, %v9028_v7  ;;  %vm1495_vm9 = vcmp.lt.s32.totalorder %v467_v56, %v9028_v7  ;;  %v526_v55 = vadd.s32 2016, %v9016_v1 }
 0x15e   : > { %8089 = vmatprep.subr.msk.bf16.mxu1 %vm8088_vm12, %v13659_v13  ;;  %vm1988_vm13 = vmand %vm963_vm7, %vm1476_vm8  ;;  %3183 = vmatmul.mubr.f32.vlgmr.msra.gmra.mrb[4].mxu0 %v249_v52  ;;  %vm982_vm8 = vcmp.ge.s32.totalorder %v467_v56, %v9023_v5  ;;  %vm1029_vm12 = vcmp.ge.s32.totalorder %v514_v57, %v9023_v5  ;;  %v495_v52 = vadd.s32 1768, %v9016_v1  ;;  %v527_v56 = vadd.s32 2024, %v9016_v1 }
 0x15f   : > { %vm1989_vm0 = vmand %vm964_vm10, %vm1477_vm11  ;;  %3322 = vmatprep.mubr.f32.mxu0 %v254_v54  ;;  %v479_v54 = vadd.s32 1640, %v9016_v1 }
 0x160   : > { %vm8090_vm3 = vmpackc.low %vm1989_vm0, %vm1988_vm13  ;;  %vm1542_vm13 = vcmp.lt.s32.totalorder %v514_v57, %v9028_v7  ;;  %vm1543_vm0 = vcmp.lt.s32.totalorder %v515_v58, %v9028_v7  ;;  %v510_v57 = vadd.s32 1888, %v9016_v1 }
 0x161   : > { %8091 = vmatpush3.bf16.msk.msra.mxu1 %vm8090_vm3, %v13659_v13  ;;  %vm2022_vm4 = vmand %vm997_vm14, %vm1510_vm15  ;;  %vm1030_vm15 = vcmp.ge.s32.totalorder %v515_v58, %v9023_v5  ;;  %vm1013_vm3 = vcmp.ge.s32.totalorder %v498_v61, %v9023_v5  ;;  %v511_v58 = vadd.s32 1896, %v9016_v1 }
 0x162   : > { %vm2023_vm7 = vmand %vm998_vm1, %vm1511_vm2 }
 0x163   : > { %vm8092_vm10 = vmpackc.low %vm2023_vm7, %vm2022_vm4  ;;  %vm1526_vm4 = vcmp.lt.s32.totalorder %v498_v61, %v9028_v7  ;;  %vm1527_vm7 = vcmp.lt.s32.totalorder %v499_v62, %v9028_v7  ;;  %v480_v61 = vadd.s32 1648, %v9016_v1 }
 0x164   : > { %8093 = vmatprep.subr.msk.bf16.mxu0 %vm8092_vm10, %v13659_v13  ;;  %vm2006_vm11 = vmand %vm981_vm5, %vm1494_vm6  ;;  %3253 = vmatmul.mubr.f32.vlgmr.msra.gmra.mrb[4].mxu1 %v251_v59  ;;  %vm1014_vm6 = vcmp.ge.s32.totalorder %v499_v62, %v9023_v5  ;;  %vm999_vm10 = vcmp.ge.s32.totalorder %v484_v63, %v9023_v5  ;;  %v496_v59 = vadd.s32 1776, %v9016_v1  ;;  %v481_v62 = vadd.s32 1656, %v9016_v1 }
 0x165   : > { %vm2007_vm14 = vmand %vm982_vm8, %vm1495_vm9  ;;  %3392 = vmatprep.mubr.f32.mxu1 %v256_v60  ;;  %v497_v60 = vadd.s32 1784, %v9016_v1 }
 0x166   : > { %vm8094_vm1 = vmpackc.low %vm2007_vm14, %vm2006_vm11  ;;  %vm1512_vm11 = vcmp.lt.s32.totalorder %v484_v63, %v9028_v7  ;;  %vm1513_vm14 = vcmp.lt.s32.totalorder %v485_v0, %v9028_v7  ;;  %v528_v63 = vadd.s32 2032, %v9016_v1 }
 0x167   : > { %8095 = vmatpush3.bf16.msk.msra.mxu0 %vm8094_vm1, %v13659_v13  ;;  %vm2054_vm2 = vmand %vm1029_vm12, %vm1542_vm13  ;;  %vm1000_vm13 = vcmp.ge.s32.totalorder %v485_v0, %v9023_v5  ;;  %vm983_vm1 = vcmp.ge.s32.totalorder %v468_v3, %v9023_v5  ;;  %v529_v0 = vadd.s32 2040, %v9016_v1 }
 0x168   : > { %vm2055_vm5 = vmand %vm1030_vm15, %vm1543_vm0 }
 0x169   : > { %vm8124_vm8 = vmpackc.low %vm2055_vm5, %vm2054_vm2  ;;  %vm1496_vm2 = vcmp.lt.s32.totalorder %v468_v3, %v9028_v7  ;;  %vm1497_vm5 = vcmp.lt.s32.totalorder %v469_v4, %v9028_v7  ;;  %v512_v3 = vadd.s32 1904, %v9016_v1 }
 0x16a   : > { %8125 = vmatprep.subr.msk.bf16.mxu1 %vm8124_vm8, %v13659_v13  ;;  %vm2038_vm9 = vmand %vm1013_vm3, %vm1526_vm4  ;;  %vm984_vm4 = vcmp.ge.s32.totalorder %v469_v4, %v9023_v5  ;;  %vm1031_vm8 = vcmp.ge.s32.totalorder %v516_v6, %v9023_v5  ;;  %v513_v4 = vadd.s32 1912, %v9016_v1 }
 0x16b   : > { %vm2039_vm12 = vmand %vm1014_vm6, %vm1527_vm7 }
 0x16c   : > { %vm8126_vm15 = vmpackc.low %vm2039_vm12, %vm2038_vm9  ;;  %vm1544_vm9 = vcmp.lt.s32.totalorder %v516_v6, %v9028_v7  ;;  %vm1545_vm12 = vcmp.lt.s32.totalorder %v517_v8, %v9028_v7  ;;  %v546_v6 = vadd.s32 2176, %v9016_v1 }
 0x16d   : > { %8127 = vmatpush3.bf16.msk.msra.mxu1 %vm8126_vm15, %v13659_v13  ;;  %vm2024_vm0 = vmand %vm999_vm10, %vm1512_vm11  ;;  %vm1032_vm11 = vcmp.ge.s32.totalorder %v517_v8, %v9023_v5  ;;  %vm1015_vm15 = vcmp.ge.s32.totalorder %v500_v9, %v9023_v5  ;;  %v253_v8 = vld [vmem:[%s9010_s15 + $0x60] sm:$0xff] }
 0x16e   : > { %vm2025_vm3 = vmand %vm1000_vm13, %vm1513_vm14 }
 0x16f   : > { %vm8096_vm6 = vmpackc.low %vm2025_vm3, %vm2024_vm0  ;;  %vm1528_vm0 = vcmp.lt.s32.totalorder %v500_v9, %v9028_v7  ;;  %vm1529_vm3 = vcmp.lt.s32.totalorder %v501_v10, %v9028_v7  ;;  %v547_v9 = vadd.s32 2184, %v9016_v1 }
 0x170   : > { %8097 = vmatprep.subr.msk.bf16.mxu0 %vm8096_vm6, %v13659_v13  ;;  %vm2008_vm7 = vmand %vm983_vm1, %vm1496_vm2  ;;  %vm1016_vm2 = vcmp.ge.s32.totalorder %v501_v10, %v9023_v5  ;;  %vm1001_vm6 = vcmp.ge.s32.totalorder %v486_v12, %v9023_v5  ;;  %v258_v10 = vld [vmem:[%s9010_s15 + $0x88] sm:$0xff] }
 0x171   : > { %vm2009_vm10 = vmand %vm984_vm4, %vm1497_vm5 }
 0x172   : > { %vm8098_vm13 = vmpackc.low %vm2009_vm10, %vm2008_vm7  ;;  %vm1514_vm7 = vcmp.lt.s32.totalorder %v486_v12, %v9028_v7  ;;  %vm1515_vm10 = vcmp.lt.s32.totalorder %v487_v14, %v9028_v7  ;;  %v530_v12 = vadd.s32 2048, %v9016_v1 }
 0x173   : > { %8099 = vmatpush3.bf16.msk.msra.mxu0 %vm8098_vm13, %v13659_v13  ;;  %vm2056_vm14 = vmand %vm1031_vm8, %vm1544_vm9  ;;  %vm1002_vm9 = vcmp.ge.s32.totalorder %v487_v14, %v9023_v5  ;;  %vm985_vm13 = vcmp.ge.s32.totalorder %v470_v15, %v9023_v5  ;;  %v531_v14 = vadd.s32 2056, %v9016_v1 }
 0x174   : > { %vm2057_vm1 = vmand %vm1032_vm11, %vm1545_vm12 }
 0x175   : > { %vm8128_vm4 = vmpackc.low %vm2057_vm1, %vm2056_vm14  ;;  %vm1498_vm14 = vcmp.lt.s32.totalorder %v470_v15, %v9028_v7  ;;  %vm1499_vm1 = vcmp.lt.s32.totalorder %v471_v16, %v9028_v7  ;;  %v578_v15 = vadd.s32 2432, %v9016_v1 }
 0x176   : > { %8129 = vmatprep.subr.msk.bf16.mxu1 %vm8128_vm4, %v13659_v13  ;;  %vm2040_vm5 = vmand %vm1015_vm15, %vm1528_vm0  ;;  %vm986_vm0 = vcmp.ge.s32.totalorder %v471_v16, %v9023_v5  ;;  %vm1033_vm4 = vcmp.ge.s32.totalorder %v518_v17, %v9023_v5  ;;  %v579_v16 = vadd.s32 2440, %v9016_v1 }
 0x177   : > { %vm2041_vm8 = vmand %vm1016_vm2, %vm1529_vm3 }
 0x178   : > { %vm8130_vm11 = vmpackc.low %vm2041_vm8, %vm2040_vm5  ;;  %vm1546_vm5 = vcmp.lt.s32.totalorder %v518_v17, %v9028_v7  ;;  %vm1547_vm8 = vcmp.lt.s32.totalorder %v519_v18, %v9028_v7  ;;  %v255_v17 = vld [vmem:[%s9010_s15 + $0x70] sm:$0xff] }
 0x179   : > { %8131 = vmatpush3.bf16.msk.msra.mxu1 %vm8130_vm11, %v13659_v13  ;;  %vm2026_vm12 = vmand %vm1001_vm6, %vm1514_vm7  ;;  %vm1034_vm7 = vcmp.ge.s32.totalorder %v519_v18, %v9023_v5  ;;  %vm1017_vm11 = vcmp.ge.s32.totalorder %v502_v21, %v9023_v5  ;;  %v260_v18 = vld [vmem:[%s9010_s15 + $0x98] sm:$0xff] }
 0x17a   : > { %vm2027_vm15 = vmand %vm1002_vm9, %vm1515_vm10 }
 0x17b   : > { %vm8100_vm2 = vmpackc.low %vm2027_vm15, %vm2026_vm12  ;;  %vm1530_vm12 = vcmp.lt.s32.totalorder %v502_v21, %v9028_v7  ;;  %vm1531_vm15 = vcmp.lt.s32.totalorder %v503_v22, %v9028_v7  ;;  %v562_v21 = vadd.s32 2304, %v9016_v1 }
 0x17c   : > { %8101 = vmatprep.subr.msk.bf16.mxu0 %vm8100_vm2, %v13659_v13  ;;  %vm2010_vm3 = vmand %vm985_vm13, %vm1498_vm14  ;;  %vm1018_vm14 = vcmp.ge.s32.totalorder %v503_v22, %v9023_v5  ;;  %vm1003_vm2 = vcmp.ge.s32.totalorder %v488_v23, %v9023_v5  ;;  %v563_v22 = vadd.s32 2312, %v9016_v1 }
 0x17d   : > { %vm2011_vm6 = vmand %vm986_vm0, %vm1499_vm1 }
 0x17e   : > { %vm8102_vm9 = vmpackc.low %vm2011_vm6, %vm2010_vm3  ;;  %vm1516_vm3 = vcmp.lt.s32.totalorder %v488_v23, %v9028_v7  ;;  %vm1517_vm6 = vcmp.lt.s32.totalorder %v489_v24, %v9028_v7  ;;  %v548_v23 = vadd.s32 2192, %v9016_v1 }
 0x17f   : > { %8103 = vmatpush3.bf16.msk.msra.mxu0 %vm8102_vm9, %v13659_v13  ;;  %vm2058_vm10 = vmand %vm1033_vm4, %vm1546_vm5  ;;  %vm1004_vm5 = vcmp.ge.s32.totalorder %v489_v24, %v9023_v5  ;;  %vm987_vm9 = vcmp.ge.s32.totalorder %v472_v25, %v9023_v5  ;;  %v549_v24 = vadd.s32 2200, %v9016_v1 }
 0x180   : > { %vm2059_vm13 = vmand %vm1034_vm7, %vm1547_vm8 }
 0x181   : > { %vm8132_vm0 = vmpackc.low %vm2059_vm13, %vm2058_vm10  ;;  %vm1500_vm10 = vcmp.lt.s32.totalorder %v472_v25, %v9028_v7  ;;  %vm1501_vm13 = vcmp.lt.s32.totalorder %v473_v26, %v9028_v7  ;;  %v532_v25 = vadd.s32 2064, %v9016_v1 }
 0x182   : > { %8133 = vmatprep.subr.msk.bf16.mxu1 %vm8132_vm0, %v13659_v13  ;;  %vm2042_vm1 = vmand %vm1017_vm11, %vm1530_vm12  ;;  %vm988_vm12 = vcmp.ge.s32.totalorder %v473_v26, %v9023_v5  ;;  %vm1035_vm0 = vcmp.ge.s32.totalorder %v520_v29, %v9023_v5  ;;  %v533_v26 = vadd.s32 2072, %v9016_v1 }
 0x183   : > { %vm2043_vm4 = vmand %vm1018_vm14, %vm1531_vm15 }
 0x184   : > { %vm8134_vm7 = vmpackc.low %vm2043_vm4, %vm2042_vm1  ;;  %vm1548_vm1 = vcmp.lt.s32.totalorder %v520_v29, %v9028_v7  ;;  %vm1549_vm4 = vcmp.lt.s32.totalorder %v521_v30, %v9028_v7  ;;  %v580_v29 = vadd.s32 2448, %v9016_v1 }
 0x185   : > { %8135 = vmatpush3.bf16.msk.msra.mxu1 %vm8134_vm7, %v13659_v13  ;;  %vm2028_vm8 = vmand %vm1003_vm2, %vm1516_vm3  ;;  %vm1036_vm3 = vcmp.ge.s32.totalorder %v521_v30, %v9023_v5  ;;  %vm1019_vm7 = vcmp.ge.s32.totalorder %v504_v31, %v9023_v5  ;;  %v581_v30 = vadd.s32 2456, %v9016_v1 }
 0x186   : > { %vm2029_vm11 = vmand %vm1004_vm5, %vm1517_vm6 }
 0x187   : > { %vm8104_vm14 = vmpackc.low %vm2029_vm11, %vm2028_vm8  ;;  %vm1532_vm8 = vcmp.lt.s32.totalorder %v504_v31, %v9028_v7  ;;  %vm1533_vm11 = vcmp.lt.s32.totalorder %v505_v32, %v9028_v7  ;;  %v564_v31 = vadd.s32 2320, %v9016_v1 }
 0x188   : > { %8105 = vmatprep.subr.msk.bf16.mxu0 %vm8104_vm14, %v13659_v13  ;;  %vm2012_vm15 = vmand %vm987_vm9, %vm1500_vm10  ;;  %vm1020_vm10 = vcmp.ge.s32.totalorder %v505_v32, %v9023_v5  ;;  %vm1005_vm14 = vcmp.ge.s32.totalorder %v490_v33, %v9023_v5  ;;  %v565_v32 = vadd.s32 2328, %v9016_v1 }
 0x189   : > { %vm2013_vm2 = vmand %vm988_vm12, %vm1501_vm13 }
 0x18a   : > { %vm8106_vm5 = vmpackc.low %vm2013_vm2, %vm2012_vm15  ;;  %vm1518_vm15 = vcmp.lt.s32.totalorder %v490_v33, %v9028_v7  ;;  %vm1519_vm2 = vcmp.lt.s32.totalorder %v491_v34, %v9028_v7  ;;  %v550_v33 = vadd.s32 2208, %v9016_v1 }
 0x18b   : > { %8107 = vmatpush3.bf16.msk.msra.mxu0 %vm8106_vm5, %v13659_v13  ;;  %vm2060_vm6 = vmand %vm1035_vm0, %vm1548_vm1  ;;  %vm1006_vm1 = vcmp.ge.s32.totalorder %v491_v34, %v9023_v5  ;;  %vm989_vm5 = vcmp.ge.s32.totalorder %v474_v37, %v9023_v5  ;;  %v551_v34 = vadd.s32 2216, %v9016_v1 }
 0x18c   : > { %vm2061_vm9 = vmand %vm1036_vm3, %vm1549_vm4 }
 0x18d   : > { %vm8136_vm12 = vmpackc.low %vm2061_vm9, %vm2060_vm6  ;;  %vm1502_vm6 = vcmp.lt.s32.totalorder %v474_v37, %v9028_v7  ;;  %vm1503_vm9 = vcmp.lt.s32.totalorder %v475_v38, %v9028_v7  ;;  %v534_v37 = vadd.s32 2080, %v9016_v1 }
 0x18e   : > { %8137 = vmatprep.subr.msk.bf16.mxu1 %vm8136_vm12, %v13659_v13  ;;  %vm2044_vm13 = vmand %vm1019_vm7, %vm1532_vm8  ;;  %vm990_vm8 = vcmp.ge.s32.totalorder %v475_v38, %v9023_v5  ;;  %vm1037_vm12 = vcmp.ge.s32.totalorder %v522_v39, %v9023_v5  ;;  %v535_v38 = vadd.s32 2088, %v9016_v1 }
 0x18f   : > { %vm2045_vm0 = vmand %vm1020_vm10, %vm1533_vm11 }
 0x190   : > { %vm8138_vm3 = vmpackc.low %vm2045_vm0, %vm2044_vm13  ;;  %vm1550_vm13 = vcmp.lt.s32.totalorder %v522_v39, %v9028_v7  ;;  %vm1551_vm0 = vcmp.lt.s32.totalorder %v523_v40, %v9028_v7  ;;  %v582_v39 = vadd.s32 2464, %v9016_v1 }
 0x191   : > { %8139 = vmatpush3.bf16.msk.msra.mxu1 %vm8138_vm3, %v13659_v13  ;;  %vm2030_vm4 = vmand %vm1005_vm14, %vm1518_vm15  ;;  %vm1038_vm15 = vcmp.ge.s32.totalorder %v523_v40, %v9023_v5  ;;  %vm1021_vm3 = vcmp.ge.s32.totalorder %v506_v41, %v9023_v5  ;;  %v583_v40 = vadd.s32 2472, %v9016_v1 }
 0x192   : > { %vm2031_vm7 = vmand %vm1006_vm1, %vm1519_vm2 }
 0x193   : > { %vm8108_vm10 = vmpackc.low %vm2031_vm7, %vm2030_vm4  ;;  %vm1534_vm4 = vcmp.lt.s32.totalorder %v506_v41, %v9028_v7  ;;  %vm1535_vm7 = vcmp.lt.s32.totalorder %v507_v42, %v9028_v7  ;;  %v566_v41 = vadd.s32 2336, %v9016_v1 }
 0x194   : > { %8109 = vmatprep.subr.msk.bf16.mxu0 %vm8108_vm10, %v13659_v13  ;;  %vm2014_vm11 = vmand %vm989_vm5, %vm1502_vm6  ;;  %vm1022_vm6 = vcmp.ge.s32.totalorder %v507_v42, %v9023_v5  ;;  %vm1007_vm10 = vcmp.ge.s32.totalorder %v492_v43, %v9023_v5  ;;  %v567_v42 = vadd.s32 2344, %v9016_v1 }
 0x195   : > { %vm2015_vm14 = vmand %vm990_vm8, %vm1503_vm9 }
 0x196   : > { %vm8110_vm1 = vmpackc.low %vm2015_vm14, %vm2014_vm11  ;;  %vm1520_vm11 = vcmp.lt.s32.totalorder %v492_v43, %v9028_v7  ;;  %vm1521_vm14 = vcmp.lt.s32.totalorder %v493_v44, %v9028_v7  ;;  %v552_v43 = vadd.s32 2224, %v9016_v1 }
 0x197   : > { %8111 = vmatpush3.bf16.msk.msra.mxu0 %vm8110_vm1, %v13659_v13  ;;  %vm2062_vm2 = vmand %vm1037_vm12, %vm1550_vm13  ;;  %vm1008_vm13 = vcmp.ge.s32.totalorder %v493_v44, %v9023_v5  ;;  %vm991_vm1 = vcmp.ge.s32.totalorder %v476_v45, %v9023_v5  ;;  %v553_v44 = vadd.s32 2232, %v9016_v1 }
 0x198   : > { %vm2063_vm5 = vmand %vm1038_vm15, %vm1551_vm0 }
 0x199   : > { %vm8140_vm8 = vmpackc.low %vm2063_vm5, %vm2062_vm2  ;;  %vm1504_vm2 = vcmp.lt.s32.totalorder %v476_v45, %v9028_v7  ;;  %vm1505_vm5 = vcmp.lt.s32.totalorder %v477_v46, %v9028_v7  ;;  %v536_v45 = vadd.s32 2096, %v9016_v1 }
 0x19a   : > { %8141 = vmatprep.subr.msk.bf16.mxu1 %vm8140_vm8, %v13659_v13  ;;  %vm2046_vm9 = vmand %vm1021_vm3, %vm1534_vm4  ;;  %vm992_vm4 = vcmp.ge.s32.totalorder %v477_v46, %v9023_v5  ;;  %vm1039_vm8 = vcmp.ge.s32.totalorder %v524_v47, %v9023_v5  ;;  %v537_v46 = vadd.s32 2104, %v9016_v1 }
 0x19b   : > { %vm2047_vm12 = vmand %vm1022_vm6, %vm1535_vm7 }
 0x19c   : > { %vm8142_vm15 = vmpackc.low %vm2047_vm12, %vm2046_vm9  ;;  %vm1552_vm9 = vcmp.lt.s32.totalorder %v524_v47, %v9028_v7  ;;  %vm1553_vm12 = vcmp.lt.s32.totalorder %v525_v48, %v9028_v7  ;;  %v584_v47 = vadd.s32 2480, %v9016_v1 }
 0x19d   : > { %8143 = vmatpush3.bf16.msk.msra.mxu1 %vm8142_vm15, %v13659_v13  ;;  %vm2032_vm0 = vmand %vm1007_vm10, %vm1520_vm11  ;;  %vm1040_vm11 = vcmp.ge.s32.totalorder %v525_v48, %v9023_v5  ;;  %vm1023_vm15 = vcmp.ge.s32.totalorder %v508_v49, %v9023_v5  ;;  %v585_v48 = vadd.s32 2488, %v9016_v1 }
 0x19e   : > { %vm2033_vm3 = vmand %vm1008_vm13, %vm1521_vm14 }
 0x19f   : > { %vm8112_vm6 = vmpackc.low %vm2033_vm3, %vm2032_vm0  ;;  %vm1536_vm0 = vcmp.lt.s32.totalorder %v508_v49, %v9028_v7  ;;  %vm1537_vm3 = vcmp.lt.s32.totalorder %v509_v50, %v9028_v7  ;;  %v568_v49 = vadd.s32 2352, %v9016_v1 }
 0x1a0   : > { %8113 = vmatprep.subr.msk.bf16.mxu0 %vm8112_vm6, %v13659_v13  ;;  %vm2016_vm7 = vmand %vm991_vm1, %vm1504_vm2  ;;  %vm1024_vm2 = vcmp.ge.s32.totalorder %v509_v50, %v9023_v5  ;;  %vm1009_vm6 = vcmp.ge.s32.totalorder %v494_v51, %v9023_v5  ;;  %v569_v50 = vadd.s32 2360, %v9016_v1 }
 0x1a1   : > { %vm2017_vm10 = vmand %vm992_vm4, %vm1505_vm5 }
 0x1a2   : > { %vm8114_vm13 = vmpackc.low %vm2017_vm10, %vm2016_vm7  ;;  %vm1522_vm7 = vcmp.lt.s32.totalorder %v494_v51, %v9028_v7  ;;  %vm1523_vm10 = vcmp.lt.s32.totalorder %v495_v52, %v9028_v7  ;;  %v554_v51 = vadd.s32 2240, %v9016_v1 }
 0x1a3   : > { %8115 = vmatpush3.bf16.msk.msra.mxu0 %vm8114_vm13, %v13659_v13  ;;  %vm2064_vm14 = vmand %vm1039_vm8, %vm1552_vm9  ;;  %vm1010_vm9 = vcmp.ge.s32.totalorder %v495_v52, %v9023_v5  ;;  %vm993_vm13 = vcmp.ge.s32.totalorder %v478_v53, %v9023_v5  ;;  %v555_v52 = vadd.s32 2248, %v9016_v1 }
 0x1a4   : > { %vm2065_vm1 = vmand %vm1040_vm11, %vm1553_vm12 }
 0x1a5   : > { %vm8144_vm4 = vmpackc.low %vm2065_vm1, %vm2064_vm14  ;;  %vm1506_vm14 = vcmp.lt.s32.totalorder %v478_v53, %v9028_v7  ;;  %vm1507_vm1 = vcmp.lt.s32.totalorder %v479_v54, %v9028_v7  ;;  %v538_v53 = vadd.s32 2112, %v9016_v1 }
 0x1a6   : > { %8145 = vmatprep.subr.msk.bf16.mxu1 %vm8144_vm4, %v13659_v13  ;;  %vm2048_vm5 = vmand %vm1023_vm15, %vm1536_vm0  ;;  %vm994_vm0 = vcmp.ge.s32.totalorder %v479_v54, %v9023_v5  ;;  %vm1041_vm4 = vcmp.ge.s32.totalorder %v526_v55, %v9023_v5  ;;  %v539_v54 = vadd.s32 2120, %v9016_v1 }
 0x1a7   : > { %vm2049_vm8 = vmand %vm1024_vm2, %vm1537_vm3 }
 0x1a8   : > { %vm8146_vm11 = vmpackc.low %vm2049_vm8, %vm2048_vm5  ;;  %vm1554_vm5 = vcmp.lt.s32.totalorder %v526_v55, %v9028_v7  ;;  %vm1555_vm8 = vcmp.lt.s32.totalorder %v527_v56, %v9028_v7  ;;  %v586_v55 = vadd.s32 2496, %v9016_v1 }
 0x1a9   : > { %8147 = vmatpush3.bf16.msk.msra.mxu1 %vm8146_vm11, %v13659_v13  ;;  %vm2034_vm12 = vmand %vm1009_vm6, %vm1522_vm7  ;;  %vm1042_vm7 = vcmp.ge.s32.totalorder %v527_v56, %v9023_v5  ;;  %vm1025_vm11 = vcmp.ge.s32.totalorder %v510_v57, %v9023_v5  ;;  %v587_v56 = vadd.s32 2504, %v9016_v1 }
 0x1aa   : > { %vm2035_vm15 = vmand %vm1010_vm9, %vm1523_vm10 }
 0x1ab   : > { %vm8116_vm2 = vmpackc.low %vm2035_vm15, %vm2034_vm12  ;;  %vm1538_vm12 = vcmp.lt.s32.totalorder %v510_v57, %v9028_v7  ;;  %vm1539_vm15 = vcmp.lt.s32.totalorder %v511_v58, %v9028_v7  ;;  %v570_v57 = vadd.s32 2368, %v9016_v1 }
 0x1ac   : > { %8117 = vmatprep.subr.msk.bf16.mxu0 %vm8116_vm2, %v13659_v13  ;;  %vm2018_vm3 = vmand %vm993_vm13, %vm1506_vm14  ;;  %vm1026_vm14 = vcmp.ge.s32.totalorder %v511_v58, %v9023_v5  ;;  %vm1011_vm2 = vcmp.ge.s32.totalorder %v496_v59, %v9023_v5  ;;  %v571_v58 = vadd.s32 2376, %v9016_v1 }
 0x1ad   : > { %vm2019_vm6 = vmand %vm994_vm0, %vm1507_vm1 }
 0x1ae   : > { %vm8118_vm9 = vmpackc.low %vm2019_vm6, %vm2018_vm3  ;;  %vm1524_vm3 = vcmp.lt.s32.totalorder %v496_v59, %v9028_v7  ;;  %vm1525_vm6 = vcmp.lt.s32.totalorder %v497_v60, %v9028_v7  ;;  %v556_v59 = vadd.s32 2256, %v9016_v1 }
 0x1af   : > { %8119 = vmatpush3.bf16.msk.msra.mxu0 %vm8118_vm9, %v13659_v13  ;;  %vm2066_vm10 = vmand %vm1041_vm4, %vm1554_vm5  ;;  %vm1012_vm5 = vcmp.ge.s32.totalorder %v497_v60, %v9023_v5  ;;  %vm995_vm9 = vcmp.ge.s32.totalorder %v480_v61, %v9023_v5  ;;  %v557_v60 = vadd.s32 2264, %v9016_v1 }
 0x1b0   : > { %vm2067_vm13 = vmand %vm1042_vm7, %vm1555_vm8 }
 0x1b1   : > { %vm8148_vm0 = vmpackc.low %vm2067_vm13, %vm2066_vm10  ;;  %vm1508_vm10 = vcmp.lt.s32.totalorder %v480_v61, %v9028_v7  ;;  %vm1509_vm13 = vcmp.lt.s32.totalorder %v481_v62, %v9028_v7  ;;  %v540_v61 = vadd.s32 2128, %v9016_v1 }
 0x1b2   : > { %8149 = vmatprep.subr.msk.bf16.mxu1 %vm8148_vm0, %v13659_v13  ;;  %vm2050_vm1 = vmand %vm1025_vm11, %vm1538_vm12  ;;  %vm996_vm12 = vcmp.ge.s32.totalorder %v481_v62, %v9023_v5  ;;  %vm1043_vm0 = vcmp.ge.s32.totalorder %v528_v63, %v9023_v5  ;;  %v541_v62 = vadd.s32 2136, %v9016_v1 }
 0x1b3   : > { %vm2051_vm4 = vmand %vm1026_vm14, %vm1539_vm15 }
 0x1b4   : > { %vm8150_vm7 = vmpackc.low %vm2051_vm4, %vm2050_vm1  ;;  %vm1556_vm1 = vcmp.lt.s32.totalorder %v528_v63, %v9028_v7  ;;  %vm1557_vm4 = vcmp.lt.s32.totalorder %v529_v0, %v9028_v7  ;;  %v588_v63 = vadd.s32 2512, %v9016_v1 }
 0x1b5   : > { %8151 = vmatpush3.bf16.msk.msra.mxu1 %vm8150_vm7, %v13659_v13  ;;  %vm2036_vm8 = vmand %vm1011_vm2, %vm1524_vm3  ;;  %vm1044_vm3 = vcmp.ge.s32.totalorder %v529_v0, %v9023_v5  ;;  %vm1027_vm7 = vcmp.ge.s32.totalorder %v512_v3, %v9023_v5  ;;  %v589_v0 = vadd.s32 2520, %v9016_v1 }
 0x1b6   : > { %vm2037_vm11 = vmand %vm1012_vm5, %vm1525_vm6 }
 0x1b7   : > { %vm8120_vm14 = vmpackc.low %vm2037_vm11, %vm2036_vm8  ;;  %vm1540_vm8 = vcmp.lt.s32.totalorder %v512_v3, %v9028_v7  ;;  %vm1541_vm11 = vcmp.lt.s32.totalorder %v513_v4, %v9028_v7  ;;  %v572_v3 = vadd.s32 2384, %v9016_v1 }
 0x1b8   : > { %8121 = vmatprep.subr.msk.bf16.mxu0 %vm8120_vm14, %v13659_v13  ;;  %vm2020_vm15 = vmand %vm995_vm9, %vm1508_vm10  ;;  %vm1028_vm10 = vcmp.ge.s32.totalorder %v513_v4, %v9023_v5  ;;  %vm1061_vm14 = vcmp.ge.s32.totalorder %v546_v6, %v9023_v5  ;;  %v573_v4 = vadd.s32 2392, %v9016_v1 }
 0x1b9   : > { %vm2021_vm2 = vmand %vm996_vm12, %vm1509_vm13 }
 0x1ba   : > { %vm8122_vm5 = vmpackc.low %vm2021_vm2, %vm2020_vm15  ;;  %vm1574_vm15 = vcmp.lt.s32.totalorder %v546_v6, %v9028_v7  ;;  %vm1575_vm2 = vcmp.lt.s32.totalorder %v547_v9, %v9028_v7  ;;  %v558_v6 = vadd.s32 2272, %v9016_v1 }
 0x1bb   : > { %8123 = vmatpush3.bf16.msk.msra.mxu0 %vm8122_vm5, %v13659_v13  ;;  %vm2068_vm6 = vmand %vm1043_vm0, %vm1556_vm1  ;;  %vm1062_vm1 = vcmp.ge.s32.totalorder %v547_v9, %v9023_v5  ;;  %vm1045_vm5 = vcmp.ge.s32.totalorder %v530_v12, %v9023_v5  ;;  %v542_v9 = vadd.s32 2144, %v9016_v1 }
 0x1bc   : > { %vm2069_vm9 = vmand %vm1044_vm3, %vm1557_vm4 }
 0x1bd   : > { %vm8152_vm12 = vmpackc.low %vm2069_vm9, %vm2068_vm6  ;;  %vm1558_vm6 = vcmp.lt.s32.totalorder %v530_v12, %v9028_v7  ;;  %vm1559_vm9 = vcmp.lt.s32.totalorder %v531_v14, %v9028_v7  ;;  %v590_v12 = vadd.s32 2528, %v9016_v1 }
 0x1be   : > { %8153 = vmatprep.subr.msk.bf16.mxu1 %vm8152_vm12, %v13659_v13  ;;  %vm2052_vm13 = vmand %vm1027_vm7, %vm1540_vm8  ;;  %3323 = vmatmul.mubr.f32.vlgmr.msra.gmra.mrb[6].mxu0 %v253_v8  ;;  %vm1046_vm8 = vcmp.ge.s32.totalorder %v531_v14, %v9023_v5  ;;  %vm1093_vm12 = vcmp.ge.s32.totalorder %v578_v15, %v9023_v5  ;;  %v559_v8 = vadd.s32 2280, %v9016_v1  ;;  %v591_v14 = vadd.s32 2536, %v9016_v1 }
 0x1bf   : > { %vm2053_vm0 = vmand %vm1028_vm10, %vm1541_vm11  ;;  %3462 = vmatprep.mubr.f32.mxu0 %v258_v10  ;;  %v543_v10 = vadd.s32 2152, %v9016_v1 }
 0x1c0   : > { %vm8154_vm3 = vmpackc.low %vm2053_vm0, %vm2052_vm13  ;;  %vm1606_vm13 = vcmp.lt.s32.totalorder %v578_v15, %v9028_v7  ;;  %vm1607_vm0 = vcmp.lt.s32.totalorder %v579_v16, %v9028_v7  ;;  %v574_v15 = vadd.s32 2400, %v9016_v1 }
 0x1c1   : > { %8155 = vmatpush3.bf16.msk.msra.mxu1 %vm8154_vm3, %v13659_v13  ;;  %vm2086_vm4 = vmand %vm1061_vm14, %vm1574_vm15  ;;  %vm1094_vm15 = vcmp.ge.s32.totalorder %v579_v16, %v9023_v5  ;;  %vm1077_vm3 = vcmp.ge.s32.totalorder %v562_v21, %v9023_v5  ;;  %v575_v16 = vadd.s32 2408, %v9016_v1 }
 0x1c2   : > { %vm2087_vm7 = vmand %vm1062_vm1, %vm1575_vm2 }
 0x1c3   : > { %vm8156_vm10 = vmpackc.low %vm2087_vm7, %vm2086_vm4  ;;  %vm1590_vm4 = vcmp.lt.s32.totalorder %v562_v21, %v9028_v7  ;;  %vm1591_vm7 = vcmp.lt.s32.totalorder %v563_v22, %v9028_v7  ;;  %v544_v21 = vadd.s32 2160, %v9016_v1 }
 0x1c4   : > { %8157 = vmatprep.subr.msk.bf16.mxu0 %vm8156_vm10, %v13659_v13  ;;  %vm2070_vm11 = vmand %vm1045_vm5, %vm1558_vm6  ;;  %3393 = vmatmul.mubr.f32.vlgmr.msra.gmra.mrb[6].mxu1 %v255_v17  ;;  %vm1078_vm6 = vcmp.ge.s32.totalorder %v563_v22, %v9023_v5  ;;  %vm1063_vm10 = vcmp.ge.s32.totalorder %v548_v23, %v9023_v5  ;;  %v560_v17 = vadd.s32 2288, %v9016_v1  ;;  %v545_v22 = vadd.s32 2168, %v9016_v1 }
 0x1c5   : > { %vm2071_vm14 = vmand %vm1046_vm8, %vm1559_vm9  ;;  %3532 = vmatprep.mubr.f32.mxu1 %v260_v18  ;;  %v561_v18 = vadd.s32 2296, %v9016_v1 }
 0x1c6   : > { %vm8158_vm1 = vmpackc.low %vm2071_vm14, %vm2070_vm11  ;;  %vm1576_vm11 = vcmp.lt.s32.totalorder %v548_v23, %v9028_v7  ;;  %vm1577_vm14 = vcmp.lt.s32.totalorder %v549_v24, %v9028_v7  ;;  %v592_v23 = vadd.s32 2544, %v9016_v1 }
 0x1c7   : > { %8159 = vmatpush3.bf16.msk.msra.mxu0 %vm8158_vm1, %v13659_v13  ;;  %vm2118_vm2 = vmand %vm1093_vm12, %vm1606_vm13  ;;  %vm1064_vm13 = vcmp.ge.s32.totalorder %v549_v24, %v9023_v5  ;;  %vm1047_vm1 = vcmp.ge.s32.totalorder %v532_v25, %v9023_v5  ;;  %v593_v24 = vadd.s32 2552, %v9016_v1 }
 0x1c8   : > { %vm2119_vm5 = vmand %vm1094_vm15, %vm1607_vm0 }
 0x1c9   : > { %vm8188_vm8 = vmpackc.low %vm2119_vm5, %vm2118_vm2  ;;  %vm1560_vm2 = vcmp.lt.s32.totalorder %v532_v25, %v9028_v7  ;;  %vm1561_vm5 = vcmp.lt.s32.totalorder %v533_v26, %v9028_v7  ;;  %v576_v25 = vadd.s32 2416, %v9016_v1 }
 0x1ca   : > { %8189 = vmatprep.subr.msk.bf16.mxu1 %vm8188_vm8, %v13659_v13  ;;  %vm2102_vm9 = vmand %vm1077_vm3, %vm1590_vm4  ;;  %vm1048_vm4 = vcmp.ge.s32.totalorder %v533_v26, %v9023_v5  ;;  %vm1095_vm8 = vcmp.ge.s32.totalorder %v580_v29, %v9023_v5  ;;  %v577_v26 = vadd.s32 2424, %v9016_v1 }
 0x1cb   : > { %vm2103_vm12 = vmand %vm1078_vm6, %vm1591_vm7 }
 0x1cc   : > { %vm8190_vm15 = vmpackc.low %vm2103_vm12, %vm2102_vm9  ;;  %vm1608_vm9 = vcmp.lt.s32.totalorder %v580_v29, %v9028_v7  ;;  %vm1609_vm12 = vcmp.lt.s32.totalorder %v581_v30, %v9028_v7  ;;  %v610_v29 = vadd.s32 2688, %v9016_v1 }
 0x1cd   : > { %8191 = vmatpush3.bf16.msk.msra.mxu1 %vm8190_vm15, %v13659_v13  ;;  %vm2088_vm0 = vmand %vm1063_vm10, %vm1576_vm11  ;;  %vm1096_vm11 = vcmp.ge.s32.totalorder %v581_v30, %v9023_v5  ;;  %vm1079_vm15 = vcmp.ge.s32.totalorder %v564_v31, %v9023_v5  ;;  %v257_v30 = vld [vmem:[%s9010_s15 + $0x80] sm:$0xff] }
 0x1ce   : > { %vm2089_vm3 = vmand %vm1064_vm13, %vm1577_vm14 }
 0x1cf   : > { %vm8160_vm6 = vmpackc.low %vm2089_vm3, %vm2088_vm0  ;;  %vm1592_vm0 = vcmp.lt.s32.totalorder %v564_v31, %v9028_v7  ;;  %vm1593_vm3 = vcmp.lt.s32.totalorder %v565_v32, %v9028_v7  ;;  %v611_v31 = vadd.s32 2696, %v9016_v1 }
 0x1d0   : > { %8161 = vmatprep.subr.msk.bf16.mxu0 %vm8160_vm6, %v13659_v13  ;;  %vm2072_vm7 = vmand %vm1047_vm1, %vm1560_vm2  ;;  %vm1080_vm2 = vcmp.ge.s32.totalorder %v565_v32, %v9023_v5  ;;  %vm1065_vm6 = vcmp.ge.s32.totalorder %v550_v33, %v9023_v5  ;;  %v262_v32 = vld [vmem:[%s9010_s15 + $0xa8] sm:$0xff] }
 0x1d1   : > { %vm2073_vm10 = vmand %vm1048_vm4, %vm1561_vm5 }
 0x1d2   : > { %vm8162_vm13 = vmpackc.low %vm2073_vm10, %vm2072_vm7  ;;  %vm1578_vm7 = vcmp.lt.s32.totalorder %v550_v33, %v9028_v7  ;;  %vm1579_vm10 = vcmp.lt.s32.totalorder %v551_v34, %v9028_v7  ;;  %v594_v33 = vadd.s32 2560, %v9016_v1 }
 0x1d3   : > { %8163 = vmatpush3.bf16.msk.msra.mxu0 %vm8162_vm13, %v13659_v13  ;;  %vm2120_vm14 = vmand %vm1095_vm8, %vm1608_vm9  ;;  %vm1066_vm9 = vcmp.ge.s32.totalorder %v551_v34, %v9023_v5  ;;  %vm1049_vm13 = vcmp.ge.s32.totalorder %v534_v37, %v9023_v5  ;;  %v595_v34 = vadd.s32 2568, %v9016_v1 }
 0x1d4   : > { %vm2121_vm1 = vmand %vm1096_vm11, %vm1609_vm12 }
 0x1d5   : > { %vm8192_vm4 = vmpackc.low %vm2121_vm1, %vm2120_vm14  ;;  %vm1562_vm14 = vcmp.lt.s32.totalorder %v534_v37, %v9028_v7  ;;  %vm1563_vm1 = vcmp.lt.s32.totalorder %v535_v38, %v9028_v7  ;;  %v642_v37 = vadd.s32 2944, %v9016_v1 }
 0x1d6   : > { %8193 = vmatprep.subr.msk.bf16.mxu1 %vm8192_vm4, %v13659_v13  ;;  %vm2104_vm5 = vmand %vm1079_vm15, %vm1592_vm0  ;;  %vm1050_vm0 = vcmp.ge.s32.totalorder %v535_v38, %v9023_v5  ;;  %vm1097_vm4 = vcmp.ge.s32.totalorder %v582_v39, %v9023_v5  ;;  %v643_v38 = vadd.s32 2952, %v9016_v1 }
 0x1d7   : > { %vm2105_vm8 = vmand %vm1080_vm2, %vm1593_vm3 }
 0x1d8   : > { %vm8194_vm11 = vmpackc.low %vm2105_vm8, %vm2104_vm5  ;;  %vm1610_vm5 = vcmp.lt.s32.totalorder %v582_v39, %v9028_v7  ;;  %vm1611_vm8 = vcmp.lt.s32.totalorder %v583_v40, %v9028_v7  ;;  %v259_v39 = vld [vmem:[%s9010_s15 + $0x90] sm:$0xff] }
 0x1d9   : > { %8195 = vmatpush3.bf16.msk.msra.mxu1 %vm8194_vm11, %v13659_v13  ;;  %vm2090_vm12 = vmand %vm1065_vm6, %vm1578_vm7  ;;  %vm1098_vm7 = vcmp.ge.s32.totalorder %v583_v40, %v9023_v5  ;;  %vm1081_vm11 = vcmp.ge.s32.totalorder %v566_v41, %v9023_v5  ;;  %v264_v40 = vld [vmem:[%s9010_s15 + $0xb8] sm:$0xff] }
 0x1da   : > { %vm2091_vm15 = vmand %vm1066_vm9, %vm1579_vm10 }
 0x1db   : > { %vm8164_vm2 = vmpackc.low %vm2091_vm15, %vm2090_vm12  ;;  %vm1594_vm12 = vcmp.lt.s32.totalorder %v566_v41, %v9028_v7  ;;  %vm1595_vm15 = vcmp.lt.s32.totalorder %v567_v42, %v9028_v7  ;;  %v626_v41 = vadd.s32 2816, %v9016_v1 }
 0x1dc   : > { %8165 = vmatprep.subr.msk.bf16.mxu0 %vm8164_vm2, %v13659_v13  ;;  %vm2074_vm3 = vmand %vm1049_vm13, %vm1562_vm14  ;;  %vm1082_vm14 = vcmp.ge.s32.totalorder %v567_v42, %v9023_v5  ;;  %vm1067_vm2 = vcmp.ge.s32.totalorder %v552_v43, %v9023_v5  ;;  %v627_v42 = vadd.s32 2824, %v9016_v1 }
 0x1dd   : > { %vm2075_vm6 = vmand %vm1050_vm0, %vm1563_vm1 }
 0x1de   : > { %vm8166_vm9 = vmpackc.low %vm2075_vm6, %vm2074_vm3  ;;  %vm1580_vm3 = vcmp.lt.s32.totalorder %v552_v43, %v9028_v7  ;;  %vm1581_vm6 = vcmp.lt.s32.totalorder %v553_v44, %v9028_v7  ;;  %v612_v43 = vadd.s32 2704, %v9016_v1 }
 0x1df   : > { %8167 = vmatpush3.bf16.msk.msra.mxu0 %vm8166_vm9, %v13659_v13  ;;  %vm2122_vm10 = vmand %vm1097_vm4, %vm1610_vm5  ;;  %vm1068_vm5 = vcmp.ge.s32.totalorder %v553_v44, %v9023_v5  ;;  %vm1051_vm9 = vcmp.ge.s32.totalorder %v536_v45, %v9023_v5  ;;  %v613_v44 = vadd.s32 2712, %v9016_v1 }
 0x1e0   : > { %vm2123_vm13 = vmand %vm1098_vm7, %vm1611_vm8 }
 0x1e1   : > { %vm8196_vm0 = vmpackc.low %vm2123_vm13, %vm2122_vm10  ;;  %vm1564_vm10 = vcmp.lt.s32.totalorder %v536_v45, %v9028_v7  ;;  %vm1565_vm13 = vcmp.lt.s32.totalorder %v537_v46, %v9028_v7  ;;  %v596_v45 = vadd.s32 2576, %v9016_v1 }
 0x1e2   : > { %8197 = vmatprep.subr.msk.bf16.mxu1 %vm8196_vm0, %v13659_v13  ;;  %vm2106_vm1 = vmand %vm1081_vm11, %vm1594_vm12  ;;  %vm1052_vm12 = vcmp.ge.s32.totalorder %v537_v46, %v9023_v5  ;;  %vm1099_vm0 = vcmp.ge.s32.totalorder %v584_v47, %v9023_v5  ;;  %v597_v46 = vadd.s32 2584, %v9016_v1 }
 0x1e3   : > { %vm2107_vm4 = vmand %vm1082_vm14, %vm1595_vm15 }
 0x1e4   : > { %vm8198_vm7 = vmpackc.low %vm2107_vm4, %vm2106_vm1  ;;  %vm1612_vm1 = vcmp.lt.s32.totalorder %v584_v47, %v9028_v7  ;;  %vm1613_vm4 = vcmp.lt.s32.totalorder %v585_v48, %v9028_v7  ;;  %v644_v47 = vadd.s32 2960, %v9016_v1 }
 0x1e5   : > { %8199 = vmatpush3.bf16.msk.msra.mxu1 %vm8198_vm7, %v13659_v13  ;;  %vm2092_vm8 = vmand %vm1067_vm2, %vm1580_vm3  ;;  %vm1100_vm3 = vcmp.ge.s32.totalorder %v585_v48, %v9023_v5  ;;  %vm1083_vm7 = vcmp.ge.s32.totalorder %v568_v49, %v9023_v5  ;;  %v645_v48 = vadd.s32 2968, %v9016_v1 }
 0x1e6   : > { %vm2093_vm11 = vmand %vm1068_vm5, %vm1581_vm6 }
 0x1e7   : > { %vm8168_vm14 = vmpackc.low %vm2093_vm11, %vm2092_vm8  ;;  %vm1596_vm8 = vcmp.lt.s32.totalorder %v568_v49, %v9028_v7  ;;  %vm1597_vm11 = vcmp.lt.s32.totalorder %v569_v50, %v9028_v7  ;;  %v628_v49 = vadd.s32 2832, %v9016_v1 }
 0x1e8   : > { %8169 = vmatprep.subr.msk.bf16.mxu0 %vm8168_vm14, %v13659_v13  ;;  %vm2076_vm15 = vmand %vm1051_vm9, %vm1564_vm10  ;;  %vm1084_vm10 = vcmp.ge.s32.totalorder %v569_v50, %v9023_v5  ;;  %vm1069_vm14 = vcmp.ge.s32.totalorder %v554_v51, %v9023_v5  ;;  %v629_v50 = vadd.s32 2840, %v9016_v1 }
 0x1e9   : > { %vm2077_vm2 = vmand %vm1052_vm12, %vm1565_vm13 }
 0x1ea   : > { %vm8170_vm5 = vmpackc.low %vm2077_vm2, %vm2076_vm15  ;;  %vm1582_vm15 = vcmp.lt.s32.totalorder %v554_v51, %v9028_v7  ;;  %vm1583_vm2 = vcmp.lt.s32.totalorder %v555_v52, %v9028_v7  ;;  %v614_v51 = vadd.s32 2720, %v9016_v1 }
 0x1eb   : > { %8171 = vmatpush3.bf16.msk.msra.mxu0 %vm8170_vm5, %v13659_v13  ;;  %vm2124_vm6 = vmand %vm1099_vm0, %vm1612_vm1  ;;  %vm1070_vm1 = vcmp.ge.s32.totalorder %v555_v52, %v9023_v5  ;;  %vm1053_vm5 = vcmp.ge.s32.totalorder %v538_v53, %v9023_v5  ;;  %v615_v52 = vadd.s32 2728, %v9016_v1 }
 0x1ec   : > { %vm2125_vm9 = vmand %vm1100_vm3, %vm1613_vm4 }
 0x1ed   : > { %vm8200_vm12 = vmpackc.low %vm2125_vm9, %vm2124_vm6  ;;  %vm1566_vm6 = vcmp.lt.s32.totalorder %v538_v53, %v9028_v7  ;;  %vm1567_vm9 = vcmp.lt.s32.totalorder %v539_v54, %v9028_v7  ;;  %v598_v53 = vadd.s32 2592, %v9016_v1 }
 0x1ee   : > { %8201 = vmatprep.subr.msk.bf16.mxu1 %vm8200_vm12, %v13659_v13  ;;  %vm2108_vm13 = vmand %vm1083_vm7, %vm1596_vm8  ;;  %vm1054_vm8 = vcmp.ge.s32.totalorder %v539_v54, %v9023_v5  ;;  %vm1101_vm12 = vcmp.ge.s32.totalorder %v586_v55, %v9023_v5  ;;  %v599_v54 = vadd.s32 2600, %v9016_v1 }
 0x1ef   : > { %vm2109_vm0 = vmand %vm1084_vm10, %vm1597_vm11 }
 0x1f0   : > { %vm8202_vm3 = vmpackc.low %vm2109_vm0, %vm2108_vm13  ;;  %vm1614_vm13 = vcmp.lt.s32.totalorder %v586_v55, %v9028_v7  ;;  %vm1615_vm0 = vcmp.lt.s32.totalorder %v587_v56, %v9028_v7  ;;  %v646_v55 = vadd.s32 2976, %v9016_v1 }
 0x1f1   : > { %8203 = vmatpush3.bf16.msk.msra.mxu1 %vm8202_vm3, %v13659_v13  ;;  %vm2094_vm4 = vmand %vm1069_vm14, %vm1582_vm15  ;;  %vm1102_vm15 = vcmp.ge.s32.totalorder %v587_v56, %v9023_v5  ;;  %vm1085_vm3 = vcmp.ge.s32.totalorder %v570_v57, %v9023_v5  ;;  %v647_v56 = vadd.s32 2984, %v9016_v1 }
 0x1f2   : > { %vm2095_vm7 = vmand %vm1070_vm1, %vm1583_vm2 }
 0x1f3   : > { %vm8172_vm10 = vmpackc.low %vm2095_vm7, %vm2094_vm4  ;;  %vm1598_vm4 = vcmp.lt.s32.totalorder %v570_v57, %v9028_v7  ;;  %vm1599_vm7 = vcmp.lt.s32.totalorder %v571_v58, %v9028_v7  ;;  %v630_v57 = vadd.s32 2848, %v9016_v1 }
 0x1f4   : > { %8173 = vmatprep.subr.msk.bf16.mxu0 %vm8172_vm10, %v13659_v13  ;;  %vm2078_vm11 = vmand %vm1053_vm5, %vm1566_vm6  ;;  %vm1086_vm6 = vcmp.ge.s32.totalorder %v571_v58, %v9023_v5  ;;  %vm1071_vm10 = vcmp.ge.s32.totalorder %v556_v59, %v9023_v5  ;;  %v631_v58 = vadd.s32 2856, %v9016_v1 }
 0x1f5   : > { %vm2079_vm14 = vmand %vm1054_vm8, %vm1567_vm9 }
 0x1f6   : > { %vm8174_vm1 = vmpackc.low %vm2079_vm14, %vm2078_vm11  ;;  %vm1584_vm11 = vcmp.lt.s32.totalorder %v556_v59, %v9028_v7  ;;  %vm1585_vm14 = vcmp.lt.s32.totalorder %v557_v60, %v9028_v7  ;;  %v616_v59 = vadd.s32 2736, %v9016_v1 }
 0x1f7   : > { %8175 = vmatpush3.bf16.msk.msra.mxu0 %vm8174_vm1, %v13659_v13  ;;  %vm2126_vm2 = vmand %vm1101_vm12, %vm1614_vm13  ;;  %vm1072_vm13 = vcmp.ge.s32.totalorder %v557_v60, %v9023_v5  ;;  %vm1055_vm1 = vcmp.ge.s32.totalorder %v540_v61, %v9023_v5  ;;  %v617_v60 = vadd.s32 2744, %v9016_v1 }
 0x1f8   : > { %vm2127_vm5 = vmand %vm1102_vm15, %vm1615_vm0 }
 0x1f9   : > { %vm8204_vm8 = vmpackc.low %vm2127_vm5, %vm2126_vm2  ;;  %vm1568_vm2 = vcmp.lt.s32.totalorder %v540_v61, %v9028_v7  ;;  %vm1569_vm5 = vcmp.lt.s32.totalorder %v541_v62, %v9028_v7  ;;  %v600_v61 = vadd.s32 2608, %v9016_v1 }
 0x1fa   : > { %8205 = vmatprep.subr.msk.bf16.mxu1 %vm8204_vm8, %v13659_v13  ;;  %vm2110_vm9 = vmand %vm1085_vm3, %vm1598_vm4  ;;  %vm1056_vm4 = vcmp.ge.s32.totalorder %v541_v62, %v9023_v5  ;;  %vm1103_vm8 = vcmp.ge.s32.totalorder %v588_v63, %v9023_v5  ;;  %v601_v62 = vadd.s32 2616, %v9016_v1 }
 0x1fb   : > { %vm2111_vm12 = vmand %vm1086_vm6, %vm1599_vm7 }
 0x1fc   : > { %vm8206_vm15 = vmpackc.low %vm2111_vm12, %vm2110_vm9  ;;  %vm1616_vm9 = vcmp.lt.s32.totalorder %v588_v63, %v9028_v7  ;;  %vm1617_vm12 = vcmp.lt.s32.totalorder %v589_v0, %v9028_v7  ;;  %v648_v63 = vadd.s32 2992, %v9016_v1 }
 0x1fd   : > { %8207 = vmatpush3.bf16.msk.msra.mxu1 %vm8206_vm15, %v13659_v13  ;;  %vm2096_vm0 = vmand %vm1071_vm10, %vm1584_vm11  ;;  %vm1104_vm11 = vcmp.ge.s32.totalorder %v589_v0, %v9023_v5  ;;  %vm1087_vm15 = vcmp.ge.s32.totalorder %v572_v3, %v9023_v5  ;;  %v649_v0 = vadd.s32 3000, %v9016_v1 }
 0x1fe   : > { %vm2097_vm3 = vmand %vm1072_vm13, %vm1585_vm14 }
 0x1ff   : > { %vm8176_vm6 = vmpackc.low %vm2097_vm3, %vm2096_vm0  ;;  %vm1600_vm0 = vcmp.lt.s32.totalorder %v572_v3, %v9028_v7  ;;  %vm1601_vm3 = vcmp.lt.s32.totalorder %v573_v4, %v9028_v7  ;;  %v632_v3 = vadd.s32 2864, %v9016_v1 }
 0x200   : > { %8177 = vmatprep.subr.msk.bf16.mxu0 %vm8176_vm6, %v13659_v13  ;;  %vm2080_vm7 = vmand %vm1055_vm1, %vm1568_vm2  ;;  %vm1088_vm2 = vcmp.ge.s32.totalorder %v573_v4, %v9023_v5  ;;  %vm1073_vm6 = vcmp.ge.s32.totalorder %v558_v6, %v9023_v5  ;;  %v633_v4 = vadd.s32 2872, %v9016_v1 }
 0x201   : > { %vm2081_vm10 = vmand %vm1056_vm4, %vm1569_vm5 }
 0x202   : > { %vm8178_vm13 = vmpackc.low %vm2081_vm10, %vm2080_vm7  ;;  %vm1586_vm7 = vcmp.lt.s32.totalorder %v558_v6, %v9028_v7  ;;  %vm1587_vm10 = vcmp.lt.s32.totalorder %v559_v8, %v9028_v7  ;;  %v618_v6 = vadd.s32 2752, %v9016_v1 }
 0x203   : > { %8179 = vmatpush3.bf16.msk.msra.mxu0 %vm8178_vm13, %v13659_v13  ;;  %vm2128_vm14 = vmand %vm1103_vm8, %vm1616_vm9  ;;  %vm1074_vm9 = vcmp.ge.s32.totalorder %v559_v8, %v9023_v5  ;;  %vm1057_vm13 = vcmp.ge.s32.totalorder %v542_v9, %v9023_v5  ;;  %v619_v8 = vadd.s32 2760, %v9016_v1 }
 0x204   : > { %vm2129_vm1 = vmand %vm1104_vm11, %vm1617_vm12 }
 0x205   : > { %vm8208_vm4 = vmpackc.low %vm2129_vm1, %vm2128_vm14  ;;  %vm1570_vm14 = vcmp.lt.s32.totalorder %v542_v9, %v9028_v7  ;;  %vm1571_vm1 = vcmp.lt.s32.totalorder %v543_v10, %v9028_v7  ;;  %v602_v9 = vadd.s32 2624, %v9016_v1 }
 0x206   : > { %8209 = vmatprep.subr.msk.bf16.mxu1 %vm8208_vm4, %v13659_v13  ;;  %vm2112_vm5 = vmand %vm1087_vm15, %vm1600_vm0  ;;  %vm1058_vm0 = vcmp.ge.s32.totalorder %v543_v10, %v9023_v5  ;;  %vm1105_vm4 = vcmp.ge.s32.totalorder %v590_v12, %v9023_v5  ;;  %v603_v10 = vadd.s32 2632, %v9016_v1 }
 0x207   : > { %vm2113_vm8 = vmand %vm1088_vm2, %vm1601_vm3 }
 0x208   : > { %vm8210_vm11 = vmpackc.low %vm2113_vm8, %vm2112_vm5  ;;  %vm1618_vm5 = vcmp.lt.s32.totalorder %v590_v12, %v9028_v7  ;;  %vm1619_vm8 = vcmp.lt.s32.totalorder %v591_v14, %v9028_v7  ;;  %v650_v12 = vadd.s32 3008, %v9016_v1 }
 0x209   : > { %8211 = vmatpush3.bf16.msk.msra.mxu1 %vm8210_vm11, %v13659_v13  ;;  %vm2098_vm12 = vmand %vm1073_vm6, %vm1586_vm7  ;;  %vm1106_vm7 = vcmp.ge.s32.totalorder %v591_v14, %v9023_v5  ;;  %vm1089_vm11 = vcmp.ge.s32.totalorder %v574_v15, %v9023_v5  ;;  %v651_v14 = vadd.s32 3016, %v9016_v1 }
 0x20a   : > { %vm2099_vm15 = vmand %vm1074_vm9, %vm1587_vm10 }
 0x20b   : > { %vm8180_vm2 = vmpackc.low %vm2099_vm15, %vm2098_vm12  ;;  %vm1602_vm12 = vcmp.lt.s32.totalorder %v574_v15, %v9028_v7  ;;  %vm1603_vm15 = vcmp.lt.s32.totalorder %v575_v16, %v9028_v7  ;;  %v634_v15 = vadd.s32 2880, %v9016_v1 }
 0x20c   : > { %8181 = vmatprep.subr.msk.bf16.mxu0 %vm8180_vm2, %v13659_v13  ;;  %vm2082_vm3 = vmand %vm1057_vm13, %vm1570_vm14  ;;  %vm1090_vm14 = vcmp.ge.s32.totalorder %v575_v16, %v9023_v5  ;;  %vm1075_vm2 = vcmp.ge.s32.totalorder %v560_v17, %v9023_v5  ;;  %v635_v16 = vadd.s32 2888, %v9016_v1 }
 0x20d   : > { %vm2083_vm6 = vmand %vm1058_vm0, %vm1571_vm1 }
 0x20e   : > { %vm8182_vm9 = vmpackc.low %vm2083_vm6, %vm2082_vm3  ;;  %vm1588_vm3 = vcmp.lt.s32.totalorder %v560_v17, %v9028_v7  ;;  %vm1589_vm6 = vcmp.lt.s32.totalorder %v561_v18, %v9028_v7  ;;  %v620_v17 = vadd.s32 2768, %v9016_v1 }
 0x20f   : > { %8183 = vmatpush3.bf16.msk.msra.mxu0 %vm8182_vm9, %v13659_v13  ;;  %vm2130_vm10 = vmand %vm1105_vm4, %vm1618_vm5  ;;  %vm1076_vm5 = vcmp.ge.s32.totalorder %v561_v18, %v9023_v5  ;;  %vm1059_vm9 = vcmp.ge.s32.totalorder %v544_v21, %v9023_v5  ;;  %v621_v18 = vadd.s32 2776, %v9016_v1 }
 0x210   : > { %vm2131_vm13 = vmand %vm1106_vm7, %vm1619_vm8 }
 0x211   : > { %vm8212_vm0 = vmpackc.low %vm2131_vm13, %vm2130_vm10  ;;  %vm1572_vm10 = vcmp.lt.s32.totalorder %v544_v21, %v9028_v7  ;;  %vm1573_vm13 = vcmp.lt.s32.totalorder %v545_v22, %v9028_v7  ;;  %v604_v21 = vadd.s32 2640, %v9016_v1 }
 0x212   : > { %8213 = vmatprep.subr.msk.bf16.mxu1 %vm8212_vm0, %v13659_v13  ;;  %vm2114_vm1 = vmand %vm1089_vm11, %vm1602_vm12  ;;  %vm1060_vm12 = vcmp.ge.s32.totalorder %v545_v22, %v9023_v5  ;;  %vm1107_vm0 = vcmp.ge.s32.totalorder %v592_v23, %v9023_v5  ;;  %v605_v22 = vadd.s32 2648, %v9016_v1 }
 0x213   : > { %vm2115_vm4 = vmand %vm1090_vm14, %vm1603_vm15 }
 0x214   : > { %vm8214_vm7 = vmpackc.low %vm2115_vm4, %vm2114_vm1  ;;  %vm1620_vm1 = vcmp.lt.s32.totalorder %v592_v23, %v9028_v7  ;;  %vm1621_vm4 = vcmp.lt.s32.totalorder %v593_v24, %v9028_v7  ;;  %v652_v23 = vadd.s32 3024, %v9016_v1 }
 0x215   : > { %8215 = vmatpush3.bf16.msk.msra.mxu1 %vm8214_vm7, %v13659_v13  ;;  %vm2100_vm8 = vmand %vm1075_vm2, %vm1588_vm3  ;;  %vm1108_vm3 = vcmp.ge.s32.totalorder %v593_v24, %v9023_v5  ;;  %vm1091_vm7 = vcmp.ge.s32.totalorder %v576_v25, %v9023_v5  ;;  %v653_v24 = vadd.s32 3032, %v9016_v1 }
 0x216   : > { %vm2101_vm11 = vmand %vm1076_vm5, %vm1589_vm6 }
 0x217   : > { %vm8184_vm14 = vmpackc.low %vm2101_vm11, %vm2100_vm8  ;;  %vm1604_vm8 = vcmp.lt.s32.totalorder %v576_v25, %v9028_v7  ;;  %vm1605_vm11 = vcmp.lt.s32.totalorder %v577_v26, %v9028_v7  ;;  %v636_v25 = vadd.s32 2896, %v9016_v1 }
 0x218   : > { %8185 = vmatprep.subr.msk.bf16.mxu0 %vm8184_vm14, %v13659_v13  ;;  %vm2084_vm15 = vmand %vm1059_vm9, %vm1572_vm10  ;;  %vm1092_vm10 = vcmp.ge.s32.totalorder %v577_v26, %v9023_v5  ;;  %vm1125_vm14 = vcmp.ge.s32.totalorder %v610_v29, %v9023_v5  ;;  %v637_v26 = vadd.s32 2904, %v9016_v1 }
 0x219   : > { %vm2085_vm2 = vmand %vm1060_vm12, %vm1573_vm13 }
 0x21a   : > { %vm8186_vm5 = vmpackc.low %vm2085_vm2, %vm2084_vm15  ;;  %vm1638_vm15 = vcmp.lt.s32.totalorder %v610_v29, %v9028_v7  ;;  %vm1639_vm2 = vcmp.lt.s32.totalorder %v611_v31, %v9028_v7  ;;  %v622_v29 = vadd.s32 2784, %v9016_v1 }
 0x21b   : > { %8187 = vmatpush3.bf16.msk.msra.mxu0 %vm8186_vm5, %v13659_v13  ;;  %vm2132_vm6 = vmand %vm1107_vm0, %vm1620_vm1  ;;  %vm1126_vm1 = vcmp.ge.s32.totalorder %v611_v31, %v9023_v5  ;;  %vm1109_vm5 = vcmp.ge.s32.totalorder %v594_v33, %v9023_v5  ;;  %v606_v31 = vadd.s32 2656, %v9016_v1 }
 0x21c   : > { %vm2133_vm9 = vmand %vm1108_vm3, %vm1621_vm4 }
 0x21d   : > { %vm8216_vm12 = vmpackc.low %vm2133_vm9, %vm2132_vm6  ;;  %vm1622_vm6 = vcmp.lt.s32.totalorder %v594_v33, %v9028_v7  ;;  %vm1623_vm9 = vcmp.lt.s32.totalorder %v595_v34, %v9028_v7  ;;  %v654_v33 = vadd.s32 3040, %v9016_v1 }
 0x21e   : > { %8217 = vmatprep.subr.msk.bf16.mxu1 %vm8216_vm12, %v13659_v13  ;;  %vm2116_vm13 = vmand %vm1091_vm7, %vm1604_vm8  ;;  %3463 = vmatmul.mubr.f32.vlgmr.msra.gmra.mrb[8].mxu0 %v257_v30  ;;  %vm1110_vm8 = vcmp.ge.s32.totalorder %v595_v34, %v9023_v5  ;;  %vm1157_vm12 = vcmp.ge.s32.totalorder %v642_v37, %v9023_v5  ;;  %v623_v30 = vadd.s32 2792, %v9016_v1  ;;  %v655_v34 = vadd.s32 3048, %v9016_v1 }
 0x21f   : > { %vm2117_vm0 = vmand %vm1092_vm10, %vm1605_vm11  ;;  %3602 = vmatprep.mubr.f32.mxu0 %v262_v32  ;;  %v607_v32 = vadd.s32 2664, %v9016_v1 }
 0x220   : > { %vm8218_vm3 = vmpackc.low %vm2117_vm0, %vm2116_vm13  ;;  %vm1670_vm13 = vcmp.lt.s32.totalorder %v642_v37, %v9028_v7  ;;  %vm1671_vm0 = vcmp.lt.s32.totalorder %v643_v38, %v9028_v7  ;;  %v638_v37 = vadd.s32 2912, %v9016_v1 }
 0x221   : > { %8219 = vmatpush3.bf16.msk.msra.mxu1 %vm8218_vm3, %v13659_v13  ;;  %vm2150_vm4 = vmand %vm1125_vm14, %vm1638_vm15  ;;  %vm1158_vm15 = vcmp.ge.s32.totalorder %v643_v38, %v9023_v5  ;;  %vm1141_vm3 = vcmp.ge.s32.totalorder %v626_v41, %v9023_v5  ;;  %v639_v38 = vadd.s32 2920, %v9016_v1 }
 0x222   : > { %vm2151_vm7 = vmand %vm1126_vm1, %vm1639_vm2 }
 0x223   : > { %vm8220_vm10 = vmpackc.low %vm2151_vm7, %vm2150_vm4  ;;  %vm1654_vm4 = vcmp.lt.s32.totalorder %v626_v41, %v9028_v7  ;;  %vm1655_vm7 = vcmp.lt.s32.totalorder %v627_v42, %v9028_v7  ;;  %v608_v41 = vadd.s32 2672, %v9016_v1 }
 0x224   : > { %8221 = vmatprep.subr.msk.bf16.mxu0 %vm8220_vm10, %v13659_v13  ;;  %vm2134_vm11 = vmand %vm1109_vm5, %vm1622_vm6  ;;  %3533 = vmatmul.mubr.f32.vlgmr.msra.gmra.mrb[8].mxu1 %v259_v39  ;;  %vm1142_vm6 = vcmp.ge.s32.totalorder %v627_v42, %v9023_v5  ;;  %vm1127_vm10 = vcmp.ge.s32.totalorder %v612_v43, %v9023_v5  ;;  %v624_v39 = vadd.s32 2800, %v9016_v1  ;;  %v609_v42 = vadd.s32 2680, %v9016_v1 }
 0x225   : > { %vm2135_vm14 = vmand %vm1110_vm8, %vm1623_vm9  ;;  %3672 = vmatprep.mubr.f32.mxu1 %v264_v40  ;;  %v625_v40 = vadd.s32 2808, %v9016_v1 }
 0x226   : > { %vm8222_vm1 = vmpackc.low %vm2135_vm14, %vm2134_vm11  ;;  %vm1640_vm11 = vcmp.lt.s32.totalorder %v612_v43, %v9028_v7  ;;  %vm1641_vm14 = vcmp.lt.s32.totalorder %v613_v44, %v9028_v7  ;;  %v656_v43 = vadd.s32 3056, %v9016_v1 }
 0x227   : > { %8223 = vmatpush3.bf16.msk.msra.mxu0 %vm8222_vm1, %v13659_v13  ;;  %vm2182_vm2 = vmand %vm1157_vm12, %vm1670_vm13  ;;  %vm1128_vm13 = vcmp.ge.s32.totalorder %v613_v44, %v9023_v5  ;;  %vm1111_vm1 = vcmp.ge.s32.totalorder %v596_v45, %v9023_v5  ;;  %v657_v44 = vadd.s32 3064, %v9016_v1 }
 0x228   : > { %vm2183_vm5 = vmand %vm1158_vm15, %vm1671_vm0 }
 0x229   : > { %vm8252_vm8 = vmpackc.low %vm2183_vm5, %vm2182_vm2  ;;  %vm1624_vm2 = vcmp.lt.s32.totalorder %v596_v45, %v9028_v7  ;;  %vm1625_vm5 = vcmp.lt.s32.totalorder %v597_v46, %v9028_v7  ;;  %v640_v45 = vadd.s32 2928, %v9016_v1 }
 0x22a   : > { %8253 = vmatprep.subr.msk.bf16.mxu1 %vm8252_vm8, %v13659_v13  ;;  %vm2166_vm9 = vmand %vm1141_vm3, %vm1654_vm4  ;;  %vm1112_vm4 = vcmp.ge.s32.totalorder %v597_v46, %v9023_v5  ;;  %vm1159_vm8 = vcmp.ge.s32.totalorder %v644_v47, %v9023_v5  ;;  %v641_v46 = vadd.s32 2936, %v9016_v1 }
 0x22b   : > { %vm2167_vm12 = vmand %vm1142_vm6, %vm1655_vm7 }
 0x22c   : > { %vm8254_vm15 = vmpackc.low %vm2167_vm12, %vm2166_vm9  ;;  %vm1672_vm9 = vcmp.lt.s32.totalorder %v644_v47, %v9028_v7  ;;  %vm1673_vm12 = vcmp.lt.s32.totalorder %v645_v48, %v9028_v7  ;;  %v674_v47 = vadd.s32 3200, %v9016_v1 }
 0x22d   : > { %8255 = vmatpush3.bf16.msk.msra.mxu1 %vm8254_vm15, %v13659_v13  ;;  %vm2152_vm0 = vmand %vm1127_vm10, %vm1640_vm11  ;;  %vm1160_vm11 = vcmp.ge.s32.totalorder %v645_v48, %v9023_v5  ;;  %vm1143_vm15 = vcmp.ge.s32.totalorder %v628_v49, %v9023_v5  ;;  %v261_v48 = vld [vmem:[%s9010_s15 + $0xa0] sm:$0xff] }
 0x22e   : > { %vm2153_vm3 = vmand %vm1128_vm13, %vm1641_vm14 }
 0x22f   : > { %vm8224_vm6 = vmpackc.low %vm2153_vm3, %vm2152_vm0  ;;  %vm1656_vm0 = vcmp.lt.s32.totalorder %v628_v49, %v9028_v7  ;;  %vm1657_vm3 = vcmp.lt.s32.totalorder %v629_v50, %v9028_v7  ;;  %v675_v49 = vadd.s32 3208, %v9016_v1 }
 0x230   : > { %8225 = vmatprep.subr.msk.bf16.mxu0 %vm8224_vm6, %v13659_v13  ;;  %vm2136_vm7 = vmand %vm1111_vm1, %vm1624_vm2  ;;  %vm1144_vm2 = vcmp.ge.s32.totalorder %v629_v50, %v9023_v5  ;;  %vm1129_vm6 = vcmp.ge.s32.totalorder %v614_v51, %v9023_v5  ;;  %v266_v50 = vld [vmem:[%s9010_s15 + $0xc8] sm:$0xff] }
 0x231   : > { %vm2137_vm10 = vmand %vm1112_vm4, %vm1625_vm5 }
 0x232   : > { %vm8226_vm13 = vmpackc.low %vm2137_vm10, %vm2136_vm7  ;;  %vm1642_vm7 = vcmp.lt.s32.totalorder %v614_v51, %v9028_v7  ;;  %vm1643_vm10 = vcmp.lt.s32.totalorder %v615_v52, %v9028_v7  ;;  %v658_v51 = vadd.s32 3072, %v9016_v1 }
 0x233   : > { %8227 = vmatpush3.bf16.msk.msra.mxu0 %vm8226_vm13, %v13659_v13  ;;  %vm2184_vm14 = vmand %vm1159_vm8, %vm1672_vm9  ;;  %vm1130_vm9 = vcmp.ge.s32.totalorder %v615_v52, %v9023_v5  ;;  %vm1113_vm13 = vcmp.ge.s32.totalorder %v598_v53, %v9023_v5  ;;  %v659_v52 = vadd.s32 3080, %v9016_v1 }
 0x234   : > { %vm2185_vm1 = vmand %vm1160_vm11, %vm1673_vm12 }
 0x235   : > { %vm8256_vm4 = vmpackc.low %vm2185_vm1, %vm2184_vm14  ;;  %vm1626_vm14 = vcmp.lt.s32.totalorder %v598_v53, %v9028_v7  ;;  %vm1627_vm1 = vcmp.lt.s32.totalorder %v599_v54, %v9028_v7  ;;  %v706_v53 = vadd.s32 3456, %v9016_v1 }
 0x236   : > { %8257 = vmatprep.subr.msk.bf16.mxu1 %vm8256_vm4, %v13659_v13  ;;  %vm2168_vm5 = vmand %vm1143_vm15, %vm1656_vm0  ;;  %vm1114_vm0 = vcmp.ge.s32.totalorder %v599_v54, %v9023_v5  ;;  %vm1161_vm4 = vcmp.ge.s32.totalorder %v646_v55, %v9023_v5  ;;  %v707_v54 = vadd.s32 3464, %v9016_v1 }
 0x237   : > { %vm2169_vm8 = vmand %vm1144_vm2, %vm1657_vm3 }
 0x238   : > { %vm8258_vm11 = vmpackc.low %vm2169_vm8, %vm2168_vm5  ;;  %vm1674_vm5 = vcmp.lt.s32.totalorder %v646_v55, %v9028_v7  ;;  %vm1675_vm8 = vcmp.lt.s32.totalorder %v647_v56, %v9028_v7  ;;  %v263_v55 = vld [vmem:[%s9010_s15 + $0xb0] sm:$0xff] }
 0x239   : > { %8259 = vmatpush3.bf16.msk.msra.mxu1 %vm8258_vm11, %v13659_v13  ;;  %vm2154_vm12 = vmand %vm1129_vm6, %vm1642_vm7  ;;  %vm1162_vm7 = vcmp.ge.s32.totalorder %v647_v56, %v9023_v5  ;;  %vm1145_vm11 = vcmp.ge.s32.totalorder %v630_v57, %v9023_v5  ;;  %v268_v56 = vld [vmem:[%s9010_s15 + $0xd8] sm:$0xff] }
 0x23a   : > { %vm2155_vm15 = vmand %vm1130_vm9, %vm1643_vm10 }
 0x23b   : > { %vm8228_vm2 = vmpackc.low %vm2155_vm15, %vm2154_vm12  ;;  %vm1658_vm12 = vcmp.lt.s32.totalorder %v630_v57, %v9028_v7  ;;  %vm1659_vm15 = vcmp.lt.s32.totalorder %v631_v58, %v9028_v7  ;;  %v690_v57 = vadd.s32 3328, %v9016_v1 }
 0x23c   : > { %8229 = vmatprep.subr.msk.bf16.mxu0 %vm8228_vm2, %v13659_v13  ;;  %vm2138_vm3 = vmand %vm1113_vm13, %vm1626_vm14  ;;  %vm1146_vm14 = vcmp.ge.s32.totalorder %v631_v58, %v9023_v5  ;;  %vm1131_vm2 = vcmp.ge.s32.totalorder %v616_v59, %v9023_v5  ;;  %v691_v58 = vadd.s32 3336, %v9016_v1 }
 0x23d   : > { %vm2139_vm6 = vmand %vm1114_vm0, %vm1627_vm1 }
 0x23e   : > { %vm8230_vm9 = vmpackc.low %vm2139_vm6, %vm2138_vm3  ;;  %vm1644_vm3 = vcmp.lt.s32.totalorder %v616_v59, %v9028_v7  ;;  %vm1645_vm6 = vcmp.lt.s32.totalorder %v617_v60, %v9028_v7  ;;  %v676_v59 = vadd.s32 3216, %v9016_v1 }
 0x23f   : > { %8231 = vmatpush3.bf16.msk.msra.mxu0 %vm8230_vm9, %v13659_v13  ;;  %vm2186_vm10 = vmand %vm1161_vm4, %vm1674_vm5  ;;  %vm1132_vm5 = vcmp.ge.s32.totalorder %v617_v60, %v9023_v5  ;;  %vm1115_vm9 = vcmp.ge.s32.totalorder %v600_v61, %v9023_v5  ;;  %v677_v60 = vadd.s32 3224, %v9016_v1 }
 0x240   : > { %vm2187_vm13 = vmand %vm1162_vm7, %vm1675_vm8 }
 0x241   : > { %vm8260_vm0 = vmpackc.low %vm2187_vm13, %vm2186_vm10  ;;  %vm1628_vm10 = vcmp.lt.s32.totalorder %v600_v61, %v9028_v7  ;;  %vm1629_vm13 = vcmp.lt.s32.totalorder %v601_v62, %v9028_v7  ;;  %v660_v61 = vadd.s32 3088, %v9016_v1 }
 0x242   : > { %8261 = vmatprep.subr.msk.bf16.mxu1 %vm8260_vm0, %v13659_v13  ;;  %vm2170_vm1 = vmand %vm1145_vm11, %vm1658_vm12  ;;  %vm1116_vm12 = vcmp.ge.s32.totalorder %v601_v62, %v9023_v5  ;;  %vm1163_vm0 = vcmp.ge.s32.totalorder %v648_v63, %v9023_v5  ;;  %v661_v62 = vadd.s32 3096, %v9016_v1 }
 0x243   : > { %vm2171_vm4 = vmand %vm1146_vm14, %vm1659_vm15 }
 0x244   : > { %vm8262_vm7 = vmpackc.low %vm2171_vm4, %vm2170_vm1  ;;  %vm1676_vm1 = vcmp.lt.s32.totalorder %v648_v63, %v9028_v7  ;;  %vm1677_vm4 = vcmp.lt.s32.totalorder %v649_v0, %v9028_v7  ;;  %v708_v63 = vadd.s32 3472, %v9016_v1 }
 0x245   : > { %8263 = vmatpush3.bf16.msk.msra.mxu1 %vm8262_vm7, %v13659_v13  ;;  %vm2156_vm8 = vmand %vm1131_vm2, %vm1644_vm3  ;;  %vm1164_vm3 = vcmp.ge.s32.totalorder %v649_v0, %v9023_v5  ;;  %vm1147_vm7 = vcmp.ge.s32.totalorder %v632_v3, %v9023_v5  ;;  %v709_v0 = vadd.s32 3480, %v9016_v1 }
 0x246   : > { %vm2157_vm11 = vmand %vm1132_vm5, %vm1645_vm6 }
 0x247   : > { %vm8232_vm14 = vmpackc.low %vm2157_vm11, %vm2156_vm8  ;;  %vm1660_vm8 = vcmp.lt.s32.totalorder %v632_v3, %v9028_v7  ;;  %vm1661_vm11 = vcmp.lt.s32.totalorder %v633_v4, %v9028_v7  ;;  %v692_v3 = vadd.s32 3344, %v9016_v1 }
 0x248   : > { %8233 = vmatprep.subr.msk.bf16.mxu0 %vm8232_vm14, %v13659_v13  ;;  %vm2140_vm15 = vmand %vm1115_vm9, %vm1628_vm10  ;;  %vm1148_vm10 = vcmp.ge.s32.totalorder %v633_v4, %v9023_v5  ;;  %vm1133_vm14 = vcmp.ge.s32.totalorder %v618_v6, %v9023_v5  ;;  %v693_v4 = vadd.s32 3352, %v9016_v1 }
 0x249   : > { %vm2141_vm2 = vmand %vm1116_vm12, %vm1629_vm13 }
 0x24a   : > { %vm8234_vm5 = vmpackc.low %vm2141_vm2, %vm2140_vm15  ;;  %vm1646_vm15 = vcmp.lt.s32.totalorder %v618_v6, %v9028_v7  ;;  %vm1647_vm2 = vcmp.lt.s32.totalorder %v619_v8, %v9028_v7  ;;  %v678_v6 = vadd.s32 3232, %v9016_v1 }
 0x24b   : > { %8235 = vmatpush3.bf16.msk.msra.mxu0 %vm8234_vm5, %v13659_v13  ;;  %vm2188_vm6 = vmand %vm1163_vm0, %vm1676_vm1  ;;  %vm1134_vm1 = vcmp.ge.s32.totalorder %v619_v8, %v9023_v5  ;;  %vm1117_vm5 = vcmp.ge.s32.totalorder %v602_v9, %v9023_v5  ;;  %v679_v8 = vadd.s32 3240, %v9016_v1 }
 0x24c   : > { %vm2189_vm9 = vmand %vm1164_vm3, %vm1677_vm4 }
 0x24d   : > { %vm8264_vm12 = vmpackc.low %vm2189_vm9, %vm2188_vm6  ;;  %vm1630_vm6 = vcmp.lt.s32.totalorder %v602_v9, %v9028_v7  ;;  %vm1631_vm9 = vcmp.lt.s32.totalorder %v603_v10, %v9028_v7  ;;  %v662_v9 = vadd.s32 3104, %v9016_v1 }
 0x24e   : > { %8265 = vmatprep.subr.msk.bf16.mxu1 %vm8264_vm12, %v13659_v13  ;;  %vm2172_vm13 = vmand %vm1147_vm7, %vm1660_vm8  ;;  %vm1118_vm8 = vcmp.ge.s32.totalorder %v603_v10, %v9023_v5  ;;  %vm1165_vm12 = vcmp.ge.s32.totalorder %v650_v12, %v9023_v5  ;;  %v663_v10 = vadd.s32 3112, %v9016_v1 }
 0x24f   : > { %vm2173_vm0 = vmand %vm1148_vm10, %vm1661_vm11 }
 0x250   : > { %vm8266_vm3 = vmpackc.low %vm2173_vm0, %vm2172_vm13  ;;  %vm1678_vm13 = vcmp.lt.s32.totalorder %v650_v12, %v9028_v7  ;;  %vm1679_vm0 = vcmp.lt.s32.totalorder %v651_v14, %v9028_v7  ;;  %v710_v12 = vadd.s32 3488, %v9016_v1 }
 0x251   : > { %8267 = vmatpush3.bf16.msk.msra.mxu1 %vm8266_vm3, %v13659_v13  ;;  %vm2158_vm4 = vmand %vm1133_vm14, %vm1646_vm15  ;;  %vm1166_vm15 = vcmp.ge.s32.totalorder %v651_v14, %v9023_v5  ;;  %vm1149_vm3 = vcmp.ge.s32.totalorder %v634_v15, %v9023_v5  ;;  %v711_v14 = vadd.s32 3496, %v9016_v1 }
 0x252   : > { %vm2159_vm7 = vmand %vm1134_vm1, %vm1647_vm2 }
 0x253   : > { %vm8236_vm10 = vmpackc.low %vm2159_vm7, %vm2158_vm4  ;;  %vm1662_vm4 = vcmp.lt.s32.totalorder %v634_v15, %v9028_v7  ;;  %vm1663_vm7 = vcmp.lt.s32.totalorder %v635_v16, %v9028_v7  ;;  %v694_v15 = vadd.s32 3360, %v9016_v1 }
 0x254   : > { %8237 = vmatprep.subr.msk.bf16.mxu0 %vm8236_vm10, %v13659_v13  ;;  %vm2142_vm11 = vmand %vm1117_vm5, %vm1630_vm6  ;;  %vm1150_vm6 = vcmp.ge.s32.totalorder %v635_v16, %v9023_v5  ;;  %vm1135_vm10 = vcmp.ge.s32.totalorder %v620_v17, %v9023_v5  ;;  %v695_v16 = vadd.s32 3368, %v9016_v1 }
 0x255   : > { %vm2143_vm14 = vmand %vm1118_vm8, %vm1631_vm9 }
 0x256   : > { %vm8238_vm1 = vmpackc.low %vm2143_vm14, %vm2142_vm11  ;;  %vm1648_vm11 = vcmp.lt.s32.totalorder %v620_v17, %v9028_v7  ;;  %vm1649_vm14 = vcmp.lt.s32.totalorder %v621_v18, %v9028_v7  ;;  %v7337_v17 = vpop.f32.mrb[0].mxu0 }
 0x257   : > { %8239 = vmatpush3.bf16.msk.msra.mxu0 %vm8238_vm1, %v13659_v13  ;;  %vm2190_vm2 = vmand %vm1165_vm12, %vm1678_vm13  ;;  %vm1136_vm13 = vcmp.ge.s32.totalorder %v621_v18, %v9023_v5  ;;  %vm1119_vm1 = vcmp.ge.s32.totalorder %v604_v21, %v9023_v5  ;;  %v7372_v18 = vpop.f32.mrb[0].mxu1 }
 0x258   : > { %vm2191_vm5 = vmand %vm1166_vm15, %vm1679_vm0 }
 0x259   : > { %vm8268_vm8 = vmpackc.low %vm2191_vm5, %vm2190_vm2  ;;  %vm1632_vm2 = vcmp.lt.s32.totalorder %v604_v21, %v9028_v7  ;;  %vm1633_vm5 = vcmp.lt.s32.totalorder %v605_v22, %v9028_v7  ;;  %v680_v21 = vadd.s32 3248, %v9016_v1 }
 0x25a   : > { %8269 = vmatprep.subr.msk.bf16.mxu1 %vm8268_vm8, %v13659_v13  ;;  %vm2174_vm9 = vmand %vm1149_vm3, %vm1662_vm4  ;;  %vm1120_vm4 = vcmp.ge.s32.totalorder %v605_v22, %v9023_v5  ;;  %vm1167_vm8 = vcmp.ge.s32.totalorder %v652_v23, %v9023_v5  ;;  %v7338_v22 = vpop.f32.mrb[1].mxu0 }
 0x25b   : > { %vm2175_vm12 = vmand %vm1150_vm6, %vm1663_vm7 }
 0x25c   : > { %vm8270_vm15 = vmpackc.low %vm2175_vm12, %vm2174_vm9  ;;  %vm1680_vm9 = vcmp.lt.s32.totalorder %v652_v23, %v9028_v7  ;;  %vm1681_vm12 = vcmp.lt.s32.totalorder %v653_v24, %v9028_v7  ;;  %v7373_v23 = vpop.f32.mrb[1].mxu1 }
 0x25d   : > { %8271 = vmatpush3.bf16.msk.msra.mxu1 %vm8270_vm15, %v13659_v13  ;;  %vm2160_vm0 = vmand %vm1135_vm10, %vm1648_vm11  ;;  %vm1168_vm11 = vcmp.ge.s32.totalorder %v653_v24, %v9023_v5  ;;  %vm1151_vm15 = vcmp.ge.s32.totalorder %v636_v25, %v9023_v5  ;;  %v681_v24 = vadd.s32 3256, %v9016_v1 }
 0x25e   : > { %vm2161_vm3 = vmand %vm1136_vm13, %vm1649_vm14 }
 0x25f   : > { %vm8240_vm6 = vmpackc.low %vm2161_vm3, %vm2160_vm0  ;;  %vm1664_vm0 = vcmp.lt.s32.totalorder %v636_v25, %v9028_v7  ;;  %vm1665_vm3 = vcmp.lt.s32.totalorder %v637_v26, %v9028_v7  ;;  %v7339_v25 = vadd.f32 %v7338_v22, %v7337_v17  ;;  %v719_v17 = vadd.s32 3560, %v9016_v1 }
 0x260   : > { %8241 = vmatprep.subr.msk.bf16.mxu0 %vm8240_vm6, %v13659_v13  ;;  %vm2144_vm7 = vmand %vm1119_vm1, %vm1632_vm2  ;;  %vm1152_vm2 = vcmp.ge.s32.totalorder %v637_v26, %v9023_v5  ;;  %vm1137_vm6 = vcmp.ge.s32.totalorder %v622_v29, %v9023_v5  ;;  %v7374_v26 = vadd.f32 %v7373_v23, %v7372_v18 }
 0x261   : > { %vm2145_vm10 = vmand %vm1120_vm4, %vm1633_vm5 }
 0x262   : > { %vm8242_vm13 = vmpackc.low %vm2145_vm10, %vm2144_vm7  ;;  %vm1650_vm7 = vcmp.lt.s32.totalorder %v622_v29, %v9028_v7  ;;  %vm1651_vm10 = vcmp.lt.s32.totalorder %v623_v30, %v9028_v7  ;;  %v664_v29 = vadd.s32 3120, %v9016_v1 }
 0x263   : > { %8243 = vmatpush3.bf16.msk.msra.mxu0 %vm8242_vm13, %v13659_v13  ;;  %vm2192_vm14 = vmand %vm1167_vm8, %vm1680_vm9  ;;  %vm1138_vm9 = vcmp.ge.s32.totalorder %v623_v30, %v9023_v5  ;;  %vm1121_vm13 = vcmp.ge.s32.totalorder %v606_v31, %v9023_v5  ;;  %v10512_v30 = vadd.f32 %v7374_v26, %v7339_v25  ;;  %v702_v25 = vadd.s32 3424, %v9016_v1 }
 0x264   : > { %vm2193_vm1 = vmand %vm1168_vm11, %vm1681_vm12  ;;  %v703_v26 = vadd.s32 3432, %v9016_v1 }
 0x265   : > { %vm8272_vm4 = vmpackc.low %vm2193_vm1, %vm2192_vm14  ;;  %vm1634_vm14 = vcmp.lt.s32.totalorder %v606_v31, %v9028_v7  ;;  %vm1635_vm1 = vcmp.lt.s32.totalorder %v607_v32, %v9028_v7  ;;  %v665_v31 = vadd.s32 3128, %v9016_v1 }
 0x266   : > { %8273 = vmatprep.subr.msk.bf16.mxu1 %vm8272_vm4, %v13659_v13  ;;  %vm2176_vm5 = vmand %vm1151_vm15, %vm1664_vm0  ;;  %vm1122_vm0 = vcmp.ge.s32.totalorder %v607_v32, %v9023_v5  ;;  %vm1169_vm4 = vcmp.ge.s32.totalorder %v654_v33, %v9023_v5  ;;  %v712_v32 = vadd.s32 3504, %v9016_v1 }
 0x267   : > { %vm2177_vm8 = vmand %vm1152_vm2, %vm1665_vm3 }
 0x268   : > { %vm8274_vm11 = vmpackc.low %vm2177_vm8, %vm2176_vm5  ;;  %vm1682_vm5 = vcmp.lt.s32.totalorder %v654_v33, %v9028_v7  ;;  %vm1683_vm8 = vcmp.lt.s32.totalorder %v655_v34, %v9028_v7  ;;  %v713_v33 = vadd.s32 3512, %v9016_v1 }
 0x269   : > { %8275 = vmatpush3.bf16.msk.msra.mxu1 %vm8274_vm11, %v13659_v13  ;;  %vm2162_vm12 = vmand %vm1137_vm6, %vm1650_vm7  ;;  %vm1170_vm7 = vcmp.ge.s32.totalorder %v655_v34, %v9023_v5  ;;  %vm1153_vm11 = vcmp.ge.s32.totalorder %v638_v37, %v9023_v5  ;;  %v696_v34 = vadd.s32 3376, %v9016_v1 }
 0x26a   : > { %vm2163_vm15 = vmand %vm1138_vm9, %vm1651_vm10 }
 0x26b   : > { %vm8244_vm2 = vmpackc.low %vm2163_vm15, %vm2162_vm12  ;;  %vm1666_vm12 = vcmp.lt.s32.totalorder %v638_v37, %v9028_v7  ;;  %vm1667_vm15 = vcmp.lt.s32.totalorder %v639_v38, %v9028_v7  ;;  %v697_v37 = vadd.s32 3384, %v9016_v1 }
 0x26c   : > { %8245 = vmatprep.subr.msk.bf16.mxu0 %vm8244_vm2, %v13659_v13  ;;  %vm2146_vm3 = vmand %vm1121_vm13, %vm1634_vm14  ;;  %vm1154_vm14 = vcmp.ge.s32.totalorder %v639_v38, %v9023_v5  ;;  %vm1139_vm2 = vcmp.ge.s32.totalorder %v624_v39, %v9023_v5  ;;  %v682_v38 = vadd.s32 3264, %v9016_v1 }
 0x26d   : > { %vm2147_vm6 = vmand %vm1122_vm0, %vm1635_vm1 }
 0x26e   : > { %vm8246_vm9 = vmpackc.low %vm2147_vm6, %vm2146_vm3  ;;  %vm1652_vm3 = vcmp.lt.s32.totalorder %v624_v39, %v9028_v7  ;;  %vm1653_vm6 = vcmp.lt.s32.totalorder %v625_v40, %v9028_v7  ;;  %v683_v39 = vadd.s32 3272, %v9016_v1 }
 0x26f   : > { %8247 = vmatpush3.bf16.msk.msra.mxu0 %vm8246_vm9, %v13659_v13  ;;  %vm2194_vm10 = vmand %vm1169_vm4, %vm1682_vm5  ;;  %vm1140_vm5 = vcmp.ge.s32.totalorder %v625_v40, %v9023_v5  ;;  %vm1123_vm9 = vcmp.ge.s32.totalorder %v608_v41, %v9023_v5  ;;  %v666_v40 = vadd.s32 3136, %v9016_v1 }
 0x270   : > { %vm2195_vm13 = vmand %vm1170_vm7, %vm1683_vm8 }
 0x271   : > { %vm8276_vm0 = vmpackc.low %vm2195_vm13, %vm2194_vm10  ;;  %vm1636_vm10 = vcmp.lt.s32.totalorder %v608_v41, %v9028_v7  ;;  %vm1637_vm13 = vcmp.lt.s32.totalorder %v609_v42, %v9028_v7  ;;  %v667_v41 = vadd.s32 3144, %v9016_v1 }
 0x272   : > { %8277 = vmatprep.subr.msk.bf16.mxu1 %vm8276_vm0, %v13659_v13  ;;  %vm2178_vm1 = vmand %vm1153_vm11, %vm1666_vm12  ;;  %vm1124_vm12 = vcmp.ge.s32.totalorder %v609_v42, %v9023_v5  ;;  %vm1171_vm0 = vcmp.ge.s32.totalorder %v656_v43, %v9023_v5  ;;  %v714_v42 = vadd.s32 3520, %v9016_v1 }
 0x273   : > { %vm2179_vm4 = vmand %vm1154_vm14, %vm1667_vm15 }
 0x274   : > { %vm8278_vm7 = vmpackc.low %vm2179_vm4, %vm2178_vm1  ;;  %vm1684_vm1 = vcmp.lt.s32.totalorder %v656_v43, %v9028_v7  ;;  %vm1685_vm4 = vcmp.lt.s32.totalorder %v657_v44, %v9028_v7  ;;  %v715_v43 = vadd.s32 3528, %v9016_v1 }
 0x275   : > { %8279 = vmatpush3.bf16.msk.msra.mxu1 %vm8278_vm7, %v13659_v13  ;;  %vm2164_vm8 = vmand %vm1139_vm2, %vm1652_vm3  ;;  %vm1172_vm3 = vcmp.ge.s32.totalorder %v657_v44, %v9023_v5  ;;  %vm1155_vm7 = vcmp.ge.s32.totalorder %v640_v45, %v9023_v5  ;;  %v698_v44 = vadd.s32 3392, %v9016_v1 }
 0x276   : > { %vm2165_vm11 = vmand %vm1140_vm5, %vm1653_vm6 }
 0x277   : > { %vm8248_vm14 = vmpackc.low %vm2165_vm11, %vm2164_vm8  ;;  %vm1668_vm8 = vcmp.lt.s32.totalorder %v640_v45, %v9028_v7  ;;  %vm1669_vm11 = vcmp.lt.s32.totalorder %v641_v46, %v9028_v7  ;;  %v699_v45 = vadd.s32 3400, %v9016_v1 }
 0x278   : > { %8249 = vmatprep.subr.msk.bf16.mxu0 %vm8248_vm14, %v13659_v13  ;;  %vm2148_vm15 = vmand %vm1123_vm9, %vm1636_vm10  ;;  %vm1156_vm10 = vcmp.ge.s32.totalorder %v641_v46, %v9023_v5  ;;  %vm1189_vm14 = vcmp.ge.s32.totalorder %v674_v47, %v9023_v5  ;;  %v684_v46 = vadd.s32 3280, %v9016_v1 }
 0x279   : > { %vm2149_vm2 = vmand %vm1124_vm12, %vm1637_vm13 }
 0x27a   : > { %vm8250_vm5 = vmpackc.low %vm2149_vm2, %vm2148_vm15  ;;  %vm1702_vm15 = vcmp.lt.s32.totalorder %v674_v47, %v9028_v7  ;;  %vm1703_vm2 = vcmp.lt.s32.totalorder %v675_v49, %v9028_v7  ;;  %v685_v47 = vadd.s32 3288, %v9016_v1 }
 0x27b   : > { %8251 = vmatpush3.bf16.msk.msra.mxu0 %vm8250_vm5, %v13659_v13  ;;  %vm2196_vm6 = vmand %vm1171_vm0, %vm1684_vm1  ;;  %vm1190_vm1 = vcmp.ge.s32.totalorder %v675_v49, %v9023_v5  ;;  %vm1173_vm5 = vcmp.ge.s32.totalorder %v658_v51, %v9023_v5  ;;  %v669_v49 = vadd.s32 3160, %v9016_v1 }
 0x27c   : > { %vm2197_vm9 = vmand %vm1172_vm3, %vm1685_vm4 }
 0x27d   : > { %vm8280_vm12 = vmpackc.low %vm2197_vm9, %vm2196_vm6  ;;  %vm1686_vm6 = vcmp.lt.s32.totalorder %v658_v51, %v9028_v7  ;;  %vm1687_vm9 = vcmp.lt.s32.totalorder %v659_v52, %v9028_v7  ;;  %v717_v51 = vadd.s32 3544, %v9016_v1 }
 0x27e   : > { %8281 = vmatprep.subr.msk.bf16.mxu1 %vm8280_vm12, %v13659_v13  ;;  %vm2180_vm13 = vmand %vm1155_vm7, %vm1668_vm8  ;;  %3603 = vmatmul.mubr.f32.vlgmr.msra.gmra.mrb[10].mxu0 %v261_v48  ;;  %vm1174_vm8 = vcmp.ge.s32.totalorder %v659_v52, %v9023_v5  ;;  %vm1221_vm12 = vcmp.ge.s32.totalorder %v706_v53, %v9023_v5  ;;  %v668_v48 = vadd.s32 3152, %v9016_v1  ;;  %v700_v52 = vadd.s32 3408, %v9016_v1 }
 0x27f   : > { %vm2181_vm0 = vmand %vm1156_vm10, %vm1669_vm11  ;;  %3742 = vmatprep.mubr.f32.mxu0 %v266_v50  ;;  %v716_v50 = vadd.s32 3536, %v9016_v1 }
 0x280   : > { %vm8282_vm3 = vmpackc.low %vm2181_vm0, %vm2180_vm13  ;;  %vm1734_vm13 = vcmp.lt.s32.totalorder %v706_v53, %v9028_v7  ;;  %vm1735_vm0 = vcmp.lt.s32.totalorder %v707_v54, %v9028_v7  ;;  %v701_v53 = vadd.s32 3416, %v9016_v1 }
 0x281   : > { %8283 = vmatpush3.bf16.msk.msra.mxu1 %vm8282_vm3, %v13659_v13  ;;  %vm2214_vm4 = vmand %vm1189_vm14, %vm1702_vm15  ;;  %vm1222_vm15 = vcmp.ge.s32.totalorder %v707_v54, %v9023_v5  ;;  %vm1205_vm3 = vcmp.ge.s32.totalorder %v690_v57, %v9023_v5  ;;  %v686_v54 = vadd.s32 3296, %v9016_v1 }
 0x282   : > { %vm2215_vm7 = vmand %vm1190_vm1, %vm1703_vm2 }
 0x283   : > { %vm8284_vm10 = vmpackc.low %vm2215_vm7, %vm2214_vm4  ;;  %vm1718_vm4 = vcmp.lt.s32.totalorder %v690_v57, %v9028_v7  ;;  %vm1719_vm7 = vcmp.lt.s32.totalorder %v691_v58, %v9028_v7  ;;  %v7442_v57 = vpop.f32.mrb[2].mxu1 }
 0x284   : > { %8285 = vmatprep.subr.msk.bf16.mxu0 %vm8284_vm10, %v13659_v13  ;;  %vm2198_vm11 = vmand %vm1173_vm5, %vm1686_vm6  ;;  %3673 = vmatmul.mubr.f32.vlgmr.msra.gmra.mrb[10].mxu1 %v263_v55  ;;  %vm1206_vm6 = vcmp.ge.s32.totalorder %v691_v58, %v9023_v5  ;;  %vm1191_vm10 = vcmp.ge.s32.totalorder %v676_v59, %v9023_v5  ;;  %v687_v55 = vadd.s32 3304, %v9016_v1  ;;  %v670_v58 = vadd.s32 3168, %v9016_v1 }
 0x285   : > { %vm2199_vm14 = vmand %vm1174_vm8, %vm1687_vm9  ;;  %3812 = vmatprep.mubr.f32.mxu1 %v268_v56  ;;  %v7407_v56 = vpop.f32.mrb[2].mxu0 }
 0x286   : > { %vm8286_vm1 = vmpackc.low %vm2199_vm14, %vm2198_vm11  ;;  %vm1704_vm11 = vcmp.lt.s32.totalorder %v676_v59, %v9028_v7  ;;  %vm1705_vm14 = vcmp.lt.s32.totalorder %v677_v60, %v9028_v7  ;;  %v671_v59 = vadd.s32 3176, %v9016_v1 }
 0x287   : > { %8287 = vmatpush3.bf16.msk.msra.mxu0 %vm8286_vm1, %v13659_v13  ;;  %vm2246_vm2 = vmand %vm1221_vm12, %vm1734_vm13  ;;  %vm1192_vm13 = vcmp.ge.s32.totalorder %v677_v60, %v9023_v5  ;;  %vm1175_vm1 = vcmp.ge.s32.totalorder %v660_v61, %v9023_v5  ;;  %v7408_v60 = vpop.f32.mrb[3].mxu0 }
 0x288   : > { %vm2247_vm5 = vmand %vm1222_vm15, %vm1735_vm0 }
 0x289   : > { %vm8316_vm8 = vmpackc.low %vm2247_vm5, %vm2246_vm2  ;;  %vm1688_vm2 = vcmp.lt.s32.totalorder %v660_v61, %v9028_v7  ;;  %vm1689_vm5 = vcmp.lt.s32.totalorder %v661_v62, %v9028_v7  ;;  %v7443_v61 = vpop.f32.mrb[3].mxu1 }
 0x28a   : > { %8317 = vmatprep.subr.msk.bf16.mxu1 %vm8316_vm8, %v13659_v13  ;;  %vm2230_vm9 = vmand %vm1205_vm3, %vm1718_vm4  ;;  %vm1176_vm4 = vcmp.ge.s32.totalorder %v661_v62, %v9023_v5  ;;  %vm1223_vm8 = vcmp.ge.s32.totalorder %v708_v63, %v9023_v5  ;;  %v757_v62 = vadd.s32 3864, %v9016_v1 }
 0x28b   : > { %vm2231_vm12 = vmand %vm1206_vm6, %vm1719_vm7 }
 0x28c   : > { %vm8318_vm15 = vmpackc.low %vm2231_vm12, %vm2230_vm9  ;;  %vm1736_vm9 = vcmp.lt.s32.totalorder %v708_v63, %v9028_v7  ;;  %vm1737_vm12 = vcmp.lt.s32.totalorder %v709_v0, %v9028_v7  ;;  %v7409_v63 = vadd.f32 %v7408_v60, %v7407_v56  ;;  %v741_v56 = vadd.s32 3736, %v9016_v1 }
 0x28d   : > { %8319 = vmatpush3.bf16.msk.msra.mxu1 %vm8318_vm15, %v13659_v13  ;;  %vm2216_vm0 = vmand %vm1191_vm10, %vm1704_vm11  ;;  %vm1224_vm11 = vcmp.ge.s32.totalorder %v709_v0, %v9023_v5  ;;  %vm1207_vm15 = vcmp.ge.s32.totalorder %v692_v3, %v9023_v5  ;;  %v7444_v0 = vadd.f32 %v7443_v61, %v7442_v57  ;;  %v724_v57 = vadd.s32 3600, %v9016_v1 }
 0x28e   : > { %vm2217_vm3 = vmand %vm1192_vm13, %vm1705_vm14  ;;  %v773_v60 = vadd.s32 3992, %v9016_v1  ;;  %v756_v61 = vadd.s32 3856, %v9016_v1 }
 0x28f   : > { %vm8288_vm6 = vmpackc.low %vm2217_vm3, %vm2216_vm0  ;;  %vm1720_vm0 = vcmp.lt.s32.totalorder %v692_v3, %v9028_v7  ;;  %vm1721_vm3 = vcmp.lt.s32.totalorder %v693_v4, %v9028_v7  ;;  %v7477_v3 = vpop.f32.mrb[4].mxu0 }
 0x290   : > { %8289 = vmatprep.subr.msk.bf16.mxu0 %vm8288_vm6, %v13659_v13  ;;  %vm2200_vm7 = vmand %vm1175_vm1, %vm1688_vm2  ;;  %vm1208_vm2 = vcmp.ge.s32.totalorder %v693_v4, %v9023_v5  ;;  %vm1193_vm6 = vcmp.ge.s32.totalorder %v678_v6, %v9023_v5  ;;  %v7512_v4 = vpop.f32.mrb[4].mxu1 }
 0x291   : > { %vm2201_vm10 = vmand %vm1176_vm4, %vm1689_vm5 }
 0x292   : > { %vm8290_vm13 = vmpackc.low %vm2201_vm10, %vm2200_vm7  ;;  %vm1706_vm7 = vcmp.lt.s32.totalorder %v678_v6, %v9028_v7  ;;  %vm1707_vm10 = vcmp.lt.s32.totalorder %v679_v8, %v9028_v7  ;;  %v7478_v6 = vpop.f32.mrb[5].mxu0 }
 0x293   : > { %8291 = vmatpush3.bf16.msk.msra.mxu0 %vm8290_vm13, %v13659_v13  ;;  %vm2248_vm14 = vmand %vm1223_vm8, %vm1736_vm9  ;;  %vm1194_vm9 = vcmp.ge.s32.totalorder %v679_v8, %v9023_v5  ;;  %vm1177_vm13 = vcmp.ge.s32.totalorder %v662_v9, %v9023_v5  ;;  %v7513_v8 = vpop.f32.mrb[5].mxu1 }
 0x294   : > { %vm2249_vm1 = vmand %vm1224_vm11, %vm1737_vm12 }
 0x295   : > { %vm8320_vm4 = vmpackc.low %vm2249_vm1, %vm2248_vm14  ;;  %vm1690_vm14 = vcmp.lt.s32.totalorder %v662_v9, %v9028_v7  ;;  %vm1691_vm1 = vcmp.lt.s32.totalorder %v663_v10, %v9028_v7  ;;  %v718_v9 = vadd.s32 3552, %v9016_v1 }
 0x296   : > { %8321 = vmatprep.subr.msk.bf16.mxu1 %vm8320_vm4, %v13659_v13  ;;  %vm2232_vm5 = vmand %vm1207_vm15, %vm1720_vm0  ;;  %vm1178_vm0 = vcmp.ge.s32.totalorder %v663_v10, %v9023_v5  ;;  %vm1225_vm4 = vcmp.ge.s32.totalorder %v710_v12, %v9023_v5  ;;  %v3045_v10 = vadd.f32 %v7409_v63, %v10512_v30  ;;  %v688_v30 = vadd.s32 3312, %v9016_v1 }
 0x297   : > { %vm2233_vm8 = vmand %vm1208_vm2, %vm1721_vm3 }
 0x298   : > { %vm8322_vm11 = vmpackc.low %vm2233_vm8, %vm2232_vm5  ;;  %vm1738_vm5 = vcmp.lt.s32.totalorder %v710_v12, %v9028_v7  ;;  %vm1739_vm8 = vcmp.lt.s32.totalorder %v711_v14, %v9028_v7  ;;  %v7479_v12 = vadd.f32 %v7478_v6, %v7477_v3  ;;  %v3115_v22 = vadd.f32 %v7444_v0, %v3045_v10 }
 0x299   : > { %8323 = vmatpush3.bf16.msk.msra.mxu1 %vm8322_vm11, %v13659_v13  ;;  %vm2218_vm12 = vmand %vm1193_vm6, %vm1706_vm7  ;;  %vm1226_vm7 = vcmp.ge.s32.totalorder %v711_v14, %v9023_v5  ;;  %v7514_v14 = vadd.f32 %v7513_v8, %v7512_v4  ;;  %v742_v0 = vadd.s32 3744, %v9016_v1  ;;  %v743_v4 = vadd.s32 3752, %v9016_v1 }
 0x29a   : > { %vm2219_vm15 = vmand %vm1194_vm9, %vm1707_vm10  ;;  %vm1209_vm10 = vcmp.ge.s32.totalorder %v694_v15, %v9023_v5  ;;  %v726_v8 = vadd.s32 3616, %v9016_v1  ;;  %v727_v10 = vadd.s32 3624, %v9016_v1 }
 0x29b   : > { %vm8292_vm2 = vmpackc.low %vm2219_vm15, %vm2218_vm12  ;;  %vm1722_vm12 = vcmp.lt.s32.totalorder %v694_v15, %v9028_v7  ;;  %vm1723_vm15 = vcmp.lt.s32.totalorder %v695_v16, %v9028_v7  ;;  %v7547_v15 = vpop.f32.mrb[6].mxu0 }
 0x29c   : > { %8293 = vmatprep.subr.msk.bf16.mxu0 %vm8292_vm2, %v13659_v13  ;;  %vm2202_vm3 = vmand %vm1177_vm13, %vm1690_vm14  ;;  %vm1210_vm14 = vcmp.ge.s32.totalorder %v695_v16, %v9023_v5  ;;  %vm1195_vm2 = vcmp.ge.s32.totalorder %v680_v21, %v9023_v5  ;;  %v7582_v16 = vpop.f32.mrb[6].mxu1  ;;  %v7548_v18 = vpop.f32.mrb[7].mxu0 }
 0x29d   : > { %vm2203_vm6 = vmand %vm1178_vm0, %vm1691_vm1  ;;  %v7549_v23 = vadd.f32 %v7548_v18, %v7547_v15  ;;  %v758_v18 = vadd.s32 3872, %v9016_v1 }
 0x29e   : > { %vm8294_vm9 = vmpackc.low %vm2203_vm6, %vm2202_vm3  ;;  %vm1708_vm3 = vcmp.lt.s32.totalorder %v680_v21, %v9028_v7  ;;  %vm1709_vm6 = vcmp.lt.s32.totalorder %v681_v24, %v9028_v7  ;;  %v7583_v21 = vpop.f32.mrb[7].mxu1 }
 0x29f   : > { %8295 = vmatpush3.bf16.msk.msra.mxu0 %vm8294_vm9, %v13659_v13  ;;  %vm2250_vm11 = vmand %vm1225_vm4, %vm1738_vm5  ;;  %vm1196_vm5 = vcmp.ge.s32.totalorder %v681_v24, %v9023_v5  ;;  %vm1179_vm9 = vcmp.ge.s32.totalorder %v664_v29, %v9023_v5  ;;  %v7584_v24 = vadd.f32 %v7583_v21, %v7582_v16  ;;  %v775_v16 = vadd.s32 4008, %v9016_v1 }
 0x2a0   : > { %vm2251_vm13 = vmand %vm1226_vm7, %vm1739_vm8 }
 0x2a1   : > { %vm8324_vm0 = vmpackc.low %vm2251_vm13, %vm2250_vm11  ;;  %vm1693_vm13 = vcmp.lt.s32.totalorder %v665_v31, %v9028_v7 }
 0x2a2   : > { %8325 = vmatprep.subr.msk.bf16.mxu1 %vm8324_vm0, %v13659_v13  ;;  %vm2234_vm1 = vmand %vm1209_vm10, %vm1722_vm12  ;;  %vm1692_vm10 = vcmp.lt.s32.totalorder %v664_v29, %v9028_v7  ;;  %vm1180_vm12 = vcmp.ge.s32.totalorder %v665_v31, %v9023_v5  ;;  %vm1227_vm0 = vcmp.ge.s32.totalorder %v712_v32, %v9023_v5  ;;  %v3185_v29 = vadd.f32 %v7479_v12, %v3115_v22 }
 0x2a3   : > { %vm2235_vm4 = vmand %vm1210_vm14, %vm1723_vm15  ;;  %v759_v22 = vadd.s32 3880, %v9016_v1 }
 0x2a4   : > { %vm8326_vm7 = vmpackc.low %vm2235_vm4, %vm2234_vm1  ;;  %vm1740_vm1 = vcmp.lt.s32.totalorder %v712_v32, %v9028_v7  ;;  %vm1741_vm4 = vcmp.lt.s32.totalorder %v713_v33, %v9028_v7  ;;  %v3255_v31 = vadd.f32 %v7514_v14, %v3185_v29  ;;  %v689_v32 = vadd.s32 3320, %v9016_v1 }
 0x2a5   : > { %8327 = vmatpush3.bf16.msk.msra.mxu1 %vm8326_vm7, %v13659_v13  ;;  %vm2220_vm8 = vmand %vm1195_vm2, %vm1708_vm3  ;;  %vm1228_vm3 = vcmp.ge.s32.totalorder %v713_v33, %v9023_v5  ;;  %vm1211_vm7 = vcmp.ge.s32.totalorder %v696_v34, %v9023_v5  ;;  %v774_v14 = vadd.s32 4000, %v9016_v1  ;;  %v776_v29 = vadd.s32 4016, %v9016_v1 }
 0x2a6   : > { %vm2221_vm11 = vmand %vm1196_vm5, %vm1709_vm6  ;;  %v3325_v33 = vadd.f32 %v7549_v23, %v3255_v31  ;;  %v744_v23 = vadd.s32 3760, %v9016_v1  ;;  %v760_v31 = vadd.s32 3888, %v9016_v1 }
 0x2a7   : > { %vm8296_vm14 = vmpackc.low %vm2221_vm11, %vm2220_vm8  ;;  %vm1724_vm8 = vcmp.lt.s32.totalorder %v696_v34, %v9028_v7  ;;  %vm1725_vm11 = vcmp.lt.s32.totalorder %v697_v37, %v9028_v7  ;;  %v672_v34 = vadd.s32 3184, %v9016_v1 }
 0x2a8   : > { %8297 = vmatprep.subr.msk.bf16.mxu0 %vm8296_vm14, %v13659_v13  ;;  %vm2204_vm15 = vmand %vm1179_vm9, %vm1692_vm10  ;;  %vm1212_vm10 = vcmp.ge.s32.totalorder %v697_v37, %v9023_v5  ;;  %vm1197_vm14 = vcmp.ge.s32.totalorder %v682_v38, %v9023_v5  ;;  %v673_v37 = vadd.s32 3192, %v9016_v1 }
 0x2a9   : > { %vm2205_vm2 = vmand %vm1180_vm12, %vm1693_vm13 }
 0x2aa   : > { %vm8298_vm5 = vmpackc.low %vm2205_vm2, %vm2204_vm15  ;;  %vm1710_vm15 = vcmp.lt.s32.totalorder %v682_v38, %v9028_v7  ;;  %vm1711_vm2 = vcmp.lt.s32.totalorder %v683_v39, %v9028_v7  ;;  %v10653_v38 = vadd.f32 %v7584_v24, %v3325_v33  ;;  %v745_v24 = vadd.s32 3768, %v9016_v1 }
 0x2ab   : > { %8299 = vmatpush3.bf16.msk.msra.mxu0 %vm8298_vm5, %v13659_v13  ;;  %vm2252_vm6 = vmand %vm1227_vm0, %vm1740_vm1  ;;  %vm1198_vm1 = vcmp.ge.s32.totalorder %v683_v39, %v9023_v5  ;;  %vm1181_vm5 = vcmp.ge.s32.totalorder %v666_v40, %v9023_v5  ;;  %v720_v39 = vadd.s32 3568, %v9016_v1  ;;  %v746_v33 = vadd.s32 3776, %v9016_v1 }
 0x2ac   : > { %vm2253_vm9 = vmand %vm1228_vm3, %vm1741_vm4 }
 0x2ad   : > { %vm8328_vm12 = vmpackc.low %vm2253_vm9, %vm2252_vm6  ;;  %vm1694_vm6 = vcmp.lt.s32.totalorder %v666_v40, %v9028_v7  ;;  %vm1695_vm9 = vcmp.lt.s32.totalorder %v667_v41, %v9028_v7  ;;  %v721_v40 = vadd.s32 3576, %v9016_v1 }
 0x2ae   : > { %8329 = vmatprep.subr.msk.bf16.mxu1 %vm8328_vm12, %v13659_v13  ;;  %vm2236_vm13 = vmand %vm1211_vm7, %vm1724_vm8  ;;  %vm1182_vm8 = vcmp.ge.s32.totalorder %v667_v41, %v9023_v5  ;;  %vm1229_vm12 = vcmp.ge.s32.totalorder %v714_v42, %v9023_v5  ;;  %v704_v41 = vadd.s32 3440, %v9016_v1 }
 0x2af   : > { %vm2237_vm0 = vmand %vm1212_vm10, %vm1725_vm11 }
 0x2b0   : > { %vm8330_vm3 = vmpackc.low %vm2237_vm0, %vm2236_vm13  ;;  %vm1742_vm13 = vcmp.lt.s32.totalorder %v714_v42, %v9028_v7  ;;  %vm1743_vm0 = vcmp.lt.s32.totalorder %v715_v43, %v9028_v7  ;;  %v705_v42 = vadd.s32 3448, %v9016_v1 }
 0x2b1   : > { %8331 = vmatpush3.bf16.msk.msra.mxu1 %vm8330_vm3, %v13659_v13  ;;  %vm2222_vm4 = vmand %vm1197_vm14, %vm1710_vm15  ;;  %vm1230_vm15 = vcmp.ge.s32.totalorder %v715_v43, %v9023_v5  ;;  %vm1213_vm3 = vcmp.ge.s32.totalorder %v698_v44, %v9023_v5  ;;  %v738_v43 = vadd.s32 3712, %v9016_v1 }
 0x2b2   : > { %vm2223_vm7 = vmand %vm1198_vm1, %vm1711_vm2 }
 0x2b3   : > { %vm8300_vm10 = vmpackc.low %vm2223_vm7, %vm2222_vm4  ;;  %vm1726_vm4 = vcmp.lt.s32.totalorder %v698_v44, %v9028_v7  ;;  %vm1727_vm7 = vcmp.lt.s32.totalorder %v699_v45, %v9028_v7  ;;  %v265_v44 = vld [vmem:[%s9010_s15 + $0xc0] sm:$0xff] }
 0x2b4   : > { %8301 = vmatprep.subr.msk.bf16.mxu0 %vm8300_vm10, %v13659_v13  ;;  %vm2206_vm11 = vmand %vm1181_vm5, %vm1694_vm6  ;;  %vm1214_vm6 = vcmp.ge.s32.totalorder %v699_v45, %v9023_v5  ;;  %vm1199_vm10 = vcmp.ge.s32.totalorder %v684_v46, %v9023_v5  ;;  %v739_v45 = vadd.s32 3720, %v9016_v1 }
 0x2b5   : > { %vm2207_vm14 = vmand %vm1182_vm8, %vm1695_vm9 }
 0x2b6   : > { %vm8302_vm1 = vmpackc.low %vm2207_vm14, %vm2206_vm11  ;;  %vm1712_vm11 = vcmp.lt.s32.totalorder %v684_v46, %v9028_v7  ;;  %vm1713_vm14 = vcmp.lt.s32.totalorder %v685_v47, %v9028_v7  ;;  %v270_v46 = vld [vmem:[%s9010_s15 + $0xe8] sm:$0xff] }
 0x2b7   : > { %8303 = vmatpush3.bf16.msk.msra.mxu0 %vm8302_vm1, %v13659_v13  ;;  %vm2254_vm2 = vmand %vm1229_vm12, %vm1742_vm13  ;;  %vm1200_vm13 = vcmp.ge.s32.totalorder %v685_v47, %v9023_v5  ;;  %vm1183_vm1 = vcmp.ge.s32.totalorder %v668_v48, %v9023_v5  ;;  %v722_v47 = vadd.s32 3584, %v9016_v1 }
 0x2b8   : > { %vm2255_vm5 = vmand %vm1230_vm15, %vm1743_vm0 }
 0x2b9   : > { %vm8332_vm8 = vmpackc.low %vm2255_vm5, %vm2254_vm2  ;;  %vm1696_vm2 = vcmp.lt.s32.totalorder %v668_v48, %v9028_v7  ;;  %vm1697_vm5 = vcmp.lt.s32.totalorder %v669_v49, %v9028_v7  ;;  %v723_v48 = vadd.s32 3592, %v9016_v1 }
 0x2ba   : > { %8333 = vmatprep.subr.msk.bf16.mxu1 %vm8332_vm8, %v13659_v13  ;;  %vm2238_vm9 = vmand %vm1213_vm3, %vm1726_vm4  ;;  %vm1184_vm4 = vcmp.ge.s32.totalorder %v669_v49, %v9023_v5  ;;  %vm1231_vm8 = vcmp.ge.s32.totalorder %v716_v50, %v9023_v5  ;;  %v770_v49 = vadd.s32 3968, %v9016_v1 }
 0x2bb   : > { %vm2239_vm12 = vmand %vm1214_vm6, %vm1727_vm7 }
 0x2bc   : > { %vm8334_vm15 = vmpackc.low %vm2239_vm12, %vm2238_vm9  ;;  %vm1744_vm9 = vcmp.lt.s32.totalorder %v716_v50, %v9028_v7  ;;  %vm1745_vm12 = vcmp.lt.s32.totalorder %v717_v51, %v9028_v7  ;;  %v771_v50 = vadd.s32 3976, %v9016_v1 }
 0x2bd   : > { %8335 = vmatpush3.bf16.msk.msra.mxu1 %vm8334_vm15, %v13659_v13  ;;  %vm2224_vm0 = vmand %vm1199_vm10, %vm1712_vm11  ;;  %vm1232_vm11 = vcmp.ge.s32.totalorder %v717_v51, %v9023_v5  ;;  %vm1215_vm15 = vcmp.ge.s32.totalorder %v700_v52, %v9023_v5  ;;  %v267_v51 = vld [vmem:[%s9010_s15 + $0xd0] sm:$0xff] }
 0x2be   : > { %vm2225_vm3 = vmand %vm1200_vm13, %vm1713_vm14 }
 0x2bf   : > { %vm8304_vm6 = vmpackc.low %vm2225_vm3, %vm2224_vm0  ;;  %vm1728_vm0 = vcmp.lt.s32.totalorder %v700_v52, %v9028_v7  ;;  %vm1729_vm3 = vcmp.lt.s32.totalorder %v701_v53, %v9028_v7  ;;  %v272_v52 = vld [vmem:[%s9010_s15 + $0xf8] sm:$0xff] }
 0x2c0   : > { %8305 = vmatprep.subr.msk.bf16.mxu0 %vm8304_vm6, %v13659_v13  ;;  %vm2208_vm7 = vmand %vm1183_vm1, %vm1696_vm2  ;;  %vm1216_vm2 = vcmp.ge.s32.totalorder %v701_v53, %v9023_v5  ;;  %vm1201_vm6 = vcmp.ge.s32.totalorder %v686_v54, %v9023_v5  ;;  %v754_v53 = vadd.s32 3840, %v9016_v1 }
 0x2c1   : > { %vm2209_vm10 = vmand %vm1184_vm4, %vm1697_vm5 }
 0x2c2   : > { %vm8306_vm13 = vmpackc.low %vm2209_vm10, %vm2208_vm7  ;;  %vm1714_vm7 = vcmp.lt.s32.totalorder %v686_v54, %v9028_v7  ;;  %vm1715_vm10 = vcmp.lt.s32.totalorder %v687_v55, %v9028_v7  ;;  %v755_v54 = vadd.s32 3848, %v9016_v1 }
 0x2c3   : > { %8307 = vmatpush3.bf16.msk.msra.mxu0 %vm8306_vm13, %v13659_v13  ;;  %vm2256_vm14 = vmand %vm1231_vm8, %vm1744_vm9  ;;  %vm1202_vm9 = vcmp.ge.s32.totalorder %v687_v55, %v9023_v5  ;;  %vm1185_vm13 = vcmp.ge.s32.totalorder %v670_v58, %v9023_v5  ;;  %v740_v55 = vadd.s32 3728, %v9016_v1 }
 0x2c4   : > { %vm2257_vm1 = vmand %vm1232_vm11, %vm1745_vm12 }
 0x2c5   : > { %vm8336_vm4 = vmpackc.low %vm2257_vm1, %vm2256_vm14  ;;  %vm1186_vm14 = vcmp.ge.s32.totalorder %v671_v59, %v9023_v5  ;;  %vm1699_vm1 = vcmp.lt.s32.totalorder %v671_v59, %v9028_v7  ;;  %v772_v59 = vadd.s32 3984, %v9016_v1 }
 0x2c6   : > { %8337 = vmatprep.subr.msk.bf16.mxu1 %vm8336_vm4, %v13659_v13  ;;  %vm10602_vm5 = vmand %vm1215_vm15, %vm1728_vm0  ;;  %vm1698_vm15 = vcmp.lt.s32.totalorder %v670_v58, %v9028_v7  ;;  %vm1233_vm4 = vcmp.ge.s32.totalorder %v718_v9, %v9023_v5  ;;  %v725_v58 = vadd.s32 3608, %v9016_v1 }
 0x2c7   : > { %vm2241_vm8 = vmand %vm1216_vm2, %vm1729_vm3 }
 0x2c8   : > { %vm8338_vm11 = vmpackc.low %vm2241_vm8, %vm10602_vm5  ;;  %vm1746_vm5 = vcmp.lt.s32.totalorder %v718_v9, %v9028_v7  ;;  %vm1747_vm8 = vcmp.lt.s32.totalorder %v719_v17, %v9028_v7 }
 0x2c9   : > { %8339 = vmatpush3.bf16.msk.msra.mxu1 %vm8338_vm11, %v13659_v13  ;;  %vm2226_vm12 = vmand %vm1201_vm6, %vm1714_vm7  ;;  %vm1234_vm7 = vcmp.ge.s32.totalorder %v719_v17, %v9023_v5  ;;  %vm1217_vm11 = vcmp.ge.s32.totalorder %v702_v25, %v9023_v5 }
 0x2ca   : > { %vm2227_vm0 = vmand %vm1202_vm9, %vm1715_vm10 }
 0x2cb   : > { %vm8308_vm2 = vmpackc.low %vm2227_vm0, %vm2226_vm12  ;;  %vm1730_vm12 = vcmp.lt.s32.totalorder %v702_v25, %v9028_v7  ;;  %v728_v25 = vadd.s32 3632, %v9016_v1 }
 0x2cc   : > { %8309 = vmatprep.subr.msk.bf16.mxu0 %vm8308_vm2, %v13659_v13  ;;  %vm2210_vm3 = vmand %vm1185_vm13, %vm1698_vm15  ;;  %vm1731_vm15 = vcmp.lt.s32.totalorder %v703_v26, %v9028_v7  ;;  %vm1203_vm2 = vcmp.ge.s32.totalorder %v688_v30, %v9023_v5 }
 0x2cd   : > { %vm2211_vm6 = vmand %vm1186_vm14, %vm1699_vm1  ;;  %vm1218_vm14 = vcmp.ge.s32.totalorder %v703_v26, %v9023_v5  ;;  %v729_v26 = vadd.s32 3640, %v9016_v1 }
 0x2ce   : > { %vm8310_vm9 = vmpackc.low %vm2211_vm6, %vm2210_vm3  ;;  %vm1716_vm3 = vcmp.lt.s32.totalorder %v688_v30, %v9028_v7  ;;  %vm1717_vm6 = vcmp.lt.s32.totalorder %v689_v32, %v9028_v7  ;;  %v777_v30 = vadd.s32 4024, %v9016_v1 }
 0x2cf   : > { %8311 = vmatpush3.bf16.msk.msra.mxu0 %vm8310_vm9, %v13659_v13  ;;  %vm2258_vm10 = vmand %vm1233_vm4, %vm1746_vm5  ;;  %vm1204_vm5 = vcmp.ge.s32.totalorder %v689_v32, %v9023_v5  ;;  %vm1187_vm9 = vcmp.ge.s32.totalorder %v672_v34, %v9023_v5  ;;  %v761_v32 = vadd.s32 3896, %v9016_v1 }
 0x2d0   : > { %vm2259_vm13 = vmand %vm1234_vm7, %vm1747_vm8 }
 0x2d1   : > { %vm8340_vm0 = vmpackc.low %vm2259_vm13, %vm2258_vm10  ;;  %vm1700_vm10 = vcmp.lt.s32.totalorder %v672_v34, %v9028_v7  ;;  %vm1701_vm13 = vcmp.lt.s32.totalorder %v673_v37, %v9028_v7  ;;  %v747_v34 = vadd.s32 3784, %v9016_v1 }
 0x2d2   : > { %8341 = vmatprep.subr.msk.bf16.mxu1 %vm8340_vm0, %v13659_v13  ;;  %vm2242_vm1 = vmand %vm1217_vm11, %vm1730_vm12  ;;  %vm1188_vm12 = vcmp.ge.s32.totalorder %v673_v37, %v9023_v5  ;;  %vm1235_vm0 = vcmp.ge.s32.totalorder %v720_v39, %v9023_v5  ;;  %v730_v37 = vadd.s32 3648, %v9016_v1 }
 0x2d3   : > { %vm2243_vm4 = vmand %vm1218_vm14, %vm1731_vm15 }
 0x2d4   : > { %vm8342_vm7 = vmpackc.low %vm2243_vm4, %vm2242_vm1  ;;  %vm1748_vm1 = vcmp.lt.s32.totalorder %v720_v39, %v9028_v7  ;;  %vm1749_vm4 = vcmp.lt.s32.totalorder %v721_v40, %v9028_v7  ;;  %v778_v39 = vadd.s32 4032, %v9016_v1 }
 0x2d5   : > { %8343 = vmatpush3.bf16.msk.msra.mxu1 %vm8342_vm7, %v13659_v13  ;;  %vm2228_vm8 = vmand %vm1203_vm2, %vm1716_vm3  ;;  %vm1236_vm3 = vcmp.ge.s32.totalorder %v721_v40, %v9023_v5  ;;  %vm1219_vm7 = vcmp.ge.s32.totalorder %v704_v41, %v9023_v5  ;;  %v779_v40 = vadd.s32 4040, %v9016_v1 }
 0x2d6   : > { %vm2229_vm11 = vmand %vm1204_vm5, %vm1717_vm6 }
 0x2d7   : > { %vm8312_vm14 = vmpackc.low %vm2229_vm11, %vm2228_vm8  ;;  %vm1732_vm8 = vcmp.lt.s32.totalorder %v704_v41, %v9028_v7  ;;  %vm1733_vm11 = vcmp.lt.s32.totalorder %v705_v42, %v9028_v7  ;;  %v762_v41 = vadd.s32 3904, %v9016_v1 }
 0x2d8   : > { %8313 = vmatprep.subr.msk.bf16.mxu0 %vm8312_vm14, %v13659_v13  ;;  %vm2212_vm15 = vmand %vm1187_vm9, %vm1700_vm10  ;;  %vm1220_vm10 = vcmp.ge.s32.totalorder %v705_v42, %v9023_v5  ;;  %vm1253_vm14 = vcmp.ge.s32.totalorder %v738_v43, %v9023_v5  ;;  %v763_v42 = vadd.s32 3912, %v9016_v1 }
 0x2d9   : > { %vm2213_vm2 = vmand %vm1188_vm12, %vm1701_vm13 }
 0x2da   : > { %vm8314_vm5 = vmpackc.low %vm2213_vm2, %vm2212_vm15  ;;  %vm1766_vm15 = vcmp.lt.s32.totalorder %v738_v43, %v9028_v7  ;;  %vm1767_vm2 = vcmp.lt.s32.totalorder %v739_v45, %v9028_v7  ;;  %v748_v43 = vadd.s32 3792, %v9016_v1 }
 0x2db   : > { %8315 = vmatpush3.bf16.msk.msra.mxu0 %vm8314_vm5, %v13659_v13  ;;  %vm2260_vm6 = vmand %vm1235_vm0, %vm1748_vm1  ;;  %vm1254_vm1 = vcmp.ge.s32.totalorder %v739_v45, %v9023_v5  ;;  %vm1237_vm5 = vcmp.ge.s32.totalorder %v722_v47, %v9023_v5  ;;  %v732_v45 = vadd.s32 3664, %v9016_v1 }
 0x2dc   : > { %vm2261_vm9 = vmand %vm1236_vm3, %vm1749_vm4 }
 0x2dd   : > { %vm8344_vm12 = vmpackc.low %vm2261_vm9, %vm2260_vm6  ;;  %vm1750_vm6 = vcmp.lt.s32.totalorder %v722_v47, %v9028_v7  ;;  %vm1751_vm9 = vcmp.lt.s32.totalorder %v723_v48, %v9028_v7  ;;  %v780_v47 = vadd.s32 4048, %v9016_v1 }
 0x2de   : > { %8345 = vmatprep.subr.msk.bf16.mxu1 %vm8344_vm12, %v13659_v13  ;;  %vm2244_vm13 = vmand %vm1219_vm7, %vm1732_vm8  ;;  %3743 = vmatmul.mubr.f32.vlgmr.msra.gmra.mrb[12].mxu0 %v265_v44  ;;  %vm1238_vm8 = vcmp.ge.s32.totalorder %v723_v48, %v9023_v5  ;;  %vm1285_vm12 = vcmp.ge.s32.totalorder %v770_v49, %v9023_v5  ;;  %v749_v44 = vadd.s32 3800, %v9016_v1  ;;  %v781_v48 = vadd.s32 4056, %v9016_v1 }
 0x2df   : > { %vm2245_vm0 = vmand %vm1220_vm10, %vm1733_vm11  ;;  %3882 = vmatprep.mubr.f32.mxu0 %v270_v46  ;;  %v733_v46 = vadd.s32 3672, %v9016_v1 }
 0x2e0   : > { %vm8346_vm3 = vmpackc.low %vm2245_vm0, %vm2244_vm13  ;;  %vm1798_vm13 = vcmp.lt.s32.totalorder %v770_v49, %v9028_v7  ;;  %vm1799_vm0 = vcmp.lt.s32.totalorder %v771_v50, %v9028_v7  ;;  %v764_v49 = vadd.s32 3920, %v9016_v1 }
 0x2e1   : > { %8347 = vmatpush3.bf16.msk.msra.mxu1 %vm8346_vm3, %v13659_v13  ;;  %vm2278_vm4 = vmand %vm1253_vm14, %vm1766_vm15  ;;  %vm1286_vm15 = vcmp.ge.s32.totalorder %v771_v50, %v9023_v5  ;;  %vm1269_vm3 = vcmp.ge.s32.totalorder %v754_v53, %v9023_v5  ;;  %v765_v50 = vadd.s32 3928, %v9016_v1 }
 0x2e2   : > { %vm2279_vm7 = vmand %vm1254_vm1, %vm1767_vm2 }
 0x2e3   : > { %vm8348_vm10 = vmpackc.low %vm2279_vm7, %vm2278_vm4  ;;  %vm1782_vm4 = vcmp.lt.s32.totalorder %v754_v53, %v9028_v7  ;;  %vm1783_vm7 = vcmp.lt.s32.totalorder %v755_v54, %v9028_v7  ;;  %v734_v53 = vadd.s32 3680, %v9016_v1 }
 0x2e4   : > { %8349 = vmatprep.subr.msk.bf16.mxu0 %vm8348_vm10, %v13659_v13  ;;  %vm2262_vm11 = vmand %vm1237_vm5, %vm1750_vm6  ;;  %3813 = vmatmul.mubr.f32.vlgmr.msra.gmra.mrb[12].mxu1 %v267_v51  ;;  %vm1270_vm6 = vcmp.ge.s32.totalorder %v755_v54, %v9023_v5  ;;  %vm1255_vm10 = vcmp.ge.s32.totalorder %v740_v55, %v9023_v5  ;;  %v750_v51 = vadd.s32 3808, %v9016_v1  ;;  %v735_v54 = vadd.s32 3688, %v9016_v1 }
 0x2e5   : > { %vm2263_vm14 = vmand %vm1238_vm8, %vm1751_vm9  ;;  %3952 = vmatprep.mubr.f32.mxu1 %v272_v52  ;;  %v751_v52 = vadd.s32 3816, %v9016_v1 }
 0x2e6   : > { %vm8350_vm1 = vmpackc.low %vm2263_vm14, %vm2262_vm11  ;;  %vm1768_vm11 = vcmp.lt.s32.totalorder %v740_v55, %v9028_v7  ;;  %vm1769_vm14 = vcmp.lt.s32.totalorder %v741_v56, %v9028_v7  ;;  %v782_v55 = vadd.s32 4064, %v9016_v1 }
 0x2e7   : > { %8351 = vmatpush3.bf16.msk.msra.mxu0 %vm8350_vm1, %v13659_v13  ;;  %vm2310_vm2 = vmand %vm1285_vm12, %vm1798_vm13  ;;  %vm1256_vm13 = vcmp.ge.s32.totalorder %v741_v56, %v9023_v5  ;;  %vm1239_vm1 = vcmp.ge.s32.totalorder %v724_v57, %v9023_v5  ;;  %v783_v56 = vadd.s32 4072, %v9016_v1 }
 0x2e8   : > { %vm2311_vm5 = vmand %vm1286_vm15, %vm1799_vm0 }
 0x2e9   : > { %vm8380_vm8 = vmpackc.low %vm2311_vm5, %vm2310_vm2  ;;  %vm1752_vm2 = vcmp.lt.s32.totalorder %v724_v57, %v9028_v7  ;;  %vm1753_vm5 = vcmp.lt.s32.totalorder %v725_v58, %v9028_v7  ;;  %v766_v57 = vadd.s32 3936, %v9016_v1 }
 0x2ea   : > { %8381 = vmatprep.subr.msk.bf16.mxu1 %vm8380_vm8, %v13659_v13  ;;  %vm2294_vm9 = vmand %vm1269_vm3, %vm1782_vm4  ;;  %vm1240_vm4 = vcmp.ge.s32.totalorder %v725_v58, %v9023_v5  ;;  %vm1287_vm8 = vcmp.ge.s32.totalorder %v772_v59, %v9023_v5  ;;  %v767_v58 = vadd.s32 3944, %v9016_v1 }
 0x2eb   : > { %vm2295_vm12 = vmand %vm1270_vm6, %vm1783_vm7 }
 0x2ec   : > { %vm8382_vm15 = vmpackc.low %vm2295_vm12, %vm2294_vm9  ;;  %vm1800_vm9 = vcmp.lt.s32.totalorder %v772_v59, %v9028_v7  ;;  %vm1801_vm12 = vcmp.lt.s32.totalorder %v773_v60, %v9028_v7  ;;  %v752_v59 = vadd.s32 3824, %v9016_v1 }
 0x2ed   : > { %8383 = vmatpush3.bf16.msk.msra.mxu1 %vm8382_vm15, %v13659_v13  ;;  %vm2280_vm0 = vmand %vm1255_vm10, %vm1768_vm11  ;;  %vm1288_vm11 = vcmp.ge.s32.totalorder %v773_v60, %v9023_v5  ;;  %vm1271_vm15 = vcmp.ge.s32.totalorder %v756_v61, %v9023_v5  ;;  %v753_v60 = vadd.s32 3832, %v9016_v1 }
 0x2ee   : > { %vm2281_vm3 = vmand %vm1256_vm13, %vm1769_vm14 }
 0x2ef   : > { %vm8352_vm6 = vmpackc.low %vm2281_vm3, %vm2280_vm0  ;;  %vm1784_vm0 = vcmp.lt.s32.totalorder %v756_v61, %v9028_v7  ;;  %vm1785_vm3 = vcmp.lt.s32.totalorder %v757_v62, %v9028_v7  ;;  %v736_v61 = vadd.s32 3696, %v9016_v1 }
 0x2f0   : > { %8353 = vmatprep.subr.msk.bf16.mxu0 %vm8352_vm6, %v13659_v13  ;;  %vm2264_vm7 = vmand %vm1239_vm1, %vm1752_vm2  ;;  %vm1272_vm2 = vcmp.ge.s32.totalorder %v757_v62, %v9023_v5  ;;  %vm1257_vm6 = vcmp.ge.s32.totalorder %v742_v0, %v9023_v5  ;;  %v737_v62 = vadd.s32 3704, %v9016_v1 }
 0x2f1   : > { %vm2265_vm10 = vmand %vm1240_vm4, %vm1753_vm5  ;;  %v7617_v63 = vpop.f32.mrb[8].mxu0 }
 0x2f2   : > { %vm8354_vm13 = vmpackc.low %vm2265_vm10, %vm2264_vm7  ;;  %v7618_v3 = vpop.f32.mrb[9].mxu0  ;;  %vm1770_vm7 = vcmp.lt.s32.totalorder %v742_v0, %v9028_v7  ;;  %vm1771_vm10 = vcmp.lt.s32.totalorder %v743_v4, %v9028_v7  ;;  %v785_v0 = vadd.s32 4088, %v9016_v1 }
 0x2f3   : > { %8355 = vmatpush3.bf16.msk.msra.mxu0 %vm8354_vm13, %v13659_v13  ;;  %vm2312_vm14 = vmand %vm1287_vm8, %vm1800_vm9  ;;  %v7619_v6 = vadd.f32 %v7618_v3, %v7617_v63  ;;  %vm1258_vm9 = vcmp.ge.s32.totalorder %v743_v4, %v9023_v5  ;;  %vm1241_vm13 = vcmp.ge.s32.totalorder %v726_v8, %v9023_v5  ;;  %v784_v63 = vadd.s32 4080, %v9016_v1 }
 0x2f4   : > { %vm2313_vm1 = vmand %vm1288_vm11, %vm1801_vm12  ;;  %v768_v3 = vadd.s32 3952, %v9016_v1  ;;  %v769_v4 = vadd.s32 3960, %v9016_v1 }
 0x2f5   : > { %vm8384_vm4 = vmpackc.low %vm2313_vm1, %vm2312_vm14  ;;  %v3465_v9 = vadd.f32 %v7619_v6, %v10653_v38  ;;  %vm1754_vm14 = vcmp.lt.s32.totalorder %v726_v8, %v9028_v7  ;;  %vm1755_vm1 = vcmp.lt.s32.totalorder %v727_v10, %v9028_v7  ;;  %v731_v38 = vadd.s32 3656, %v9016_v1  ;;  %v269_v6 = vld [vmem:[%s9010_s15 + $0xe0] sm:$0xff] }
 0x2f6   : > { %8385 = vmatprep.subr.msk.bf16.mxu1 %vm8384_vm4, %v13659_v13  ;;  %vm2296_vm5 = vmand %vm1271_vm15, %vm1784_vm0  ;;  %vm1242_vm0 = vcmp.ge.s32.totalorder %v727_v10, %v9023_v5  ;;  %vm1289_vm4 = vcmp.ge.s32.totalorder %v774_v14, %v9023_v5  ;;  %v3958_v8 = vld [vmem:[%s13617_s1] sm:$0xff]  ;;  %v8866_v10 = vmov 0.0|0.0  }
 0x2f7   : > { %vm2297_vm8 = vmand %vm1272_vm2, %vm1785_vm3  ;;  %v7652_v12 = vpop.f32.mrb[8].mxu1 }
 0x2f8   : > { %vm8386_vm11 = vmpackc.low %vm2297_vm8, %vm2296_vm5  ;;  %v7653_v15 = vpop.f32.mrb[9].mxu1  ;;  %vm1802_vm5 = vcmp.lt.s32.totalorder %v774_v14, %v9028_v7  ;;  %vm1803_vm8 = vcmp.lt.s32.totalorder %v775_v16, %v9028_v7  ;;  %v3960_v14 = vld [vmem:[%s13617_s1 + $0x10] sm:$0xff] }
 0x2f9   : > { %8387 = vmatpush3.bf16.msk.msra.mxu1 %vm8386_vm11, %v13659_v13  ;;  %vm2282_vm12 = vmand %vm1257_vm6, %vm1770_vm7  ;;  %v7654_v17 = vadd.f32 %v7653_v15, %v7652_v12  ;;  %vm1290_vm7 = vcmp.ge.s32.totalorder %v775_v16, %v9023_v5  ;;  %vm1273_vm11 = vcmp.ge.s32.totalorder %v758_v18, %v9023_v5  ;;  %v3961_v15 = vld [vmem:[%s13617_s1 + $0x18] sm:$0xff] }
 0x2fa   : > { %vm2283_vm15 = vmand %vm1258_vm9, %vm1771_vm10 }
 0x2fb   : > { %vm8356_vm2 = vmpackc.low %vm2283_vm15, %vm2282_vm12  ;;  %v10754_v21 = vadd.f32 %v7654_v17, %v3465_v9  ;;  %vm1786_vm12 = vcmp.lt.s32.totalorder %v758_v18, %v9028_v7  ;;  %vm1787_vm15 = vcmp.lt.s32.totalorder %v759_v22, %v9028_v7  ;;  %v3959_v9 = vld [vmem:[%s13617_s1 + $0x8] sm:$0xff] }
 0x2fc   : > { %8357 = vmatprep.subr.msk.bf16.mxu0 %vm8356_vm2, %v13659_v13  ;;  %vm2266_vm3 = vmand %vm1241_vm13, %vm1754_vm14  ;;  %vm1274_vm14 = vcmp.ge.s32.totalorder %v759_v22, %v9023_v5  ;;  %vm1259_vm2 = vcmp.ge.s32.totalorder %v744_v23, %v9023_v5  ;;  %v8413_v12 = vpack.c.bf16 %v3959_v9, %v3958_v8  ;;  %v11078_v8 = vmul.u32 64, %v9141_v35 }
 0x2fd   : > { %vm2267_vm6 = vmand %vm1242_vm0, %vm1755_vm1  ;;  %v11085_v9 = vmul.u32 64, %v9147_v36 }
 0x2fe   : > { %vm8358_vm9 = vmpackc.low %vm2267_vm6, %vm2266_vm3  ;;  %vm1772_vm3 = vcmp.lt.s32.totalorder %v744_v23, %v9028_v7  ;;  %vm1773_vm6 = vcmp.lt.s32.totalorder %v745_v24, %v9028_v7  ;;  %v11097_v35 = vadd.s32 64, %v11078_v8 }
 0x2ff   : > { %8359 = vmatpush3.bf16.msk.msra.mxu0 %vm8358_vm9, %v13659_v13  ;;  %vm2314_vm10 = vmand %vm1289_vm4, %vm1802_vm5  ;;  %vm1260_vm5 = vcmp.ge.s32.totalorder %v745_v24, %v9023_v5  ;;  %vm1243_vm9 = vcmp.ge.s32.totalorder %v728_v25, %v9023_v5  ;;  %v11105_v36 = vadd.s32 64, %v11085_v9 }
 0x300   : > { %vm2315_vm13 = vmand %vm1290_vm7, %vm1803_vm8 }
 0x301   : > { %vm8388_vm0 = vmpackc.low %vm2315_vm13, %vm2314_vm10  ;;  %vm1756_vm10 = vcmp.lt.s32.totalorder %v728_v25, %v9028_v7  ;;  %vm1757_vm13 = vcmp.lt.s32.totalorder %v729_v26, %v9028_v7 }
 0x302   : > { %8389 = vmatprep.subr.msk.bf16.mxu1 %vm8388_vm0, %v13659_v13  ;;  %vm2298_vm1 = vmand %vm1273_vm11, %vm1786_vm12  ;;  %vm1244_vm12 = vcmp.ge.s32.totalorder %v729_v26, %v9023_v5  ;;  %vm1291_vm0 = vcmp.ge.s32.totalorder %v776_v29, %v9023_v5 }
 0x303   : > { %vm2299_vm4 = vmand %vm1274_vm14, %vm1787_vm15 }
 0x304   : > { %vm8390_vm7 = vmpackc.low %vm2299_vm4, %vm2298_vm1  ;;  %vm1804_vm1 = vcmp.lt.s32.totalorder %v776_v29, %v9028_v7  ;;  %vm1805_vm4 = vcmp.lt.s32.totalorder %v777_v30, %v9028_v7  ;;  %v3962_v29 = vld [vmem:[%s13617_s1 + $0x20] sm:$0xff] }
 0x305   : > { %8391 = vmatpush3.bf16.msk.msra.mxu1 %vm8390_vm7, %v13659_v13  ;;  %vm2284_vm8 = vmand %vm1259_vm2, %vm1772_vm3  ;;  %vm1292_vm3 = vcmp.ge.s32.totalorder %v777_v30, %v9023_v5  ;;  %vm1275_vm7 = vcmp.ge.s32.totalorder %v760_v31, %v9023_v5  ;;  %v3963_v30 = vld [vmem:[%s13617_s1 + $0x28] sm:$0xff] }
 0x306   : > { %vm2285_vm11 = vmand %vm1260_vm5, %vm1773_vm6 }
 0x307   : > { %vm8360_vm14 = vmpackc.low %vm2285_vm11, %vm2284_vm8  ;;  %vm1788_vm8 = vcmp.lt.s32.totalorder %v760_v31, %v9028_v7  ;;  %vm1789_vm11 = vcmp.lt.s32.totalorder %v761_v32, %v9028_v7  ;;  %v8419_v31 = vpack.c.bf16 %v3963_v30, %v3962_v29  ;;  %v13755_v29 = vmov 0 }
 0x308   : > { %8361 = vmatprep.subr.msk.bf16.mxu0 %vm8360_vm14, %v13659_v13  ;;  %vm2268_vm15 = vmand %vm1243_vm9, %vm1756_vm10  ;;  %vm1276_vm10 = vcmp.ge.s32.totalorder %v761_v32, %v9023_v5  ;;  %vm1261_vm14 = vcmp.ge.s32.totalorder %v746_v33, %v9023_v5  ;;  %v3964_v32 = vld [vmem:[%s13617_s1 + $0x30] sm:$0xff]  ;;  %v13759_v30 = vmov 0 }
 0x309   : > { %vm2269_vm2 = vmand %vm1244_vm12, %vm1757_vm13 }
 0x30a   : > { %vm8362_vm5 = vmpackc.low %vm2269_vm2, %vm2268_vm15  ;;  %vm1774_vm15 = vcmp.lt.s32.totalorder %v746_v33, %v9028_v7  ;;  %vm1775_vm2 = vcmp.lt.s32.totalorder %v747_v34, %v9028_v7 }
 0x30b   : > { %8363 = vmatpush3.bf16.msk.msra.mxu0 %vm8362_vm5, %v13659_v13  ;;  %vm2316_vm6 = vmand %vm1291_vm0, %vm1804_vm1  ;;  %vm1262_vm1 = vcmp.ge.s32.totalorder %v747_v34, %v9023_v5  ;;  %vm1245_vm5 = vcmp.ge.s32.totalorder %v730_v37, %v9023_v5  ;;  %v13657_v34 = vmov 0.0  }
 0x30c   : > { %vm2317_vm9 = vmand %vm1292_vm3, %vm1805_vm4 }
 0x30d   : > { %vm8392_vm12 = vmpackc.low %vm2317_vm9, %vm2316_vm6  ;;  %vm1758_vm6 = vcmp.lt.s32.totalorder %v730_v37, %v9028_v7  ;;  %vm1759_vm9 = vcmp.lt.s32.totalorder %v731_v38, %v9028_v7 }
 0x30e   : > { %8393 = vmatprep.subr.msk.bf16.mxu1 %vm8392_vm12, %v13659_v13  ;;  %vm2300_vm13 = vmand %vm1275_vm7, %vm1788_vm8  ;;  %vm1246_vm8 = vcmp.ge.s32.totalorder %v731_v38, %v9023_v5  ;;  %vm1293_vm12 = vcmp.ge.s32.totalorder %v778_v39, %v9023_v5 }
 0x30f   : > { %vm2301_vm0 = vmand %vm1276_vm10, %vm1789_vm11 }
 0x310   : > { %vm8394_vm3 = vmpackc.low %vm2301_vm0, %vm2300_vm13  ;;  %vm1806_vm13 = vcmp.lt.s32.totalorder %v778_v39, %v9028_v7  ;;  %vm1807_vm0 = vcmp.lt.s32.totalorder %v779_v40, %v9028_v7 }
 0x311   : > { %8395 = vmatpush3.bf16.msk.msra.mxu1 %vm8394_vm3, %v13659_v13  ;;  %vm2286_vm4 = vmand %vm1261_vm14, %vm1774_vm15  ;;  %vm1294_vm15 = vcmp.ge.s32.totalorder %v779_v40, %v9023_v5  ;;  %vm1277_vm3 = vcmp.ge.s32.totalorder %v762_v41, %v9023_v5 }
 0x312   : > { %vm2287_vm7 = vmand %vm1262_vm1, %vm1775_vm2 }
 0x313   : > { %vm8364_vm10 = vmpackc.low %vm2287_vm7, %vm2286_vm4  ;;  %vm1790_vm4 = vcmp.lt.s32.totalorder %v762_v41, %v9028_v7  ;;  %vm1791_vm7 = vcmp.lt.s32.totalorder %v763_v42, %v9028_v7 }
 0x314   : > { %8365 = vmatprep.subr.msk.bf16.mxu0 %vm8364_vm10, %v13659_v13  ;;  %vm2270_vm11 = vmand %vm1245_vm5, %vm1758_vm6  ;;  %vm1278_vm6 = vcmp.ge.s32.totalorder %v763_v42, %v9023_v5  ;;  %vm1263_vm10 = vcmp.ge.s32.totalorder %v748_v43, %v9023_v5 }
 0x315   : > { %vm2271_vm14 = vmand %vm1246_vm8, %vm1759_vm9 }
 0x316   : > { %vm8366_vm1 = vmpackc.low %vm2271_vm14, %vm2270_vm11  ;;  %vm1776_vm11 = vcmp.lt.s32.totalorder %v748_v43, %v9028_v7  ;;  %vm1777_vm14 = vcmp.lt.s32.totalorder %v749_v44, %v9028_v7 }
 0x317   : > { %8367 = vmatpush3.bf16.msk.msra.mxu0 %vm8366_vm1, %v13659_v13  ;;  %vm2318_vm2 = vmand %vm1293_vm12, %vm1806_vm13  ;;  %vm1264_vm13 = vcmp.ge.s32.totalorder %v749_v44, %v9023_v5  ;;  %vm1247_vm1 = vcmp.ge.s32.totalorder %v732_v45, %v9023_v5 }
 0x318   : > { %vm2319_vm5 = vmand %vm1294_vm15, %vm1807_vm0 }
 0x319   : > { %vm8396_vm8 = vmpackc.low %vm2319_vm5, %vm2318_vm2  ;;  %vm1760_vm2 = vcmp.lt.s32.totalorder %v732_v45, %v9028_v7  ;;  %vm1761_vm5 = vcmp.lt.s32.totalorder %v733_v46, %v9028_v7 }
 0x31a   : > { %8397 = vmatprep.subr.msk.bf16.mxu1 %vm8396_vm8, %v13659_v13  ;;  %vm2302_vm9 = vmand %vm1277_vm3, %vm1790_vm4  ;;  %vm1248_vm4 = vcmp.ge.s32.totalorder %v733_v46, %v9023_v5  ;;  %vm1295_vm8 = vcmp.ge.s32.totalorder %v780_v47, %v9023_v5 }
 0x31b   : > { %vm2303_vm12 = vmand %vm1278_vm6, %vm1791_vm7 }
 0x31c   : > { %vm8398_vm15 = vmpackc.low %vm2303_vm12, %vm2302_vm9  ;;  %vm1808_vm9 = vcmp.lt.s32.totalorder %v780_v47, %v9028_v7  ;;  %vm1809_vm12 = vcmp.lt.s32.totalorder %v781_v48, %v9028_v7 }
 0x31d   : > { %8399 = vmatpush3.bf16.msk.msra.mxu1 %vm8398_vm15, %v13659_v13  ;;  %vm2288_vm0 = vmand %vm1263_vm10, %vm1776_vm11  ;;  %vm1296_vm11 = vcmp.ge.s32.totalorder %v781_v48, %v9023_v5  ;;  %vm1279_vm15 = vcmp.ge.s32.totalorder %v764_v49, %v9023_v5 }
 0x31e   : > { %vm2289_vm3 = vmand %vm1264_vm13, %vm1777_vm14 }
 0x31f   : > { %vm8368_vm6 = vmpackc.low %vm2289_vm3, %vm2288_vm0  ;;  %vm1792_vm0 = vcmp.lt.s32.totalorder %v764_v49, %v9028_v7  ;;  %vm1793_vm3 = vcmp.lt.s32.totalorder %v765_v50, %v9028_v7 }
 0x320   : > { %8369 = vmatprep.subr.msk.bf16.mxu0 %vm8368_vm6, %v13659_v13  ;;  %vm2272_vm7 = vmand %vm1247_vm1, %vm1760_vm2  ;;  %vm1280_vm2 = vcmp.ge.s32.totalorder %v765_v50, %v9023_v5  ;;  %vm1265_vm6 = vcmp.ge.s32.totalorder %v750_v51, %v9023_v5 }
 0x321   : > { %vm2273_vm10 = vmand %vm1248_vm4, %vm1761_vm5 }
 0x322   : > { %vm8370_vm13 = vmpackc.low %vm2273_vm10, %vm2272_vm7  ;;  %vm1778_vm7 = vcmp.lt.s32.totalorder %v750_v51, %v9028_v7  ;;  %vm1779_vm10 = vcmp.lt.s32.totalorder %v751_v52, %v9028_v7 }
 0x323   : > { %8371 = vmatpush3.bf16.msk.msra.mxu0 %vm8370_vm13, %v13659_v13  ;;  %vm2320_vm14 = vmand %vm1295_vm8, %vm1808_vm9  ;;  %vm1266_vm9 = vcmp.ge.s32.totalorder %v751_v52, %v9023_v5  ;;  %vm1249_vm13 = vcmp.ge.s32.totalorder %v734_v53, %v9023_v5 }
 0x324   : > { %vm2321_vm1 = vmand %vm1296_vm11, %vm1809_vm12 }
 0x325   : > { %vm8400_vm4 = vmpackc.low %vm2321_vm1, %vm2320_vm14  ;;  %vm1762_vm14 = vcmp.lt.s32.totalorder %v734_v53, %v9028_v7  ;;  %vm1763_vm1 = vcmp.lt.s32.totalorder %v735_v54, %v9028_v7  ;;  %v4048_v53 = vld [vmem:[%s13619_s3] sm:$0xf] }
 0x326   : > { %8401 = vmatprep.subr.msk.bf16.mxu1 %vm8400_vm4, %v13659_v13  ;;  %vm2304_vm5 = vmand %vm1279_vm15, %vm1792_vm0  ;;  %vm1250_vm0 = vcmp.ge.s32.totalorder %v735_v54, %v9023_v5  ;;  %vm1297_vm4 = vcmp.ge.s32.totalorder %v782_v55, %v9023_v5  ;;  %v7020_v54 = vld [vmem:[%s13618_s2] ss:$0 sm:$0xff] }
 0x327   : > { %vm2305_vm8 = vmand %vm1280_vm2, %vm1793_vm3 }
 0x328   : > { %vm8402_vm11 = vmpackc.low %vm2305_vm8, %vm2304_vm5  ;;  %vm1810_vm5 = vcmp.lt.s32.totalorder %v782_v55, %v9028_v7  ;;  %vm1811_vm8 = vcmp.lt.s32.totalorder %v783_v56, %v9028_v7 }
 0x329   : > { %8403 = vmatpush3.bf16.msk.msra.mxu1 %vm8402_vm11, %v13659_v13  ;;  %vm2290_vm12 = vmand %vm1265_vm6, %vm1778_vm7  ;;  %vm1298_vm7 = vcmp.ge.s32.totalorder %v783_v56, %v9023_v5  ;;  %vm1281_vm11 = vcmp.ge.s32.totalorder %v766_v57, %v9023_v5 }
 0x32a   : > { %vm2291_vm15 = vmand %vm1266_vm9, %vm1779_vm10 }
 0x32b   : > { %vm8372_vm2 = vmpackc.low %vm2291_vm15, %vm2290_vm12  ;;  %vm1794_vm12 = vcmp.lt.s32.totalorder %v766_v57, %v9028_v7  ;;  %vm1795_vm15 = vcmp.lt.s32.totalorder %v767_v58, %v9028_v7 }
 0x32c   : > { %8373 = vmatprep.subr.msk.bf16.mxu0 %vm8372_vm2, %v13659_v13  ;;  %vm2274_vm3 = vmand %vm1249_vm13, %vm1762_vm14  ;;  %vm1282_vm14 = vcmp.ge.s32.totalorder %v767_v58, %v9023_v5  ;;  %vm1267_vm2 = vcmp.ge.s32.totalorder %v752_v59, %v9023_v5 }
 0x32d   : > { %vm2275_vm6 = vmand %vm1250_vm0, %vm1763_vm1 }
 0x32e   : > { %vm8374_vm9 = vmpackc.low %vm2275_vm6, %vm2274_vm3  ;;  %vm1780_vm3 = vcmp.lt.s32.totalorder %v752_v59, %v9028_v7  ;;  %vm1781_vm6 = vcmp.lt.s32.totalorder %v753_v60, %v9028_v7  ;;  %v10949_v59 = vmul.u32 64, %v9039_v11  ;;  %v10986_v11 = vmul.u32 64, %v9075_v20 }
 0x32f   : > { %8375 = vmatpush3.bf16.msk.msra.mxu0 %vm8374_vm9, %v13659_v13  ;;  %vm2322_vm10 = vmand %vm1297_vm4, %vm1810_vm5  ;;  %vm1268_vm5 = vcmp.ge.s32.totalorder %v753_v60, %v9023_v5  ;;  %vm1251_vm9 = vcmp.ge.s32.totalorder %v736_v61, %v9023_v5  ;;  %v10952_v60 = vmul.u32 64, %v9016_v1  ;;  %v10979_v1 = vmul.u32 64, %v9069_v19 }
 0x330   : > { %vm2323_vm13 = vmand %vm1298_vm7, %vm1811_vm8  ;;  %13737 = vst [vmem:[#allocation9_spill] sm:$0xff] %v10986_v11  ;;  %v11009_v20 = vadd.s32 64, %v10986_v11 }
 0x331   : > { %vm8404_vm0 = vmpackc.low %vm2323_vm13, %vm2322_vm10  ;;  %vm1764_vm10 = vcmp.lt.s32.totalorder %v736_v61, %v9028_v7  ;;  %vm1765_vm13 = vcmp.lt.s32.totalorder %v737_v62, %v9028_v7  ;;  %v10955_v61 = vadd.s32 128, %v9018_v2  ;;  %13736 = vst [vmem:[#allocation8_spill] sm:$0xff] %v10979_v1  ;;  %v11001_v19 = vadd.s32 64, %v10979_v1 }
 0x332   : > { %8405 = vmatprep.subr.msk.bf16.mxu1 %vm8404_vm0, %v13659_v13  ;;  %vm2306_vm1 = vmand %vm1281_vm11, %vm1794_vm12  ;;  %vm1252_vm12 = vcmp.ge.s32.totalorder %v737_v62, %v9023_v5  ;;  %vm1299_vm0 = vcmp.ge.s32.totalorder %v784_v63, %v9023_v5  ;;  %v10958_v62 = vadd.s32 64, %v10952_v60  ;;  %13739 = vst [vmem:[#allocation11_spill] sm:$0xff] %v11009_v20 }
 0x333   : > { %vm2307_vm4 = vmand %vm1282_vm14, %vm1795_vm15  ;;  %13738 = vst [vmem:[#allocation10_spill] sm:$0xff] %v11001_v19 }
 0x334   : > { %vm8406_vm7 = vmpackc.low %vm2307_vm4, %vm2306_vm1  ;;  %vm1812_vm1 = vcmp.lt.s32.totalorder %v784_v63, %v9028_v7  ;;  %vm1813_vm4 = vcmp.lt.s32.totalorder %v785_v0, %v9028_v7  ;;  %v10961_v63 = vadd.s32 64, %v10949_v59 }
 0x335   : > { %8407 = vmatpush3.bf16.msk.msra.mxu1 %vm8406_vm7, %v13659_v13  ;;  %vm2292_vm8 = vmand %vm1267_vm2, %vm1780_vm3  ;;  %vm1300_vm3 = vcmp.ge.s32.totalorder %v785_v0, %v9023_v5  ;;  %vm1283_vm7 = vcmp.ge.s32.totalorder %v768_v3, %v9023_v5  ;;  %v10964_v0 = vadd.s32 384, %v9018_v2 }
 0x336   : > { %vm2293_vm11 = vmand %vm1268_vm5, %vm1781_vm6 }
 0x337   : > { %vm8376_vm14 = vmpackc.low %vm2293_vm11, %vm2292_vm8  ;;  %vm1796_vm8 = vcmp.lt.s32.totalorder %v768_v3, %v9028_v7  ;;  %vm1797_vm11 = vcmp.lt.s32.totalorder %v769_v4, %v9028_v7  ;;  %v271_v7 = vld [vmem:[%s9010_s15 + $0xf0] sm:$0xff]  ;;  %v10989_v3 = vadd.s32 256, %v9018_v2 }
 0x338   : > { %8377 = vmatprep.subr.msk.bf16.mxu0 %vm8376_vm14, %v13659_v13  ;;  %vm2276_vm15 = vmand %vm1251_vm9, %vm1764_vm10  ;;  %vm1284_vm10 = vcmp.ge.s32.totalorder %v769_v4, %v9023_v5  ;;  %v8416_v5 = vpack.c.bf16 %v3961_v15, %v3960_v14  ;;  %v11030_v4 = vmul.u32 64, %v9105_v27  ;;  %v11174_v14 = vadd.s32 512, %v9018_v2 }
 0x339   : > { %vm2277_vm2 = vmand %vm1252_vm12, %vm1765_vm13  ;;  %v11177_v15 = vadd.s32 768, %v9018_v2 }
 0x33a   : > { %vm8378_vm5 = vmpackc.low %vm2277_vm2, %vm2276_vm15  ;;  %vm4060_vm2 = vcmask 1043456   ;;  %v11049_v27 = vadd.s32 64, %v11030_v4 }
 0x33b   : > { %8379 = vmatpush3.bf16.msk.msra.mxu0 %vm8378_vm5, %v13659_v13  ;;  %vm2324_vm6 = vmand %vm1299_vm0, %vm1812_vm1  ;;  %vm8867_vm0 = vmmov 0   ;;  %vm13623_vm1 = vcmask 523264   ;;  %vm4212_vm5 = vcmp.ge.s32.totalorder %v10955_v61, %v10949_v59 }
 0x33c   : > { %vm2325_vm9 = vmand %vm1300_vm3, %vm1813_vm4  ;;  %8412 = vmatprep.subr.bf16.mxu0 %v8866_v10  ;;  %vm4056_vm3 = vcmask 31744   ;;  %vm4180_vm4 = vcmp.ge.s32.totalorder %v10955_v61, %v10952_v60 }
 0x33d   : > { %vm8408_vm12 = vmpackc.low %vm2325_vm9, %vm2324_vm6  ;;  %vm4444_vm6 = vcmp.lt.s32.totalorder %v10955_v61, %v10958_v62  ;;  %vm4182_vm9 = vcmp.ge.s32.totalorder %v10964_v0, %v10952_v60 }
 0x33e   : > { %8409 = vmatprep.subr.msk.bf16.mxu1 %vm8408_vm12, %v13659_v13  ;;  %vm2308_vm13 = vmand %vm1283_vm7, %vm1796_vm8  ;;  %3883 = vmatmul.mubr.f32.vlgmr.msra.gmra.mrb[14].mxu0 %v269_v6  ;;  %vm4476_vm7 = vcmp.lt.s32.totalorder %v10955_v61, %v10961_v63  ;;  %vm4214_vm12 = vcmp.ge.s32.totalorder %v10964_v0, %v10949_v59  ;;  %v11037_v6 = vmul.u32 64, %v9111_v28 }
 0x33f   : > { %vm2309_vm14 = vmand %vm1284_vm10, %vm1797_vm11  ;;  %8414 = vmatpush3.bf16.msra.mxu0 %v8413_v12  ;;  %7892 = vmatprep.mubr.msk.f32.mxu0 %vm8867_vm0, %v13657_v34  ;;  %vm4446_vm10 = vcmp.lt.s32.totalorder %v10964_v0, %v10958_v62  ;;  %v11151_v12 = vadd.s32 896, %v9018_v2 }
 0x340   : > { %vm8410_vm15 = vmpackc.low %vm2309_vm14, %vm2308_vm13  ;;  %8415 = vmatprep.subr.bf16.mxu0 %v8866_v10  ;;  %vm4478_vm13 = vcmp.lt.s32.totalorder %v10964_v0, %v10961_v63  ;;  %13740 = vst [vmem:[#allocation12_spill] sm:$0xff] %v11037_v6  ;;  %v11057_v28 = vadd.s32 64, %v11037_v6 }
 0x341   : > { %8411 = vmatpush3.bf16.msk.msra.mxu1 %vm8410_vm15, %v13659_v13  ;;  %vm4700_vm8 = vmand %vm4180_vm4, %vm4444_vm6  ;;  %vm4211_vm4 = vcmp.ge.s32.totalorder %v9018_v2, %v10949_v59 }
 0x342   : > { %7895 = vmatprep.subr.mxu1 %v13657_v34  ;;  %vm4732_vm11 = vmand %vm4212_vm5, %vm4476_vm7  ;;  %vm4475_vm5 = vcmp.lt.s32.totalorder %v9018_v2, %v10961_v63  ;;  %13741 = vst [vmem:[#allocation13_spill] sm:$0xff] %v11057_v28 }
 0x343   : > { %8417 = vmatpush3.bf16.msra.mxu0 %v8416_v5  ;;  %vm8424_vm14 = vmpackc.low %vm4732_vm11, %vm4700_vm8  ;;  %vm4181_vm8 = vcmp.ge.s32.totalorder %v10989_v3, %v10952_v60  ;;  %vm4213_vm11 = vcmp.ge.s32.totalorder %v10989_v3, %v10949_v59  ;;  %v7022_v5 = vld [vmem:[%s13620_s4] ss:$0 sm:$0xff] }
 0x344   : > { %3953 = vmatmul.mubr.f32.vlgmr.msra.gmra.mrb[14].mxu1 %v271_v7  ;;  %8418 = vmatprep.subr.bf16.mxu0 %v8866_v10  ;;  %vm4702_vm15 = vmand %vm4182_vm9, %vm4446_vm10  ;;  %vm4445_vm9 = vcmp.lt.s32.totalorder %v10989_v3, %v10958_v62 }
 0x345   : > { %7897 = vmatprep.mubr.msk.f32.mxu1 %vm8867_vm0, %v13657_v34  ;;  %7896 = vmatpush3.msk.msra.mxu1 %vm4060_vm2, %v4048_v53  ;;  %vm4179_vm0 = vcmp.ge.s32.totalorder %v9018_v2, %v10952_v60  ;;  %vm4443_vm2 = vcmp.lt.s32.totalorder %v9018_v2, %v10958_v62  ;;  %vm4731_vm10 = vmand %vm4211_vm4, %vm4475_vm5  ;;  %vm4540_vm4 = vcmp.lt.s32.totalorder %v10955_v61, %v11009_v20  ;;  %v13818_v53 = vmov 0 }
 0x346   : > { %8425 = vmatprep.subr.msk.bf16.mxu1 %vm8424_vm14, %v13659_v13  ;;  %vm4699_vm7 = vmand %vm4179_vm0, %vm4443_vm2  ;;  %vm4508_vm0 = vcmp.lt.s32.totalorder %v10955_v61, %v11001_v19 }
 0x347   : > { %8420 = vmatpush3.bf16.msra.mxu0 %v8419_v31  ;;  %vm4701_vm14 = vmand %vm4181_vm8, %vm4445_vm9  ;;  %vm4510_vm8 = vcmp.lt.s32.totalorder %v10964_v0, %v11001_v19  ;;  %v13763_v31 = vmov 0 }
 0x348   : > { %8421 = vmatprep.subr.bf16.mxu0 %v8866_v10  ;;  %v11139_v10 = vadd.s32 640, %v9018_v2 }
 0x351   : > { %v7687_v16 = vpop.f32.mrb[10].mxu0 }
 0x352   : > { %v7688_v17 = vpop.f32.mrb[11].mxu0 }
 0x353   : > { %v7689_v18 = vadd.f32 %v7688_v17, %v7687_v16 }
 0x355   : > { %v3605_v22 = vadd.f32 %v7689_v18, %v10754_v21  ;;  %v3965_v21 = vld [vmem:[%s13617_s1 + $0x38] sm:$0xff] }
 0x356   : > { %v8422_v33 = vpack.c.bf16 %v3965_v21, %v3964_v32  ;;  %v13767_v32 = vmov 0  ;;  %v13771_v21 = vmov 0 }
 0x357   : > { %v7722_v23 = vpop.f32.mrb[10].mxu1 }
 0x358   : > { %v7723_v24 = vpop.f32.mrb[11].mxu1  ;;  %8423 = vmatpush3.bf16.msra.mxu0 %v8422_v33  ;;  %v13774_v33 = vmov 0 }
 0x359   : > { %v7724_v25 = vadd.f32 %v7723_v24, %v7722_v23  ;;  %v13746_v24 = vmov 0  ;;  %v11994_v23 = vadd.s32 1920, %v9018_v2 }
 0x35b   : > { %v3675_v26 = vadd.f32 %v7724_v25, %v3605_v22  ;;  %v13742_v22 = vmov 0  ;;  %v13964_v25 = vmov 0 }
 0x3b1   : > { %v7757_v37 = vpop.f32.mrb[12].mxu0 }
 0x3b2   : > { %v7758_v38 = vpop.f32.mrb[13].mxu0 }
 0x3b3   : > { %v7759_v39 = vadd.f32 %v7758_v38, %v7757_v37  ;;  %v13778_v37 = vmov 0  ;;  %v11397_v38 = vadd.s32 1152, %v9018_v2 }
 0x3b5   : > { %v3745_v40 = vadd.f32 %v7759_v39, %v3675_v26  ;;  %v13751_v26 = vmov 0  ;;  %v13782_v39 = vmov 0 }
 0x3b7   : > { %v7792_v41 = vpop.f32.mrb[12].mxu1 }
 0x3b8   : > { %v7793_v42 = vpop.f32.mrb[13].mxu1 }
 0x3b9   : > { %v7794_v43 = vadd.f32 %v7793_v42, %v7792_v41  ;;  %v11426_v41 = vadd.s32 1408, %v9018_v2  ;;  %v13790_v42 = vmov 0 }
 0x3bb   : > { %v3815_v44 = vadd.f32 %v7794_v43, %v3745_v40  ;;  %v13786_v40 = vmov 0  ;;  %v11445_v43 = vadd.s32 1024, %v9018_v2 }
 0x411   : > { %v7827_v45 = vpop.f32.mrb[14].mxu0 }
 0x412   : > { %v7828_v46 = vpop.f32.mrb[15].mxu0 }
 0x413   : > { %v7829_v47 = vadd.f32 %v7828_v46, %v7827_v45  ;;  %v13794_v45 = vmov 0  ;;  %v11464_v46 = vadd.s32 1280, %v9018_v2 }
 0x415   : > { %v3885_v48 = vadd.f32 %v7829_v47, %v3815_v44 }
 0x417   : > { %v7862_v49 = vpop.f32.mrb[14].mxu1 }
 0x418   : > { %v7863_v50 = vpop.f32.mrb[15].mxu1 }
 0x419   : > { %v7864_v51 = vadd.f32 %v7863_v50, %v7862_v49  ;;  %v13802_v49 = vmov 0  ;;  %v13806_v50 = vmov 0 }
 0x41b   : > { %v3955_v52 = vadd.f32 %v7864_v51, %v3885_v48  ;;  %v13798_v48 = vmov 0  ;;  %v14068_v51 = vld [vmem:[#allocation8_spill] sm:$0xff] }
 0x41d   : > { %7893 = vmatmul.mubr.msk.f32.vlgmr.msra.gmra.mrb[16].mxu0 %vm13623_vm1, %v3955_v52  ;;  %vm4513_vm1 = vcmp.lt.s32.totalorder %v11177_v15, %v11001_v19  ;;  %v13814_v52 = vmov 0 }
 0x41e   : > { %5349 = vmatprep.mubr.f32.mxu0 %v13657_v34 }
 0x4f0   : > { %v4043_v55 = vpop.f32.mrb[16].mxu0 }
 0x4f1   : > { %v4044_v56 = vadd.f32 %v7020_v54, %v4043_v55  ;;  %v7894_v57 = vpop.f32.mrb[17].mxu0  ;;  %v13822_v54 = vmov 0  ;;  %v13827_v55 = vmov 0 }
 0x4f2   : > { %v13836_v57 = vmov 0 }
 0x4f3   : > { %v4047_v58 = vmax.f32 %v4044_v56, 0.0  ;;  %v13832_v56 = vmov 0 }
 0x4f5   : > { %7898 = vmatmul.mubr.msk.f32.vlgmr.msra.gmra.mrb[16].mxu1 %vm4056_vm3, %v4047_v58  ;;  %vm4734_vm3 = vmand %vm4214_vm12, %vm4478_vm13  ;;  %vm4477_vm12 = vcmp.lt.s32.totalorder %v10989_v3, %v10961_v63  ;;  %v13840_v58 = vmov 0 }
 0x4f6   : > { %5278 = vmatprep.mubr.f32.mxu1 %v13657_v34  ;;  %vm8440_vm6 = vmpackc.low %vm4734_vm3, %vm4702_vm15  ;;  %vm4244_vm15 = vcmp.ge.s32.totalorder %v10955_v61, %v10979_v1  ;;  %vm4276_vm3 = vcmp.ge.s32.totalorder %v10955_v61, %v10986_v11  ;;  %v13909_v34 = vmov 0 }
 0x4f7   : > { %8441 = vmatprep.subr.msk.bf16.mxu0 %vm8440_vm6, %v13659_v13  ;;  %vm8426_vm13 = vmpackc.low %vm4731_vm10, %vm4699_vm7  ;;  %vm4246_vm7 = vcmp.ge.s32.totalorder %v10964_v0, %v10979_v1  ;;  %vm4278_vm10 = vcmp.ge.s32.totalorder %v10964_v0, %v10986_v11 }
 0x4f8   : > { %8427 = vmatpush1.bf16.msk.msra.mxu1 %vm8426_vm13, %v13659_v13  ;;  %vm4733_vm2 = vmand %vm4213_vm11, %vm4477_vm12  ;;  %vm4542_vm11 = vcmp.lt.s32.totalorder %v10964_v0, %v11009_v20 }
 0x4f9   : > { %vm8442_vm5 = vmpackc.low %vm4733_vm2, %vm4701_vm14  ;;  %vm4243_vm14 = vcmp.ge.s32.totalorder %v9018_v2, %v10979_v1  ;;  %vm4275_vm2 = vcmp.ge.s32.totalorder %v9018_v2, %v10986_v11 }
 0x4fa   : > { %8443 = vmatpush1.bf16.msk.msra.mxu0 %vm8442_vm5, %v13659_v13  ;;  %vm4764_vm6 = vmand %vm4244_vm15, %vm4508_vm0  ;;  %vm4507_vm15 = vcmp.lt.s32.totalorder %v9018_v2, %v11001_v19 }
 0x4fb   : > { %vm4796_vm9 = vmand %vm4276_vm3, %vm4540_vm4  ;;  %vm4539_vm3 = vcmp.lt.s32.totalorder %v9018_v2, %v11009_v20 }
 0x4fc   : > { %vm8428_vm12 = vmpackc.low %vm4796_vm9, %vm4764_vm6  ;;  %vm4245_vm6 = vcmp.ge.s32.totalorder %v10989_v3, %v10979_v1  ;;  %vm4277_vm9 = vcmp.ge.s32.totalorder %v10989_v3, %v10986_v11 }
 0x4fd   : > { %8429 = vmatprep.subr.msk.bf16.mxu1 %vm8428_vm12, %v13659_v13  ;;  %vm4766_vm13 = vmand %vm4246_vm7, %vm4510_vm8  ;;  %vm4509_vm7 = vcmp.lt.s32.totalorder %v10989_v3, %v11001_v19 }
 0x4fe   : > { %vm4798_vm0 = vmand %vm4278_vm10, %vm4542_vm11  ;;  %vm4541_vm10 = vcmp.lt.s32.totalorder %v10989_v3, %v11009_v20 }
 0x4ff   : > { %vm8444_vm4 = vmpackc.low %vm4798_vm0, %vm4766_vm13  ;;  %vm4308_vm13 = vcmp.ge.s32.totalorder %v10955_v61, %v11030_v4  ;;  %vm4340_vm0 = vcmp.ge.s32.totalorder %v10955_v61, %v11037_v6 }
 0x500   : > { %8445 = vmatprep.subr.msk.bf16.mxu0 %vm8444_vm4, %v13659_v13  ;;  %vm4763_vm5 = vmand %vm4243_vm14, %vm4507_vm15  ;;  %vm4572_vm14 = vcmp.lt.s32.totalorder %v10955_v61, %v11049_v27 }
 0x501   : > { %vm4795_vm8 = vmand %vm4275_vm2, %vm4539_vm3  ;;  %vm4604_vm2 = vcmp.lt.s32.totalorder %v10955_v61, %v11057_v28 }
 0x502   : > { %vm8430_vm11 = vmpackc.low %vm4795_vm8, %vm4763_vm5  ;;  %vm4310_vm5 = vcmp.ge.s32.totalorder %v10964_v0, %v11030_v4  ;;  %vm4342_vm8 = vcmp.ge.s32.totalorder %v10964_v0, %v11037_v6 }
 0x503   : > { %8431 = vmatpush1.bf16.msk.msra.mxu1 %vm8430_vm11, %v13659_v13  ;;  %vm4765_vm12 = vmand %vm4245_vm6, %vm4509_vm7  ;;  %vm4574_vm6 = vcmp.lt.s32.totalorder %v10964_v0, %v11049_v27 }
 0x504   : > { %vm4797_vm15 = vmand %vm4277_vm9, %vm4541_vm10  ;;  %vm4606_vm9 = vcmp.lt.s32.totalorder %v10964_v0, %v11057_v28 }
 0x505   : > { %vm8446_vm3 = vmpackc.low %vm4797_vm15, %vm4765_vm12  ;;  %vm4307_vm12 = vcmp.ge.s32.totalorder %v9018_v2, %v11030_v4  ;;  %vm4339_vm15 = vcmp.ge.s32.totalorder %v9018_v2, %v11037_v6 }
 0x506   : > { %8447 = vmatpush1.bf16.msk.msra.mxu0 %vm8446_vm3, %v13659_v13  ;;  %vm4828_vm4 = vmand %vm4308_vm13, %vm4572_vm14  ;;  %vm4571_vm13 = vcmp.lt.s32.totalorder %v9018_v2, %v11049_v27 }
 0x507   : > { %vm4860_vm7 = vmand %vm4340_vm0, %vm4604_vm2  ;;  %vm4603_vm0 = vcmp.lt.s32.totalorder %v9018_v2, %v11057_v28 }
 0x508   : > { %vm8432_vm10 = vmpackc.low %vm4860_vm7, %vm4828_vm4  ;;  %vm4309_vm4 = vcmp.ge.s32.totalorder %v10989_v3, %v11030_v4  ;;  %vm4341_vm7 = vcmp.ge.s32.totalorder %v10989_v3, %v11037_v6 }
 0x509   : > { %8433 = vmatprep.subr.msk.bf16.mxu1 %vm8432_vm10, %v13659_v13  ;;  %vm4830_vm11 = vmand %vm4310_vm5, %vm4574_vm6  ;;  %vm4573_vm5 = vcmp.lt.s32.totalorder %v10989_v3, %v11049_v27 }
 0x50a   : > { %vm4862_vm14 = vmand %vm4342_vm8, %vm4606_vm9  ;;  %vm4605_vm8 = vcmp.lt.s32.totalorder %v10989_v3, %v11057_v28 }
 0x50b   : > { %vm8448_vm2 = vmpackc.low %vm4862_vm14, %vm4830_vm11  ;;  %vm4372_vm11 = vcmp.ge.s32.totalorder %v10955_v61, %v11078_v8  ;;  %vm4404_vm14 = vcmp.ge.s32.totalorder %v10955_v61, %v11085_v9 }
 0x50c   : > { %8449 = vmatprep.subr.msk.bf16.mxu0 %vm8448_vm2, %v13659_v13  ;;  %vm4827_vm3 = vmand %vm4307_vm12, %vm4571_vm13  ;;  %vm4636_vm12 = vcmp.lt.s32.totalorder %v10955_v61, %v11097_v35 }
 0x50d   : > { %vm4859_vm6 = vmand %vm4339_vm15, %vm4603_vm0  ;;  %vm4668_vm15 = vcmp.lt.s32.totalorder %v10955_v61, %v11105_v36  ;;  %v13844_v61 = vmov 0 }
 0x50e   : > { %vm8434_vm9 = vmpackc.low %vm4859_vm6, %vm4827_vm3  ;;  %vm4374_vm3 = vcmp.ge.s32.totalorder %v10964_v0, %v11078_v8  ;;  %vm4406_vm6 = vcmp.ge.s32.totalorder %v10964_v0, %v11085_v9 }
 0x50f   : > { %8435 = vmatpush1.bf16.msk.msra.mxu1 %vm8434_vm9, %v13659_v13  ;;  %vm4829_vm10 = vmand %vm4309_vm4, %vm4573_vm5  ;;  %vm4638_vm4 = vcmp.lt.s32.totalorder %v10964_v0, %v11097_v35 }
 0x510   : > { %vm4861_vm13 = vmand %vm4341_vm7, %vm4605_vm8  ;;  %vm4670_vm7 = vcmp.lt.s32.totalorder %v10964_v0, %v11105_v36  ;;  %v13848_v0 = vmov 0 }
 0x511   : > { %vm8450_vm0 = vmpackc.low %vm4861_vm13, %vm4829_vm10  ;;  %vm4371_vm10 = vcmp.ge.s32.totalorder %v9018_v2, %v11078_v8  ;;  %vm4403_vm13 = vcmp.ge.s32.totalorder %v9018_v2, %v11085_v9 }
 0x512   : > { %8451 = vmatpush1.bf16.msk.msra.mxu0 %vm8450_vm0, %v13659_v13  ;;  %vm4892_vm2 = vmand %vm4372_vm11, %vm4636_vm12  ;;  %vm4635_vm11 = vcmp.lt.s32.totalorder %v9018_v2, %v11097_v35 }
 0x513   : > { %vm4924_vm5 = vmand %vm4404_vm14, %vm4668_vm15  ;;  %vm4667_vm14 = vcmp.lt.s32.totalorder %v9018_v2, %v11105_v36 }
 0x514   : > { %vm8436_vm8 = vmpackc.low %vm4924_vm5, %vm4892_vm2  ;;  %vm4373_vm2 = vcmp.ge.s32.totalorder %v10989_v3, %v11078_v8  ;;  %vm4405_vm5 = vcmp.ge.s32.totalorder %v10989_v3, %v11085_v9 }
 0x515   : > { %8437 = vmatprep.subr.msk.bf16.mxu1 %vm8436_vm8, %v13659_v13  ;;  %vm4894_vm9 = vmand %vm4374_vm3, %vm4638_vm4  ;;  %vm4637_vm3 = vcmp.lt.s32.totalorder %v10989_v3, %v11097_v35 }
 0x516   : > { %vm4926_vm12 = vmand %vm4406_vm6, %vm4670_vm7  ;;  %vm4669_vm6 = vcmp.lt.s32.totalorder %v10989_v3, %v11105_v36  ;;  %v13852_v3 = vmov 0 }
 0x517   : > { %vm8452_vm15 = vmpackc.low %vm4926_vm12, %vm4894_vm9  ;;  %vm4184_vm9 = vcmp.ge.s32.totalorder %v11139_v10, %v10952_v60  ;;  %vm4216_vm12 = vcmp.ge.s32.totalorder %v11139_v10, %v10949_v59 }
 0x518   : > { %8453 = vmatprep.subr.msk.bf16.mxu0 %vm8452_vm15, %v13659_v13  ;;  %vm4891_vm0 = vmand %vm4371_vm10, %vm4635_vm11  ;;  %vm4448_vm10 = vcmp.lt.s32.totalorder %v11139_v10, %v10958_v62 }
 0x519   : > { %vm4923_vm4 = vmand %vm4403_vm13, %vm4667_vm14  ;;  %vm4480_vm13 = vcmp.lt.s32.totalorder %v11139_v10, %v10961_v63 }
 0x51a   : > { %vm8438_vm7 = vmpackc.low %vm4923_vm4, %vm4891_vm0  ;;  %vm4186_vm0 = vcmp.ge.s32.totalorder %v11151_v12, %v10952_v60  ;;  %vm4218_vm4 = vcmp.ge.s32.totalorder %v11151_v12, %v10949_v59 }
 0x51b   : > { %8439 = vmatpush1.bf16.msk.msra.mxu1 %vm8438_vm7, %v13659_v13  ;;  %vm4893_vm8 = vmand %vm4373_vm2, %vm4637_vm3  ;;  %vm4450_vm2 = vcmp.lt.s32.totalorder %v11151_v12, %v10958_v62 }
 0x51c   : > { %vm4925_vm11 = vmand %vm4405_vm5, %vm4669_vm6  ;;  %vm4482_vm5 = vcmp.lt.s32.totalorder %v11151_v12, %v10961_v63 }
 0x51d   : > { %vm8454_vm14 = vmpackc.low %vm4925_vm11, %vm4893_vm8 }
 0x51e   : > { %8455 = vmatpush1.bf16.msk.msra.mxu0 %vm8454_vm14, %v13659_v13  ;;  %vm4704_vm15 = vmand %vm4184_vm9, %vm4448_vm10  ;;  %vm4183_vm9 = vcmp.ge.s32.totalorder %v11174_v14, %v10952_v60  ;;  %vm4215_vm10 = vcmp.ge.s32.totalorder %v11174_v14, %v10949_v59  ;;  %vm4185_vm14 = vcmp.ge.s32.totalorder %v11177_v15, %v10952_v60 }
 0x51f   : > { %vm4736_vm3 = vmand %vm4216_vm12, %vm4480_vm13  ;;  %vm4447_vm12 = vcmp.lt.s32.totalorder %v11174_v14, %v10958_v62  ;;  %vm4479_vm13 = vcmp.lt.s32.totalorder %v11174_v14, %v10961_v63 }
 0x520   : > { %vm8456_vm6 = vmpackc.low %vm4736_vm3, %vm4704_vm15  ;;  %vm4217_vm15 = vcmp.ge.s32.totalorder %v11177_v15, %v10949_v59  ;;  %vm13757_vm3 = vcmp.lt.s32.totalorder %v11151_v12, %v11001_v19 }
 0x521   : > { %8457 = vmatprep.subr.msk.bf16.mxu1 %vm8456_vm6, %v13659_v13  ;;  %vm4706_vm7 = vmand %vm4186_vm0, %vm4450_vm2  ;;  %vm4449_vm0 = vcmp.lt.s32.totalorder %v11177_v15, %v10958_v62  ;;  %vm4481_vm2 = vcmp.lt.s32.totalorder %v11177_v15, %v10961_v63 }
 0x522   : > { %vm4738_vm8 = vmand %vm4218_vm4, %vm4482_vm5  ;;  %vm4512_vm5 = vcmp.lt.s32.totalorder %v11139_v10, %v11001_v19  ;;  %vm13765_vm4 = vcmp.lt.s32.totalorder %v11174_v14, %v11001_v19 }
 0x523   : > { %vm8472_vm11 = vmpackc.low %vm4738_vm8, %vm4706_vm7  ;;  %vm13761_vm7 = vcmp.lt.s32.totalorder %v11151_v12, %v11009_v20  ;;  %vm13770_vm8 = vcmp.ge.s32.totalorder %v11174_v14, %v10986_v11 }
 0x524   : > { %8473 = vmatprep.subr.msk.bf16.mxu0 %vm8472_vm11, %v13659_v13  ;;  %vm11244_vm11 = vmand %vm4183_vm9, %vm4447_vm12  ;;  %vm13753_vm12 = vcmp.lt.s32.totalorder %v11139_v10, %v11009_v20  ;;  %v13914_v13 = vmov 0 }
 0x525   : > { %v13743_v22 = vsel %vm11244_vm11, 4294967295, %v13742_v22  ;;  %vm11254_vm6 = vmand %vm4215_vm10, %vm4479_vm13  ;;  %vm13754_vm13 = vcmp.ge.s32.totalorder %v11139_v10, %v10986_v11 }
 0x526   : > { %vm11264_vm9 = vmand %vm4185_vm14, %vm4449_vm0  ;;  %vm13769_vm0 = vcmp.lt.s32.totalorder %v11174_v14, %v11009_v20 }
 0x527   : > { %v13747_v24 = vsel %vm11264_vm9, 4294967295, %v13746_v24  ;;  %vm11274_vm10 = vmand %vm4217_vm15, %vm4481_vm2  ;;  %vm13750_vm15 = vcmp.ge.s32.totalorder %v11139_v10, %v10979_v1  ;;  %vm13838_vm9 = vcmp.lt.s32.totalorder %v11177_v15, %v11097_v35 }
 0x528   : > { %vm11292_vm2 = vmand %vm13750_vm15, %vm4512_vm5  ;;  %vm13773_vm15 = vcmp.ge.s32.totalorder %v11177_v15, %v10979_v1 }
 0x529   : > { %v13752_v26 = vsel %vm11292_vm2, 4294967295, %v13751_v26  ;;  %vm11302_vm14 = vmand %vm13754_vm13, %vm13753_vm12  ;;  %vm13758_vm12 = vcmp.ge.s32.totalorder %v11151_v12, %v10979_v1 }
 0x52a   : > { %v13756_v29 = vsel %vm11302_vm14, 4294967295, %v13755_v29  ;;  %vm11320_vm13 = vmand %vm13758_vm12, %vm13757_vm3  ;;  %vm13762_vm3 = vcmp.ge.s32.totalorder %v11151_v12, %v10986_v11  ;;  %vm13874_vm14 = vcmp.lt.s32.totalorder %v11445_v43, %v10961_v63 }
 0x52b   : > { %v13760_v30 = vsel %vm11320_vm13, 4294967295, %v13759_v30  ;;  %vm11338_vm12 = vmand %vm13762_vm3, %vm13761_vm7  ;;  %vm13766_vm7 = vcmp.ge.s32.totalorder %v11174_v14, %v10979_v1  ;;  %vm13839_vm13 = vcmp.ge.s32.totalorder %v11177_v15, %v11078_v8 }
 0x52c   : > { %v13764_v31 = vsel %vm11338_vm12, 4294967295, %v13763_v31  ;;  %vm11356_vm3 = vmand %vm13766_vm7, %vm13765_vm4  ;;  %vm13776_vm7 = vcmp.lt.s32.totalorder %v11177_v15, %v11009_v20 }
 0x52d   : > { %v13768_v32 = vsel %vm11356_vm3, 4294967295, %v13767_v32  ;;  %vm11366_vm5 = vmand %vm13770_vm8, %vm13769_vm0  ;;  %vm13777_vm3 = vcmp.ge.s32.totalorder %v11177_v15, %v10986_v11  ;;  %vm13784_vm0 = vcmp.lt.s32.totalorder %v11139_v10, %v11057_v28 }
 0x52e   : > { %v13772_v21 = vsel %vm11366_vm5, 4294967295, %v13771_v21  ;;  %vm11376_vm4 = vmand %vm13773_vm15, %vm4513_vm1  ;;  %vm13780_vm15 = vcmp.lt.s32.totalorder %v11139_v10, %v11049_v27  ;;  %vm13785_vm5 = vcmp.ge.s32.totalorder %v11139_v10, %v11037_v6 }
 0x52f   : > { %v13775_v33 = vsel %vm11376_vm4, 4294967295, %v13774_v33  ;;  %vm11386_vm8 = vmand %vm13777_vm3, %vm13776_vm7  ;;  %vm13781_vm3 = vcmp.ge.s32.totalorder %v11139_v10, %v11030_v4  ;;  %vm13800_vm4 = vcmp.lt.s32.totalorder %v11174_v14, %v11057_v28 }
 0x530   : > { %v13779_v37 = vsel %vm11386_vm8, 4294967295, %v13778_v37  ;;  %vm11405_vm7 = vmand %vm13781_vm3, %vm13780_vm15  ;;  %vm13788_vm3 = vcmp.lt.s32.totalorder %v11151_v12, %v11049_v27  ;;  %vm13801_vm8 = vcmp.ge.s32.totalorder %v11174_v14, %v11037_v6 }
 0x531   : > { %v13783_v39 = vsel %vm11405_vm7, 4294967295, %v13782_v39  ;;  %vm11415_vm1 = vmand %vm13785_vm5, %vm13784_vm0  ;;  %vm13789_vm5 = vcmp.ge.s32.totalorder %v11151_v12, %v11030_v4  ;;  %vm13805_vm7 = vcmp.ge.s32.totalorder %v11177_v15, %v11030_v4 }
 0x532   : > { %v13787_v40 = vsel %vm11415_vm1, 4294967295, %v13786_v40  ;;  %vm11434_vm0 = vmand %vm13789_vm5, %vm13788_vm3  ;;  %vm13792_vm1 = vcmp.lt.s32.totalorder %v11151_v12, %v11057_v28  ;;  %vm13793_vm3 = vcmp.ge.s32.totalorder %v11151_v12, %v11037_v6 }
 0x533   : > { %v13791_v42 = vsel %vm11434_vm0, 4294967295, %v13790_v42  ;;  %vm11453_vm5 = vmand %vm13793_vm3, %vm13792_vm1  ;;  %vm13796_vm0 = vcmp.lt.s32.totalorder %v11174_v14, %v11049_v27  ;;  %vm13797_vm1 = vcmp.ge.s32.totalorder %v11174_v14, %v11030_v4 }
 0x534   : > { %v13795_v45 = vsel %vm11453_vm5, 4294967295, %v13794_v45  ;;  %vm11472_vm3 = vmand %vm13797_vm1, %vm13796_vm0  ;;  %vm13804_vm5 = vcmp.lt.s32.totalorder %v11177_v15, %v11049_v27  ;;  %vm13808_vm1 = vcmp.lt.s32.totalorder %v11177_v15, %v11057_v28 }
 0x535   : > { %v13799_v48 = vsel %vm11472_vm3, 4294967295, %v13798_v48  ;;  %vm11482_vm15 = vmand %vm13801_vm8, %vm13800_vm4  ;;  %vm13809_vm3 = vcmp.ge.s32.totalorder %v11177_v15, %v11037_v6  ;;  %vm13831_vm8 = vcmp.ge.s32.totalorder %v11174_v14, %v11078_v8 }
 0x536   : > { %v13803_v49 = vsel %vm11482_vm15, 4294967295, %v13802_v49  ;;  %vm11492_vm0 = vmand %vm13805_vm7, %vm13804_vm5  ;;  %vm13812_vm5 = vcmp.lt.s32.totalorder %v11139_v10, %v11097_v35  ;;  %vm13826_vm7 = vcmp.ge.s32.totalorder %v11151_v12, %v11085_v9 }
 0x537   : > { %v13807_v50 = vsel %vm11492_vm0, 4294967295, %v13806_v50  ;;  %vm11502_vm4 = vmand %vm13809_vm3, %vm13808_vm1  ;;  %vm13813_vm0 = vcmp.ge.s32.totalorder %v11139_v10, %v11078_v8  ;;  %vm13816_vm3 = vcmp.lt.s32.totalorder %v11139_v10, %v11105_v36  ;;  %vm13817_vm1 = vcmp.ge.s32.totalorder %v11139_v10, %v11085_v9 }
 0x538   : > { %vm11518_vm12 = vmand %vm13813_vm0, %vm13812_vm5  ;;  %vm13830_vm5 = vcmp.lt.s32.totalorder %v11174_v14, %v11097_v35  ;;  %v13856_v10 = vmov 0 }
 0x539   : > { %v13815_v52 = vsel %vm11518_vm12, 4294967295, %v13814_v52  ;;  %vm11528_vm15 = vmand %vm13817_vm1, %vm13816_vm3  ;;  %vm13820_vm12 = vcmp.lt.s32.totalorder %v11151_v12, %v11097_v35  ;;  %vm13821_vm3 = vcmp.ge.s32.totalorder %v11151_v12, %v11078_v8 }
 0x53a   : > { %v13819_v53 = vsel %vm11528_vm15, 4294967295, %v13818_v53  ;;  %vm11546_vm1 = vmand %vm13821_vm3, %vm13820_vm12  ;;  %vm13825_vm3 = vcmp.lt.s32.totalorder %v11151_v12, %v11105_v36  ;;  %vm13834_vm12 = vcmp.lt.s32.totalorder %v11174_v14, %v11105_v36  ;;  %v13864_v12 = vmov 0 }
 0x53b   : > { %v13823_v54 = vsel %vm11546_vm1, 4294967295, %v13822_v54  ;;  %vm11570_vm0 = vmand %vm13826_vm7, %vm13825_vm3  ;;  %vm13835_vm7 = vcmp.ge.s32.totalorder %v11174_v14, %v11085_v9  ;;  %v13872_v14 = vmov 0  ;;  %vm13899_vm3 = vnez %v13803_v49 }
 0x53c   : > { %13824 = vst [vmem:[#allocation14_spill] sm:$0xff] %v13823_v54  ;;  %v13828_v55 = vsel %vm11570_vm0, 4294967295, %v13827_v55  ;;  %vm11596_vm11 = vmand %vm13831_vm8, %vm13830_vm5  ;;  %vm13842_vm5 = vcmp.lt.s32.totalorder %v11177_v15, %v11105_v36  ;;  %vm13917_vm1 = vcmp.ge.s32.totalorder %v11464_v46, %v10979_v1  ;;  %v13918_v54 = vmov 0 }
 0x53d   : > { %v13833_v56 = vsel %vm11596_vm11, 4294967295, %v13832_v56  ;;  %vm11606_vm2 = vmand %vm13835_vm7, %vm13834_vm12  ;;  %vm13843_vm11 = vcmp.ge.s32.totalorder %v11177_v15, %v11085_v9  ;;  %vm13850_vm7 = vcmp.lt.s32.totalorder %v11397_v38, %v10961_v63  ;;  %v13876_v15 = vmov 0 }
 0x53e   : > { %v13837_v57 = vsel %vm11606_vm2, 4294967295, %v13836_v57  ;;  %vm11616_vm8 = vmand %vm13839_vm13, %vm13838_vm9  ;;  %vm13851_vm2 = vcmp.ge.s32.totalorder %v11397_v38, %v10949_v59  ;;  %vm13862_vm13 = vcmp.lt.s32.totalorder %v11426_v41, %v10961_v63  ;;  %vm13967_vm15 = vcmp.ge.s32.totalorder %v11445_v43, %v11037_v6 }
 0x53f   : > { %v13841_v58 = vsel %vm11616_vm8, 4294967295, %v13840_v58  ;;  %vm11626_vm12 = vmand %vm13843_vm11, %vm13842_vm5  ;;  %vm13846_vm8 = vcmp.lt.s32.totalorder %v11397_v38, %v10958_v62  ;;  %vm13847_vm11 = vcmp.ge.s32.totalorder %v11397_v38, %v10952_v60  ;;  %v14064_v49 = vmov 0 }
 0x540   : > { %v13845_v61 = vsel %vm11626_vm12, 4294967295, %v13844_v61  ;;  %vm11644_vm5 = vmand %vm13847_vm11, %vm13846_vm8  ;;  %vm13863_vm12 = vcmp.ge.s32.totalorder %v11426_v41, %v10949_v59  ;;  %vm13870_vm11 = vcmp.lt.s32.totalorder %v11445_v43, %v10958_v62 }
 0x541   : > { %v13849_v0 = vsel %vm11644_vm5, 4294967295, %v13848_v0  ;;  %vm11654_vm9 = vmand %vm13851_vm2, %vm13850_vm7  ;;  %vm13854_vm5 = vcmp.lt.s32.totalorder %v11426_v41, %v10958_v62  ;;  %vm13855_vm2 = vcmp.ge.s32.totalorder %v11426_v41, %v10952_v60 }
 0x542   : > { %v13853_v3 = vsel %vm11654_vm9, 4294967295, %v13852_v3  ;;  %vm11672_vm7 = vmand %vm13855_vm2, %vm13854_vm5  ;;  %vm13871_vm5 = vcmp.ge.s32.totalorder %v11445_v43, %v10952_v60 }
 0x543   : > { %v13857_v10 = vsel %vm11672_vm7, 4294967295, %v13856_v10  ;;  %vm11698_vm8 = vmand %vm13863_vm12, %vm13862_vm13  ;;  %vm13867_vm7 = vnez %v13787_v40  ;;  %vm13875_vm12 = vcmp.ge.s32.totalorder %v11445_v43, %v10949_v59  ;;  %vm13879_vm13 = vcmp.ge.s32.totalorder %v11464_v46, %v10952_v60 }
 0x544   : > { %v13865_v12 = vsel %vm11698_vm8, 4294967295, %v13864_v12  ;;  %vm11724_vm9 = vmand %vm13871_vm5, %vm13870_vm11  ;;  %vm13878_vm8 = vcmp.lt.s32.totalorder %v11464_v46, %v10958_v62  ;;  %vm13882_vm5 = vcmp.lt.s32.totalorder %v11464_v46, %v10961_v63  ;;  %v14026_v40 = vmov 0 }
 0x545   : > { %v13873_v14 = vsel %vm11724_vm9, 4294967295, %v13872_v14  ;;  %vm11734_vm2 = vmand %vm13875_vm12, %vm13874_vm14  ;;  %vm13883_vm9 = vcmp.ge.s32.totalorder %v11464_v46, %v10949_v59  ;;  %vm13890_vm12 = vcmp.lt.s32.totalorder %v11397_v38, %v11009_v20 }
 0x546   : > { %v13877_v15 = vsel %vm11734_vm2, 4294967295, %v13876_v15  ;;  %vm11744_vm11 = vmand %vm13879_vm13, %vm13878_vm8  ;;  %vm13891_vm2 = vcmp.ge.s32.totalorder %v11397_v38, %v10986_v11  ;;  %vm13901_vm13 = vcmp.lt.s32.totalorder %v11426_v41, %v11009_v20 }
 0x547   : > { %vm11754_vm14 = vmand %vm13883_vm9, %vm13882_vm5  ;;  %vm13887_vm9 = vcmp.ge.s32.totalorder %v11397_v38, %v10979_v1 }
 0x548   : > { %vm11782_vm8 = vmand %vm13891_vm2, %vm13890_vm12  ;;  %vm13895_vm2 = vcmp.ge.s32.totalorder %v11426_v41, %v10979_v1 }
 0x5c8   : > { %v4130_v7 = vpop.f32.mrb[16].mxu1 }
 0x5c9   : > { %v4131_v16 = vadd.f32 %v7022_v5, %v4130_v7  ;;  %v7899_v17 = vpop.f32.mrb[17].mxu1  ;;  %v13880_v5 = vmov 0  ;;  %v13884_v7 = vmov 0 }
 0x5ca   : > { %v13881_v5 = vsel %vm11744_vm11, 4294967295, %v13880_v5  ;;  %v13885_v7 = vsel %vm11754_vm14, 4294967295, %v13884_v7  ;;  %vm13886_vm11 = vcmp.lt.s32.totalorder %v11397_v38, %v11001_v19  ;;  %v13892_v17 = vmov 0 }
 0x5cb   : > { %v7025_v18 = vmul.f32 -1.442695, %v4131_v16  ;;  %vm11772_vm5 = vmand %vm13887_vm9, %vm13886_vm11  ;;  %v13888_v16 = vmov 0  ;;  %v13893_v17 = vsel %vm11782_vm8, 4294967295, %v13892_v17  ;;  %vm13902_vm14 = vcmp.ge.s32.totalorder %v11426_v41, %v10986_v11 }
 0x5cc   : > { %v13889_v16 = vsel %vm11772_vm5, 4294967295, %v13888_v16  ;;  %vm13894_vm5 = vcmp.lt.s32.totalorder %v11426_v41, %v11001_v19  ;;  %vm11826_vm11 = vmand %vm13902_vm14, %vm13901_vm13  ;;  %vm13908_vm8 = vcmp.ge.s32.totalorder %v11445_v43, %v10979_v1  ;;  %vm13913_vm14 = vcmp.ge.s32.totalorder %v11445_v43, %v10986_v11 }
 0x5cd   : > { %8730 = vpow2.f32 %v7025_v18  ;;  %vm11800_vm12 = vmand %vm13895_vm2, %vm13894_vm5  ;;  %v13896_v18 = vmov 0  ;;  %vm13907_vm5 = vcmp.lt.s32.totalorder %v11445_v43, %v11001_v19  ;;  %vm13916_vm13 = vcmp.lt.s32.totalorder %v11464_v46, %v11001_v19 }
 0x5ce   : > { %v13897_v18 = vsel %vm11800_vm12, 4294967295, %v13896_v18  ;;  %vm11854_vm9 = vmand %vm13908_vm8, %vm13907_vm5  ;;  %vm13912_vm12 = vcmp.lt.s32.totalorder %v11445_v43, %v11009_v20  ;;  %vm13920_vm5 = vcmp.lt.s32.totalorder %v11464_v46, %v11009_v20  ;;  %v13928_v20 = vmov 0 }
 0x5cf   : > { %v13910_v34 = vsel %vm11854_vm9, 4294967295, %v13909_v34  ;;  %vm11864_vm2 = vmand %vm13913_vm14, %vm13912_vm12  ;;  %vm13921_vm9 = vcmp.ge.s32.totalorder %v11464_v46, %v10986_v11  ;;  %vm13927_vm14 = vcmp.ge.s32.totalorder %v11397_v38, %v11030_v4  ;;  %v13932_v11 = vmov 0 }
 0x5d0   : > { %13911 = vst [vmem:[#allocation16_spill] sm:$0xff] %v13910_v34  ;;  %v13915_v13 = vsel %vm11864_vm2, 4294967295, %v13914_v13  ;;  %vm11874_vm8 = vmand %vm13917_vm1, %vm13916_vm13  ;;  %v13922_v34 = vmov 0  ;;  %vm13930_vm1 = vcmp.lt.s32.totalorder %v11397_v38, %v11057_v28  ;;  %vm13931_vm13 = vcmp.ge.s32.totalorder %v11397_v38, %v11037_v6 }
 0x5d1   : > { %v13919_v54 = vsel %vm11874_vm8, 4294967295, %v13918_v54  ;;  %vm11884_vm12 = vmand %vm13921_vm9, %vm13920_vm5  ;;  %vm13924_vm8 = vcmask 523264   ;;  %vm13926_vm5 = vcmp.lt.s32.totalorder %v11397_v38, %v11049_v27  ;;  %v13934_v19 = vmov 1.0|1.0  }
 0x5d2   : > { %v13923_v34 = vsel %vm11884_vm12, 4294967295, %v13922_v34  ;;  %vm13925_vm9 = vmmov %vm13924_vm8  ;;  %vm13940_vm2 = vcmp.ge.s32.totalorder %v11426_v41, %v11030_v4  ;;  %v13941_v1 = vmov 0 }
 0x5d3   : > { %vm11906_vm12 = vmand %vm13927_vm14, %vm13926_vm5  ;;  %vm13937_vm5 = vnez %v13747_v24  ;;  %vm13939_vm14 = vcmp.lt.s32.totalorder %v11426_v41, %v11049_v27  ;;  %v13957_v24 = vmov 0.0  }
 0x5d4   : > { %v13929_v20 = vsel %vm11906_vm12, 4294967295, %v13928_v20  ;;  %vm13971_vm12 = vcmp.ge.s32.totalorder %v11464_v46, %v11030_v4 }
 0x5d7   : > { %v8731_v44 = vpop.eup %8730 }
 0x5d8   : > { %v4137_v47 = vadd.f32 1.0, %v8731_v44  ;;  %v13903_v44 = vmov 0 }
 0x5d9   : > { %v13904_v44 = vsel %vm11826_vm11, 4294967295, %v13903_v44  ;;  %vm14041_vm11 = vcmp.ge.s32.totalorder %v11994_v23, %v10952_v60 }
 0x5da   : > { %8732 = vrcp.f32 %v4137_v47 }
 0x5e4   : > { %v11838_v47 = vpop.eup %8732 }
 0x5e5   : > { %13905 = vst [vmem:[#allocation15_spill] sm:$0xff] %v11838_v47  ;;  %7042 = vmatmul.mubr.msk.f32.vlgmr.msra.gmra.mrb[18].mxu1 %vm13924_vm8, %v11838_v47  ;;  %7059 = vmatmul.mubr.msk.f32.vlgmr.msra.gmra.mrb[18].mxu0 %vm13925_vm9, %v11838_v47  ;;  %vm11916_vm8 = vmand %vm13931_vm13, %vm13930_vm1  ;;  %v11927_v47 = vadd.s32 1664, %v9018_v2  ;;  %vm13935_vm1 = vnez %v13743_v22  ;;  %v13955_v22 = vmov 0 }
 0x5e6   : > { %v13933_v11 = vsel %vm11916_vm8, 4294967295, %v13932_v11  ;;  %vm13936_vm13 = vmpackc.low %vm11254_vm6, %vm13935_vm1  ;;  %5420 = vmatprep.mubr.f32.mxu1 %v13957_v24  ;;  %5491 = vmatprep.mubr.f32.mxu0 %v13957_v24  ;;  %vm13966_vm6 = vcmp.lt.s32.totalorder %v11445_v43, %v11057_v28 }
 0x5e7   : > { %8459 = vmatpush1.bf16.msk.msra.mxu1 %vm13936_vm13, %v13934_v19  ;;  %vm13938_vm9 = vmpackc.low %vm11274_vm10, %vm13937_vm5  ;;  %vm13944_vm13 = vnez %v13752_v26  ;;  %vm13963_vm10 = vcmp.ge.s32.totalorder %v11445_v43, %v11030_v4  ;;  %v13968_v26 = vmov 0 }
 0x5e8   : > { %8475 = vmatpush1.bf16.msk.msra.mxu0 %vm13938_vm9, %v13934_v19  ;;  %vm11947_vm8 = vmand %vm13940_vm2, %vm13939_vm14  ;;  %vm13943_vm9 = vnez %v13756_v29  ;;  %vm13946_vm2 = vnez %v13764_v31  ;;  %vm13947_vm14 = vnez %v13760_v30  ;;  %v13972_v29 = vmov 0 }
 0x5e9   : > { %v13942_v1 = vsel %vm11947_vm8, 4294967295, %v13941_v1  ;;  %vm13945_vm5 = vmpackc.low %vm13943_vm9, %vm13944_vm13  ;;  %vm13953_vm9 = vcmp.lt.s32.totalorder %v11426_v41, %v11057_v28  ;;  %vm13954_vm13 = vcmp.ge.s32.totalorder %v11426_v41, %v11037_v6  ;;  %v13976_v30 = vmov 0 }
 0x5ea   : > { %8461 = vmatprep.subr.msk.bf16.mxu1 %vm13945_vm5, %v13934_v19  ;;  %vm13948_vm8 = vmpackc.low %vm13946_vm2, %vm13947_vm14  ;;  %vm13962_vm14 = vcmp.lt.s32.totalorder %v11445_v43, %v11049_v27  ;;  %vm13970_vm2 = vcmp.lt.s32.totalorder %v11464_v46, %v11049_v27  ;;  %v13980_v31 = vmov 0 }
 0x5eb   : > { %8477 = vmatprep.subr.msk.bf16.mxu0 %vm13948_vm8, %v13934_v19  ;;  %vm11983_vm5 = vmand %vm13954_vm13, %vm13953_vm9  ;;  %vm14016_vm13 = vcmp.lt.s32.totalorder %v11445_v43, %v11105_v36 }
 0x5ec   : > { %v13956_v22 = vsel %vm11983_vm5, 4294967295, %v13955_v22  ;;  %vm12012_vm0 = vmand %vm13963_vm10, %vm13962_vm14  ;;  %vm13974_vm14 = vcmp.lt.s32.totalorder %v11464_v46, %v11057_v28  ;;  %v13984_v28 = vmov 0  ;;  %vm14073_vm5 = vnez %v13845_v61 }
 0x5ed   : > { %v13965_v25 = vsel %vm12012_vm0, 4294967295, %v13964_v25  ;;  %vm12022_vm9 = vmand %vm13967_vm15, %vm13966_vm6  ;;  %vm13975_vm0 = vcmp.ge.s32.totalorder %v11464_v46, %v11037_v6  ;;  %v12079_v6 = vadd.s32 1536, %v9018_v2  ;;  %vm13993_vm6 = vcmp.ge.s32.totalorder %v11426_v41, %v11078_v8 }
 0x5ee   : > { %v13969_v26 = vsel %vm12022_vm9, 4294967295, %v13968_v26  ;;  %vm12032_vm10 = vmand %vm13971_vm12, %vm13970_vm2  ;;  %vm13978_vm2 = vcmp.lt.s32.totalorder %v11397_v38, %v11097_v35  ;;  %vm13990_vm12 = vnez %v13775_v33  ;;  %v14014_v33 = vmov 0 }
 0x5ef   : > { %v13973_v29 = vsel %vm12032_vm10, 4294967295, %v13972_v29  ;;  %vm12042_vm15 = vmand %vm13975_vm0, %vm13974_vm14  ;;  %vm13979_vm10 = vcmp.ge.s32.totalorder %v11397_v38, %v11078_v8  ;;  %vm13982_vm0 = vcmp.lt.s32.totalorder %v11397_v38, %v11105_v36  ;;  %vm13983_vm14 = vcmp.ge.s32.totalorder %v11397_v38, %v11085_v9 }
 0x5f0   : > { %v13977_v30 = vsel %vm12042_vm15, 4294967295, %v13976_v30  ;;  %vm12058_vm8 = vmand %vm13979_vm10, %vm13978_vm2  ;;  %vm13986_vm2 = vnez %v13772_v21  ;;  %vm13992_vm10 = vcmp.lt.s32.totalorder %v11426_v41, %v11097_v35  ;;  %v13994_v38 = vmov 0 }
 0x5f1   : > { %v13981_v31 = vsel %vm12058_vm8, 4294967295, %v13980_v31  ;;  %vm12068_vm9 = vmand %vm13983_vm14, %vm13982_vm0  ;;  %vm13987_vm0 = vnez %v13768_v32  ;;  %v14007_v32 = vmov 0  ;;  %v12144_v21 = vadd.s32 1792, %v9018_v2 }
 0x5f2   : > { %v13985_v28 = vsel %vm12068_vm9, 4294967295, %v13984_v28  ;;  %vm13988_vm14 = vmpackc.low %vm13986_vm2, %vm13987_vm0  ;;  %vm13989_vm9 = vnez %v13779_v37  ;;  %v14018_v37 = vmov 0  ;;  %v14105_v61 = vmov 0 }
 0x5f3   : > { %8463 = vmatpush1.bf16.msk.msra.mxu1 %vm13988_vm14, %v13934_v19  ;;  %vm13991_vm8 = vmpackc.low %vm13989_vm9, %vm13990_vm12  ;;  %vm14021_vm9 = vcmp.ge.s32.totalorder %v11464_v46, %v11078_v8  ;;  %vm4489_vm1 = vcmp.lt.s32.totalorder %v12144_v21, %v10961_v63 }
 0x5f4   : > { %8479 = vmatpush1.bf16.msk.msra.mxu0 %vm13991_vm8, %v13934_v19  ;;  %vm12099_vm15 = vmand %vm13993_vm6, %vm13992_vm10  ;;  %vm13996_vm8 = vnez %v13783_v39  ;;  %vm13998_vm6 = vnez %v13795_v45  ;;  %vm13999_vm10 = vnez %v13791_v42  ;;  %v14022_v39 = vmov 0  ;;  %v14048_v45 = vld [vmem:[#allocation14_spill] sm:$0xff] }
 0x5f5   : > { %v13995_v38 = vsel %vm12099_vm15, 4294967295, %v13994_v38  ;;  %vm13997_vm12 = vmpackc.low %vm13867_vm7, %vm13996_vm8  ;;  %vm14005_vm7 = vcmp.lt.s32.totalorder %v11426_v41, %v11105_v36  ;;  %vm14006_vm8 = vcmp.ge.s32.totalorder %v11426_v41, %v11085_v9  ;;  %vm14017_vm15 = vcmp.ge.s32.totalorder %v11445_v43, %v11085_v9 }
 0x5f6   : > { %8465 = vmatprep.subr.msk.bf16.mxu1 %vm13997_vm12, %v13934_v19  ;;  %vm14000_vm14 = vmpackc.low %vm13998_vm6, %vm13999_vm10  ;;  %vm14013_vm6 = vcmp.ge.s32.totalorder %v11445_v43, %v11078_v8  ;;  %v14030_v41 = vmov 0  ;;  %v14034_v42 = vmov 0 }
 0x5f7   : > { %8481 = vmatprep.subr.msk.bf16.mxu0 %vm14000_vm14, %v13934_v19  ;;  %vm12135_vm12 = vmand %vm14006_vm8, %vm14005_vm7  ;;  %vm14012_vm8 = vcmp.lt.s32.totalorder %v11445_v43, %v11097_v35  ;;  %vm14020_vm7 = vcmp.lt.s32.totalorder %v11464_v46, %v11097_v35  ;;  %v14042_v43 = vmov 0 }
 0x5f8   : > { %v14008_v32 = vsel %vm12135_vm12, 4294967295, %v14007_v32  ;;  %vm12160_vm10 = vmand %vm14013_vm6, %vm14012_vm8  ;;  %vm14024_vm8 = vcmp.lt.s32.totalorder %v11464_v46, %v11105_v36 }
 0x5f9   : > { %v14015_v33 = vsel %vm12160_vm10, 4294967295, %v14014_v33  ;;  %vm12170_vm14 = vmand %vm14017_vm15, %vm14016_vm13  ;;  %vm14025_vm10 = vcmp.ge.s32.totalorder %v11464_v46, %v11085_v9  ;;  %v14051_v46 = vld [vmem:[#allocation16_spill] sm:$0xff] }
 0x5fa   : > { %v14019_v37 = vsel %vm12170_vm14, 4294967295, %v14018_v37  ;;  %vm12180_vm6 = vmand %vm14021_vm9, %vm14020_vm7  ;;  %vm4490_vm14 = vcmp.lt.s32.totalorder %v11994_v23, %v10961_v63  ;;  %vm14028_vm9 = vcmp.lt.s32.totalorder %v11927_v47, %v10958_v62  ;;  %vm14029_vm7 = vcmp.ge.s32.totalorder %v11927_v47, %v10952_v60 }
 0x5fb   : > { %v14023_v39 = vsel %vm12180_vm6, 4294967295, %v14022_v39  ;;  %vm12190_vm13 = vmand %vm14025_vm10, %vm14024_vm8  ;;  %vm14032_vm10 = vcmp.lt.s32.totalorder %v11927_v47, %v10961_v63  ;;  %vm14033_vm8 = vcmp.ge.s32.totalorder %v11927_v47, %v10949_v59 }
 0x5fc   : > { %v14027_v40 = vsel %vm12190_vm13, 4294967295, %v14026_v40  ;;  %vm12204_vm6 = vmand %vm14029_vm7, %vm14028_vm9  ;;  %vm14036_vm9 = vnez %v13799_v48  ;;  %vm14040_vm13 = vcmp.lt.s32.totalorder %v11994_v23, %v10958_v62  ;;  %v14057_v48 = vmov 0 }
 0x5fd   : > { %v14031_v41 = vsel %vm12204_vm6, 4294967295, %v14030_v41  ;;  %vm12214_vm15 = vmand %vm14033_vm8, %vm14032_vm10  ;;  %vm14038_vm10 = vnez %v13807_v50  ;;  %v14066_v50 = vmov 0 }
 0x5fe   : > { %v14035_v42 = vsel %vm12214_vm15, 4294967295, %v14034_v42  ;;  %vm14037_vm7 = vmpackc.low %vm13899_vm3, %vm14036_vm9  ;;  %vm4223_vm3 = vcmp.ge.s32.totalorder %v12079_v6, %v10949_v59  ;;  %vm4487_vm9 = vcmp.lt.s32.totalorder %v12079_v6, %v10961_v63 }
 0x5ff   : > { %8467 = vmatpush1.bf16.msk.msra.mxu1 %vm14037_vm7, %v13934_v19  ;;  %vm14039_vm8 = vmpackc.low %vm11502_vm4, %vm14038_vm10  ;;  %vm14044_vm4 = vnez %v13819_v53  ;;  %vm14045_vm7 = vnez %v13815_v52  ;;  %v14069_v52 = vld [vmem:[#allocation10_spill] sm:$0xff]  ;;  %v14076_v53 = vmov 0 }
 0x600   : > { %8483 = vmatpush1.bf16.msk.msra.mxu0 %vm14039_vm8, %v13934_v19  ;;  %vm12240_vm15 = vmand %vm14041_vm11, %vm14040_vm13  ;;  %vm14047_vm8 = vnez %v13828_v55  ;;  %vm14049_vm11 = vnez %v14048_v45  ;;  %v14078_v55 = vld [vmem:[#allocation9_spill] sm:$0xff]  ;;  %v14079_v45 = vld [vmem:[#allocation11_spill] sm:$0xff] }
 0x601   : > { %v14043_v43 = vsel %vm12240_vm15, 4294967295, %v14042_v43  ;;  %vm14046_vm10 = vmpackc.low %vm14044_vm4, %vm14045_vm7  ;;  %vm14056_vm4 = vcmp.ge.s32.totalorder %v11994_v23, %v10949_v59  ;;  %vm4225_vm15 = vcmp.ge.s32.totalorder %v12144_v21, %v10949_v59 }
 0x602   : > { %8469 = vmatprep.subr.msk.bf16.mxu1 %vm14046_vm10, %v13934_v19  ;;  %vm14050_vm13 = vmpackc.low %vm14047_vm8, %vm14049_vm11  ;;  %vm4193_vm10 = vcmp.ge.s32.totalorder %v12144_v21, %v10952_v60  ;;  %vm4457_vm8 = vcmp.lt.s32.totalorder %v12144_v21, %v10958_v62 }
 0x603   : > { %8485 = vmatprep.subr.msk.bf16.mxu0 %vm14050_vm13, %v13934_v19  ;;  %vm12271_vm7 = vmand %vm14056_vm4, %vm4490_vm14  ;;  %vm14062_vm14 = vcmp.lt.s32.totalorder %v12079_v6, %v10958_v62  ;;  %vm14063_vm4 = vcmp.ge.s32.totalorder %v12079_v6, %v10952_v60 }
 0x604   : > { %v14058_v48 = vsel %vm12271_vm7, 4294967295, %v14057_v48  ;;  %vm12293_vm0 = vmand %vm14063_vm4, %vm14062_vm14  ;;  %vm14070_vm14 = vnez %v13837_v57  ;;  %vm14071_vm4 = vnez %v13833_v56  ;;  %v14090_v56 = vmov 0 }
 0x605   : > { %v14065_v49 = vsel %vm12293_vm0, 4294967295, %v14064_v49  ;;  %vm12301_vm11 = vmand %vm4223_vm3, %vm4487_vm9  ;;  %vm14074_vm3 = vnez %v13841_v58  ;;  %v14098_v57 = vmov 0  ;;  %v14100_v58 = vld [vmem:[#allocation15_spill] sm:$0xff]  ;;  %vm14140_vm7 = vnez %v13915_v13 }
 0x606   : > { %v14067_v50 = vsel %vm12301_vm11, 4294967295, %v14066_v50  ;;  %vm14072_vm0 = vmpackc.low %vm14070_vm14, %vm14071_vm4  ;;  %vm14081_vm14 = vnez %v13849_v0  ;;  %v14113_v0 = vmov 0  ;;  %v14159_v13 = vmov 0 }
 0x607   : > { %8471 = vmatpush1.bf16.msk.msra.mxu1 %vm14072_vm0, %v13934_v19  ;;  %vm14075_vm9 = vmpackc.low %vm14073_vm5, %vm14074_vm3  ;;  %vm14080_vm0 = vnez %v13853_v3  ;;  %vm14083_vm5 = vnez %v13865_v12  ;;  %v14127_v3 = vmov 0  ;;  %v14138_v12 = vmov 0 }
 0x608   : > { %8487 = vmatpush1.bf16.msk.msra.mxu0 %vm14075_vm9, %v13934_v19  ;;  %vm12321_vm11 = vmand %vm4193_vm10, %vm4457_vm8  ;;  %vm14084_vm10 = vnez %v13857_v10  ;;  %vm14133_vm9 = vcmp.ge.s32.totalorder %v12079_v6, %v14068_v51  ;;  %v14134_v10 = vmov 0 }
 0x609   : > { %v14077_v53 = vsel %vm12321_vm11, 4294967295, %v14076_v53  ;;  %vm14082_vm4 = vmpackc.low %vm14080_vm0, %vm14081_vm14  ;;  %vm4258_vm0 = vcmp.ge.s32.totalorder %v11994_v23, %v14068_v51  ;;  %vm4522_vm14 = vcmp.lt.s32.totalorder %v11994_v23, %v14069_v52  ;;  %vm4553_vm11 = vcmp.lt.s32.totalorder %v12144_v21, %v14079_v45 }
 0x60a   : > { %8489 = vmatprep.subr.msk.bf16.mxu1 %vm14082_vm4, %v13934_v19  ;;  %vm14085_vm8 = vmpackc.low %vm14083_vm5, %vm14084_vm10  ;;  %vm14101_vm4 = vcmask 523264   ;;  %vm14110_vm5 = vnez %v13885_v7  ;;  %vm14132_vm10 = vcmp.lt.s32.totalorder %v12079_v6, %v14069_v52  ;;  %v14208_v7 = vmov 0 }
 0x60b   : > { %8505 = vmatprep.subr.msk.bf16.mxu0 %vm14085_vm8, %v13934_v19  ;;  %vm12349_vm6 = vmand %vm4225_vm15, %vm4489_vm1  ;;  %vm14096_vm1 = vcmp.lt.s32.totalorder %v11927_v47, %v14069_v52  ;;  %vm14097_vm15 = vcmp.ge.s32.totalorder %v11927_v47, %v14068_v51  ;;  %7076 = vmatmul.mubr.msk.f32.vlgmr.msra.gmra.mrb[20].mxu1 %vm14101_vm4, %v14100_v58  ;;  %vm14103_vm8 = vcmp.lt.s32.totalorder %v11927_v47, %v14079_v45 }
 0x60c   : > { %v14091_v56 = vsel %vm12349_vm6, 4294967295, %v14090_v56  ;;  %vm12371_vm12 = vmand %vm14097_vm15, %vm14096_vm1  ;;  %vm14104_vm1 = vcmp.ge.s32.totalorder %v11927_v47, %v14078_v55  ;;  %5562 = vmatprep.mubr.f32.mxu1 %v13957_v24 }
 0x60d   : > { %v14099_v57 = vsel %vm12371_vm12, 4294967295, %v14098_v57  ;;  %vm14102_vm13 = vmmov %vm14101_vm4  ;;  %vm14107_vm4 = vnez %v13877_v15  ;;  %v14148_v15 = vld [vmem:[#allocation12_spill] sm:$0xff]  ;;  %vm14171_vm12 = vnez %v13969_v26  ;;  %v12958_v26 = vadd.s32 2688, %v9018_v2 }
 0x60e   : > { %7093 = vmatmul.mubr.msk.f32.vlgmr.msra.gmra.mrb[20].mxu0 %vm14102_vm13, %v14100_v58  ;;  %vm12389_vm15 = vmand %vm14104_vm1, %vm14103_vm8  ;;  %vm14108_vm13 = vnez %v13873_v14  ;;  %vm14111_vm8 = vnez %v13881_v5  ;;  %v14146_v14 = vmov 0  ;;  %v14149_v5 = vld [vmem:[#allocation13_spill] sm:$0xff]  ;;  %vm4354_vm6 = vcmp.ge.s32.totalorder %v11994_v23, %v14148_v15 }
 0x60f   : > { %v14106_v61 = vsel %vm12389_vm15, 4294967295, %v14105_v61  ;;  %vm14109_vm2 = vmpackc.low %vm14107_vm4, %vm14108_vm13  ;;  %vm14116_vm4 = vnez %v13889_v16  ;;  %5633 = vmatprep.mubr.f32.mxu0 %v13957_v24 }
 0x610   : > { %8491 = vmatpush1.bf16.msk.msra.mxu1 %vm14109_vm2, %v13934_v19  ;;  %vm14112_vm1 = vmpackc.low %vm14110_vm5, %vm14111_vm8  ;;  %vm14115_vm2 = vnez %v13893_v17  ;;  %vm14118_vm5 = vnez %v13904_v44  ;;  %v14226_v17 = vmov 0  ;;  %v8748_v44 = vld [vmem:[%s9010_s15 + $0x68] sm:$0xff] }
 0x611   : > { %8507 = vmatpush1.bf16.msk.msra.mxu0 %vm14112_vm1, %v13934_v19  ;;  %vm12409_vm3 = vmand %vm4258_vm0, %vm4522_vm14  ;;  %vm14119_vm0 = vnez %v13897_v18  ;;  %vm4289_vm1 = vcmp.ge.s32.totalorder %v12144_v21, %v14078_v55  ;;  %v14228_v18 = vmov 0 }
 0x612   : > { %v14114_v0 = vsel %vm12409_vm3, 4294967295, %v14113_v0  ;;  %vm14117_vm13 = vmpackc.low %vm14115_vm2, %vm14116_vm4  ;;  %vm14125_vm2 = vcmp.lt.s32.totalorder %v11994_v23, %v14079_v45  ;;  %vm14126_vm4 = vcmp.ge.s32.totalorder %v11994_v23, %v14078_v55  ;;  %vm14141_vm3 = vnez %v14051_v46 }
 0x613   : > { %8493 = vmatprep.subr.msk.bf16.mxu1 %vm14117_vm13, %v13934_v19  ;;  %vm14120_vm14 = vmpackc.low %vm14118_vm5, %vm14119_vm0  ;;  %vm4257_vm5 = vcmp.ge.s32.totalorder %v12144_v21, %v14068_v51  ;;  %vm4521_vm0 = vcmp.lt.s32.totalorder %v12144_v21, %v14069_v52 }
 0x614   : > { %8509 = vmatprep.subr.msk.bf16.mxu0 %vm14120_vm14, %v13934_v19  ;;  %vm12443_vm13 = vmand %vm14126_vm4, %vm14125_vm2  ;;  %vm14136_vm14 = vcmp.lt.s32.totalorder %v12079_v6, %v14079_v45  ;;  %vm14137_vm4 = vcmp.ge.s32.totalorder %v12079_v6, %v14078_v55 }
 0x615   : > { %v14128_v3 = vsel %vm12443_vm13, 4294967295, %v14127_v3  ;;  %vm12467_vm8 = vmand %vm14133_vm9, %vm14132_vm10  ;;  %vm14143_vm13 = vnez %v13923_v34  ;;  %vm4352_vm9 = vcmp.ge.s32.totalorder %v11927_v47, %v14148_v15  ;;  %vm4616_vm10 = vcmp.lt.s32.totalorder %v11927_v47, %v14149_v5 }
 0x616   : > { %v14135_v10 = vsel %vm12467_vm8, 4294967295, %v14134_v10  ;;  %vm12481_vm2 = vmand %vm14137_vm4, %vm14136_vm14  ;;  %vm14144_vm14 = vnez %v13919_v54  ;;  %v14167_v34 = vmov 0  ;;  %v14200_v54 = vmov 0 }
 0x617   : > { %v14139_v12 = vsel %vm12481_vm2, 4294967295, %v14138_v12  ;;  %vm14142_vm8 = vmpackc.low %vm14140_vm7, %vm14141_vm3  ;;  %vm14150_vm7 = vnez %v13933_v11  ;;  %vm14151_vm3 = vnez %v13929_v20  ;;  %v14177_v11 = vmov 0 }
 0x618   : > { %8495 = vmatpush1.bf16.msk.msra.mxu1 %vm14142_vm8, %v13934_v19  ;;  %vm14145_vm4 = vmpackc.low %vm14143_vm13, %vm14144_vm14  ;;  %vm14153_vm13 = vnez %v13956_v22  ;;  %v14188_v20 = vmov 0 }
 0x619   : > { %8511 = vmatpush1.bf16.msk.msra.mxu0 %vm14145_vm4, %v13934_v19  ;;  %vm12501_vm2 = vmand %vm4257_vm5, %vm4521_vm0  ;;  %vm14154_vm5 = vnez %v13942_v1  ;;  %v14169_v1 = vmov 0 }
 0x61a   : > { %v14147_v14 = vsel %vm12501_vm2, 4294967295, %v14146_v14  ;;  %vm14152_vm8 = vmpackc.low %vm14150_vm7, %vm14151_vm3  ;;  %vm4322_vm7 = vcmp.ge.s32.totalorder %v11994_v23, %v11030_v4  ;;  %vm14172_vm2 = vnez %v13965_v25  ;;  %v12834_v25 = vadd.s32 2304, %v9018_v2 }
 0x61b   : > { %8497 = vmatprep.subr.msk.bf16.mxu1 %vm14152_vm8, %v13934_v19  ;;  %vm14155_vm0 = vmpackc.low %vm14153_vm13, %vm14154_vm5  ;;  %vm4586_vm8 = vcmp.lt.s32.totalorder %v11994_v23, %v11049_v27 }
 0x61c   : > { %8513 = vmatprep.subr.msk.bf16.mxu0 %vm14155_vm0, %v13934_v19  ;;  %vm12529_vm3 = vmand %vm4289_vm1, %vm4553_vm11  ;;  %vm14165_vm11 = vcmp.lt.s32.totalorder %v11927_v47, %v11049_v27  ;;  %vm14166_vm1 = vcmp.ge.s32.totalorder %v11927_v47, %v11030_v4  ;;  %vm4618_vm0 = vcmp.lt.s32.totalorder %v11994_v23, %v14149_v5 }
 0x61d   : > { %v14160_v13 = vsel %vm12529_vm3, 4294967295, %v14159_v13  ;;  %vm12551_vm15 = vmand %vm14166_vm1, %vm14165_vm11  ;;  %vm14174_vm11 = vnez %v13977_v30  ;;  %vm14175_vm1 = vnez %v13973_v29  ;;  %vm14194_vm3 = vnez %v14019_v37 }
 0x61e   : > { %v14168_v34 = vsel %vm12551_vm15, 4294967295, %v14167_v34  ;;  %vm12559_vm13 = vmand %vm4352_vm9, %vm4616_vm10  ;;  %vm4319_vm9 = vcmp.ge.s32.totalorder %v12079_v6, %v11030_v4  ;;  %vm4583_vm10 = vcmp.lt.s32.totalorder %v12079_v6, %v11049_v27  ;;  %vm14197_vm15 = vnez %v14027_v40 }
 0x61f   : > { %v14170_v1 = vsel %vm12559_vm13, 4294967295, %v14169_v1  ;;  %vm14173_vm14 = vmpackc.low %vm14171_vm12, %vm14172_vm2  ;;  %vm14179_vm12 = vnez %v13985_v28  ;;  %vm14180_vm2 = vnez %v13981_v31  ;;  %v14192_v28 = vmov 0 }
 0x620   : > { %8499 = vmatpush1.bf16.msk.msra.mxu1 %vm14173_vm14, %v13934_v19  ;;  %vm14176_vm5 = vmpackc.low %vm14174_vm11, %vm14175_vm1  ;;  %vm4585_vm13 = vcmp.lt.s32.totalorder %v12144_v21, %v11049_v27  ;;  %vm14221_vm11 = vnez %v14099_v57  ;;  %v12970_v29 = vadd.s32 2944, %v9018_v2  ;;  %v12982_v30 = vadd.s32 2560, %v9018_v2 }
 0x621   : > { %8515 = vmatpush1.bf16.msk.msra.mxu0 %vm14176_vm5, %v13934_v19  ;;  %vm12575_vm4 = vmand %vm4322_vm7, %vm4586_vm8  ;;  %vm14182_vm5 = vnez %v14008_v32  ;;  %vm14183_vm7 = vnez %v13995_v38  ;;  %v12997_v31 = vadd.s32 2816, %v9018_v2  ;;  %v13120_v38 = vadd.s32 3200, %v9018_v2 }
 0x622   : > { %v14178_v11 = vsel %vm12575_vm4, 4294967295, %v14177_v11  ;;  %vm14181_vm14 = vmpackc.low %vm14179_vm12, %vm14180_vm2  ;;  %vm4351_vm12 = vcmp.ge.s32.totalorder %v12079_v6, %v14148_v15  ;;  %v13132_v32 = vadd.s32 3456, %v9018_v2  ;;  %v13282_v37 = vadd.s32 3712, %v9018_v2 }
 0x623   : > { %8501 = vmatprep.subr.msk.bf16.mxu1 %vm14181_vm14, %v13934_v19  ;;  %vm14184_vm8 = vmpackc.low %vm14182_vm5, %vm14183_vm7  ;;  %vm4615_vm14 = vcmp.lt.s32.totalorder %v12079_v6, %v14149_v5  ;;  %vm4617_vm7 = vcmp.lt.s32.totalorder %v12144_v21, %v14149_v5  ;;  %v13306_v40 = vadd.s32 3584, %v9018_v2 }
 0x624   : > { %8517 = vmatprep.subr.msk.bf16.mxu0 %vm14184_vm8, %v13934_v19  ;;  %vm12603_vm2 = vmand %vm4354_vm6, %vm4618_vm0  ;;  %vm4321_vm0 = vcmp.ge.s32.totalorder %v12144_v21, %v11030_v4  ;;  %vm14195_vm8 = vnez %v14015_v33  ;;  %v13159_v33 = vadd.s32 3328, %v9018_v2 }
 0x625   : > { %v14189_v20 = vsel %vm12603_vm2, 4294967295, %v14188_v20  ;;  %vm12619_vm6 = vmand %vm4319_vm9, %vm4583_vm10  ;;  %vm14198_vm9 = vnez %v14023_v39  ;;  %vm4353_vm2 = vcmp.ge.s32.totalorder %v12144_v21, %v14148_v15  ;;  %v13294_v39 = vadd.s32 3968, %v9018_v2 }
 0x626   : > { %v14193_v28 = vsel %vm12619_vm6, 4294967295, %v14192_v28  ;;  %vm14196_vm5 = vmpackc.low %vm14194_vm3, %vm14195_vm8  ;;  %vm14202_vm3 = vnez %v14035_v42 }
 0x627   : > { %8503 = vmatpush1.bf16.msk.msra.mxu1 %vm14196_vm5, %v13934_v19  ;;  %vm14199_vm10 = vmpackc.low %vm14197_vm15, %vm14198_vm9  ;;  %vm14203_vm5 = vnez %v14031_v41  ;;  %vm14205_vm15 = vnez %v14058_v48  ;;  %vm14215_vm9 = vnez %v14065_v49  ;;  %v13321_v41 = vadd.s32 3840, %v9018_v2  ;;  %v8736_v48 = vld [vmem:[%s9010_s15 + $0x8] sm:$0xff] }
 0x628   : > { %8519 = vmatpush1.bf16.msk.msra.mxu0 %vm14199_vm10, %v13934_v19  ;;  %vm12639_vm4 = vmand %vm4351_vm12, %vm4615_vm14  ;;  %vm14206_vm12 = vnez %v14043_v43 }
 0x629   : > { %v14201_v54 = vsel %vm12639_vm4, 4294967295, %v14200_v54  ;;  %vm14204_vm8 = vmpackc.low %vm14202_vm3, %vm14203_vm5  ;;  %vm4384_vm3 = vcmp.ge.s32.totalorder %v11927_v47, %v11078_v8  ;;  %vm4648_vm5 = vcmp.lt.s32.totalorder %v11927_v47, %v11097_v35  ;;  %vm14220_vm4 = vnez %v14106_v61 }
 0x62a   : > { %8521 = vmatprep.subr.msk.bf16.mxu1 %vm14204_vm8, %v13934_v19  ;;  %vm14207_vm14 = vmpackc.low %vm14205_vm15, %vm14206_vm12  ;;  %vm14210_vm8 = vcmask 523264  }
 0x62b   : > { %8537 = vmatprep.subr.msk.bf16.mxu0 %vm14207_vm14, %v13934_v19  ;;  %vm12663_vm10 = vmand %vm4321_vm0, %vm4585_vm13  ;;  %7110 = vmatmul.mubr.msk.f32.vlgmr.msra.gmra.mrb[22].mxu1 %vm14210_vm8, %v14100_v58  ;;  %vm4416_vm13 = vcmp.ge.s32.totalorder %v11927_v47, %v11085_v9  ;;  %vm4680_vm0 = vcmp.lt.s32.totalorder %v11927_v47, %v11105_v36  ;;  %vm14214_vm14 = vnez %v14067_v50  ;;  %v12772_v47 = vadd.s32 2176, %v9018_v2  ;;  %v8737_v50 = vld [vmem:[%s9010_s15 + $0x18] sm:$0xff] }
 0x62c   : > { %v14209_v7 = vsel %vm12663_vm10, 4294967295, %v14208_v7  ;;  %vm14211_vm15 = vmmov %vm14210_vm8  ;;  %vm14217_vm8 = vnez %v14091_v56  ;;  %5704 = vmatprep.mubr.f32.mxu1 %v13957_v24 }
 0x62d   : > { %7127 = vmatmul.mubr.msk.f32.vlgmr.msra.gmra.mrb[22].mxu0 %vm14211_vm15, %v14100_v58  ;;  %vm12675_vm12 = vmand %vm4353_vm2, %vm4617_vm7  ;;  %vm14218_vm2 = vnez %v14077_v53  ;;  %v8738_v53 = vld [vmem:[%s9010_s15 + $0x20] sm:$0xff] }
 0x62e   : > { %vm14216_vm6 = vmpackc.low %vm14214_vm14, %vm14215_vm9  ;;  %vm14224_vm9 = vnez %v14114_v0  ;;  %5775 = vmatprep.mubr.f32.mxu0 %v13957_v24 }
 0x62f   : > { %8523 = vmatpush1.bf16.msk.msra.mxu1 %vm14216_vm6, %v13934_v19  ;;  %vm14219_vm7 = vmpackc.low %vm14217_vm8, %vm14218_vm2  ;;  %vm14223_vm6 = vnez %v14128_v3  ;;  %vm4386_vm2 = vcmp.ge.s32.totalorder %v11994_v23, %v11078_v8  ;;  %v8740_v3 = vld [vmem:[%s9010_s15 + $0x28] sm:$0xff] }
 0x630   : > { %8539 = vmatpush1.bf16.msk.msra.mxu0 %vm14219_vm7, %v13934_v19  ;;  %vm14222_vm1 = vmpackc.low %vm14220_vm4, %vm14221_vm11  ;;  %vm4650_vm7 = vcmp.lt.s32.totalorder %v11994_v23, %v11097_v35  ;;  %vm4418_vm4 = vcmp.ge.s32.totalorder %v11994_v23, %v11085_v9  ;;  %vm4682_vm11 = vcmp.lt.s32.totalorder %v11994_v23, %v11105_v36  ;;  %v12820_v23 = vadd.s32 2048, %v9018_v2 }
 0x631   : > { %8525 = vmatprep.subr.msk.bf16.mxu1 %vm14222_vm1, %v13934_v19  ;;  %vm14225_vm14 = vmpackc.low %vm14223_vm6, %vm14224_vm9  ;;  %vm14234_vm6 = vnez %v14147_v14  ;;  %vm4383_vm1 = vcmp.ge.s32.totalorder %v12079_v6, %v11078_v8 }
 0x632   : > { %8541 = vmatprep.subr.msk.bf16.mxu0 %vm14225_vm14, %v13934_v19  ;;  %vm12711_vm8 = vmand %vm4384_vm3, %vm4648_vm5  ;;  %vm14230_vm3 = vnez %v14139_v12  ;;  %vm14231_vm5 = vnez %v14135_v10  ;;  %v8741_v12 = vld [vmem:[%s9010_s15 + $0x38] sm:$0xff] }
 0x633   : > { %v14227_v17 = vsel %vm12711_vm8, 4294967295, %v14226_v17  ;;  %vm12719_vm15 = vmand %vm4416_vm13, %vm4680_vm0  ;;  %vm14233_vm0 = vnez %v14160_v13  ;;  %vm4647_vm8 = vcmp.lt.s32.totalorder %v12079_v6, %v11097_v35 }
 0x634   : > { %v14229_v18 = vsel %vm12719_vm15, 4294967295, %v14228_v18  ;;  %vm14232_vm13 = vmpackc.low %vm14230_vm3, %vm14231_vm5  ;;  %vm14238_vm3 = vnez %v14170_v1  ;;  %vm14239_vm5 = vnez %v14168_v34  ;;  %vm4679_vm15 = vcmp.lt.s32.totalorder %v12079_v6, %v11105_v36 }
 0x635   : > { %8527 = vmatpush1.bf16.msk.msra.mxu1 %vm14232_vm13, %v13934_v19  ;;  %vm14235_vm9 = vmpackc.low %vm14233_vm0, %vm14234_vm6  ;;  %vm14241_vm0 = vnez %v14189_v20 }
 0x636   : > { %8543 = vmatpush1.bf16.msk.msra.mxu0 %vm14235_vm9, %v13934_v19  ;;  %vm12745_vm14 = vmand %vm4386_vm2, %vm4650_vm7  ;;  %vm14242_vm2 = vnez %v14178_v11  ;;  %vm4415_vm9 = vcmp.ge.s32.totalorder %v12079_v6, %v11085_v9  ;;  %v12808_v6 = vadd.s32 2432, %v9018_v2  ;;  %v8745_v11 = vld [vmem:[%s9010_s15 + $0x58] sm:$0xff] }
 0x637   : > { %vm14240_vm13 = vmpackc.low %vm14238_vm3, %vm14239_vm5  ;;  %vm4385_vm5 = vcmp.ge.s32.totalorder %v12144_v21, %v11078_v8 }
 0x638   : > { %8529 = vmatprep.subr.msk.bf16.mxu1 %vm14240_vm13, %v13934_v19  ;;  %vm14243_vm7 = vmpackc.low %vm14241_vm0, %vm14242_vm2  ;;  %vm14247_vm13 = vnez %v14193_v28  ;;  %vm4417_vm2 = vcmp.ge.s32.totalorder %v12144_v21, %v11085_v9  ;;  %v8746_v28 = vld [vmem:[%s9010_s15 + $0x60] sm:$0xff] }
 0x639   : > { %8545 = vmatprep.subr.msk.bf16.mxu0 %vm14243_vm7, %v13934_v19  ;;  %vm4938_vm6 = vmand %vm4418_vm4, %vm4682_vm11  ;;  %vm4649_vm4 = vcmp.lt.s32.totalorder %v12144_v21, %v11097_v35  ;;  %vm14246_vm11 = vnez %v14201_v54  ;;  %vm4681_vm7 = vcmp.lt.s32.totalorder %v12144_v21, %v11105_v36  ;;  %v13144_v21 = vadd.s32 3072, %v9018_v2  ;;  %v8754_v2 = vld [vmem:[%s9010_s15 + $0xa0] sm:$0xff] }
 0x63a   : > { %vm8548_vm10 = vmpackc.low %vm4938_vm6, %vm12745_vm14  ;;  %vm14251_vm6 = vnez %v14229_v18 }
 0x63b   : > { %vm12774_vm3 = vmand %vm4383_vm1, %vm4647_vm8  ;;  %vm14249_vm8 = vnez %v14209_v7 }
 0x63c   : > { %vm14248_vm0 = vmpackc.low %vm14246_vm11, %vm14247_vm13  ;;  %vm14252_vm11 = vnez %v14227_v17  ;;  %v8747_v17 = vld [vmem:[%s9010_s15 + $0x70] sm:$0xff] }
 0x63d   : > { %8531 = vmatpush1.bf16.msk.msra.mxu1 %vm14248_vm0, %v13934_v19  ;;  %vm14250_vm1 = vmpackc.low %vm12675_vm12, %vm14249_vm8  ;;  %vm4460_vm0 = vcmp.lt.s32.totalorder %v12772_v47, %v10958_v62 }
 0x63e   : > { %8547 = vmatpush1.bf16.msk.msra.mxu0 %vm14250_vm1, %v13934_v19  ;;  %vm4935_vm14 = vmand %vm4415_vm9, %vm4679_vm15  ;;  %vm4196_vm9 = vcmp.ge.s32.totalorder %v12772_v47, %v10952_v60  ;;  %vm4228_vm1 = vcmp.ge.s32.totalorder %v12772_v47, %v10949_v59 }
 0x63f   : > { %vm14253_vm13 = vmpackc.low %vm14251_vm6, %vm14252_vm11  ;;  %8549 = vmatprep.subr.msk.bf16.mxu0 %vm8548_vm10, %v13934_v19  ;;  %vm4492_vm10 = vcmp.lt.s32.totalorder %v12772_v47, %v10961_v63  ;;  %vm4494_vm6 = vcmp.lt.s32.totalorder %v12808_v6, %v10961_v63  ;;  %vm14254_vm11 = vcmask 523264  }
 0x640   : > { %8533 = vmatprep.subr.msk.bf16.mxu1 %vm14253_vm13, %v13934_v19  ;;  %vm8534_vm12 = vmpackc.low %vm4935_vm14, %vm12774_vm3  ;;  %vm4462_vm14 = vcmp.lt.s32.totalorder %v12808_v6, %v10958_v62 }
 0x641   : > { %vm4905_vm15 = vmand %vm4385_vm5, %vm4649_vm4  ;;  %8535 = vmatpush1.bf16.msk.msra.mxu1 %vm8534_vm12, %v13934_v19  ;;  %vm4198_vm4 = vcmp.ge.s32.totalorder %v12808_v6, %v10952_v60 }
 0x642   : > { %vm4937_vm8 = vmand %vm4417_vm2, %vm4681_vm7  ;;  %vm4230_vm7 = vcmp.ge.s32.totalorder %v12808_v6, %v10949_v59 }
 0x643   : > { %vm8550_vm3 = vmpackc.low %vm4937_vm8, %vm4905_vm15 }
 0x644   : > { %8551 = vmatpush1.bf16.msk.msra.mxu0 %vm8550_vm3, %v13934_v19  ;;  %vm4716_vm5 = vmand %vm4196_vm9, %vm4460_vm0  ;;  %7144 = vmatmul.mubr.msk.f32.vlgmr.msra.gmra.mrb[24].mxu1 %vm14254_vm11, %v14100_v58  ;;  %vm4195_vm9 = vcmp.ge.s32.totalorder %v12820_v23, %v10952_v60  ;;  %vm4459_vm0 = vcmp.lt.s32.totalorder %v12820_v23, %v10958_v62 }
 0x645   : > { %vm4748_vm2 = vmand %vm4228_vm1, %vm4492_vm10  ;;  %vm4227_vm1 = vcmp.ge.s32.totalorder %v12820_v23, %v10949_v59  ;;  %vm4491_vm10 = vcmp.lt.s32.totalorder %v12820_v23, %v10961_v63  ;;  %5846 = vmatprep.mubr.f32.mxu1 %v13957_v24 }
 0x646   : > { %vm8552_vm13 = vmpackc.low %vm4748_vm2, %vm4716_vm5 }
 0x647   : > { %vm14255_vm12 = vmmov %vm14254_vm11  ;;  %8553 = vmatprep.subr.msk.bf16.mxu1 %vm8552_vm13, %v13934_v19 }
 0x648   : > { %7161 = vmatmul.mubr.msk.f32.vlgmr.msra.gmra.mrb[24].mxu0 %vm14255_vm12, %v14100_v58  ;;  %vm4718_vm15 = vmand %vm4198_vm4, %vm4462_vm14  ;;  %vm4197_vm4 = vcmp.ge.s32.totalorder %v12834_v25, %v10952_v60  ;;  %vm4461_vm14 = vcmp.lt.s32.totalorder %v12834_v25, %v10958_v62  ;;  %vm4260_vm12 = vcmp.ge.s32.totalorder %v12772_v47, %v14068_v51 }
 0x649   : > { %vm4750_vm8 = vmand %vm4230_vm7, %vm4494_vm6  ;;  %5917 = vmatprep.mubr.f32.mxu0 %v13957_v24  ;;  %vm4229_vm7 = vcmp.ge.s32.totalorder %v12834_v25, %v10949_v59  ;;  %vm4493_vm6 = vcmp.lt.s32.totalorder %v12834_v25, %v10961_v63 }
 0x64a   : > { %vm8568_vm3 = vmpackc.low %vm4750_vm8, %vm4718_vm15  ;;  %vm4524_vm15 = vcmp.lt.s32.totalorder %v12772_v47, %v14069_v52  ;;  %vm4556_vm8 = vcmp.lt.s32.totalorder %v12772_v47, %v14079_v45 }
 0x64b   : > { %8569 = vmatprep.subr.msk.bf16.mxu0 %vm8568_vm3, %v13934_v19  ;;  %vm4715_vm5 = vmand %vm4195_vm9, %vm4459_vm0  ;;  %vm4292_vm0 = vcmp.ge.s32.totalorder %v12772_v47, %v14078_v55  ;;  %vm4262_vm3 = vcmp.ge.s32.totalorder %v12808_v6, %v14068_v51 }
 0x64c   : > { %vm4747_vm2 = vmand %vm4227_vm1, %vm4491_vm10 }
 0x64d   : > { %vm8554_vm11 = vmpackc.low %vm4747_vm2, %vm4715_vm5  ;;  %vm4526_vm5 = vcmp.lt.s32.totalorder %v12808_v6, %v14069_v52  ;;  %vm4558_vm2 = vcmp.lt.s32.totalorder %v12808_v6, %v14079_v45 }
 0x64e   : > { %8555 = vmatpush1.bf16.msk.msra.mxu1 %vm8554_vm11, %v13934_v19  ;;  %vm4717_vm13 = vmand %vm4197_vm4, %vm4461_vm14  ;;  %vm4294_vm14 = vcmp.ge.s32.totalorder %v12808_v6, %v14078_v55  ;;  %vm4259_vm11 = vcmp.ge.s32.totalorder %v12820_v23, %v14068_v51 }
 0x64f   : > { %vm4749_vm9 = vmand %vm4229_vm7, %vm4493_vm6 }
 0x650   : > { %vm8570_vm1 = vmpackc.low %vm4749_vm9, %vm4717_vm13  ;;  %vm4523_vm13 = vcmp.lt.s32.totalorder %v12820_v23, %v14069_v52  ;;  %vm4555_vm9 = vcmp.lt.s32.totalorder %v12820_v23, %v14079_v45 }
 0x651   : > { %8571 = vmatpush1.bf16.msk.msra.mxu0 %vm8570_vm1, %v13934_v19  ;;  %vm4780_vm10 = vmand %vm4260_vm12, %vm4524_vm15  ;;  %vm4291_vm15 = vcmp.ge.s32.totalorder %v12820_v23, %v14078_v55  ;;  %vm4261_vm1 = vcmp.ge.s32.totalorder %v12834_v25, %v14068_v51 }
 0x652   : > { %vm4812_vm4 = vmand %vm4292_vm0, %vm4556_vm8 }
 0x653   : > { %vm8556_vm7 = vmpackc.low %vm4812_vm4, %vm4780_vm10  ;;  %vm4525_vm10 = vcmp.lt.s32.totalorder %v12834_v25, %v14069_v52  ;;  %vm4557_vm4 = vcmp.lt.s32.totalorder %v12834_v25, %v14079_v45 }
 0x654   : > { %8557 = vmatprep.subr.msk.bf16.mxu1 %vm8556_vm7, %v13934_v19  ;;  %vm4782_vm6 = vmand %vm4262_vm3, %vm4526_vm5  ;;  %vm4293_vm5 = vcmp.ge.s32.totalorder %v12834_v25, %v14078_v55  ;;  %vm4324_vm7 = vcmp.ge.s32.totalorder %v12772_v47, %v11030_v4 }
 0x655   : > { %vm4814_vm12 = vmand %vm4294_vm14, %vm4558_vm2 }
 0x656   : > { %vm8572_vm0 = vmpackc.low %vm4814_vm12, %vm4782_vm6  ;;  %vm4588_vm6 = vcmp.lt.s32.totalorder %v12772_v47, %v11049_v27  ;;  %vm4620_vm12 = vcmp.lt.s32.totalorder %v12772_v47, %v14149_v5 }
 0x657   : > { %8573 = vmatprep.subr.msk.bf16.mxu0 %vm8572_vm0, %v13934_v19  ;;  %vm4779_vm8 = vmand %vm4259_vm11, %vm4523_vm13  ;;  %vm4356_vm13 = vcmp.ge.s32.totalorder %v12772_v47, %v14148_v15  ;;  %vm4326_vm0 = vcmp.ge.s32.totalorder %v12808_v6, %v11030_v4 }
 0x658   : > { %vm4811_vm3 = vmand %vm4291_vm15, %vm4555_vm9 }
 0x659   : > { %vm8558_vm14 = vmpackc.low %vm4811_vm3, %vm4779_vm8  ;;  %vm4590_vm8 = vcmp.lt.s32.totalorder %v12808_v6, %v11049_v27  ;;  %vm4622_vm3 = vcmp.lt.s32.totalorder %v12808_v6, %v14149_v5 }
 0x65a   : > { %8559 = vmatpush1.bf16.msk.msra.mxu1 %vm8558_vm14, %v13934_v19  ;;  %vm4781_vm2 = vmand %vm4261_vm1, %vm4525_vm10  ;;  %vm4358_vm10 = vcmp.ge.s32.totalorder %v12808_v6, %v14148_v15  ;;  %vm4323_vm14 = vcmp.ge.s32.totalorder %v12820_v23, %v11030_v4 }
 0x65b   : > { %vm4813_vm11 = vmand %vm4293_vm5, %vm4557_vm4 }
 0x65c   : > { %vm8574_vm15 = vmpackc.low %vm4813_vm11, %vm4781_vm2  ;;  %vm4587_vm2 = vcmp.lt.s32.totalorder %v12820_v23, %v11049_v27  ;;  %vm4619_vm11 = vcmp.lt.s32.totalorder %v12820_v23, %v14149_v5 }
 0x65d   : > { %8575 = vmatpush1.bf16.msk.msra.mxu0 %vm8574_vm15, %v13934_v19  ;;  %vm4844_vm9 = vmand %vm4324_vm7, %vm4588_vm6  ;;  %vm4355_vm6 = vcmp.ge.s32.totalorder %v12820_v23, %v14148_v15  ;;  %vm4325_vm15 = vcmp.ge.s32.totalorder %v12834_v25, %v11030_v4 }
 0x65e   : > { %vm4876_vm1 = vmand %vm4356_vm13, %vm4620_vm12 }
 0x65f   : > { %vm8560_vm5 = vmpackc.low %vm4876_vm1, %vm4844_vm9  ;;  %vm4589_vm9 = vcmp.lt.s32.totalorder %v12834_v25, %v11049_v27  ;;  %vm4621_vm1 = vcmp.lt.s32.totalorder %v12834_v25, %v14149_v5 }
 0x660   : > { %8561 = vmatprep.subr.msk.bf16.mxu1 %vm8560_vm5, %v13934_v19  ;;  %vm4846_vm4 = vmand %vm4326_vm0, %vm4590_vm8  ;;  %vm4357_vm8 = vcmp.ge.s32.totalorder %v12834_v25, %v14148_v15  ;;  %vm4388_vm5 = vcmp.ge.s32.totalorder %v12772_v47, %v11078_v8 }
 0x661   : > { %vm4878_vm7 = vmand %vm4358_vm10, %vm4622_vm3 }
 0x662   : > { %vm8576_vm13 = vmpackc.low %vm4878_vm7, %vm4846_vm4  ;;  %vm4652_vm4 = vcmp.lt.s32.totalorder %v12772_v47, %v11097_v35  ;;  %vm4684_vm7 = vcmp.lt.s32.totalorder %v12772_v47, %v11105_v36 }
 0x663   : > { %8577 = vmatprep.subr.msk.bf16.mxu0 %vm8576_vm13, %v13934_v19  ;;  %vm4843_vm12 = vmand %vm4323_vm14, %vm4587_vm2  ;;  %vm4420_vm2 = vcmp.ge.s32.totalorder %v12772_v47, %v11085_v9  ;;  %vm4390_vm13 = vcmp.ge.s32.totalorder %v12808_v6, %v11078_v8 }
 0x664   : > { %vm4875_vm0 = vmand %vm4355_vm6, %vm4619_vm11 }
 0x665   : > { %vm8562_vm10 = vmpackc.low %vm4875_vm0, %vm4843_vm12  ;;  %vm4654_vm12 = vcmp.lt.s32.totalorder %v12808_v6, %v11097_v35  ;;  %vm4686_vm0 = vcmp.lt.s32.totalorder %v12808_v6, %v11105_v36 }
 0x666   : > { %8563 = vmatpush1.bf16.msk.msra.mxu1 %vm8562_vm10, %v13934_v19  ;;  %vm4845_vm3 = vmand %vm4325_vm15, %vm4589_vm9  ;;  %vm4422_vm9 = vcmp.ge.s32.totalorder %v12808_v6, %v11085_v9  ;;  %vm4387_vm10 = vcmp.ge.s32.totalorder %v12820_v23, %v11078_v8  ;;  %v8749_v6 = vld [vmem:[%s9010_s15 + $0x78] sm:$0xff] }
 0x667   : > { %vm4877_vm14 = vmand %vm4357_vm8, %vm4621_vm1 }
 0x668   : > { %vm8578_vm6 = vmpackc.low %vm4877_vm14, %vm4845_vm3  ;;  %vm4651_vm3 = vcmp.lt.s32.totalorder %v12820_v23, %v11097_v35  ;;  %vm4683_vm14 = vcmp.lt.s32.totalorder %v12820_v23, %v11105_v36 }
 0x669   : > { %8579 = vmatpush1.bf16.msk.msra.mxu0 %vm8578_vm6, %v13934_v19  ;;  %vm4908_vm11 = vmand %vm4388_vm5, %vm4652_vm4  ;;  %vm4419_vm4 = vcmp.ge.s32.totalorder %v12820_v23, %v11085_v9  ;;  %vm4389_vm6 = vcmp.ge.s32.totalorder %v12834_v25, %v11078_v8 }
 0x66a   : > { %vm4940_vm15 = vmand %vm4420_vm2, %vm4684_vm7 }
 0x66b   : > { %vm8564_vm8 = vmpackc.low %vm4940_vm15, %vm4908_vm11  ;;  %vm4653_vm11 = vcmp.lt.s32.totalorder %v12834_v25, %v11097_v35  ;;  %vm4685_vm15 = vcmp.lt.s32.totalorder %v12834_v25, %v11105_v36 }
 0x66c   : > { %8565 = vmatprep.subr.msk.bf16.mxu1 %vm8564_vm8, %v13934_v19  ;;  %vm4910_vm1 = vmand %vm4390_vm13, %vm4654_vm12  ;;  %vm4421_vm12 = vcmp.ge.s32.totalorder %v12834_v25, %v11085_v9  ;;  %vm4200_vm8 = vcmp.ge.s32.totalorder %v12958_v26, %v10952_v60 }
 0x66d   : > { %vm4942_vm5 = vmand %vm4422_vm9, %vm4686_vm0 }
 0x66e   : > { %vm8580_vm2 = vmpackc.low %vm4942_vm5, %vm4910_vm1  ;;  %vm4464_vm1 = vcmp.lt.s32.totalorder %v12958_v26, %v10958_v62  ;;  %vm4496_vm5 = vcmp.lt.s32.totalorder %v12958_v26, %v10961_v63 }
 0x66f   : > { %8581 = vmatprep.subr.msk.bf16.mxu0 %vm8580_vm2, %v13934_v19  ;;  %vm4907_vm7 = vmand %vm4387_vm10, %vm4651_vm3  ;;  %vm4232_vm3 = vcmp.ge.s32.totalorder %v12958_v26, %v10949_v59 }
 0x670   : > { %vm4939_vm13 = vmand %vm4419_vm4, %vm4683_vm14  ;;  %vm14256_vm14 = vcmask 523264  }
 0x671   : > { %vm8566_vm9 = vmpackc.low %vm4939_vm13, %vm4907_vm7  ;;  %vm4202_vm7 = vcmp.ge.s32.totalorder %v12970_v29, %v10952_v60  ;;  %vm4234_vm13 = vcmp.ge.s32.totalorder %v12970_v29, %v10949_v59 }
 0x672   : > { %8567 = vmatpush1.bf16.msk.msra.mxu1 %vm8566_vm9, %v13934_v19  ;;  %vm4909_vm0 = vmand %vm4389_vm6, %vm4653_vm11  ;;  %vm4466_vm6 = vcmp.lt.s32.totalorder %v12970_v29, %v10958_v62 }
 0x673   : > { %vm4941_vm10 = vmand %vm4421_vm12, %vm4685_vm15  ;;  %vm4498_vm12 = vcmp.lt.s32.totalorder %v12970_v29, %v10961_v63 }
 0x674   : > { %vm8582_vm4 = vmpackc.low %vm4941_vm10, %vm4909_vm0 }
 0x675   : > { %8583 = vmatpush1.bf16.msk.msra.mxu0 %vm8582_vm4, %v13934_v19  ;;  %7178 = vmatmul.mubr.msk.f32.vlgmr.msra.gmra.mrb[26].mxu1 %vm14256_vm14, %v14100_v58  ;;  %vm4720_vm2 = vmand %vm4200_vm8, %vm4464_vm1  ;;  %vm4199_vm8 = vcmp.ge.s32.totalorder %v12982_v30, %v10952_v60  ;;  %vm4463_vm1 = vcmp.lt.s32.totalorder %v12982_v30, %v10958_v62 }
 0x676   : > { %vm4752_vm11 = vmand %vm4232_vm3, %vm4496_vm5  ;;  %5988 = vmatprep.mubr.f32.mxu1 %v13957_v24  ;;  %vm4231_vm3 = vcmp.ge.s32.totalorder %v12982_v30, %v10949_v59  ;;  %vm4495_vm5 = vcmp.lt.s32.totalorder %v12982_v30, %v10961_v63 }
 0x677   : > { %vm8584_vm15 = vmpackc.low %vm4752_vm11, %vm4720_vm2  ;;  %vm4201_vm2 = vcmp.ge.s32.totalorder %v12997_v31, %v10952_v60  ;;  %vm4233_vm11 = vcmp.ge.s32.totalorder %v12997_v31, %v10949_v59 }
 0x678   : > { %vm14257_vm9 = vmmov %vm14256_vm14  ;;  %8585 = vmatprep.subr.msk.bf16.mxu1 %vm8584_vm15, %v13934_v19 }
 0x679   : > { %7195 = vmatmul.mubr.msk.f32.vlgmr.msra.gmra.mrb[26].mxu0 %vm14257_vm9, %v14100_v58  ;;  %vm4722_vm0 = vmand %vm4202_vm7, %vm4466_vm6  ;;  %vm4465_vm7 = vcmp.lt.s32.totalorder %v12997_v31, %v10958_v62  ;;  %vm4264_vm9 = vcmp.ge.s32.totalorder %v12958_v26, %v14068_v51 }
 0x67a   : > { %vm4754_vm10 = vmand %vm4234_vm13, %vm4498_vm12  ;;  %6059 = vmatprep.mubr.f32.mxu0 %v13957_v24  ;;  %vm4497_vm13 = vcmp.lt.s32.totalorder %v12997_v31, %v10961_v63 }
 0x67b   : > { %vm8600_vm4 = vmpackc.low %vm4754_vm10, %vm4722_vm0  ;;  %vm4528_vm0 = vcmp.lt.s32.totalorder %v12958_v26, %v14069_v52  ;;  %vm4560_vm10 = vcmp.lt.s32.totalorder %v12958_v26, %v14079_v45 }
 0x67c   : > { %8601 = vmatprep.subr.msk.bf16.mxu0 %vm8600_vm4, %v13934_v19  ;;  %vm4719_vm14 = vmand %vm4199_vm8, %vm4463_vm1  ;;  %vm4296_vm1 = vcmp.ge.s32.totalorder %v12958_v26, %v14078_v55  ;;  %vm4266_vm4 = vcmp.ge.s32.totalorder %v12970_v29, %v14068_v51 }
 0x67d   : > { %vm4751_vm6 = vmand %vm4231_vm3, %vm4495_vm5 }
 0x67e   : > { %vm8586_vm12 = vmpackc.low %vm4751_vm6, %vm4719_vm14  ;;  %vm4530_vm14 = vcmp.lt.s32.totalorder %v12970_v29, %v14069_v52  ;;  %vm4562_vm6 = vcmp.lt.s32.totalorder %v12970_v29, %v14079_v45 }
 0x67f   : > { %8587 = vmatpush1.bf16.msk.msra.mxu1 %vm8586_vm12, %v13934_v19  ;;  %vm4721_vm15 = vmand %vm4201_vm2, %vm4465_vm7  ;;  %vm4298_vm7 = vcmp.ge.s32.totalorder %v12970_v29, %v14078_v55  ;;  %vm4263_vm12 = vcmp.ge.s32.totalorder %v12982_v30, %v14068_v51 }
 0x680   : > { %vm4753_vm8 = vmand %vm4233_vm11, %vm4497_vm13 }
 0x681   : > { %vm8602_vm3 = vmpackc.low %vm4753_vm8, %vm4721_vm15  ;;  %vm4527_vm15 = vcmp.lt.s32.totalorder %v12982_v30, %v14069_v52  ;;  %vm4559_vm8 = vcmp.lt.s32.totalorder %v12982_v30, %v14079_v45 }
 0x682   : > { %8603 = vmatpush1.bf16.msk.msra.mxu0 %vm8602_vm3, %v13934_v19  ;;  %vm4784_vm5 = vmand %vm4264_vm9, %vm4528_vm0  ;;  %vm4295_vm0 = vcmp.ge.s32.totalorder %v12982_v30, %v14078_v55  ;;  %vm4265_vm3 = vcmp.ge.s32.totalorder %v12997_v31, %v14068_v51 }
 0x683   : > { %vm4816_vm2 = vmand %vm4296_vm1, %vm4560_vm10 }
 0x684   : > { %vm8588_vm11 = vmpackc.low %vm4816_vm2, %vm4784_vm5  ;;  %vm4529_vm5 = vcmp.lt.s32.totalorder %v12997_v31, %v14069_v52  ;;  %vm4561_vm2 = vcmp.lt.s32.totalorder %v12997_v31, %v14079_v45 }
 0x685   : > { %8589 = vmatprep.subr.msk.bf16.mxu1 %vm8588_vm11, %v13934_v19  ;;  %vm4786_vm13 = vmand %vm4266_vm4, %vm4530_vm14  ;;  %vm4297_vm14 = vcmp.ge.s32.totalorder %v12997_v31, %v14078_v55  ;;  %vm4328_vm11 = vcmp.ge.s32.totalorder %v12958_v26, %v11030_v4 }
 0x686   : > { %vm4818_vm9 = vmand %vm4298_vm7, %vm4562_vm6 }
 0x687   : > { %vm8604_vm1 = vmpackc.low %vm4818_vm9, %vm4786_vm13  ;;  %vm4592_vm13 = vcmp.lt.s32.totalorder %v12958_v26, %v11049_v27  ;;  %vm4624_vm9 = vcmp.lt.s32.totalorder %v12958_v26, %v14149_v5 }
 0x688   : > { %8605 = vmatprep.subr.msk.bf16.mxu0 %vm8604_vm1, %v13934_v19  ;;  %vm4783_vm10 = vmand %vm4263_vm12, %vm4527_vm15  ;;  %vm4360_vm15 = vcmp.ge.s32.totalorder %v12958_v26, %v14148_v15  ;;  %vm4330_vm1 = vcmp.ge.s32.totalorder %v12970_v29, %v11030_v4 }
 0x689   : > { %vm4815_vm4 = vmand %vm4295_vm0, %vm4559_vm8 }
 0x68a   : > { %vm8590_vm7 = vmpackc.low %vm4815_vm4, %vm4783_vm10  ;;  %vm4594_vm10 = vcmp.lt.s32.totalorder %v12970_v29, %v11049_v27  ;;  %vm4626_vm4 = vcmp.lt.s32.totalorder %v12970_v29, %v14149_v5 }
 0x68b   : > { %8591 = vmatpush1.bf16.msk.msra.mxu1 %vm8590_vm7, %v13934_v19  ;;  %vm4785_vm6 = vmand %vm4265_vm3, %vm4529_vm5  ;;  %vm4362_vm5 = vcmp.ge.s32.totalorder %v12970_v29, %v14148_v15  ;;  %vm4327_vm7 = vcmp.ge.s32.totalorder %v12982_v30, %v11030_v4 }
 0x68c   : > { %vm4817_vm12 = vmand %vm4297_vm14, %vm4561_vm2 }
 0x68d   : > { %vm8606_vm0 = vmpackc.low %vm4817_vm12, %vm4785_vm6  ;;  %vm4591_vm6 = vcmp.lt.s32.totalorder %v12982_v30, %v11049_v27  ;;  %vm4623_vm12 = vcmp.lt.s32.totalorder %v12982_v30, %v14149_v5 }
 0x68e   : > { %8607 = vmatpush1.bf16.msk.msra.mxu0 %vm8606_vm0, %v13934_v19  ;;  %vm4848_vm8 = vmand %vm4328_vm11, %vm4592_vm13  ;;  %vm4359_vm13 = vcmp.ge.s32.totalorder %v12982_v30, %v14148_v15  ;;  %vm4329_vm0 = vcmp.ge.s32.totalorder %v12997_v31, %v11030_v4 }
 0x68f   : > { %vm4880_vm3 = vmand %vm4360_vm15, %vm4624_vm9 }
 0x690   : > { %vm8592_vm14 = vmpackc.low %vm4880_vm3, %vm4848_vm8  ;;  %vm4593_vm8 = vcmp.lt.s32.totalorder %v12997_v31, %v11049_v27  ;;  %vm4625_vm3 = vcmp.lt.s32.totalorder %v12997_v31, %v14149_v5 }
 0x691   : > { %8593 = vmatprep.subr.msk.bf16.mxu1 %vm8592_vm14, %v13934_v19  ;;  %vm4850_vm2 = vmand %vm4330_vm1, %vm4594_vm10  ;;  %vm4361_vm10 = vcmp.ge.s32.totalorder %v12997_v31, %v14148_v15  ;;  %vm4392_vm14 = vcmp.ge.s32.totalorder %v12958_v26, %v11078_v8 }
 0x692   : > { %vm4882_vm11 = vmand %vm4362_vm5, %vm4626_vm4 }
 0x693   : > { %vm8608_vm15 = vmpackc.low %vm4882_vm11, %vm4850_vm2  ;;  %vm4656_vm2 = vcmp.lt.s32.totalorder %v12958_v26, %v11097_v35  ;;  %vm4688_vm11 = vcmp.lt.s32.totalorder %v12958_v26, %v11105_v36 }
 0x694   : > { %8609 = vmatprep.subr.msk.bf16.mxu0 %vm8608_vm15, %v13934_v19  ;;  %vm4847_vm9 = vmand %vm4327_vm7, %vm4591_vm6  ;;  %vm4424_vm6 = vcmp.ge.s32.totalorder %v12958_v26, %v11085_v9  ;;  %vm4394_vm15 = vcmp.ge.s32.totalorder %v12970_v29, %v11078_v8  ;;  %v8750_v26 = vld [vmem:[%s9010_s15 + $0x80] sm:$0xff] }
 0x695   : > { %vm4879_vm1 = vmand %vm4359_vm13, %vm4623_vm12 }
 0x696   : > { %vm8594_vm5 = vmpackc.low %vm4879_vm1, %vm4847_vm9  ;;  %vm4658_vm9 = vcmp.lt.s32.totalorder %v12970_v29, %v11097_v35  ;;  %vm4690_vm1 = vcmp.lt.s32.totalorder %v12970_v29, %v11105_v36 }
 0x697   : > { %8595 = vmatpush1.bf16.msk.msra.mxu1 %vm8594_vm5, %v13934_v19  ;;  %vm4849_vm4 = vmand %vm4329_vm0, %vm4593_vm8  ;;  %vm4426_vm8 = vcmp.ge.s32.totalorder %v12970_v29, %v11085_v9  ;;  %vm4391_vm5 = vcmp.ge.s32.totalorder %v12982_v30, %v11078_v8 }
 0x698   : > { %vm4881_vm7 = vmand %vm4361_vm10, %vm4625_vm3 }
 0x699   : > { %vm8610_vm13 = vmpackc.low %vm4881_vm7, %vm4849_vm4  ;;  %vm4655_vm4 = vcmp.lt.s32.totalorder %v12982_v30, %v11097_v35  ;;  %vm4687_vm7 = vcmp.lt.s32.totalorder %v12982_v30, %v11105_v36 }
 0x69a   : > { %8611 = vmatpush1.bf16.msk.msra.mxu0 %vm8610_vm13, %v13934_v19  ;;  %vm4912_vm12 = vmand %vm4392_vm14, %vm4656_vm2  ;;  %vm4423_vm2 = vcmp.ge.s32.totalorder %v12982_v30, %v11085_v9  ;;  %vm4393_vm13 = vcmp.ge.s32.totalorder %v12997_v31, %v11078_v8 }
 0x69b   : > { %vm4944_vm0 = vmand %vm4424_vm6, %vm4688_vm11 }
 0x69c   : > { %vm8596_vm10 = vmpackc.low %vm4944_vm0, %vm4912_vm12  ;;  %vm4657_vm12 = vcmp.lt.s32.totalorder %v12997_v31, %v11097_v35  ;;  %vm4689_vm0 = vcmp.lt.s32.totalorder %v12997_v31, %v11105_v36 }
 0x69d   : > { %8597 = vmatprep.subr.msk.bf16.mxu1 %vm8596_vm10, %v13934_v19  ;;  %vm4914_vm3 = vmand %vm4394_vm15, %vm4658_vm9  ;;  %vm4425_vm9 = vcmp.ge.s32.totalorder %v12997_v31, %v11085_v9  ;;  %vm4204_vm10 = vcmp.ge.s32.totalorder %v13120_v38, %v10952_v60  ;;  %v8751_v31 = vld [vmem:[%s9010_s15 + $0x88] sm:$0xff] }
 0x69e   : > { %vm4946_vm14 = vmand %vm4426_vm8, %vm4690_vm1 }
 0x69f   : > { %vm8612_vm6 = vmpackc.low %vm4946_vm14, %vm4914_vm3  ;;  %vm4468_vm3 = vcmp.lt.s32.totalorder %v13120_v38, %v10958_v62  ;;  %vm4500_vm14 = vcmp.lt.s32.totalorder %v13120_v38, %v10961_v63 }
 0x6a0   : > { %8613 = vmatprep.subr.msk.bf16.mxu0 %vm8612_vm6, %v13934_v19  ;;  %vm4911_vm11 = vmand %vm4391_vm5, %vm4655_vm4  ;;  %vm4236_vm4 = vcmp.ge.s32.totalorder %v13120_v38, %v10949_v59 }
 0x6a1   : > { %vm4943_vm15 = vmand %vm4423_vm2, %vm4687_vm7  ;;  %vm14258_vm7 = vcmask 523264  }
 0x6a2   : > { %vm8598_vm8 = vmpackc.low %vm4943_vm15, %vm4911_vm11  ;;  %vm4206_vm11 = vcmp.ge.s32.totalorder %v13132_v32, %v10952_v60  ;;  %vm4238_vm15 = vcmp.ge.s32.totalorder %v13132_v32, %v10949_v59 }
 0x6a3   : > { %8599 = vmatpush1.bf16.msk.msra.mxu1 %vm8598_vm8, %v13934_v19  ;;  %vm4913_vm1 = vmand %vm4393_vm13, %vm4657_vm12  ;;  %vm4470_vm13 = vcmp.lt.s32.totalorder %v13132_v32, %v10958_v62 }
 0x6a4   : > { %vm4945_vm5 = vmand %vm4425_vm9, %vm4689_vm0  ;;  %vm4502_vm9 = vcmp.lt.s32.totalorder %v13132_v32, %v10961_v63 }
 0x6a5   : > { %vm8614_vm2 = vmpackc.low %vm4945_vm5, %vm4913_vm1 }
 0x6a6   : > { %8615 = vmatpush1.bf16.msk.msra.mxu0 %vm8614_vm2, %v13934_v19  ;;  %7212 = vmatmul.mubr.msk.f32.vlgmr.msra.gmra.mrb[28].mxu1 %vm14258_vm7, %v14100_v58  ;;  %vm4724_vm6 = vmand %vm4204_vm10, %vm4468_vm3  ;;  %vm4203_vm10 = vcmp.ge.s32.totalorder %v13144_v21, %v10952_v60  ;;  %vm4467_vm3 = vcmp.lt.s32.totalorder %v13144_v21, %v10958_v62 }
 0x6a7   : > { %vm4756_vm12 = vmand %vm4236_vm4, %vm4500_vm14  ;;  %6130 = vmatprep.mubr.f32.mxu1 %v13957_v24  ;;  %vm4235_vm4 = vcmp.ge.s32.totalorder %v13144_v21, %v10949_v59  ;;  %vm4499_vm14 = vcmp.lt.s32.totalorder %v13144_v21, %v10961_v63 }
 0x6a8   : > { %vm8616_vm0 = vmpackc.low %vm4756_vm12, %vm4724_vm6  ;;  %vm4205_vm6 = vcmp.ge.s32.totalorder %v13159_v33, %v10952_v60  ;;  %vm4237_vm12 = vcmp.ge.s32.totalorder %v13159_v33, %v10949_v59 }
 0x6a9   : > { %vm14259_vm8 = vmmov %vm14258_vm7  ;;  %8617 = vmatprep.subr.msk.bf16.mxu1 %vm8616_vm0, %v13934_v19 }
 0x6aa   : > { %7229 = vmatmul.mubr.msk.f32.vlgmr.msra.gmra.mrb[28].mxu0 %vm14259_vm8, %v14100_v58  ;;  %vm4726_vm1 = vmand %vm4206_vm11, %vm4470_vm13  ;;  %vm4469_vm11 = vcmp.lt.s32.totalorder %v13159_v33, %v10958_v62  ;;  %vm4268_vm8 = vcmp.ge.s32.totalorder %v13120_v38, %v14068_v51 }
 0x6ab   : > { %vm4758_vm5 = vmand %vm4238_vm15, %vm4502_vm9  ;;  %6201 = vmatprep.mubr.f32.mxu0 %v13957_v24  ;;  %vm4501_vm15 = vcmp.lt.s32.totalorder %v13159_v33, %v10961_v63 }
 0x6ac   : > { %vm8632_vm2 = vmpackc.low %vm4758_vm5, %vm4726_vm1  ;;  %vm4532_vm1 = vcmp.lt.s32.totalorder %v13120_v38, %v14069_v52  ;;  %vm4564_vm5 = vcmp.lt.s32.totalorder %v13120_v38, %v14079_v45 }
 0x6ad   : > { %8633 = vmatprep.subr.msk.bf16.mxu0 %vm8632_vm2, %v13934_v19  ;;  %vm4723_vm7 = vmand %vm4203_vm10, %vm4467_vm3  ;;  %vm4300_vm3 = vcmp.ge.s32.totalorder %v13120_v38, %v14078_v55  ;;  %vm4270_vm2 = vcmp.ge.s32.totalorder %v13132_v32, %v14068_v51 }
 0x6ae   : > { %vm4755_vm13 = vmand %vm4235_vm4, %vm4499_vm14 }
 0x6af   : > { %vm8618_vm9 = vmpackc.low %vm4755_vm13, %vm4723_vm7  ;;  %vm4534_vm7 = vcmp.lt.s32.totalorder %v13132_v32, %v14069_v52  ;;  %vm4566_vm13 = vcmp.lt.s32.totalorder %v13132_v32, %v14079_v45 }
 0x6b0   : > { %8619 = vmatpush1.bf16.msk.msra.mxu1 %vm8618_vm9, %v13934_v19  ;;  %vm4725_vm0 = vmand %vm4205_vm6, %vm4469_vm11  ;;  %vm4302_vm11 = vcmp.ge.s32.totalorder %v13132_v32, %v14078_v55  ;;  %vm4267_vm9 = vcmp.ge.s32.totalorder %v13144_v21, %v14068_v51 }
 0x6b1   : > { %vm4757_vm10 = vmand %vm4237_vm12, %vm4501_vm15 }
 0x6b2   : > { %vm8634_vm4 = vmpackc.low %vm4757_vm10, %vm4725_vm0  ;;  %vm4531_vm0 = vcmp.lt.s32.totalorder %v13144_v21, %v14069_v52  ;;  %vm4563_vm10 = vcmp.lt.s32.totalorder %v13144_v21, %v14079_v45 }
 0x6b3   : > { %8635 = vmatpush1.bf16.msk.msra.mxu0 %vm8634_vm4, %v13934_v19  ;;  %vm4788_vm14 = vmand %vm4268_vm8, %vm4532_vm1  ;;  %vm4299_vm1 = vcmp.ge.s32.totalorder %v13144_v21, %v14078_v55  ;;  %vm4269_vm4 = vcmp.ge.s32.totalorder %v13159_v33, %v14068_v51 }
 0x6b4   : > { %vm4820_vm6 = vmand %vm4300_vm3, %vm4564_vm5 }
 0x6b5   : > { %vm8620_vm12 = vmpackc.low %vm4820_vm6, %vm4788_vm14  ;;  %vm4533_vm14 = vcmp.lt.s32.totalorder %v13159_v33, %v14069_v52  ;;  %vm4565_vm6 = vcmp.lt.s32.totalorder %v13159_v33, %v14079_v45 }
 0x6b6   : > { %8621 = vmatprep.subr.msk.bf16.mxu1 %vm8620_vm12, %v13934_v19  ;;  %vm4790_vm15 = vmand %vm4270_vm2, %vm4534_vm7  ;;  %vm4301_vm7 = vcmp.ge.s32.totalorder %v13159_v33, %v14078_v55  ;;  %vm4332_vm12 = vcmp.ge.s32.totalorder %v13120_v38, %v11030_v4 }
 0x6b7   : > { %vm4822_vm8 = vmand %vm4302_vm11, %vm4566_vm13 }
 0x6b8   : > { %vm8636_vm3 = vmpackc.low %vm4822_vm8, %vm4790_vm15  ;;  %vm4596_vm15 = vcmp.lt.s32.totalorder %v13120_v38, %v11049_v27  ;;  %vm4628_vm8 = vcmp.lt.s32.totalorder %v13120_v38, %v14149_v5 }
 0x6b9   : > { %8637 = vmatprep.subr.msk.bf16.mxu0 %vm8636_vm3, %v13934_v19  ;;  %vm4787_vm5 = vmand %vm4267_vm9, %vm4531_vm0  ;;  %vm4364_vm0 = vcmp.ge.s32.totalorder %v13120_v38, %v14148_v15  ;;  %vm4334_vm3 = vcmp.ge.s32.totalorder %v13132_v32, %v11030_v4 }
 0x6ba   : > { %vm4819_vm2 = vmand %vm4299_vm1, %vm4563_vm10 }
 0x6bb   : > { %vm8622_vm11 = vmpackc.low %vm4819_vm2, %vm4787_vm5  ;;  %vm4598_vm5 = vcmp.lt.s32.totalorder %v13132_v32, %v11049_v27  ;;  %vm4630_vm2 = vcmp.lt.s32.totalorder %v13132_v32, %v14149_v5 }
 0x6bc   : > { %8623 = vmatpush1.bf16.msk.msra.mxu1 %vm8622_vm11, %v13934_v19  ;;  %vm4789_vm13 = vmand %vm4269_vm4, %vm4533_vm14  ;;  %vm4366_vm14 = vcmp.ge.s32.totalorder %v13132_v32, %v14148_v15  ;;  %vm4331_vm11 = vcmp.ge.s32.totalorder %v13144_v21, %v11030_v4 }
 0x6bd   : > { %vm4821_vm9 = vmand %vm4301_vm7, %vm4565_vm6 }
 0x6be   : > { %vm8638_vm1 = vmpackc.low %vm4821_vm9, %vm4789_vm13  ;;  %vm4595_vm13 = vcmp.lt.s32.totalorder %v13144_v21, %v11049_v27  ;;  %vm4627_vm9 = vcmp.lt.s32.totalorder %v13144_v21, %v14149_v5 }
 0x6bf   : > { %8639 = vmatpush1.bf16.msk.msra.mxu0 %vm8638_vm1, %v13934_v19  ;;  %vm4852_vm10 = vmand %vm4332_vm12, %vm4596_vm15  ;;  %vm4363_vm15 = vcmp.ge.s32.totalorder %v13144_v21, %v14148_v15  ;;  %vm4333_vm1 = vcmp.ge.s32.totalorder %v13159_v33, %v11030_v4 }
 0x6c0   : > { %vm4884_vm4 = vmand %vm4364_vm0, %vm4628_vm8 }
 0x6c1   : > { %vm8624_vm7 = vmpackc.low %vm4884_vm4, %vm4852_vm10  ;;  %vm4597_vm10 = vcmp.lt.s32.totalorder %v13159_v33, %v11049_v27  ;;  %vm4629_vm4 = vcmp.lt.s32.totalorder %v13159_v33, %v14149_v5 }
 0x6c2   : > { %8625 = vmatprep.subr.msk.bf16.mxu1 %vm8624_vm7, %v13934_v19  ;;  %vm4854_vm6 = vmand %vm4334_vm3, %vm4598_vm5  ;;  %vm4365_vm5 = vcmp.ge.s32.totalorder %v13159_v33, %v14148_v15  ;;  %vm4396_vm7 = vcmp.ge.s32.totalorder %v13120_v38, %v11078_v8 }
 0x6c3   : > { %vm4886_vm12 = vmand %vm4366_vm14, %vm4630_vm2 }
 0x6c4   : > { %vm8640_vm0 = vmpackc.low %vm4886_vm12, %vm4854_vm6  ;;  %vm4660_vm6 = vcmp.lt.s32.totalorder %v13120_v38, %v11097_v35  ;;  %vm4692_vm12 = vcmp.lt.s32.totalorder %v13120_v38, %v11105_v36 }
 0x6c5   : > { %8641 = vmatprep.subr.msk.bf16.mxu0 %vm8640_vm0, %v13934_v19  ;;  %vm4851_vm8 = vmand %vm4331_vm11, %vm4595_vm13  ;;  %vm4428_vm13 = vcmp.ge.s32.totalorder %v13120_v38, %v11085_v9  ;;  %vm4398_vm0 = vcmp.ge.s32.totalorder %v13132_v32, %v11078_v8 }
 0x6c6   : > { %vm4883_vm3 = vmand %vm4363_vm15, %vm4627_vm9 }
 0x6c7   : > { %vm8626_vm14 = vmpackc.low %vm4883_vm3, %vm4851_vm8  ;;  %vm4662_vm8 = vcmp.lt.s32.totalorder %v13132_v32, %v11097_v35  ;;  %vm4694_vm3 = vcmp.lt.s32.totalorder %v13132_v32, %v11105_v36 }
 0x6c8   : > { %8627 = vmatpush1.bf16.msk.msra.mxu1 %vm8626_vm14, %v13934_v19  ;;  %vm4853_vm2 = vmand %vm4333_vm1, %vm4597_vm10  ;;  %vm4430_vm10 = vcmp.ge.s32.totalorder %v13132_v32, %v11085_v9  ;;  %vm4395_vm14 = vcmp.ge.s32.totalorder %v13144_v21, %v11078_v8 }
 0x6c9   : > { %vm4885_vm11 = vmand %vm4365_vm5, %vm4629_vm4 }
 0x6ca   : > { %vm8642_vm15 = vmpackc.low %vm4885_vm11, %vm4853_vm2  ;;  %vm4659_vm2 = vcmp.lt.s32.totalorder %v13144_v21, %v11097_v35  ;;  %vm4691_vm11 = vcmp.lt.s32.totalorder %v13144_v21, %v11105_v36 }
 0x6cb   : > { %8643 = vmatpush1.bf16.msk.msra.mxu0 %vm8642_vm15, %v13934_v19  ;;  %vm4916_vm9 = vmand %vm4396_vm7, %vm4660_vm6  ;;  %vm4427_vm6 = vcmp.ge.s32.totalorder %v13144_v21, %v11085_v9  ;;  %vm4397_vm15 = vcmp.ge.s32.totalorder %v13159_v33, %v11078_v8  ;;  %v8752_v21 = vld [vmem:[%s9010_s15 + $0x90] sm:$0xff] }
 0x6cc   : > { %vm4948_vm1 = vmand %vm4428_vm13, %vm4692_vm12 }
 0x6cd   : > { %vm8628_vm5 = vmpackc.low %vm4948_vm1, %vm4916_vm9  ;;  %vm4661_vm9 = vcmp.lt.s32.totalorder %v13159_v33, %v11097_v35  ;;  %vm4693_vm1 = vcmp.lt.s32.totalorder %v13159_v33, %v11105_v36 }
 0x6ce   : > { %8629 = vmatprep.subr.msk.bf16.mxu1 %vm8628_vm5, %v13934_v19  ;;  %vm4918_vm4 = vmand %vm4398_vm0, %vm4662_vm8  ;;  %vm4429_vm8 = vcmp.ge.s32.totalorder %v13159_v33, %v11085_v9  ;;  %vm4208_vm5 = vcmp.ge.s32.totalorder %v13282_v37, %v10952_v60 }
 0x6cf   : > { %vm4950_vm7 = vmand %vm4430_vm10, %vm4694_vm3 }
 0x6d0   : > { %vm8644_vm13 = vmpackc.low %vm4950_vm7, %vm4918_vm4  ;;  %vm4472_vm4 = vcmp.lt.s32.totalorder %v13282_v37, %v10958_v62  ;;  %vm4504_vm7 = vcmp.lt.s32.totalorder %v13282_v37, %v10961_v63 }
 0x6d1   : > { %8645 = vmatprep.subr.msk.bf16.mxu0 %vm8644_vm13, %v13934_v19  ;;  %vm4915_vm12 = vmand %vm4395_vm14, %vm4659_vm2  ;;  %vm4240_vm2 = vcmp.ge.s32.totalorder %v13282_v37, %v10949_v59 }
 0x6d2   : > { %vm4947_vm0 = vmand %vm4427_vm6, %vm4691_vm11  ;;  %vm14260_vm11 = vcmask 523264  }
 0x6d3   : > { %vm8630_vm10 = vmpackc.low %vm4947_vm0, %vm4915_vm12  ;;  %vm4210_vm12 = vcmp.ge.s32.totalorder %v13294_v39, %v10952_v60  ;;  %vm4242_vm0 = vcmp.ge.s32.totalorder %v13294_v39, %v10949_v59 }
 0x6d4   : > { %8631 = vmatpush1.bf16.msk.msra.mxu1 %vm8630_vm10, %v13934_v19  ;;  %vm4917_vm3 = vmand %vm4397_vm15, %vm4661_vm9  ;;  %vm4474_vm15 = vcmp.lt.s32.totalorder %v13294_v39, %v10958_v62 }
 0x6d5   : > { %vm4949_vm14 = vmand %vm4429_vm8, %vm4693_vm1  ;;  %vm4506_vm8 = vcmp.lt.s32.totalorder %v13294_v39, %v10961_v63 }
 0x6d6   : > { %vm8646_vm6 = vmpackc.low %vm4949_vm14, %vm4917_vm3 }
 0x6d7   : > { %8647 = vmatpush1.bf16.msk.msra.mxu0 %vm8646_vm6, %v13934_v19  ;;  %7246 = vmatmul.mubr.msk.f32.vlgmr.msra.gmra.mrb[30].mxu1 %vm14260_vm11, %v14100_v58  ;;  %vm4728_vm13 = vmand %vm4208_vm5, %vm4472_vm4  ;;  %vm4207_vm5 = vcmp.ge.s32.totalorder %v13306_v40, %v10952_v60  ;;  %vm4471_vm4 = vcmp.lt.s32.totalorder %v13306_v40, %v10958_v62 }
 0x6d8   : > { %vm4760_vm9 = vmand %vm4240_vm2, %vm4504_vm7  ;;  %6272 = vmatprep.mubr.f32.mxu1 %v13957_v24  ;;  %vm4239_vm2 = vcmp.ge.s32.totalorder %v13306_v40, %v10949_v59  ;;  %vm4503_vm7 = vcmp.lt.s32.totalorder %v13306_v40, %v10961_v63 }
 0x6d9   : > { %vm8648_vm1 = vmpackc.low %vm4760_vm9, %vm4728_vm13  ;;  %vm4209_vm13 = vcmp.ge.s32.totalorder %v13321_v41, %v10952_v60  ;;  %vm4241_vm9 = vcmp.ge.s32.totalorder %v13321_v41, %v10949_v59  ;;  %v5280_v59 = vpop.f32.mrb[18].mxu1  ;;  %v5351_v60 = vpop.f32.mrb[18].mxu0 }
 0x6da   : > { %vm14261_vm10 = vmmov %vm14260_vm11  ;;  %8649 = vmatprep.subr.msk.bf16.mxu1 %vm8648_vm1, %v13934_v19  ;;  %v5282_v43 = vpop.f32.mrb[19].mxu1  ;;  %v5353_v46 = vpop.f32.mrb[19].mxu0 }
 0x6db   : > { %7263 = vmatmul.mubr.msk.f32.vlgmr.msra.gmra.mrb[30].mxu0 %vm14261_vm10, %v14100_v58  ;;  %vm4730_vm3 = vmand %vm4210_vm12, %vm4474_vm15  ;;  %vm4473_vm12 = vcmp.lt.s32.totalorder %v13321_v41, %v10958_v62  ;;  %vm4272_vm10 = vcmp.ge.s32.totalorder %v13282_v37, %v14068_v51  ;;  %v8734_v62 = vld [vmem:[%s9010_s15] sm:$0xff]  ;;  %v6351_v49 = vmul.f32 %v8736_v48, %v5282_v43  ;;  %v8757_v48 = vld [vmem:[%s9010_s15 + $0xb8] sm:$0xff] }
 0x6dc   : > { %vm4762_vm14 = vmand %vm4242_vm0, %vm4506_vm8  ;;  %6343 = vmatprep.mubr.f32.mxu0 %v13957_v24  ;;  %vm4505_vm0 = vcmp.lt.s32.totalorder %v13321_v41, %v10961_v63  ;;  %v6350_v63 = vmul.f32 %v8734_v62, %v5280_v59  ;;  %v8735_v24 = vld [vmem:[%s9010_s15 + $0x10] sm:$0xff]  ;;  %v8755_v62 = vld [vmem:[%s9010_s15 + $0xa8] sm:$0xff] }
 0x6dd   : > { %vm8664_vm6 = vmpackc.low %vm4762_vm14, %vm4730_vm3  ;;  %vm4536_vm3 = vcmp.lt.s32.totalorder %v13282_v37, %v14069_v52  ;;  %vm4568_vm14 = vcmp.lt.s32.totalorder %v13282_v37, %v14079_v45  ;;  %v6352_v42 = vmul.f32 %v8735_v24, %v5351_v60  ;;  %6383 = vst [vmem:[%s13412_s9 + $0x8] sm:$0xff] %v6351_v49 }
 0x6de   : > { %8665 = vmatprep.subr.msk.bf16.mxu0 %vm8664_vm6, %v13934_v19  ;;  %vm4727_vm11 = vmand %vm4207_vm5, %vm4471_vm4  ;;  %vm4304_vm4 = vcmp.ge.s32.totalorder %v13282_v37, %v14078_v55  ;;  %vm4274_vm6 = vcmp.ge.s32.totalorder %v13294_v39, %v14068_v51  ;;  %6382 = vst [vmem:[%s13412_s9] sm:$0xff] %v6350_v63 }
 0x6df   : > { %vm4759_vm15 = vmand %vm4239_vm2, %vm4503_vm7  ;;  %6384 = vst [vmem:[%s13412_s9 + $0x10] sm:$0xff] %v6352_v42  ;;  %v8756_v42 = vld [vmem:[%s9010_s15 + $0xb0] sm:$0xff] }
 0x6e0   : > { %vm8650_vm8 = vmpackc.low %vm4759_vm15, %vm4727_vm11  ;;  %vm4538_vm11 = vcmp.lt.s32.totalorder %v13294_v39, %v14069_v52  ;;  %vm4570_vm15 = vcmp.lt.s32.totalorder %v13294_v39, %v14079_v45 }
 0x6e1   : > { %8651 = vmatpush1.bf16.msk.msra.mxu1 %vm8650_vm8, %v13934_v19  ;;  %vm4729_vm1 = vmand %vm4209_vm13, %vm4473_vm12  ;;  %vm4306_vm12 = vcmp.ge.s32.totalorder %v13294_v39, %v14078_v55  ;;  %vm4271_vm8 = vcmp.ge.s32.totalorder %v13306_v40, %v14068_v51 }
 0x6e2   : > { %vm4761_vm5 = vmand %vm4241_vm9, %vm4505_vm0 }
 0x6e3   : > { %vm8666_vm2 = vmpackc.low %vm4761_vm5, %vm4729_vm1  ;;  %vm4535_vm1 = vcmp.lt.s32.totalorder %v13306_v40, %v14069_v52  ;;  %vm4567_vm5 = vcmp.lt.s32.totalorder %v13306_v40, %v14079_v45 }
 0x6e4   : > { %8667 = vmatpush1.bf16.msk.msra.mxu0 %vm8666_vm2, %v13934_v19  ;;  %vm4792_vm7 = vmand %vm4272_vm10, %vm4536_vm3  ;;  %vm4303_vm3 = vcmp.ge.s32.totalorder %v13306_v40, %v14078_v55  ;;  %vm4273_vm2 = vcmp.ge.s32.totalorder %v13321_v41, %v14068_v51  ;;  %v6353_v51 = vmul.f32 %v8737_v50, %v5353_v46 }
 0x6e5   : > { %vm4824_vm13 = vmand %vm4304_vm4, %vm4568_vm14 }
 0x6e6   : > { %vm8652_vm9 = vmpackc.low %vm4824_vm13, %vm4792_vm7  ;;  %vm4537_vm7 = vcmp.lt.s32.totalorder %v13321_v41, %v14069_v52  ;;  %vm4569_vm13 = vcmp.lt.s32.totalorder %v13321_v41, %v14079_v45  ;;  %6385 = vst [vmem:[%s13412_s9 + $0x18] sm:$0xff] %v6353_v51  ;;  %v5493_v52 = vpop.f32.mrb[20].mxu0  ;;  %v8739_v45 = vld [vmem:[%s9010_s15 + $0x30] sm:$0xff]  ;;  %v8758_v51 = vld [vmem:[%s9010_s15 + $0xc0] sm:$0xff] }
 0x6e7   : > { %8653 = vmatprep.subr.msk.bf16.mxu1 %vm8652_vm9, %v13934_v19  ;;  %vm4794_vm0 = vmand %vm4274_vm6, %vm4538_vm11  ;;  %vm4305_vm11 = vcmp.ge.s32.totalorder %v13321_v41, %v14078_v55  ;;  %vm4336_vm9 = vcmp.ge.s32.totalorder %v13282_v37, %v11030_v4  ;;  %v6356_v56 = vmul.f32 %v8739_v45, %v5493_v52  ;;  %v5495_v61 = vpop.f32.mrb[21].mxu0  ;;  %v8759_v52 = vld [vmem:[%s9010_s15 + $0xc8] sm:$0xff]  ;;  %v8760_v45 = vld [vmem:[%s9010_s15 + $0xd0] sm:$0xff] }
 0x6e8   : > { %vm4826_vm10 = vmand %vm4306_vm12, %vm4570_vm15  ;;  %v6357_v14 = vmul.f32 %v8741_v12, %v5495_v61  ;;  %v8761_v61 = vld [vmem:[%s9010_s15 + $0xd8] sm:$0xff] }
 0x6e9   : > { %vm8668_vm4 = vmpackc.low %vm4826_vm10, %vm4794_vm0  ;;  %vm4600_vm0 = vcmp.lt.s32.totalorder %v13282_v37, %v11049_v27  ;;  %vm4632_vm10 = vcmp.lt.s32.totalorder %v13282_v37, %v14149_v5  ;;  %6388 = vst [vmem:[%s13412_s9 + $0x30] sm:$0xff] %v6356_v56 }
 0x6ea   : > { %8669 = vmatprep.subr.msk.bf16.mxu0 %vm8668_vm4, %v13934_v19  ;;  %vm4791_vm14 = vmand %vm4271_vm8, %vm4535_vm1  ;;  %vm4368_vm1 = vcmp.ge.s32.totalorder %v13282_v37, %v14148_v15  ;;  %vm4338_vm4 = vcmp.ge.s32.totalorder %v13294_v39, %v11030_v4  ;;  %6389 = vst [vmem:[%s13412_s9 + $0x38] sm:$0xff] %v6357_v14 }
 0x6eb   : > { %vm4823_vm6 = vmand %vm4303_vm3, %vm4567_vm5 }
 0x6ec   : > { %vm8654_vm12 = vmpackc.low %vm4823_vm6, %vm4791_vm14  ;;  %vm4602_vm14 = vcmp.lt.s32.totalorder %v13294_v39, %v11049_v27  ;;  %vm4634_vm6 = vcmp.lt.s32.totalorder %v13294_v39, %v14149_v5 }
 0x6ed   : > { %8655 = vmatpush1.bf16.msk.msra.mxu1 %vm8654_vm12, %v13934_v19  ;;  %vm13381_vm15 = vmand %vm4273_vm2, %vm4537_vm7  ;;  %vm4370_vm7 = vcmp.ge.s32.totalorder %v13294_v39, %v14148_v15  ;;  %vm4335_vm12 = vcmp.ge.s32.totalorder %v13306_v40, %v11030_v4 }
 0x6ee   : > { %vm4825_vm8 = vmand %vm4305_vm11, %vm4569_vm13 }
 0x6ef   : > { %vm8670_vm3 = vmpackc.low %vm4825_vm8, %vm13381_vm15  ;;  %vm4599_vm15 = vcmp.lt.s32.totalorder %v13306_v40, %v11049_v27  ;;  %vm4631_vm8 = vcmp.lt.s32.totalorder %v13306_v40, %v14149_v5 }
 0x6f0   : > { %8671 = vmatpush1.bf16.msk.msra.mxu0 %vm8670_vm3, %v13934_v19  ;;  %vm4856_vm5 = vmand %vm4336_vm9, %vm4600_vm0  ;;  %vm4367_vm0 = vcmp.ge.s32.totalorder %v13306_v40, %v14148_v15  ;;  %vm4337_vm3 = vcmp.ge.s32.totalorder %v13321_v41, %v11030_v4 }
 0x6f1   : > { %vm4888_vm2 = vmand %vm4368_vm1, %vm4632_vm10 }
 0x6f2   : > { %vm8656_vm11 = vmpackc.low %vm4888_vm2, %vm4856_vm5  ;;  %vm4601_vm5 = vcmp.lt.s32.totalorder %v13321_v41, %v11049_v27  ;;  %vm4633_vm2 = vcmp.lt.s32.totalorder %v13321_v41, %v14149_v5  ;;  %v5422_v27 = vpop.f32.mrb[20].mxu1 }
 0x6f3   : > { %8657 = vmatprep.subr.msk.bf16.mxu1 %vm8656_vm11, %v13934_v19  ;;  %vm4858_vm13 = vmand %vm4338_vm4, %vm4602_vm14  ;;  %vm4369_vm14 = vcmp.ge.s32.totalorder %v13321_v41, %v14148_v15  ;;  %vm4400_vm11 = vcmp.ge.s32.totalorder %v13282_v37, %v11078_v8  ;;  %v6354_v55 = vmul.f32 %v8738_v53, %v5422_v27  ;;  %v5424_v57 = vpop.f32.mrb[21].mxu1  ;;  %v8743_v15 = vld [vmem:[%s9010_s15 + $0x50] sm:$0xff] }
 0x6f4   : > { %vm4890_vm9 = vmand %vm4370_vm7, %vm4634_vm6  ;;  %v6355_v10 = vmul.f32 %v8740_v3, %v5424_v57 }
 0x6f5   : > { %vm8672_vm1 = vmpackc.low %vm4890_vm9, %vm4858_vm13  ;;  %vm4664_vm13 = vcmp.lt.s32.totalorder %v13282_v37, %v11097_v35  ;;  %vm4696_vm9 = vcmp.lt.s32.totalorder %v13282_v37, %v11105_v36  ;;  %6386 = vst [vmem:[%s13412_s9 + $0x20] sm:$0xff] %v6354_v55 }
 0x6f6   : > { %8673 = vmatprep.subr.msk.bf16.mxu0 %vm8672_vm1, %v13934_v19  ;;  %vm4855_vm10 = vmand %vm4335_vm12, %vm4599_vm15  ;;  %vm4432_vm15 = vcmp.ge.s32.totalorder %v13282_v37, %v11085_v9  ;;  %vm4402_vm1 = vcmp.ge.s32.totalorder %v13294_v39, %v11078_v8  ;;  %6387 = vst [vmem:[%s13412_s9 + $0x28] sm:$0xff] %v6355_v10  ;;  %v8762_v10 = vld [vmem:[%s9010_s15 + $0xe0] sm:$0xff] }
 0x6f7   : > { %vm4887_vm4 = vmand %vm4367_vm0, %vm4631_vm8 }
 0x6f8   : > { %vm8658_vm7 = vmpackc.low %vm4887_vm4, %vm4855_vm10  ;;  %vm4666_vm10 = vcmp.lt.s32.totalorder %v13294_v39, %v11097_v35  ;;  %vm4698_vm4 = vcmp.lt.s32.totalorder %v13294_v39, %v11105_v36 }
 0x6f9   : > { %8659 = vmatpush1.bf16.msk.msra.mxu1 %vm8658_vm7, %v13934_v19  ;;  %vm4857_vm6 = vmand %vm4337_vm3, %vm4601_vm5  ;;  %vm4434_vm5 = vcmp.ge.s32.totalorder %v13294_v39, %v11085_v9  ;;  %vm4399_vm7 = vcmp.ge.s32.totalorder %v13306_v40, %v11078_v8  ;;  %v8753_v39 = vld [vmem:[%s9010_s15 + $0x98] sm:$0xff] }
 0x6fa   : > { %vm4889_vm12 = vmand %vm4369_vm14, %vm4633_vm2 }
 0x6fb   : > { %vm8674_vm0 = vmpackc.low %vm4889_vm12, %vm4857_vm6  ;;  %vm4663_vm6 = vcmp.lt.s32.totalorder %v13306_v40, %v11097_v35  ;;  %vm4695_vm12 = vcmp.lt.s32.totalorder %v13306_v40, %v11105_v36 }
 0x6fc   : > { %8675 = vmatpush1.bf16.msk.msra.mxu0 %vm8674_vm0, %v13934_v19  ;;  %vm13456_vm8 = vmand %vm4400_vm11, %vm4664_vm13  ;;  %vm4431_vm13 = vcmp.ge.s32.totalorder %v13306_v40, %v11085_v9  ;;  %vm4401_vm0 = vcmp.ge.s32.totalorder %v13321_v41, %v11078_v8 }
 0x6fd   : > { %vm4952_vm3 = vmand %vm4432_vm15, %vm4696_vm9 }
 0x6fe   : > { %vm8660_vm14 = vmpackc.low %vm4952_vm3, %vm13456_vm8  ;;  %vm4665_vm8 = vcmp.lt.s32.totalorder %v13321_v41, %v11097_v35  ;;  %vm4697_vm3 = vcmp.lt.s32.totalorder %v13321_v41, %v11105_v36  ;;  %v5564_v8 = vpop.f32.mrb[22].mxu1  ;;  %v8742_v35 = vld [vmem:[%s9010_s15 + $0x40] sm:$0xff] }
 0x6ff   : > { %8661 = vmatprep.subr.msk.bf16.mxu1 %vm8660_vm14, %v13934_v19  ;;  %vm13476_vm2 = vmand %vm4402_vm1, %vm4666_vm10  ;;  %vm4433_vm10 = vcmp.ge.s32.totalorder %v13321_v41, %v11085_v9  ;;  %v6358_v36 = vmul.f32 %v8742_v35, %v5564_v8  ;;  %v5566_v13 = vpop.f32.mrb[23].mxu1  ;;  %v8763_v8 = vld [vmem:[%s9010_s15 + $0xe8] sm:$0xff] }
 0x700   : > { %vm4954_vm11 = vmand %vm4434_vm5, %vm4698_vm4  ;;  %v5635_v9 = vpop.f32.mrb[22].mxu0 }
 0x701   : > { %vm8676_vm15 = vmpackc.low %vm4954_vm11, %vm13476_vm2  ;;  %v6360_v5 = vmul.f32 %v8743_v15, %v5635_v9  ;;  %v5637_v34 = vpop.f32.mrb[23].mxu0  ;;  %6390 = vst [vmem:[%s13412_s9 + $0x40] sm:$0xff] %v6358_v36  ;;  %v8764_v36 = vld [vmem:[%s9010_s15 + $0xf0] sm:$0xff] }
 0x702   : > { %8677 = vmatprep.subr.msk.bf16.mxu0 %vm8676_vm15, %v13934_v19  ;;  %vm4919_vm9 = vmand %vm4399_vm7, %vm4663_vm6  ;;  %vm14268_vm7 = vcmask 523264   ;;  %v6361_v20 = vmul.f32 %v8745_v11, %v5637_v34 }
 0x703   : > { %vm4951_vm1 = vmand %vm4431_vm13, %vm4695_vm12  ;;  %6392 = vst [vmem:[%s13412_s9 + $0x50] sm:$0xff] %v6360_v5 }
 0x704   : > { %vm8662_vm5 = vmpackc.low %vm4951_vm1, %vm4919_vm9  ;;  %6393 = vst [vmem:[%s13412_s9 + $0x58] sm:$0xff] %v6361_v20 }
 0x705   : > { %8663 = vmatpush1.bf16.msk.msra.mxu1 %vm8662_vm5, %v13934_v19  ;;  %vm4921_vm4 = vmand %vm4401_vm0, %vm4665_vm8 }
 0x706   : > { %vm4953_vm14 = vmand %vm4433_vm10, %vm4697_vm3 }
 0x707   : > { %vm8678_vm2 = vmpackc.low %vm4953_vm14, %vm4921_vm4 }
 0x708   : > { %8679 = vmatpush1.bf16.msk.msra.mxu0 %vm8678_vm2, %v13934_v19  ;;  %7280 = vmatmul.mubr.msk.f32.vlgmr.msra.gmra.mrb[32].mxu1 %vm14268_vm7, %v14100_v58  ;;  %vm14269_vm6 = vmmov %vm14268_vm7  ;;  %v8744_v19 = vld [vmem:[%s9010_s15 + $0x48] sm:$0xff] }
 0x709   : > { %v6359_v1 = vmul.f32 %v8744_v19, %v5566_v13  ;;  %v8765_v13 = vld [vmem:[%s9010_s15 + $0xf8] sm:$0xff]  ;;  %s8869_s15 = smov [#allocation5]  }
 0x70a   : > { %s8800_s14 = sshll.u32 %s8869_s15, 4  ;;  %s8801_s14 = int_to_ptr.vmem [resolvable:$false] %s8800_s14 }
 0x70b   : > { %7297 = vmatmul.mubr.msk.f32.vlgmr.msra.gmra.mrb[32].mxu0 %vm14269_vm6, %v14100_v58  ;;  %6391 = vst [vmem:[%s13412_s9 + $0x48] sm:$0xff] %v6359_v1  ;;  %s8802_s16 = scalar_lea.vmem %s8801_s14, 8192  ;;  %p8803_p4 = scmp.lt.s32.totalorder %s13573_s10, %s8801_s14 }
 0x70c   : > { %p8804_p9 = scmp.lt.s32.totalorder %s8802_s16, %s8796_s12 }
 0x70e   : > { %p8805_p1 = por %p8804_p9, %p8803_p4 }
 0x710   : > { %p8806_p3 = pnand %p8805_p1, %p8799_p12 }
 0x717   : > { %v5706_v58 = vpop.f32.mrb[24].mxu1 }
 0x718   : > { %v6362_v54 = vmul.f32 %v8746_v28, %v5706_v58  ;;  %v5708_v16 = vpop.f32.mrb[25].mxu1 }
 0x719   : > { %v6363_v47 = vmul.f32 %v8748_v44, %v5708_v16 }
 0x71a   : > { %6394 = vst [vmem:[%s13412_s9 + $0x60] sm:$0xff] %v6362_v54 }
 0x71b   : > { %v5777_v7 = vpop.f32.mrb[24].mxu0  ;;  %6395 = vst [vmem:[%s13412_s9 + $0x68] sm:$0xff] %v6363_v47 }
 0x71c   : > { %v6364_v18 = vmul.f32 %v8747_v17, %v5777_v7  ;;  %v5779_v22 = vpop.f32.mrb[25].mxu0 }
 0x71d   : > { %v6365_v23 = vmul.f32 %v8749_v6, %v5779_v22 }
 0x71e   : > { %6396 = vst [vmem:[%s13412_s9 + $0x70] sm:$0xff] %v6364_v18 }
 0x71f   : > { %6397 = vst [vmem:[%s13412_s9 + $0x78] sm:$0xff] %v6365_v23 }
 0x748   : > { %v5848_v25 = vpop.f32.mrb[26].mxu1 }
 0x749   : > { %v6366_v29 = vmul.f32 %v8750_v26, %v5848_v25  ;;  %v5850_v30 = vpop.f32.mrb[27].mxu1 }
 0x74a   : > { %v6367_v38 = vmul.f32 %v8751_v31, %v5850_v30 }
 0x74b   : > { %6398 = vst [vmem:[%s13412_s9 + $0x80] sm:$0xff] %v6366_v29 }
 0x74c   : > { %v5919_v32 = vpop.f32.mrb[26].mxu0  ;;  %6399 = vst [vmem:[%s13412_s9 + $0x88] sm:$0xff] %v6367_v38 }
 0x74d   : > { %v6368_v33 = vmul.f32 %v8752_v21, %v5919_v32  ;;  %v5921_v37 = vpop.f32.mrb[27].mxu0 }
 0x74e   : > { %v6369_v40 = vmul.f32 %v8753_v39, %v5921_v37 }
 0x74f   : > { %6400 = vst [vmem:[%s13412_s9 + $0x90] sm:$0xff] %v6368_v33 }
 0x750   : > { %6401 = vst [vmem:[%s13412_s9 + $0x98] sm:$0xff] %v6369_v40 }
 0x779   : > { %v5990_v41 = vpop.f32.mrb[28].mxu1 }
 0x77a   : > { %v6370_v59 = vmul.f32 %v8754_v2, %v5990_v41  ;;  %v5992_v60 = vpop.f32.mrb[29].mxu1 }
 0x77b   : > { %v6371_v63 = vmul.f32 %v8755_v62, %v5992_v60 }
 0x77c   : > { %6402 = vst [vmem:[%s13412_s9 + $0xa0] sm:$0xff] %v6370_v59 }
 0x77d   : > { %v6061_v24 = vpop.f32.mrb[28].mxu0  ;;  %6403 = vst [vmem:[%s13412_s9 + $0xa8] sm:$0xff] %v6371_v63 }
 0x77e   : > { %v6372_v43 = vmul.f32 %v8756_v42, %v6061_v24  ;;  %v6063_v46 = vpop.f32.mrb[29].mxu0 }
 0x77f   : > { %v6373_v49 = vmul.f32 %v8757_v48, %v6063_v46 }
 0x780   : > { %6404 = vst [vmem:[%s13412_s9 + $0xb0] sm:$0xff] %v6372_v43 }
 0x781   : > { %6405 = vst [vmem:[%s13412_s9 + $0xb8] sm:$0xff] %v6373_v49 }
 0x7aa   : > { %v6132_v50 = vpop.f32.mrb[30].mxu1 }
 0x7ab   : > { %v6374_v4 = vmul.f32 %v8758_v51, %v6132_v50  ;;  %v6134_v27 = vpop.f32.mrb[31].mxu1 }
 0x7ac   : > { %v6375_v53 = vmul.f32 %v8759_v52, %v6134_v27 }
 0x7ad   : > { %6406 = vst [vmem:[%s13412_s9 + $0xc0] sm:$0xff] %v6374_v4 }
 0x7ae   : > { %v6203_v55 = vpop.f32.mrb[30].mxu0  ;;  %6407 = vst [vmem:[%s13412_s9 + $0xc8] sm:$0xff] %v6375_v53 }
 0x7af   : > { %v6376_v56 = vmul.f32 %v8760_v45, %v6203_v55  ;;  %v6205_v57 = vpop.f32.mrb[31].mxu0 }
 0x7b0   : > { %v6377_v0 = vmul.f32 %v8761_v61, %v6205_v57 }
 0x7b1   : > { %6408 = vst [vmem:[%s13412_s9 + $0xd0] sm:$0xff] %v6376_v56 }
 0x7b2   : > { %6409 = vst [vmem:[%s13412_s9 + $0xd8] sm:$0xff] %v6377_v0 }
 0x7db   : > { %v6274_v3 = vpop.f32.mrb[32].mxu1 }
 0x7dc   : > { %v6378_v12 = vmul.f32 %v8762_v10, %v6274_v3  ;;  %v6276_v14 = vpop.f32.mrb[33].mxu1 }
 0x7dd   : > { %v6379_v9 = vmul.f32 %v8763_v8, %v6276_v14 }
 0x7de   : > { %6410 = vst [vmem:[%s13412_s9 + $0xe0] sm:$0xff] %v6378_v12  ;;  %v6345_v35 = vpop.f32.mrb[32].mxu0 }
 0x7df   : > { %v6380_v15 = vmul.f32 %v8764_v36, %v6345_v35  ;;  %6411 = vst [vmem:[%s13412_s9 + $0xe8] sm:$0xff] %v6379_v9  ;;  %v6347_v5 = vpop.f32.mrb[33].mxu0 }
 0x7e0   : > { %v6381_v34 = vmul.f32 %v8765_v13, %v6347_v5 }
 0x7e1   : > { %6412 = vst [vmem:[%s13412_s9 + $0xf0] sm:$0xff] %v6380_v15 }
 0x7e2   : > { %6413 = vst [vmem:[%s13412_s9 + $0xf8] sm:$0xff] %v6381_v34 }
 0x7e3   : > { %8809 = shalt.err (!%p8806_p3)
}
 0x7e4   : > { %s8810_s13 = scalar_lea.hbm %s13571_s29, 4096  ;;  %s8814_s28 = scalar_lea.hbm %s13621_s5, 16384 }
 0x7e5   : > { %p8811_p5 = scmp.ne.s32.totalorder %s13571_s29, %s8810_s13  ;;  %p8815_p13 = scmp.lt.u32.totalorder %s13571_s29, %s13621_s5 }
 0x7e6   : > { %p8816_p0 = scmp.lt.u32.totalorder %s8814_s28, %s8810_s13  ;;  %p8818_p6 = scmp.lt.u32.totalorder %s8810_s13, %s13571_s29 }
 0x7e7   : > { %p8812_p7 = pnand %p8811_p5, %p14270_p10 }
 0x7e8   : > { %p8817_p2 = por %p8816_p0, %p8815_p13 }
 0x7e9   : > { %p8813_p8 = pneg %p8812_p7 }
 0x7ea   : > { %p8819_p11 = por %p8818_p6, %p8817_p2 }
 0x7ec   : > { %p8820_p12 = pnand %p8819_p11, %p8813_p8 }
 0x7ee   : > { %8823 = shalt.err (!%p8820_p12)
}
 0x7ef   : > { %8682 = dma.vmem_to_hbm [thread:$0]  (%p14270_p10), %s13573_s10, 4096, %s13571_s29, %s6415_s22  }
 0x7f0 PF: > { %p8693_p4 = scmp.ge.s32.totalorder %s8862_s21, 2  ;;  %s6441_s9 = sand.u32 1, %s8850_s18  }
 0x7f1   : > { %p14271_p9 = scmp.ne.s32.totalorder %s13730_s6, 0  ;;  %s6442_s17 = scalar_lea.sflag [#allocation4], %s6441_s9 }
 0x7f3   : > { %p8689_p1 = pnand %p8693_p4, %p14271_p9 }
 0x7f5   : > { %8845 = dma.done.wait (!%p8689_p1), %s6442_s17, 4096  }
 0x7f6   : > { %8847 = vsyncadd (!%p8689_p1), %s6442_s17, 4294963200  ;;  %p18_p3 = scmp.ge.s32.totalorder %s8925_s24, 6   ;;  %s14272_s18 = smov %s8854_s19 }
 0x7f7   : > { %s14273_s19 = smov %s8858_s20  ;;  %s14274_s20 = smov %s8937_s27 }
 0x7f8   : > { %s14275_s21 = smov %s8925_s24  ;;  %20 = sbr.rel (!%p18_p3) target bundleno = 5 (0x5), region = 85 }
 0x7ff   :  { %6447 = vsyncpa [#allocation3], 1 }
 0x800   :  { %6449 = vsyncpa [#allocation3 + $0x1], 1 }
 0x801   :  { %6450 = vsyncpa [#allocation4], 1 }
 0x802   :  { %6452 = vsyncpa [#allocation4 + $0x1], 1 }

</bundles_post_ra>
